<compile_context>
chip_gen: v5e
topology: v5e:2x2
jax: 0.10.0
libtpu: 0.0.40
codegen_flags: <defaults>
</compile_context>

<pallas_src>
import functools

import jax
import jax.numpy as jnp
from jax import lax
from jax.experimental import pallas as pl
from jax.experimental.pallas import tpu as pltpu

_LN_EPS = 1e-5


# ----------------------------- shared helpers -------------------------------

def _layernorm(x, gamma, beta):
    # Biased variance over the last dim (matches torch.nn.LayerNorm).
    mu = jnp.mean(x, axis=-1, keepdims=True)
    xc = x - mu
    var = jnp.mean(xc * xc, axis=-1, keepdims=True)
    return xc * lax.rsqrt(var + _LN_EPS) * gamma + beta


def _gelu_tanh(x):
    # tanh-approximate GELU (exp/tanh run on the EUP slot).
    c = 0.7978845608028654  # sqrt(2/pi)
    return 0.5 * x * (1.0 + jnp.tanh(c * (x + 0.044715 * x * x * x)))


# ----------------------------- fused Pallas kernel --------------------------

def _make_fused_kernel(depth, heads, dim_head):
    scale = float(dim_head) ** -0.5
    inner = heads * dim_head
    bf16, f32 = jnp.bfloat16, jnp.float32

    def kernel(x_ref,
               alng_ref, alnb_ref, wq_ref, wkv_ref, wo_ref, bo_ref,
               flng_ref, flnb_ref, w1_ref, b1_ref, w2_ref, b2_ref,
               fing_ref, finb_ref,
               o_ref, act_ref):
        d = pl.program_id(1)

        # New sample: load the input activation into the resident VMEM scratch.
        @pl.when(d == 0)
        def _():
            act_ref[...] = x_ref[...]

        x = act_ref[...]                                        # (n, dim) f32

        # ---------------- PreNorm Attention + residual ----------------
        y = _layernorm(x, alng_ref[...], alnb_ref[...]).astype(bf16)
        q = jnp.dot(y, wq_ref[...], preferred_element_type=f32)    # (n, inner)
        kv = jnp.dot(y, wkv_ref[...], preferred_element_type=f32)  # (n, 2*inner)
        qb = q.astype(bf16)
        kb = kv[:, :inner].astype(bf16)
        vb = kv[:, inner:].astype(bf16)

        # Accumulate the output projection per head (no lane concat / relayout).
        proj = jnp.zeros_like(x)                                # (n, dim) f32
        for h in range(heads):                                  # static unroll
            lo, hi = h * dim_head, (h + 1) * dim_head
            qh, kh, vh = qb[:, lo:hi], kb[:, lo:hi], vb[:, lo:hi]
            # dots = qh @ kh^T (no materialized transpose), f32 accumulation.
            dots = lax.dot_general(qh, kh, (((1,), (1,)), ((), ())),
                                   preferred_element_type=f32) * scale
            dots = dots - jnp.max(dots, axis=-1, keepdims=True)
            p = jnp.exp(dots)
            inv = pl.reciprocal(jnp.sum(p, axis=-1, keepdims=True), approx=True)
            p = (p * inv).astype(bf16)
            ctx = jnp.dot(p, vh, preferred_element_type=f32)    # (n, dh)
            proj = proj + jnp.dot(ctx.astype(bf16), wo_ref[lo:hi, :],
                                  preferred_element_type=f32)   # (n, dim)
        x = proj + bo_ref[...] + x                              # residual

        # ---------------- PreNorm FeedForward + residual ----------------
        y2 = _layernorm(x, flng_ref[...], flnb_ref[...]).astype(bf16)
        h1 = jnp.dot(y2, w1_ref[...], preferred_element_type=f32) + b1_ref[...]
        h1 = _gelu_tanh(h1).astype(bf16)
        out = jnp.dot(h1, w2_ref[...], preferred_element_type=f32) + b2_ref[...]
        x = out + x                                             # residual

        act_ref[...] = x

        # Last layer for this sample: apply the final LayerNorm and emit.
        @pl.when(d == depth - 1)
        def _():
            o_ref[...] = _layernorm(x, fing_ref[...], finb_ref[...])

    return kernel


# ------------------------------ wrapper --------------------------------------

def transformer_forward(params, x, heads, dim_head):
    b, n, dim = x.shape
    depth = params["wq"].shape[0]
    kernel = _make_fused_kernel(depth, heads, dim_head)

    def wspec(arr):
        # Per-layer weight: squeeze the leading depth axis, stay VMEM-resident,
        # select the layer via the depth grid index.
        nd = arr.ndim
        return pl.BlockSpec((None,) + arr.shape[1:],
                            lambda i, d: (d,) + (0,) * (nd - 1))

    in_specs = [
        pl.BlockSpec((None, n, dim), lambda i, d: (i, 0, 0)),   # x (per sample)
        wspec(params["attn_ln_g"]), wspec(params["attn_ln_b"]),
        wspec(params["wq"]), wspec(params["wkv"]),
        wspec(params["wo"]), wspec(params["bo"]),
        wspec(params["ff_ln_g"]), wspec(params["ff_ln_b"]),
        wspec(params["w1"]), wspec(params["b1"]),
        wspec(params["w2"]), wspec(params["b2"]),
        pl.BlockSpec((1, dim), lambda i, d: (0, 0)),            # final LN gamma
        pl.BlockSpec((1, dim), lambda i, d: (0, 0)),            # final LN beta
    ]
    out_specs = pl.BlockSpec((None, n, dim), lambda i, d: (i, 0, 0))

    return pl.pallas_call(
        kernel,
        out_shape=jax.ShapeDtypeStruct((b, n, dim), jnp.float32),
        grid=(b, depth),
        in_specs=in_specs,
        out_specs=out_specs,
        scratch_shapes=[pltpu.VMEM((n, dim), jnp.float32)],     # resident activation
        compiler_params=pltpu.CompilerParams(
            dimension_semantics=("parallel", "arbitrary")),
    )(x.astype(jnp.float32),
      params["attn_ln_g"], params["attn_ln_b"], params["wq"], params["wkv"],
      params["wo"], params["bo"], params["ff_ln_g"], params["ff_ln_b"],
      params["w1"], params["b1"], params["w2"], params["b2"],
      params["final_ln_g"], params["final_ln_b"])


# ----------------------------- parameters ------------------------------------

def init_params(key, dim, depth, heads, dim_head, mlp_dim):
    inner = heads * dim_head
    ks = jax.random.split(key, 14)
    nrm = jax.random.normal
    bf16, f32 = jnp.bfloat16, jnp.float32
    return {
        # attention sub-block (stacked over depth)
        "attn_ln_g": 1.0 + 0.1 * nrm(ks[0], (depth, 1, dim), f32),
        "attn_ln_b": 0.1 * nrm(ks[1], (depth, 1, dim), f32),
        "wq": (nrm(ks[2], (depth, dim, inner), f32) * dim ** -0.5).astype(bf16),
        "wkv": (nrm(ks[3], (depth, dim, 2 * inner), f32) * dim ** -0.5).astype(bf16),
        "wo": (nrm(ks[4], (depth, inner, dim), f32) * inner ** -0.5).astype(bf16),
        "bo": 0.01 * nrm(ks[5], (depth, 1, dim), f32),
        # feed-forward sub-block
        "ff_ln_g": 1.0 + 0.1 * nrm(ks[6], (depth, 1, dim), f32),
        "ff_ln_b": 0.1 * nrm(ks[7], (depth, 1, dim), f32),
        "w1": (nrm(ks[8], (depth, dim, mlp_dim), f32) * dim ** -0.5).astype(bf16),
        "b1": 0.01 * nrm(ks[9], (depth, 1, mlp_dim), f32),
        "w2": (nrm(ks[10], (depth, mlp_dim, dim), f32) * mlp_dim ** -0.5).astype(bf16),
        "b2": 0.01 * nrm(ks[11], (depth, 1, dim), f32),
        # final LayerNorm
        "final_ln_g": 1.0 + 0.1 * nrm(ks[12], (1, dim), f32),
        "final_ln_b": 0.1 * nrm(ks[13], (1, dim), f32),
    }


# ---------------------------- pure-JAX reference ------------------------------
# Same math as the kernel (bf16 matmul operands, f32 accumulation) for a tight check.

def transformer_ref(params, x, heads, dim_head):
    bf16, f32 = jnp.bfloat16, jnp.float32

    def ln(v, g, b):
        mu = v.mean(-1, keepdims=True)
        var = ((v - mu) ** 2).mean(-1, keepdims=True)
        return (v - mu) * lax.rsqrt(var + _LN_EPS) * g + b

    x = x.astype(f32)
    depth = params["wq"].shape[0]
    inner = heads * dim_head
    scale = float(dim_head) ** -0.5
    for l in range(depth):
        y = ln(x, params["attn_ln_g"][l], params["attn_ln_b"][l]).astype(bf16)
        q = jnp.dot(y, params["wq"][l], preferred_element_type=f32)
        kv = jnp.dot(y, params["wkv"][l], preferred_element_type=f32)
        k, v = kv[..., :inner], kv[..., inner:]
        b_, n, _ = q.shape
        qh = q.reshape(b_, n, heads, dim_head).transpose(0, 2, 1, 3).astype(bf16)
        kh = k.reshape(b_, n, heads, dim_head).transpose(0, 2, 1, 3).astype(bf16)
        vh = v.reshape(b_, n, heads, dim_head).transpose(0, 2, 1, 3).astype(bf16)
        dots = jnp.einsum('bhid,bhjd->bhij', qh, kh,
                          preferred_element_type=f32) * scale
        attn = jax.nn.softmax(dots, axis=-1).astype(bf16)
        ctx = jnp.einsum('bhij,bhjd->bhid', attn, vh, preferred_element_type=f32)
        ctx = ctx.transpose(0, 2, 1, 3).reshape(b_, n, inner).astype(bf16)
        x = jnp.dot(ctx, params["wo"][l], preferred_element_type=f32) \
            + params["bo"][l] + x

        y = ln(x, params["ff_ln_g"][l], params["ff_ln_b"][l]).astype(bf16)
        h = jnp.dot(y, params["w1"][l], preferred_element_type=f32) + params["b1"][l]
        h = _gelu_tanh(h).astype(bf16)
        x = jnp.dot(h, params["w2"][l], preferred_element_type=f32) \
            + params["b2"][l] + x
    return ln(x, params["final_ln_g"], params["final_ln_b"])


# ---------------------------------- main --------------------------------------

if __name__ == "__main__":
    DIM, DEPTH, HEADS, DIM_HEAD, MLP_DIM = 128, 2, 4, 32, 256
    B, N = 2, 128

    key = jax.random.PRNGKey(0)
    kp, kx = jax.random.split(key)
    params = init_params(kp, DIM, DEPTH, HEADS, DIM_HEAD, MLP_DIM)
    x = jax.random.normal(kx, (B, N, DIM), jnp.float32)

    fwd = jax.jit(functools.partial(transformer_forward, heads=HEADS,
                                    dim_head=DIM_HEAD))
    out = jax.block_until_ready(fwd(params, x))

    assert out.shape == (B, N, DIM), out.shape
    assert bool(jnp.all(jnp.isfinite(out)))

    ref = transformer_ref(params, x, HEADS, DIM_HEAD)
    max_err = float(jnp.max(jnp.abs(out - ref) / (jnp.abs(ref) + 1.0)))
    assert max_err < 2e-2, max_err

    print("KERNEL_OK")
</pallas_src>

<mosaic_0001>
module attributes {stable_mosaic.version = 11 : i64} {
  func.func @kernel(%arg0: i32, %arg1: i32, %arg2: memref<1x128x128xf32, #tpu.memory_space<vmem>>, %arg3: memref<1x1x128xf32, #tpu.memory_space<vmem>>, %arg4: memref<1x1x128xf32, #tpu.memory_space<vmem>>, %arg5: memref<1x128x128xbf16, #tpu.memory_space<vmem>>, %arg6: memref<1x128x256xbf16, #tpu.memory_space<vmem>>, %arg7: memref<1x128x128xbf16, #tpu.memory_space<vmem>>, %arg8: memref<1x1x128xf32, #tpu.memory_space<vmem>>, %arg9: memref<1x1x128xf32, #tpu.memory_space<vmem>>, %arg10: memref<1x1x128xf32, #tpu.memory_space<vmem>>, %arg11: memref<1x128x256xbf16, #tpu.memory_space<vmem>>, %arg12: memref<1x1x256xf32, #tpu.memory_space<vmem>>, %arg13: memref<1x256x128xbf16, #tpu.memory_space<vmem>>, %arg14: memref<1x1x128xf32, #tpu.memory_space<vmem>>, %arg15: memref<1x128xf32, #tpu.memory_space<vmem>>, %arg16: memref<1x128xf32, #tpu.memory_space<vmem>>, %arg17: memref<1x128x128xf32, #tpu.memory_space<vmem>>, %arg18: memref<128x128xf32, #tpu.memory_space<vmem>>) attributes {dimension_semantics = [#tpu.dimension_semantics<parallel>, #tpu.dimension_semantics<arbitrary>], iteration_bounds = array<i64: 2, 2>, scalar_prefetch = 0 : i64, scratch_operands = 1 : i64, tpu.core_type = #tpu.core_type<tc>, window_params = [{transform_indices = @transform_0, window_bounds = array<i64: 1, 128, 128>}, {transform_indices = @transform_1, window_bounds = array<i64: 1, 1, 128>}, {transform_indices = @transform_2, window_bounds = array<i64: 1, 1, 128>}, {transform_indices = @transform_3, window_bounds = array<i64: 1, 128, 128>}, {transform_indices = @transform_4, window_bounds = array<i64: 1, 128, 256>}, {transform_indices = @transform_5, window_bounds = array<i64: 1, 128, 128>}, {transform_indices = @transform_6, window_bounds = array<i64: 1, 1, 128>}, {transform_indices = @transform_7, window_bounds = array<i64: 1, 1, 128>}, {transform_indices = @transform_8, window_bounds = array<i64: 1, 1, 128>}, {transform_indices = @transform_9, window_bounds = array<i64: 1, 128, 256>}, {transform_indices = @transform_10, window_bounds = array<i64: 1, 1, 256>}, {transform_indices = @transform_11, window_bounds = array<i64: 1, 256, 128>}, {transform_indices = @transform_12, window_bounds = array<i64: 1, 1, 128>}, {pipeline_mode = #tpu.pipeline_mode<synchronous>, transform_indices = @transform_13, window_bounds = array<i64: 1, 128>}, {pipeline_mode = #tpu.pipeline_mode<synchronous>, transform_indices = @transform_14, window_bounds = array<i64: 1, 128>}, {transform_indices = @transform_15, window_bounds = array<i64: 1, 128, 128>}]} {
    %c0_i32 = arith.constant 0 : i32
    %0 = arith.cmpi eq, %arg1, %c0_i32 : i32
    %1 = arith.extui %0 : i1 to i32
    %c0_i32_0 = arith.constant 0 : i32
    %2 = arith.cmpi ne, %1, %c0_i32_0 : i32
    scf.if %2 {
      %c0_89 = arith.constant 0 : index
      %c0_90 = arith.constant 0 : index
      %c0_91 = arith.constant 0 : index
      %196 = vector.load %arg2[%c0_89, %c0_90, %c0_91] : memref<1x128x128xf32, #tpu.memory_space<vmem>>, vector<1x128x128xf32>
      %197 = vector.shape_cast %196 : vector<1x128x128xf32> to vector<128x128xf32>
      %c0_92 = arith.constant 0 : index
      %c0_93 = arith.constant 0 : index
      %198 = vector.load %arg18[%c0_92, %c0_93] : memref<128x128xf32, #tpu.memory_space<vmem>>, vector<128x128xf32>
      tpu.vector_store %arg18[%c0_92, %c0_93], %197 {strides = array<i32>} : memref<128x128xf32, #tpu.memory_space<vmem>>, vector<128x128xf32>,
    } else {
    }
    %c0 = arith.constant 0 : index
    %c0_1 = arith.constant 0 : index
    %3 = vector.load %arg18[%c0, %c0_1] : memref<128x128xf32, #tpu.memory_space<vmem>>, vector<128x128xf32>
    %c0_2 = arith.constant 0 : index
    %c0_3 = arith.constant 0 : index
    %c0_4 = arith.constant 0 : index
    %4 = vector.load %arg3[%c0_2, %c0_3, %c0_4] : memref<1x1x128xf32, #tpu.memory_space<vmem>>, vector<1x1x128xf32>
    %5 = vector.shape_cast %4 : vector<1x1x128xf32> to vector<1x128xf32>
    %c0_5 = arith.constant 0 : index
    %c0_6 = arith.constant 0 : index
    %c0_7 = arith.constant 0 : index
    %6 = vector.load %arg4[%c0_5, %c0_6, %c0_7] : memref<1x1x128xf32, #tpu.memory_space<vmem>>, vector<1x1x128xf32>
    %7 = vector.shape_cast %6 : vector<1x1x128xf32> to vector<1x128xf32>
    %cst = arith.constant dense<0.000000e+00> : vector<128xf32>
    %8 = vector.multi_reduction <add>, %3, %cst [1] : vector<128x128xf32> to vector<128xf32>
    %9 = vector.shape_cast %8 : vector<128xf32> to vector<128x1xf32>
    %cst_8 = arith.constant 1.280000e+02 : f32
    %10 = vector.broadcast %cst_8 : f32 to vector<128x1xf32>
    %11 = arith.divf %9, %10 : vector<128x1xf32>
    %12 = vector.broadcast %11 : vector<128x1xf32> to vector<128x128xf32>
    %13 = arith.subf %3, %12 : vector<128x128xf32>
    %14 = arith.mulf %13, %13 : vector<128x128xf32>
    %cst_9 = arith.constant dense<0.000000e+00> : vector<128xf32>
    %15 = vector.multi_reduction <add>, %14, %cst_9 [1] : vector<128x128xf32> to vector<128xf32>
    %16 = vector.shape_cast %15 : vector<128xf32> to vector<128x1xf32>
    %cst_10 = arith.constant 1.280000e+02 : f32
    %17 = vector.broadcast %cst_10 : f32 to vector<128x1xf32>
    %18 = arith.divf %16, %17 : vector<128x1xf32>
    %cst_11 = arith.constant 9.99999974E-6 : f32
    %19 = vector.broadcast %cst_11 : f32 to vector<128x1xf32>
    %20 = arith.addf %18, %19 : vector<128x1xf32>
    %21 = math.rsqrt %20 : vector<128x1xf32>
    %22 = vector.broadcast %21 : vector<128x1xf32> to vector<128x128xf32>
    %23 = arith.mulf %13, %22 : vector<128x128xf32>
    %24 = vector.broadcast %5 : vector<1x128xf32> to vector<128x128xf32>
    %25 = arith.mulf %23, %24 : vector<128x128xf32>
    %26 = vector.broadcast %7 : vector<1x128xf32> to vector<128x128xf32>
    %27 = arith.addf %25, %26 : vector<128x128xf32>
    %28 = arith.truncf %27 : vector<128x128xf32> to vector<128x128xbf16>
    %c0_12 = arith.constant 0 : index
    %c0_13 = arith.constant 0 : index
    %c0_14 = arith.constant 0 : index
    %29 = vector.load %arg5[%c0_12, %c0_13, %c0_14] : memref<1x128x128xbf16, #tpu.memory_space<vmem>>, vector<1x128x128xbf16>
    %30 = vector.shape_cast %29 : vector<1x128x128xbf16> to vector<128x128xbf16>
    %cst_15 = arith.constant dense<0.000000e+00> : vector<128x128xf32>
    %31 = tpu.matmul %28, %30, %cst_15 {dimension_numbers = #tpu.dot_dimension_numbers<[1], [0], [0], [1], [0, 0, 1, 1], [], []>} : vector<128x128xbf16>, vector<128x128xbf16>, vector<128x128xf32> -> vector<128x128xf32>
    %c0_16 = arith.constant 0 : index
    %c0_17 = arith.constant 0 : index
    %c0_18 = arith.constant 0 : index
    %32 = vector.load %arg6[%c0_16, %c0_17, %c0_18] : memref<1x128x256xbf16, #tpu.memory_space<vmem>>, vector<1x128x256xbf16>
    %33 = vector.shape_cast %32 : vector<1x128x256xbf16> to vector<128x256xbf16>
    %cst_19 = arith.constant dense<0.000000e+00> : vector<128x256xf32>
    %34 = tpu.matmul %28, %33, %cst_19 {dimension_numbers = #tpu.dot_dimension_numbers<[1], [0], [0], [1], [0, 0, 1, 1], [], []>} : vector<128x128xbf16>, vector<128x256xbf16>, vector<128x256xf32> -> vector<128x256xf32>
    %35 = arith.truncf %31 : vector<128x128xf32> to vector<128x128xbf16>
    %36 = vector.extract_strided_slice %34 {offsets = [0, 0], sizes = [128, 128], strides = [1, 1]} : vector<128x256xf32> to vector<128x128xf32>
    %37 = arith.truncf %36 : vector<128x128xf32> to vector<128x128xbf16>
    %38 = vector.extract_strided_slice %34 {offsets = [0, 128], sizes = [128, 128], strides = [1, 1]} : vector<128x256xf32> to vector<128x128xf32>
    %39 = arith.truncf %38 : vector<128x128xf32> to vector<128x128xbf16>
    %cst_20 = arith.constant 0.000000e+00 : f32
    %40 = vector.broadcast %cst_20 : f32 to vector<128x128xf32>
    %41 = vector.extract_strided_slice %35 {offsets = [0, 0], sizes = [128, 32], strides = [1, 1]} : vector<128x128xbf16> to vector<128x32xbf16>
    %42 = vector.extract_strided_slice %37 {offsets = [0, 0], sizes = [128, 32], strides = [1, 1]} : vector<128x128xbf16> to vector<128x32xbf16>
    %43 = vector.extract_strided_slice %39 {offsets = [0, 0], sizes = [128, 32], strides = [1, 1]} : vector<128x128xbf16> to vector<128x32xbf16>
    %cst_21 = arith.constant dense<0.000000e+00> : vector<128x128xf32>
    %44 = tpu.matmul %41, %42, %cst_21 {dimension_numbers = #tpu.dot_dimension_numbers<[1], [1], [0], [0], [0, 0, 1, 0], [], []>} : vector<128x32xbf16>, vector<128x32xbf16>, vector<128x128xf32> -> vector<128x128xf32>
    %cst_22 = arith.constant 0.176776692 : f32
    %45 = vector.broadcast %cst_22 : f32 to vector<128x128xf32>
    %46 = arith.mulf %44, %45 : vector<128x128xf32>
    %cst_23 = arith.constant dense<0xFF800000> : vector<128xf32>
    %47 = vector.multi_reduction <maximumf>, %46, %cst_23 [1] : vector<128x128xf32> to vector<128xf32>
    %48 = vector.shape_cast %47 : vector<128xf32> to vector<128x1xf32>
    %49 = vector.broadcast %48 : vector<128x1xf32> to vector<128x128xf32>
    %50 = arith.subf %46, %49 : vector<128x128xf32>
    %51 = math.exp %50 : vector<128x128xf32>
    %cst_24 = arith.constant dense<0.000000e+00> : vector<128xf32>
    %52 = vector.multi_reduction <add>, %51, %cst_24 [1] : vector<128x128xf32> to vector<128xf32>
    %53 = vector.shape_cast %52 : vector<128xf32> to vector<128x1xf32>
    %54 = tpu.reciprocal %53 {approx = true} : vector<128x1xf32> -> vector<128x1xf32>
    %55 = vector.broadcast %54 : vector<128x1xf32> to vector<128x128xf32>
    %56 = arith.mulf %51, %55 : vector<128x128xf32>
    %57 = arith.truncf %56 : vector<128x128xf32> to vector<128x128xbf16>
    %cst_25 = arith.constant dense<0.000000e+00> : vector<128x32xf32>
    %58 = tpu.matmul %57, %43, %cst_25 {dimension_numbers = #tpu.dot_dimension_numbers<[1], [0], [0], [1], [0, 0, 1, 1], [], []>} : vector<128x128xbf16>, vector<128x32xbf16>, vector<128x32xf32> -> vector<128x32xf32>
    %59 = arith.truncf %58 : vector<128x32xf32> to vector<128x32xbf16>
    %c0_26 = arith.constant 0 : index
    %c0_27 = arith.constant 0 : index
    %c0_28 = arith.constant 0 : index
    %60 = vector.load %arg7[%c0_26, %c0_27, %c0_28] : memref<1x128x128xbf16, #tpu.memory_space<vmem>>, vector<1x32x128xbf16>
    %61 = vector.shape_cast %60 : vector<1x32x128xbf16> to vector<32x128xbf16>
    %cst_29 = arith.constant dense<0.000000e+00> : vector<128x128xf32>
    %62 = tpu.matmul %59, %61, %cst_29 {dimension_numbers = #tpu.dot_dimension_numbers<[1], [0], [0], [1], [0, 0, 1, 1], [], []>} : vector<128x32xbf16>, vector<32x128xbf16>, vector<128x128xf32> -> vector<128x128xf32>
    %63 = arith.addf %40, %62 : vector<128x128xf32>
    %64 = vector.extract_strided_slice %35 {offsets = [0, 32], sizes = [128, 32], strides = [1, 1]} : vector<128x128xbf16> to vector<128x32xbf16>
    %65 = vector.extract_strided_slice %37 {offsets = [0, 32], sizes = [128, 32], strides = [1, 1]} : vector<128x128xbf16> to vector<128x32xbf16>
    %66 = vector.extract_strided_slice %39 {offsets = [0, 32], sizes = [128, 32], strides = [1, 1]} : vector<128x128xbf16> to vector<128x32xbf16>
    %cst_30 = arith.constant dense<0.000000e+00> : vector<128x128xf32>
    %67 = tpu.matmul %64, %65, %cst_30 {dimension_numbers = #tpu.dot_dimension_numbers<[1], [1], [0], [0], [0, 0, 1, 0], [], []>} : vector<128x32xbf16>, vector<128x32xbf16>, vector<128x128xf32> -> vector<128x128xf32>
    %cst_31 = arith.constant 0.176776692 : f32
    %68 = vector.broadcast %cst_31 : f32 to vector<128x128xf32>
    %69 = arith.mulf %67, %68 : vector<128x128xf32>
    %cst_32 = arith.constant dense<0xFF800000> : vector<128xf32>
    %70 = vector.multi_reduction <maximumf>, %69, %cst_32 [1] : vector<128x128xf32> to vector<128xf32>
    %71 = vector.shape_cast %70 : vector<128xf32> to vector<128x1xf32>
    %72 = vector.broadcast %71 : vector<128x1xf32> to vector<128x128xf32>
    %73 = arith.subf %69, %72 : vector<128x128xf32>
    %74 = math.exp %73 : vector<128x128xf32>
    %cst_33 = arith.constant dense<0.000000e+00> : vector<128xf32>
    %75 = vector.multi_reduction <add>, %74, %cst_33 [1] : vector<128x128xf32> to vector<128xf32>
    %76 = vector.shape_cast %75 : vector<128xf32> to vector<128x1xf32>
    %77 = tpu.reciprocal %76 {approx = true} : vector<128x1xf32> -> vector<128x1xf32>
    %78 = vector.broadcast %77 : vector<128x1xf32> to vector<128x128xf32>
    %79 = arith.mulf %74, %78 : vector<128x128xf32>
    %80 = arith.truncf %79 : vector<128x128xf32> to vector<128x128xbf16>
    %cst_34 = arith.constant dense<0.000000e+00> : vector<128x32xf32>
    %81 = tpu.matmul %80, %66, %cst_34 {dimension_numbers = #tpu.dot_dimension_numbers<[1], [0], [0], [1], [0, 0, 1, 1], [], []>} : vector<128x128xbf16>, vector<128x32xbf16>, vector<128x32xf32> -> vector<128x32xf32>
    %82 = arith.truncf %81 : vector<128x32xf32> to vector<128x32xbf16>
    %c0_35 = arith.constant 0 : index
    %c32 = arith.constant 32 : index
    %c0_36 = arith.constant 0 : index
    %83 = vector.load %arg7[%c0_35, %c32, %c0_36] : memref<1x128x128xbf16, #tpu.memory_space<vmem>>, vector<1x32x128xbf16>
    %84 = vector.shape_cast %83 : vector<1x32x128xbf16> to vector<32x128xbf16>
    %cst_37 = arith.constant dense<0.000000e+00> : vector<128x128xf32>
    %85 = tpu.matmul %82, %84, %cst_37 {dimension_numbers = #tpu.dot_dimension_numbers<[1], [0], [0], [1], [0, 0, 1, 1], [], []>} : vector<128x32xbf16>, vector<32x128xbf16>, vector<128x128xf32> -> vector<128x128xf32>
    %86 = arith.addf %63, %85 : vector<128x128xf32>
    %87 = vector.extract_strided_slice %35 {offsets = [0, 64], sizes = [128, 32], strides = [1, 1]} : vector<128x128xbf16> to vector<128x32xbf16>
    %88 = vector.extract_strided_slice %37 {offsets = [0, 64], sizes = [128, 32], strides = [1, 1]} : vector<128x128xbf16> to vector<128x32xbf16>
    %89 = vector.extract_strided_slice %39 {offsets = [0, 64], sizes = [128, 32], strides = [1, 1]} : vector<128x128xbf16> to vector<128x32xbf16>
    %cst_38 = arith.constant dense<0.000000e+00> : vector<128x128xf32>
    %90 = tpu.matmul %87, %88, %cst_38 {dimension_numbers = #tpu.dot_dimension_numbers<[1], [1], [0], [0], [0, 0, 1, 0], [], []>} : vector<128x32xbf16>, vector<128x32xbf16>, vector<128x128xf32> -> vector<128x128xf32>
    %cst_39 = arith.constant 0.176776692 : f32
    %91 = vector.broadcast %cst_39 : f32 to vector<128x128xf32>
    %92 = arith.mulf %90, %91 : vector<128x128xf32>
    %cst_40 = arith.constant dense<0xFF800000> : vector<128xf32>
    %93 = vector.multi_reduction <maximumf>, %92, %cst_40 [1] : vector<128x128xf32> to vector<128xf32>
    %94 = vector.shape_cast %93 : vector<128xf32> to vector<128x1xf32>
    %95 = vector.broadcast %94 : vector<128x1xf32> to vector<128x128xf32>
    %96 = arith.subf %92, %95 : vector<128x128xf32>
    %97 = math.exp %96 : vector<128x128xf32>
    %cst_41 = arith.constant dense<0.000000e+00> : vector<128xf32>
    %98 = vector.multi_reduction <add>, %97, %cst_41 [1] : vector<128x128xf32> to vector<128xf32>
    %99 = vector.shape_cast %98 : vector<128xf32> to vector<128x1xf32>
    %100 = tpu.reciprocal %99 {approx = true} : vector<128x1xf32> -> vector<128x1xf32>
    %101 = vector.broadcast %100 : vector<128x1xf32> to vector<128x128xf32>
    %102 = arith.mulf %97, %101 : vector<128x128xf32>
    %103 = arith.truncf %102 : vector<128x128xf32> to vector<128x128xbf16>
    %cst_42 = arith.constant dense<0.000000e+00> : vector<128x32xf32>
    %104 = tpu.matmul %103, %89, %cst_42 {dimension_numbers = #tpu.dot_dimension_numbers<[1], [0], [0], [1], [0, 0, 1, 1], [], []>} : vector<128x128xbf16>, vector<128x32xbf16>, vector<128x32xf32> -> vector<128x32xf32>
    %105 = arith.truncf %104 : vector<128x32xf32> to vector<128x32xbf16>
    %c0_43 = arith.constant 0 : index
    %c64 = arith.constant 64 : index
    %c0_44 = arith.constant 0 : index
    %106 = vector.load %arg7[%c0_43, %c64, %c0_44] : memref<1x128x128xbf16, #tpu.memory_space<vmem>>, vector<1x32x128xbf16>
    %107 = vector.shape_cast %106 : vector<1x32x128xbf16> to vector<32x128xbf16>
    %cst_45 = arith.constant dense<0.000000e+00> : vector<128x128xf32>
    %108 = tpu.matmul %105, %107, %cst_45 {dimension_numbers = #tpu.dot_dimension_numbers<[1], [0], [0], [1], [0, 0, 1, 1], [], []>} : vector<128x32xbf16>, vector<32x128xbf16>, vector<128x128xf32> -> vector<128x128xf32>
    %109 = arith.addf %86, %108 : vector<128x128xf32>
    %110 = vector.extract_strided_slice %35 {offsets = [0, 96], sizes = [128, 32], strides = [1, 1]} : vector<128x128xbf16> to vector<128x32xbf16>
    %111 = vector.extract_strided_slice %37 {offsets = [0, 96], sizes = [128, 32], strides = [1, 1]} : vector<128x128xbf16> to vector<128x32xbf16>
    %112 = vector.extract_strided_slice %39 {offsets = [0, 96], sizes = [128, 32], strides = [1, 1]} : vector<128x128xbf16> to vector<128x32xbf16>
    %cst_46 = arith.constant dense<0.000000e+00> : vector<128x128xf32>
    %113 = tpu.matmul %110, %111, %cst_46 {dimension_numbers = #tpu.dot_dimension_numbers<[1], [1], [0], [0], [0, 0, 1, 0], [], []>} : vector<128x32xbf16>, vector<128x32xbf16>, vector<128x128xf32> -> vector<128x128xf32>
    %cst_47 = arith.constant 0.176776692 : f32
    %114 = vector.broadcast %cst_47 : f32 to vector<128x128xf32>
    %115 = arith.mulf %113, %114 : vector<128x128xf32>
    %cst_48 = arith.constant dense<0xFF800000> : vector<128xf32>
    %116 = vector.multi_reduction <maximumf>, %115, %cst_48 [1] : vector<128x128xf32> to vector<128xf32>
    %117 = vector.shape_cast %116 : vector<128xf32> to vector<128x1xf32>
    %118 = vector.broadcast %117 : vector<128x1xf32> to vector<128x128xf32>
    %119 = arith.subf %115, %118 : vector<128x128xf32>
    %120 = math.exp %119 : vector<128x128xf32>
    %cst_49 = arith.constant dense<0.000000e+00> : vector<128xf32>
    %121 = vector.multi_reduction <add>, %120, %cst_49 [1] : vector<128x128xf32> to vector<128xf32>
    %122 = vector.shape_cast %121 : vector<128xf32> to vector<128x1xf32>
    %123 = tpu.reciprocal %122 {approx = true} : vector<128x1xf32> -> vector<128x1xf32>
    %124 = vector.broadcast %123 : vector<128x1xf32> to vector<128x128xf32>
    %125 = arith.mulf %120, %124 : vector<128x128xf32>
    %126 = arith.truncf %125 : vector<128x128xf32> to vector<128x128xbf16>
    %cst_50 = arith.constant dense<0.000000e+00> : vector<128x32xf32>
    %127 = tpu.matmul %126, %112, %cst_50 {dimension_numbers = #tpu.dot_dimension_numbers<[1], [0], [0], [1], [0, 0, 1, 1], [], []>} : vector<128x128xbf16>, vector<128x32xbf16>, vector<128x32xf32> -> vector<128x32xf32>
    %128 = arith.truncf %127 : vector<128x32xf32> to vector<128x32xbf16>
    %c0_51 = arith.constant 0 : index
    %c96 = arith.constant 96 : index
    %c0_52 = arith.constant 0 : index
    %129 = vector.load %arg7[%c0_51, %c96, %c0_52] : memref<1x128x128xbf16, #tpu.memory_space<vmem>>, vector<1x32x128xbf16>
    %130 = vector.shape_cast %129 : vector<1x32x128xbf16> to vector<32x128xbf16>
    %cst_53 = arith.constant dense<0.000000e+00> : vector<128x128xf32>
    %131 = tpu.matmul %128, %130, %cst_53 {dimension_numbers = #tpu.dot_dimension_numbers<[1], [0], [0], [1], [0, 0, 1, 1], [], []>} : vector<128x32xbf16>, vector<32x128xbf16>, vector<128x128xf32> -> vector<128x128xf32>
    %132 = arith.addf %109, %131 : vector<128x128xf32>
    %c0_54 = arith.constant 0 : index
    %c0_55 = arith.constant 0 : index
    %c0_56 = arith.constant 0 : index
    %133 = vector.load %arg8[%c0_54, %c0_55, %c0_56] : memref<1x1x128xf32, #tpu.memory_space<vmem>>, vector<1x1x128xf32>
    %134 = vector.shape_cast %133 : vector<1x1x128xf32> to vector<1x128xf32>
    %135 = vector.broadcast %134 : vector<1x128xf32> to vector<128x128xf32>
    %136 = arith.addf %132, %135 : vector<128x128xf32>
    %137 = arith.addf %136, %3 : vector<128x128xf32>
    %c0_57 = arith.constant 0 : index
    %c0_58 = arith.constant 0 : index
    %c0_59 = arith.constant 0 : index
    %138 = vector.load %arg9[%c0_57, %c0_58, %c0_59] : memref<1x1x128xf32, #tpu.memory_space<vmem>>, vector<1x1x128xf32>
    %139 = vector.shape_cast %138 : vector<1x1x128xf32> to vector<1x128xf32>
    %c0_60 = arith.constant 0 : index
    %c0_61 = arith.constant 0 : index
    %c0_62 = arith.constant 0 : index
    %140 = vector.load %arg10[%c0_60, %c0_61, %c0_62] : memref<1x1x128xf32, #tpu.memory_space<vmem>>, vector<1x1x128xf32>
    %141 = vector.shape_cast %140 : vector<1x1x128xf32> to vector<1x128xf32>
    %cst_63 = arith.constant dense<0.000000e+00> : vector<128xf32>
    %142 = vector.multi_reduction <add>, %137, %cst_63 [1] : vector<128x128xf32> to vector<128xf32>
    %143 = vector.shape_cast %142 : vector<128xf32> to vector<128x1xf32>
    %cst_64 = arith.constant 1.280000e+02 : f32
    %144 = vector.broadcast %cst_64 : f32 to vector<128x1xf32>
    %145 = arith.divf %143, %144 : vector<128x1xf32>
    %146 = vector.broadcast %145 : vector<128x1xf32> to vector<128x128xf32>
    %147 = arith.subf %137, %146 : vector<128x128xf32>
    %148 = arith.mulf %147, %147 : vector<128x128xf32>
    %cst_65 = arith.constant dense<0.000000e+00> : vector<128xf32>
    %149 = vector.multi_reduction <add>, %148, %cst_65 [1] : vector<128x128xf32> to vector<128xf32>
    %150 = vector.shape_cast %149 : vector<128xf32> to vector<128x1xf32>
    %cst_66 = arith.constant 1.280000e+02 : f32
    %151 = vector.broadcast %cst_66 : f32 to vector<128x1xf32>
    %152 = arith.divf %150, %151 : vector<128x1xf32>
    %cst_67 = arith.constant 9.99999974E-6 : f32
    %153 = vector.broadcast %cst_67 : f32 to vector<128x1xf32>
    %154 = arith.addf %152, %153 : vector<128x1xf32>
    %155 = math.rsqrt %154 : vector<128x1xf32>
    %156 = vector.broadcast %155 : vector<128x1xf32> to vector<128x128xf32>
    %157 = arith.mulf %147, %156 : vector<128x128xf32>
    %158 = vector.broadcast %139 : vector<1x128xf32> to vector<128x128xf32>
    %159 = arith.mulf %157, %158 : vector<128x128xf32>
    %160 = vector.broadcast %141 : vector<1x128xf32> to vector<128x128xf32>
    %161 = arith.addf %159, %160 : vector<128x128xf32>
    %162 = arith.truncf %161 : vector<128x128xf32> to vector<128x128xbf16>
    %c0_68 = arith.constant 0 : index
    %c0_69 = arith.constant 0 : index
    %c0_70 = arith.constant 0 : index
    %163 = vector.load %arg11[%c0_68, %c0_69, %c0_70] : memref<1x128x256xbf16, #tpu.memory_space<vmem>>, vector<1x128x256xbf16>
    %164 = vector.shape_cast %163 : vector<1x128x256xbf16> to vector<128x256xbf16>
    %cst_71 = arith.constant dense<0.000000e+00> : vector<128x256xf32>
    %165 = tpu.matmul %162, %164, %cst_71 {dimension_numbers = #tpu.dot_dimension_numbers<[1], [0], [0], [1], [0, 0, 1, 1], [], []>} : vector<128x128xbf16>, vector<128x256xbf16>, vector<128x256xf32> -> vector<128x256xf32>
    %c0_72 = arith.constant 0 : index
    %c0_73 = arith.constant 0 : index
    %c0_74 = arith.constant 0 : index
    %166 = vector.load %arg12[%c0_72, %c0_73, %c0_74] : memref<1x1x256xf32, #tpu.memory_space<vmem>>, vector<1x1x256xf32>
    %167 = vector.shape_cast %166 : vector<1x1x256xf32> to vector<1x256xf32>
    %168 = vector.broadcast %167 : vector<1x256xf32> to vector<128x256xf32>
    %169 = arith.addf %165, %168 : vector<128x256xf32>
    %cst_75 = arith.constant 5.000000e-01 : f32
    %170 = vector.broadcast %cst_75 : f32 to vector<128x256xf32>
    %171 = arith.mulf %170, %169 : vector<128x256xf32>
    %cst_76 = arith.constant 4.471500e-02 : f32
    %172 = vector.broadcast %cst_76 : f32 to vector<128x256xf32>
    %173 = arith.mulf %172, %169 : vector<128x256xf32>
    %174 = arith.mulf %173, %169 : vector<128x256xf32>
    %175 = arith.mulf %174, %169 : vector<128x256xf32>
    %176 = arith.addf %169, %175 : vector<128x256xf32>
    %cst_77 = arith.constant 0.797884583 : f32
    %177 = vector.broadcast %cst_77 : f32 to vector<128x256xf32>
    %178 = arith.mulf %177, %176 : vector<128x256xf32>
    %179 = math.tanh %178 : vector<128x256xf32>
    %cst_78 = arith.constant 1.000000e+00 : f32
    %180 = vector.broadcast %cst_78 : f32 to vector<128x256xf32>
    %181 = arith.addf %180, %179 : vector<128x256xf32>
    %182 = arith.mulf %171, %181 : vector<128x256xf32>
    %183 = arith.truncf %182 : vector<128x256xf32> to vector<128x256xbf16>
    %c0_79 = arith.constant 0 : index
    %c0_80 = arith.constant 0 : index
    %c0_81 = arith.constant 0 : index
    %184 = vector.load %arg13[%c0_79, %c0_80, %c0_81] : memref<1x256x128xbf16, #tpu.memory_space<vmem>>, vector<1x256x128xbf16>
    %185 = vector.shape_cast %184 : vector<1x256x128xbf16> to vector<256x128xbf16>
    %cst_82 = arith.constant dense<0.000000e+00> : vector<128x128xf32>
    %186 = tpu.matmul %183, %185, %cst_82 {dimension_numbers = #tpu.dot_dimension_numbers<[1], [0], [0], [1], [0, 0, 1, 1], [], []>} : vector<128x256xbf16>, vector<256x128xbf16>, vector<128x128xf32> -> vector<128x128xf32>
    %c0_83 = arith.constant 0 : index
    %c0_84 = arith.constant 0 : index
    %c0_85 = arith.constant 0 : index
    %187 = vector.load %arg14[%c0_83, %c0_84, %c0_85] : memref<1x1x128xf32, #tpu.memory_space<vmem>>, vector<1x1x128xf32>
    %188 = vector.shape_cast %187 : vector<1x1x128xf32> to vector<1x128xf32>
    %189 = vector.broadcast %188 : vector<1x128xf32> to vector<128x128xf32>
    %190 = arith.addf %186, %189 : vector<128x128xf32>
    %191 = arith.addf %190, %137 : vector<128x128xf32>
    %c0_86 = arith.constant 0 : index
    %c0_87 = arith.constant 0 : index
    %192 = vector.load %arg18[%c0_86, %c0_87] : memref<128x128xf32, #tpu.memory_space<vmem>>, vector<128x128xf32>
    tpu.vector_store %arg18[%c0_86, %c0_87], %191 {strides = array<i32>} : memref<128x128xf32, #tpu.memory_space<vmem>>, vector<128x128xf32>,
    %c1_i32 = arith.constant 1 : i32
    %193 = arith.cmpi eq, %arg1, %c1_i32 : i32
    %194 = arith.extui %193 : i1 to i32
    %c0_i32_88 = arith.constant 0 : i32
    %195 = arith.cmpi ne, %194, %c0_i32_88 : i32
    scf.if %195 {
      %c0_89 = arith.constant 0 : index
      %c0_90 = arith.constant 0 : index
      %196 = vector.load %arg15[%c0_89, %c0_90] : memref<1x128xf32, #tpu.memory_space<vmem>>, vector<1x128xf32>
      %c0_91 = arith.constant 0 : index
      %c0_92 = arith.constant 0 : index
      %197 = vector.load %arg16[%c0_91, %c0_92] : memref<1x128xf32, #tpu.memory_space<vmem>>, vector<1x128xf32>
      %cst_93 = arith.constant dense<0.000000e+00> : vector<128xf32>
      %198 = vector.multi_reduction <add>, %191, %cst_93 [1] : vector<128x128xf32> to vector<128xf32>
      %199 = vector.shape_cast %198 : vector<128xf32> to vector<128x1xf32>
      %cst_94 = arith.constant 1.280000e+02 : f32
      %200 = vector.broadcast %cst_94 : f32 to vector<128x1xf32>
      %201 = arith.divf %199, %200 : vector<128x1xf32>
      %202 = vector.broadcast %201 : vector<128x1xf32> to vector<128x128xf32>
      %203 = arith.subf %191, %202 : vector<128x128xf32>
      %204 = arith.mulf %203, %203 : vector<128x128xf32>
      %cst_95 = arith.constant dense<0.000000e+00> : vector<128xf32>
      %205 = vector.multi_reduction <add>, %204, %cst_95 [1] : vector<128x128xf32> to vector<128xf32>
      %206 = vector.shape_cast %205 : vector<128xf32> to vector<128x1xf32>
      %cst_96 = arith.constant 1.280000e+02 : f32
      %207 = vector.broadcast %cst_96 : f32 to vector<128x1xf32>
      %208 = arith.divf %206, %207 : vector<128x1xf32>
      %cst_97 = arith.constant 9.99999974E-6 : f32
      %209 = vector.broadcast %cst_97 : f32 to vector<128x1xf32>
      %210 = arith.addf %208, %209 : vector<128x1xf32>
      %211 = math.rsqrt %210 : vector<128x1xf32>
      %212 = vector.broadcast %211 : vector<128x1xf32> to vector<128x128xf32>
      %213 = arith.mulf %203, %212 : vector<128x128xf32>
      %214 = vector.broadcast %196 : vector<1x128xf32> to vector<128x128xf32>
      %215 = arith.mulf %213, %214 : vector<128x128xf32>
      %216 = vector.broadcast %197 : vector<1x128xf32> to vector<128x128xf32>
      %217 = arith.addf %215, %216 : vector<128x128xf32>
      %c0_98 = arith.constant 0 : index
      %c0_99 = arith.constant 0 : index
      %c0_100 = arith.constant 0 : index
      %218 = vector.load %arg17[%c0_98, %c0_99, %c0_100] : memref<1x128x128xf32, #tpu.memory_space<vmem>>, vector<1x128x128xf32>
      %219 = vector.shape_cast %218 : vector<1x128x128xf32> to vector<128x128xf32>
      %220 = vector.shape_cast %217 : vector<128x128xf32> to vector<1x128x128xf32>
      tpu.vector_store %arg17[%c0_98, %c0_99, %c0_100], %220 {strides = array<i32>} : memref<1x128x128xf32, #tpu.memory_space<vmem>>, vector<1x128x128xf32>,
    } else {
    }
    return
  }
  func.func @transform_0(%arg0: i32, %arg1: i32) -> (i32, i32, i32) {
    %c0_i32 = arith.constant 0 : i32
    %c0_i32_0 = arith.constant 0 : i32
    %c0_i32_1 = arith.constant 0 : i32
    return %arg0, %c0_i32, %c0_i32_0 : i32, i32, i32
  }
  func.func @transform_1(%arg0: i32, %arg1: i32) -> (i32, i32, i32) {
    %c0_i32 = arith.constant 0 : i32
    %c0_i32_0 = arith.constant 0 : i32
    %c0_i32_1 = arith.constant 0 : i32
    return %arg1, %c0_i32, %c0_i32_0 : i32, i32, i32
  }
  func.func @transform_2(%arg0: i32, %arg1: i32) -> (i32, i32, i32) {
    %c0_i32 = arith.constant 0 : i32
    %c0_i32_0 = arith.constant 0 : i32
    %c0_i32_1 = arith.constant 0 : i32
    return %arg1, %c0_i32, %c0_i32_0 : i32, i32, i32
  }
  func.func @transform_3(%arg0: i32, %arg1: i32) -> (i32, i32, i32) {
    %c0_i32 = arith.constant 0 : i32
    %c0_i32_0 = arith.constant 0 : i32
    %c0_i32_1 = arith.constant 0 : i32
    return %arg1, %c0_i32, %c0_i32_0 : i32, i32, i32
  }
  func.func @transform_4(%arg0: i32, %arg1: i32) -> (i32, i32, i32) {
    %c0_i32 = arith.constant 0 : i32
    %c0_i32_0 = arith.constant 0 : i32
    %c0_i32_1 = arith.constant 0 : i32
    return %arg1, %c0_i32, %c0_i32_0 : i32, i32, i32
  }
  func.func @transform_5(%arg0: i32, %arg1: i32) -> (i32, i32, i32) {
    %c0_i32 = arith.constant 0 : i32
    %c0_i32_0 = arith.constant 0 : i32
    %c0_i32_1 = arith.constant 0 : i32
    return %arg1, %c0_i32, %c0_i32_0 : i32, i32, i32
  }
  func.func @transform_6(%arg0: i32, %arg1: i32) -> (i32, i32, i32) {
    %c0_i32 = arith.constant 0 : i32
    %c0_i32_0 = arith.constant 0 : i32
    %c0_i32_1 = arith.constant 0 : i32
    return %arg1, %c0_i32, %c0_i32_0 : i32, i32, i32
  }
  func.func @transform_7(%arg0: i32, %arg1: i32) -> (i32, i32, i32) {
    %c0_i32 = arith.constant 0 : i32
    %c0_i32_0 = arith.constant 0 : i32
    %c0_i32_1 = arith.constant 0 : i32
    return %arg1, %c0_i32, %c0_i32_0 : i32, i32, i32
  }
  func.func @transform_8(%arg0: i32, %arg1: i32) -> (i32, i32, i32) {
    %c0_i32 = arith.constant 0 : i32
    %c0_i32_0 = arith.constant 0 : i32
    %c0_i32_1 = arith.constant 0 : i32
    return %arg1, %c0_i32, %c0_i32_0 : i32, i32, i32
  }
  func.func @transform_9(%arg0: i32, %arg1: i32) -> (i32, i32, i32) {
    %c0_i32 = arith.constant 0 : i32
    %c0_i32_0 = arith.constant 0 : i32
    %c0_i32_1 = arith.constant 0 : i32
    return %arg1, %c0_i32, %c0_i32_0 : i32, i32, i32
  }
  func.func @transform_10(%arg0: i32, %arg1: i32) -> (i32, i32, i32) {
    %c0_i32 = arith.constant 0 : i32
    %c0_i32_0 = arith.constant 0 : i32
    %c0_i32_1 = arith.constant 0 : i32
    return %arg1, %c0_i32, %c0_i32_0 : i32, i32, i32
  }
  func.func @transform_11(%arg0: i32, %arg1: i32) -> (i32, i32, i32) {
    %c0_i32 = arith.constant 0 : i32
    %c0_i32_0 = arith.constant 0 : i32
    %c0_i32_1 = arith.constant 0 : i32
    return %arg1, %c0_i32, %c0_i32_0 : i32, i32, i32
  }
  func.func @transform_12(%arg0: i32, %arg1: i32) -> (i32, i32, i32) {
    %c0_i32 = arith.constant 0 : i32
    %c0_i32_0 = arith.constant 0 : i32
    %c0_i32_1 = arith.constant 0 : i32
    return %arg1, %c0_i32, %c0_i32_0 : i32, i32, i32
  }
  func.func @transform_13(%arg0: i32, %arg1: i32) -> (i32, i32) {
    %c0_i32 = arith.constant 0 : i32
    %c0_i32_0 = arith.constant 0 : i32
    %c0_i32_1 = arith.constant 0 : i32
    return %c0_i32, %c0_i32_0 : i32, i32
  }
  func.func @transform_14(%arg0: i32, %arg1: i32) -> (i32, i32) {
    %c0_i32 = arith.constant 0 : i32
    %c0_i32_0 = arith.constant 0 : i32
    %c0_i32_1 = arith.constant 0 : i32
    return %c0_i32, %c0_i32_0 : i32, i32
  }
  func.func @transform_15(%arg0: i32, %arg1: i32) -> (i32, i32, i32) {
    %c0_i32 = arith.constant 0 : i32
    %c0_i32_0 = arith.constant 0 : i32
    %c0_i32_1 = arith.constant 0 : i32
    return %arg0, %c0_i32, %c0_i32_0 : i32, i32, i32
  }
}

</mosaic_0001>

<bundles_post_ra>
// kernel: transformer_forward.1
= control target key start
LH: loop header
LB: loop body
LE: loop exit
PB: predicated region body
PF: predicated region fallthrough
CT: control target
= control target key end

     0   :  { %s10109_s0 = inlined_call_operand.hbm [shape: f32[2,128,128], index: 0, kind: input, shape index: {}]   ;;  %s10110_s1 = inlined_call_operand.hbm [shape: f32[2,1,128], index: 1, kind: input, shape index: {}]   ;;  %s10111_s2 = inlined_call_operand.hbm [shape: f32[2,1,128], index: 2, kind: input, shape index: {}]   ;;  %s10112_s3 = inlined_call_operand.hbm [shape: bf16[2,128,128], index: 3, kind: input, shape index: {}]   ;;  %s10113_s4 = inlined_call_operand.hbm [shape: bf16[2,128,256], index: 4, kind: input, shape index: {}]   ;;  %s10114_s5 = inlined_call_operand.hbm [shape: bf16[2,128,128], index: 5, kind: input, shape index: {}]   ;;  %s10115_s6 = inlined_call_operand.vmem [shape: f32[2,1,128], index: 6, kind: input, shape index: {}]   ;;  %s10116_s7 = inlined_call_operand.vmem [shape: f32[2,1,128], index: 7, kind: input, shape index: {}]   ;;  %s10117_s8 = inlined_call_operand.hbm [shape: f32[2,1,128], index: 8, kind: input, shape index: {}]   ;;  %s10118_s9 = inlined_call_operand.hbm [shape: bf16[2,128,256], index: 9, kind: input, shape index: {}]   ;;  %s10119_s10 = inlined_call_operand.hbm [shape: f32[2,1,256], index: 10, kind: input, shape index: {}]   ;;  %s10120_s11 = inlined_call_operand.hbm [shape: bf16[2,256,128], index: 11, kind: input, shape index: {}]   ;;  %s10121_s12 = inlined_call_operand.hbm [shape: f32[2,1,128], index: 12, kind: input, shape index: {}]   ;;  %s10122_s13 = inlined_call_operand.vmem [shape: f32[1,128], index: 13, kind: input, shape index: {}]   ;;  %s10123_s14 = inlined_call_operand.vmem [shape: f32[1,128], index: 14, kind: input, shape index: {}]   ;;  %s10124_s15 = inlined_call_operand.hbm [shape: f32[2,128,128], index: 15, kind: output, shape index: {}]  }
   0x1   :  { %10146 = sst [smem:[#allocation40_spill]] %s10109_s0 }
   0x2   :  { %10147 = sst [smem:[#allocation41_spill]] %s10110_s1 }
   0x3   :  { %10148 = sst [smem:[#allocation42_spill]] %s10111_s2 }
   0x4   :  { %10149 = sst [smem:[#allocation43_spill]] %s10112_s3 }
   0x5   :  { %10150 = sst [smem:[#allocation44_spill]] %s10113_s4 }
   0x6   :  { %10151 = sst [smem:[#allocation45_spill]] %s10114_s5 }
   0x7   :  { %10152 = sst [smem:[#allocation46_spill]] %s10115_s6 }
   0x8   :  { %10153 = sst [smem:[#allocation47_spill]] %s10116_s7 }
   0x9   :  { %10154 = sst [smem:[#allocation48_spill]] %s10117_s8 }
   0xa   :  { %10155 = sst [smem:[#allocation49_spill]] %s10118_s9 }
   0xb   :  { %10156 = sst [smem:[#allocation50_spill]] %s10119_s10 }
   0xc   :  { %10157 = sst [smem:[#allocation51_spill]] %s10120_s11 }
   0xd   :  { %10158 = sst [smem:[#allocation52_spill]] %s10121_s12 }
   0xe   :  { %10159 = sst [smem:[#allocation53_spill]] %s10122_s13 }
   0xf   :  { %10160 = sst [smem:[#allocation54_spill]] %s10123_s14 }
  0x10   :  { %10161 = sst [smem:[#allocation55_spill]] %s10124_s15 }
  0x11   :  { %20 = vsyncpa [#allocation4], 0 }
  0x12   :  { %22 = vsyncpa [#allocation4 + $0x1], 0 }
  0x13   :  { %23 = vsyncpa [#allocation7], 0 }
  0x14   :  { %25 = vsyncpa [#allocation7 + $0x1], 0 }
  0x15   :  { %26 = vsyncpa [#allocation10], 0 }
  0x16   :  { %28 = vsyncpa [#allocation10 + $0x1], 0 }
  0x17   :  { %29 = vsyncpa [#allocation13], 0 }
  0x18   :  { %31 = vsyncpa [#allocation13 + $0x1], 0 }
  0x19   :  { %32 = vsyncpa [#allocation16], 0 }
  0x1a   :  { %34 = vsyncpa [#allocation16 + $0x1], 0 }
  0x1b   :  { %35 = vsyncpa [#allocation19], 0 }
  0x1c   :  { %37 = vsyncpa [#allocation19 + $0x1], 0 }
  0x1d   :  { %38 = vsyncpa [#allocation5], 0 }
  0x1e   :  { %40 = vsyncpa [#allocation5 + $0x1], 0  ;;  %s7175_s18 = smov 0   ;;  %s7177_s19 = smov 0  }
  0x1f   :  { %s7179_s20 = smov 0   ;;  %s7181_s21 = smov 0  }
  0x20   :  { %s7183_s22 = smov 0   ;;  %s7185_s23 = smov 0  }
  0x21   :  { %s7187_s24 = smov 0   ;;  %s7189_s25 = smov 0  }
  0x22   :  { %s7191_s26 = smov 0   ;;  %s7193_s27 = smov 0  }
  0x23   :  { %s7195_s28 = smov 0  }
  0x24 LB: > { %10162 = sst [smem:[#allocation29_spill]] %s7063_s23  ;;  %p73_p0 = scmp.eq.s32.totalorder %s7083_s28, 0  ;;  %s7083_s28 = sphi %s7195_s28, %s46_s28   ;;  %s7079_s27 = sphi %s7193_s27, %s10240_s27   ;;  %s7075_s26 = sphi %s7191_s26, %s10247_s26   ;;  %s7071_s25 = sphi %s7189_s25, %s10238_s25   ;;  %s7067_s24 = sphi %s7187_s24, %s10246_s24   ;;  %s7063_s23 = sphi %s7185_s23, %s10237_s23   ;;  %s7059_s22 = sphi %s7183_s22, %s10245_s22   ;;  %s7055_s21 = sphi %s7181_s21, %s10244_s21   ;;  %s7051_s20 = sphi %s7179_s20, %s10243_s20   ;;  %s7047_s19 = sphi %s7177_s19, %s10242_s19   ;;  %s7043_s18 = sphi %s7175_s18, %s10241_s18  }
  0x25   : > { %10163 = sst [smem:[#allocation30_spill]] %s7067_s24  ;;  %p98_p1 = scmp.ne.s32.totalorder %s7051_s20, %s7047_s19 }
  0x26   : > { %10164 = sst [smem:[#allocation31_spill]] %s7071_s25  ;;  %p104_p2 = scmp.ne.s32.totalorder %s7047_s19, %s7043_s18 }
  0x27   : > { %10165 = sst [smem:[#allocation32_spill]] %s7079_s27  ;;  %p10139_p3 = scmp.lt.s32.totalorder %s7083_s28, 4 }
  0x28   : > { %p100_p4 = por %p98_p1, %p73_p0  ;;  %s7240_s30 = sand.u32 1, %s7083_s28  }
  0x29   : > { %s7243_s16 = sand.u32 1, %s7051_s20   ;;  %s10166_s1 = sld [smem:[#allocation41_spill]] }
  0x2a   : > { %s513_s29 = scalar_lea.vmem [#allocation6], %s7243_s16  ;;  %p7252_p5 = pnand %p10139_p3, %p100_p4 }
  0x2b   : > { %s520_s13 = sshll.u32 %s513_s29, 4  ;;  %p5576_p6 = scmp.ge.s32.totalorder %s7083_s28, 1  ;;  %s521_s13 = int_to_ptr.vmem [resolvable:$true] %s520_s13 }
  0x2c   : > { %p717_p7 = scmp.lt.s32.totalorder %s7083_s28, 5  ;;  %s5559_s15 = sshll.u32 %s7243_s16, 6 }
  0x2d   : > { %s10127_s17 = scalar_lea.sflag [#allocation7], %s7240_s30  ;;  %s5913_s29 = sshll.u32 %s7075_s26, 6 }
  0x2e   : > { %p7264_p8 = pnand %p5576_p6, %p717_p7  ;;  %s10170_s3 = sld [smem:[#allocation43_spill]] }
  0x2f   : > { %s516_s25 = scalar_lea.hbm %s10166_s1, %s7075_s26  ;;  %s548_s1 = scalar_lea.vmem [#allocation9], %s5559_s15 }
  0x30   : > { %s518_s14 = sshll.u32 %s516_s25, 4  ;;  %s556_s6 = sshll.u32 %s548_s1, 4  ;;  %s519_s14 = int_to_ptr.hbm [resolvable:$true] %s518_s14  ;;  %s557_s6 = int_to_ptr.vmem [resolvable:$true] %s556_s6 }
  0x31   : > { %6037 = dma.hbm_to_vmem [thread:$0]  (!%p7252_p5), %s519_s14, 16, %s521_s13, %s10127_s17  }
  0x32   : > { %s10168_s25 = scalar_select %p7264_p8, 1, 0 }
  0x33   : > { %s10130_s13 = scalar_lea.sflag [#allocation10], %s7240_s30  ;;  %s10131_s14 = smov 64  }
  0x34   : > { %10169 = sst [smem:[#allocation33_spill]] %s10168_s25  ;;  %s553_s10 = scalar_lea.hbm %s10170_s3, %s5913_s29 }
  0x35   : > { %s554_s8 = sshll.u32 %s553_s10, 4  ;;  %s10132_s17 = smov 4   ;;  %s555_s8 = int_to_ptr.hbm [resolvable:$true] %s554_s8 }
  0x36   : > { %6043 = dma.hbm_to_vmem [thread:$0]  (!%p7252_p5), %s555_s8, 1024, %s557_s6, %s10130_s13, %s10131_s14, %s10131_s14, %s10132_s17  }
  0x37   : > { %s10171_s5 = sld [smem:[#allocation45_spill]]  ;;  %s592_s24 = scalar_lea.vmem [#allocation12], %s5559_s15 }
  0x38   : > { %s600_s3 = sshll.u32 %s592_s24, 4  ;;  %s10129_s10 = scalar_lea.sflag [#allocation13], %s7240_s30  ;;  %s601_s3 = int_to_ptr.vmem [resolvable:$true] %s600_s3 }
  0x39   : > { %s7292_s6 = sshll.u32 %s7243_s16, 7  ;;  %s7295_s8 = sshll.u32 %s7075_s26, 7 }
  0x3a   : > { %s10172_s9 = sld [smem:[#allocation49_spill]]  ;;  %s5553_s15 = sadd.s32 4294967294, %s7083_s28  }
  0x3b   : > { %s10173_s11 = sld [smem:[#allocation51_spill]]  ;;  %s55_s25 = sadd.s32 1, %s7075_s26 }
  0x3c   : > { %p56_p9 = scmp.ge.s32.totalorder %s55_s25, 2  ;;  %p72_p10 = scmp.ne.s32.totalorder %s7063_s23, %s7059_s22 }
  0x3d   : > { %s597_s12 = scalar_lea.hbm %s10171_s5, %s5913_s29  ;;  %s10174_s5 = smov 4  }
  0x3e   : > { %s598_s4 = sshll.u32 %s597_s12, 4  ;;  %s643_s12 = scalar_lea.vmem [#allocation15], %s7292_s6  ;;  %s599_s4 = int_to_ptr.hbm [resolvable:$true] %s598_s4 }
  0x3f   : > { %6049 = dma.hbm_to_vmem [thread:$0]  (!%p7252_p5), %s599_s4, 1024, %s601_s3, %s10129_s10, %s10131_s14, %s10131_s14, %s10132_s17  }
  0x40   : > { %s648_s29 = scalar_lea.hbm %s10172_s9, %s7295_s8  ;;  %s651_s24 = sshll.u32 %s643_s12, 4  ;;  %s652_s24 = int_to_ptr.vmem [resolvable:$true] %s651_s24 }
  0x41   : > { %s649_s1 = sshll.u32 %s648_s29, 4  ;;  %s10134_s3 = scalar_lea.sflag [#allocation16], %s7240_s30  ;;  %s650_s1 = int_to_ptr.hbm [resolvable:$true] %s649_s1 }
  0x42   : > { %s10135_s4 = smov 128   ;;  %s10137_s10 = smov 8  }
  0x43   : > { %6055 = dma.hbm_to_vmem [thread:$0]  (!%p7252_p5), %s650_s1, 2048, %s652_s24, %s10134_s3, %s10135_s4, %s10135_s4, %s10137_s10  }
  0x44   : > { %s689_s29 = scalar_lea.hbm %s10173_s11, %s7295_s8  ;;  %s684_s12 = scalar_lea.vmem [#allocation18], %s7292_s6 }
  0x45   : > { %s692_s13 = sshll.u32 %s684_s12, 4  ;;  %s690_s14 = sshll.u32 %s689_s29, 4  ;;  %s693_s13 = int_to_ptr.vmem [resolvable:$true] %s692_s13  ;;  %s691_s14 = int_to_ptr.hbm [resolvable:$true] %s690_s14 }
  0x46   : > { %s10133_s17 = scalar_lea.sflag [#allocation19], %s7240_s30  ;;  %s10175_s1 = smov 64  }
  0x47   : > { %6061 = dma.hbm_to_vmem [thread:$0]  (!%p7252_p5), %s691_s14, 2048, %s693_s13, %s10133_s17, %s10175_s1, %s10175_s1, %s10174_s5  }
  0x48   : > { %s7324_s24 = sadd.s32 4294967295, %s7083_s28   ;;  %s58_s29 = sadd.s32 1, %s7079_s27 }
  0x49   : > { %s65_s12 = sadd.s32 1, %s7063_s23  ;;  %s10249_s25 = smov (%p56_p9, %s55_s25), 0 }
  0x4a   : > { %10176 = sst [smem:[#allocation34_spill]] %s10249_s25  ;;  %s10251_s29 = smov (!%p56_p9, %s58_s29), %s7079_s27 }
  0x4b   : > { %p7340_p11 = por %p73_p0, %p72_p10  ;;  %p78_p12 = scmp.ne.s32.totalorder %s7059_s22, %s7055_s21 }
  0x4c   : > { %p60_p13 = scmp.ge.s32.totalorder %s10251_s29, 2  ;;  %p79_p1 = scmp.eq.s32.totalorder %s7324_s24, 0 }
  0x4d   : > { %s88_s13 = ssub.s32 %s7075_s26, %s10249_s25  ;;  %p456_p4 = scmp.eq.s32.totalorder %s7324_s24, 3 }
  0x4e   : > { %s10253_s29 = smov (%p60_p13, %s10251_s29), 0  ;;  %p7355_p6 = por %p79_p1, %p78_p12 }
  0x4f   : > { %10178 = sst [smem:[#allocation35_spill]] %s10253_s29  ;;  %p89_p0 = scmp.eq.s32.totalorder %s88_s13, 0 }
  0x50   : > { %s62_s1 = ssub.s32 %s7079_s27, %s10253_s29  ;;  %p7364_p7 = por %p104_p2, %p79_p1 }
  0x51   : > { %p63_p9 = scmp.eq.s32.totalorder %s62_s1, 0  ;;  %p7371_p13 = por %p456_p4, %p72_p10 }
  0x52   : > { %s10183_s4 = sadd.s32 1, %s7051_s20  ;;  %p462_p3 = scmp.eq.s32.totalorder %s5553_s15, 3 }
  0x53   : > { %s10181_s3 = scalar_select %p7371_p13, 1, 0 }
  0x54   : > { %s7378_s10 = scalar_select %p89_p0, %s7051_s20, %s10183_s4  }
  0x55   : > { %10182 = sst [smem:[#allocation36_spill]] %s10181_s3  ;;  %s488_s18 = sand.u32 1, %s7063_s23  }
  0x56   : > { %10184 = sst [smem:[#allocation37_spill]] %s7378_s10  ;;  %s5556_s13 = sshll.u32 %s488_s18, 7 }
  0x57   : > { %s7381_s9 = scalar_select %p63_p9, %s7063_s23, %s65_s12  }
  0x58   : > { %p7387_p2 = por %p462_p3, %p78_p12  ;;  %s5912_s1 = sshll.u32 %s7079_s27, 7 }
  0x59   : > { %10185 = sst [smem:[#allocation38_spill]] %s7381_s9  ;;  %s492_s29 = scalar_lea.vmem [#allocation3], %s5556_s13 }
  0x5a   : > { %s500_s25 = sshll.u32 %s492_s29, 4  ;;  %s10187_s0 = sld [smem:[#allocation40_spill]]  ;;  %s501_s25 = int_to_ptr.vmem [resolvable:$true] %s500_s25 }
  0x5b   : > { %p10188_p10 = scmp.lt.s32.totalorder %s7083_s28, 4  ;;  %s10189_s2 = sld [smem:[#allocation42_spill]] }
  0x5c   : > { %s489_s13 = scalar_lea.sflag [#allocation4], %s488_s18  ;;  %s10190_s29 = smov 8  }
  0x5d   : > { %p6032_p1 = pnand %p10188_p10, %p7340_p11  ;;  %s10191_s10 = smov 128  }
  0x5e   : > { %s10192_s5 = scalar_lea.sflag [#allocation7], %s7240_s30  ;;  %s10197_s9 = sld [smem:[#allocation50_spill]] }
  0x60   : > { %s497_s12 = scalar_lea.hbm %s10187_s0, %s5912_s1  ;;  %s530_s1 = scalar_lea.vmem [#allocation8], %s7243_s16 }
  0x61   : > { %s498_s15 = sshll.u32 %s497_s12, 4  ;;  %s533_s27 = scalar_lea.hbm %s10189_s2, %s7075_s26  ;;  %s499_s15 = int_to_ptr.hbm [resolvable:$true] %s498_s15 }
  0x62   : > { %6034 = dma.hbm_to_vmem [thread:$0]  (!%p6032_p1), %s499_s15, 2048, %s501_s25, %s489_s13, %s10191_s10, %s10191_s10, %s10190_s29  }
  0x63   : > { %s535_s3 = sshll.u32 %s533_s27, 4  ;;  %s537_s4 = sshll.u32 %s530_s1, 4  ;;  %s536_s3 = int_to_ptr.hbm [resolvable:$true] %s535_s3  ;;  %s538_s4 = int_to_ptr.vmem [resolvable:$true] %s537_s4 }
  0x64   : > { %6040 = dma.hbm_to_vmem [thread:$0]  (!%p7252_p5), %s536_s3, 16, %s538_s4, %s10192_s5  }
  0x65   : > { %s10193_s12 = sld [smem:[#allocation44_spill]]  ;;  %s570_s2 = scalar_lea.vmem [#allocation11], %s7292_s6 }
  0x66   : > { %s578_s25 = sshll.u32 %s570_s2, 4  ;;  %s10194_s27 = scalar_lea.sflag [#allocation10], %s7240_s30  ;;  %s579_s25 = int_to_ptr.vmem [resolvable:$true] %s578_s25 }
  0x67   : > { %s10195_s1 = sld [smem:[#allocation48_spill]]  ;;  %s10196_s2 = scalar_lea.sflag [#allocation13], %s7240_s30 }
  0x68   : > { %s5571_s5 = sshll.u32 %s7243_s16, 1 }
  0x6b   : > { %s575_s18 = scalar_lea.hbm %s10193_s12, %s7295_s8  ;;  %s625_s8 = scalar_lea.vmem [#allocation14], %s7243_s16 }
  0x6c   : > { %s576_s0 = sshll.u32 %s575_s18, 4  ;;  %s632_s6 = sshll.u32 %s625_s8, 4  ;;  %s577_s0 = int_to_ptr.hbm [resolvable:$true] %s576_s0  ;;  %s633_s6 = int_to_ptr.vmem [resolvable:$true] %s632_s6 }
  0x6d   : > { %6046 = dma.hbm_to_vmem [thread:$0]  (!%p7252_p5), %s577_s0, 2048, %s579_s25, %s10194_s27, %s10191_s10, %s10191_s10, %s10190_s29  }
  0x6e   : > { %s628_s3 = scalar_lea.hbm %s10195_s1, %s7075_s26  ;;  %s5572_s0 = sshll.u32 %s7075_s26, 1 }
  0x6f   : > { %s630_s4 = sshll.u32 %s628_s3, 4  ;;  %s669_s23 = scalar_lea.hbm %s10197_s9, %s5572_s0  ;;  %s631_s4 = int_to_ptr.hbm [resolvable:$true] %s630_s4 }
  0x70   : > { %6052 = dma.hbm_to_vmem [thread:$0]  (!%p7252_p5), %s631_s4, 16, %s633_s6, %s10196_s2  }
  0x71   : > { %s671_s12 = sshll.u32 %s669_s23, 4  ;;  %s665_s18 = scalar_lea.vmem [#allocation17], %s5571_s5  ;;  %s672_s12 = int_to_ptr.hbm [resolvable:$true] %s671_s12 }
  0x72   : > { %s673_s25 = sshll.u32 %s665_s18, 4  ;;  %s10198_s27 = scalar_lea.sflag [#allocation16], %s7240_s30  ;;  %s674_s25 = int_to_ptr.vmem [resolvable:$true] %s673_s25 }
  0x73   : > { %6058 = dma.hbm_to_vmem [thread:$0]  (!%p7252_p5), %s672_s12, 32, %s674_s25, %s10198_s27  }
  0x74   : > { %s10199_s1 = sld [smem:[#allocation52_spill]]  ;;  %s705_s8 = scalar_lea.vmem [#allocation20], %s7243_s16 }
  0x75   : > { %s712_s6 = sshll.u32 %s705_s8, 4  ;;  %s10200_s2 = scalar_lea.sflag [#allocation19], %s7240_s30  ;;  %s713_s6 = int_to_ptr.vmem [resolvable:$true] %s712_s6 }
  0x78   : > { %721 = sbr.rel (%p7264_p8) target bundleno = 3474 (0xd92), region = 80 }
  0x7a   : > { %s708_s3 = scalar_lea.hbm %s10199_s1, %s7075_s26 }
  0x7b   : > { %s710_s4 = sshll.u32 %s708_s3, 4  ;;  %s711_s4 = int_to_ptr.hbm [resolvable:$true] %s710_s4 }
  0x7c   : > { %6064 = dma.hbm_to_vmem [thread:$0]  (!%p7252_p5), %s711_s4, 16, %s713_s6, %s10200_s2  }
  0x7d   : > { %s7453_s5 = sand.u32 1, %s7059_s22  }
  0x7e   : > { %s5577_s10 = sshll.u32 %s7453_s5, 7  ;;  %s724_s29 = scalar_lea.sflag [#allocation4], %s7453_s5 }
  0x7f   : > { %s7459_s16 = scalar_lea.vmem [#allocation3], %s5577_s10 }
  0x80   : > { %7014 = dma.done.wait (%p7355_p6), %s724_s29, 2048  }
  0x81   : > { %7016 = vsyncadd (%p7355_p6), %s724_s29, 4294965248  ;;  %s733_s7 = sand.u32 1, %s7324_s24   ;;  %s7467_s30 = sand.u32 1, %s7047_s19  }
  0x82   : > { %s734_s9 = scalar_lea.sflag [#allocation7], %s733_s7  ;;  %s736_s23 = scalar_lea.vmem [#allocation6], %s7467_s30 }
  0x83   : > { %7018 = dma.done.wait (%p7364_p7), %s734_s9, 32  }
  0x84   : > { %7020 = vsyncadd (%p7364_p7), %s734_s9, 4294967264  ;;  %s5578_s12 = sshll.u32 %s7467_s30, 6  ;;  %s752_s18 = scalar_lea.sflag [#allocation10], %s733_s7 }
  0x85   : > { %s7476_s25 = scalar_lea.vmem [#allocation9], %s5578_s12 }
  0x86   : > { %7022 = dma.done.wait (%p7364_p7), %s752_s18, 3072  }
  0x87   : > { %7024 = vsyncadd (%p7364_p7), %s752_s18, 4294964224  ;;  %s5579_s24 = sshll.u32 %s7467_s30, 7  ;;  %s772_s15 = scalar_lea.sflag [#allocation13], %s733_s7 }
  0x88   : > { %s7483_s27 = scalar_lea.vmem [#allocation11], %s5579_s24  ;;  %s7485_s13 = scalar_lea.vmem [#allocation12], %s5578_s12 }
  0x89   : > { %7026 = dma.done.wait (%p7364_p7), %s772_s15, 1040  }
  0x8a   : > { %7028 = vsyncadd (%p7364_p7), %s772_s15, 4294966256  ;;  %s791_s3 = scalar_lea.sflag [#allocation16], %s733_s7  ;;  %s7492_s4 = scalar_lea.vmem [#allocation15], %s5579_s24 }
  0x8b   : > { %7030 = dma.done.wait (%p7364_p7), %s791_s3, 2080  }
  0x8c   : > { %7032 = vsyncadd (%p7364_p7), %s791_s3, 4294965216  ;;  %s5582_s8 = sshll.u32 %s7467_s30, 1  ;;  %s811_s2 = scalar_lea.sflag [#allocation19], %s733_s7 }
  0x8d   : > { %s7499_s6 = scalar_lea.vmem [#allocation17], %s5582_s8  ;;  %s7501_s0 = scalar_lea.vmem [#allocation18], %s5579_s24 }
  0x8e   : > { %7034 = dma.done.wait (%p7364_p7), %s811_s2, 2064  }
  0x8f   : > { %7036 = vsyncadd (%p7364_p7), %s811_s2, 4294965232  ;;  %s10202_s29 = sld [smem:[#allocation30_spill]]  ;;  %s823_s14 = scalar_lea.vmem [#allocation20], %s7467_s30 }
  0x90   : > { %s10203_s15 = sld [smem:[#allocation46_spill]]  ;;  %s7522_s17 = scalar_lea.vmem [#allocation21], %s5577_s10 }
  0x91   : > { %s10204_s8 = sld [smem:[#allocation47_spill]] }
  0x95   : > { %p923_p3 = scmp.lt.s32.totalorder %s10202_s29, 1  ;;  %p5585_p5 = scmp.ne.s32.totalorder %s10202_s29, 0 }
  0x97   : > { %s7509_s9 = scalar_select %p923_p3, %s10202_s29, 1 }
  0x98   : > { %933 = sbr.rel (%p5585_p5) target bundleno = 174 (0xae), region = 128 }
  0x99   : > { %s925_s7 = scalar_lea.vmem %s10203_s15, %s7509_s9  ;;  %s928_s1 = scalar_lea.vmem %s10204_s8, %s7509_s9 }
  0x9d   : > { %v934_v0 = vld [vmem:[%s7459_s16] sm:$0xff]  ;;  %v935_v1 = vld [vmem:[%s7459_s16 + $0x8] sm:$0xff]  ;;  %v936_v2 = vld [vmem:[%s7459_s16 + $0x10] sm:$0xff] }
  0x9e   : > { %950 = vst [vmem:[#allocation2 + $0x30] sm:$0xff] %v934_v0  ;;  %v937_v3 = vld [vmem:[%s7459_s16 + $0x18] sm:$0xff]  ;;  %v938_v4 = vld [vmem:[%s7459_s16 + $0x20] sm:$0xff]  ;;  %v939_v5 = vld [vmem:[%s7459_s16 + $0x28] sm:$0xff] }
  0x9f   : > { %951 = vst [vmem:[#allocation2] sm:$0xff] %v935_v1  ;;  %v940_v6 = vld [vmem:[%s7459_s16 + $0x30] sm:$0xff]  ;;  %v941_v7 = vld [vmem:[%s7459_s16 + $0x38] sm:$0xff]  ;;  %v942_v8 = vld [vmem:[%s7459_s16 + $0x40] sm:$0xff] }
  0xa0   : > { %952 = vst [vmem:[#allocation2 + $0x58] sm:$0xff] %v936_v2  ;;  %v943_v9 = vld [vmem:[%s7459_s16 + $0x48] sm:$0xff]  ;;  %v944_v10 = vld [vmem:[%s7459_s16 + $0x50] sm:$0xff]  ;;  %v945_v11 = vld [vmem:[%s7459_s16 + $0x58] sm:$0xff] }
  0xa1   : > { %953 = vst [vmem:[#allocation2 + $0x18] sm:$0xff] %v937_v3  ;;  %v946_v12 = vld [vmem:[%s7459_s16 + $0x60] sm:$0xff]  ;;  %v947_v13 = vld [vmem:[%s7459_s16 + $0x68] sm:$0xff]  ;;  %v948_v14 = vld [vmem:[%s7459_s16 + $0x70] sm:$0xff] }
  0xa2   : > { %954 = vst [vmem:[#allocation2 + $0x50] sm:$0xff] %v938_v4  ;;  %v949_v15 = vld [vmem:[%s7459_s16 + $0x78] sm:$0xff] }
  0xa3   : > { %955 = vst [vmem:[#allocation2 + $0x68] sm:$0xff] %v939_v5 }
  0xa4   : > { %956 = vst [vmem:[#allocation2 + $0x8] sm:$0xff] %v940_v6 }
  0xa5   : > { %957 = vst [vmem:[#allocation2 + $0x48] sm:$0xff] %v941_v7 }
  0xa6   : > { %958 = vst [vmem:[#allocation2 + $0x40] sm:$0xff] %v942_v8 }
  0xa7   : > { %959 = vst [vmem:[#allocation2 + $0x20] sm:$0xff] %v943_v9 }
  0xa8   : > { %960 = vst [vmem:[#allocation2 + $0x10] sm:$0xff] %v944_v10 }
  0xa9   : > { %961 = vst [vmem:[#allocation2 + $0x38] sm:$0xff] %v945_v11 }
  0xaa   : > { %962 = vst [vmem:[#allocation2 + $0x60] sm:$0xff] %v946_v12 }
  0xab   : > { %963 = vst [vmem:[#allocation2 + $0x70] sm:$0xff] %v947_v13 }
  0xac   : > { %964 = vst [vmem:[#allocation2 + $0x78] sm:$0xff] %v948_v14 }
  0xad   : > { %965 = vst [vmem:[#allocation2 + $0x28] sm:$0xff] %v949_v15 }
  0xae PF: > { %v974_v16 = vld [vmem:[#allocation2 + $0x40] sm:$0xff]  ;;  %v966_v17 = vld [vmem:[#allocation2 + $0x30] sm:$0xff]  ;;  %v968_v18 = vld [vmem:[#allocation2 + $0x58] sm:$0xff]  ;;  %v7089_v26 = vmov 128.0   ;;  %s10211_s10 = scalar_lea.vmem [#allocation8], %s7467_s30  ;;  %s7090_s16 = smov 64  }
  0xaf   : > { %1000 = vadd.xlane.f32.xlu1 %v974_v16  ;;  %984 = vadd.xlane.f32.xlu0 %v966_v17  ;;  %v975_v19 = vld [vmem:[#allocation2 + $0x20] sm:$0xff]  ;;  %v969_v21 = vld [vmem:[#allocation2 + $0x18] sm:$0xff]  ;;  %v976_v22 = vld [vmem:[#allocation2 + $0x10] sm:$0xff]  ;;  %6175 = vrcp.f32 %v7089_v26 }
  0xb0   : > { %988 = vadd.xlane.f32.xlu2 %v968_v18  ;;  %v967_v20 = vld [vmem:[#allocation2] sm:$0xff]  ;;  %v977_v23 = vld [vmem:[#allocation2 + $0x38] sm:$0xff]  ;;  %v7593_v5 = vld [vmem:[#allocation2 + $0x68] sm:$0xff] }
  0xb1   : > { %v978_v24 = vld [vmem:[#allocation2 + $0x60] sm:$0xff]  ;;  %v7600_v9 = vld [vmem:[#allocation2 + $0x8] sm:$0xff]  ;;  %v7603_v11 = vld [vmem:[#allocation2 + $0x50] sm:$0xff] }
  0xb2   : > { %v7541_v25 = vld [vmem:[#allocation2 + $0x70] sm:$0xff]  ;;  %v7610_v13 = vld [vmem:[#allocation2 + $0x48] sm:$0xff] }
  0xb3   : > { %v7579_v61 = vld [vmem:[#allocation2 + $0x78] sm:$0xff]  ;;  %v5676_v15 = vld [vmem:[%s7483_s27 + $0x70] sm:$0xf] }
  0xb4   : > { %v7563_v49 = vld [vmem:[#allocation2 + $0x28] sm:$0xff] }
  0xb5   : > { %v6176_v27 = vpop.eup %6175 }
  0xb6   : > { %v1017_v28 = vmul.f32 128.0, %v6176_v27  ;;  %vm1021_vm0 = vweird.f32 %v6176_v27 }
  0xb7   : > { %1002 = vadd.xlane.f32.xlu1 %v975_v19  ;;  %986 = vadd.xlane.f32.xlu0 %v967_v20 }
  0xb8   : > { %990 = vadd.xlane.f32.xlu2 %v969_v21  ;;  %v1018_v29 = vsub.f32 1.0, %v1017_v28 }
  0xba   : > { %v1019_v30 = vmul.f32 %v6176_v27, %v1018_v29  ;;  %v5660_v29 = vld [vmem:[%s7483_s27 + $0x50] sm:$0xf] }
  0xbc   : > { %v1020_v31 = vadd.f32 %v6176_v27, %v1019_v30  ;;  %v5937_v30 = vld [vmem:[%s7483_s27 + $0x54] sm:$0xf0] }
  0xbe   : > { %v7544_v32 = vsel %vm1021_vm0, %v6176_v27, %v1020_v31  ;;  %v5670_v27 = vld [vmem:[%s7483_s27 + $0x68] sm:$0xf0]  ;;  %v5936_v31 = vld [vmem:[%s7483_s27 + $0x54] sm:$0xf] }
  0xbf   : > { %1004 = vadd.xlane.f32.xlu0 %v976_v22  ;;  %1006 = vadd.xlane.f32.xlu1 %v977_v23 }
  0xc0   : > { %1008 = vadd.xlane.f32.xlu2 %v978_v24 }
  0xc7   : > { %1010 = vadd.xlane.f32.xlu0 %v7541_v25 }
 0x122   : > { %v1001_v33 = vpop.xlane.xlu1 %1000  ;;  %v985_v34 = vpop.xlane.xlu0 %984 }
 0x123   : > { %v1031_v35 = vmul.f32 %v7544_v32, %v1001_v33  ;;  %v1023_v36 = vmul.f32 %v7544_v32, %v985_v34  ;;  %v989_v39 = vpop.xlane.xlu2 %988  ;;  %v5923_v33 = vld [vmem:[%s7476_s25 + $0x28] sm:$0xff]  ;;  %v7635_v34 = vor.u32 %v5937_v30, %v5660_v29 }
 0x124   : > { %v1025_v48 = vmul.f32 %v7544_v32, %v989_v39  ;;  %v5652_v39 = vld [vmem:[%s7483_s27 + $0x40] sm:$0xf]  ;;  %v5622_v30 = vld [vmem:[%s7483_s27 + $0x8] sm:$0xf0] }
 0x125   : > { %v7548_v37 = vsub.f32 %v974_v16, %v1031_v35  ;;  %v7550_v38 = vsub.f32 %v966_v17, %v1023_v36  ;;  %v5941_v16 = vld [vmem:[%s7483_s27 + $0x74] sm:$0xf0]  ;;  %v5940_v17 = vld [vmem:[%s7483_s27 + $0x74] sm:$0xf]  ;;  %v5662_v35 = vld [vmem:[%s7483_s27 + $0x58] sm:$0xf0] }
 0x126   : > { %v7570_v53 = vsub.f32 %v968_v18, %v1025_v48  ;;  %v5925_v18 = vld [vmem:[%s7476_s25 + $0x38] sm:$0xff]  ;;  %v5665_v36 = vor.u32 %v5936_v31, %v5662_v35  ;;  %v5644_v48 = vld [vmem:[%s7483_s27 + $0x30] sm:$0xf] }
 0x127   : > { %v1063_v40 = vmul.f32 %v7548_v37, %v7548_v37  ;;  %v1055_v41 = vmul.f32 %v7550_v38, %v7550_v38  ;;  %1421 = vmatpush.bf16.msra.mxu0 %v5925_v18  ;;  %5983 = vmatpush.bf16.msra.mxu3 %v5925_v18 }
 0x128   : > { %v1057_v57 = vmul.f32 %v7570_v53, %v7570_v53 }
 0x129   : > { %1087 = vadd.xlane.f32.xlu0 %v1063_v40  ;;  %1071 = vadd.xlane.f32.xlu1 %v1055_v41  ;;  %v5935_v40 = vld [vmem:[%s7483_s27 + $0x44] sm:$0xf0]  ;;  %v5934_v41 = vld [vmem:[%s7483_s27 + $0x44] sm:$0xf] }
 0x12a   : > { %v1003_v42 = vpop.xlane.xlu1 %1002  ;;  %v987_v43 = vpop.xlane.xlu0 %986 }
 0x12b   : > { %v1032_v44 = vmul.f32 %v7544_v32, %v1003_v42  ;;  %v1024_v45 = vmul.f32 %v7544_v32, %v987_v43  ;;  %v991_v52 = vpop.xlane.xlu2 %990  ;;  %v5922_v42 = vld [vmem:[%s7476_s25 + $0x20] sm:$0xff]  ;;  %v7643_v43 = vor.u32 %v5935_v40, %v5652_v39 }
 0x12c   : > { %v1026_v60 = vmul.f32 %v7544_v32, %v991_v52  ;;  %v5921_v52 = vld [vmem:[%s7476_s25 + $0x18] sm:$0xff] }
 0x12d   : > { %v7558_v46 = vsub.f32 %v975_v19, %v1032_v44  ;;  %v7560_v47 = vsub.f32 %v967_v20, %v1024_v45  ;;  %v7619_v19 = vor.u32 %v5941_v16, %v5676_v15  ;;  %v5678_v20 = vld [vmem:[%s7483_s27 + $0x78] sm:$0xf0]  ;;  %v5654_v44 = vld [vmem:[%s7483_s27 + $0x48] sm:$0xf0] }
 0x12e   : > { %v7586_v0 = vsub.f32 %v969_v21, %v1026_v60  ;;  %v5681_v21 = vor.u32 %v5940_v17, %v5678_v20  ;;  %v5657_v45 = vor.u32 %v5934_v41, %v5654_v44  ;;  %v5930_v60 = vld [vmem:[%s7483_s27 + $0x24] sm:$0xf]  ;;  %v5919_v15 = vld [vmem:[%s7476_s25 + $0x8] sm:$0xff]  ;;  %v5630_v17 = vld [vmem:[%s7483_s27 + $0x18] sm:$0xf0] }
 0x12f   : > { %v1064_v50 = vmul.f32 %v7558_v46, %v7558_v46  ;;  %v1056_v51 = vmul.f32 %v7560_v47, %v7560_v47  ;;  %5991 = vmatpush.bf16.msra.mxu1 %v7619_v19 }
 0x130   : > { %v1058_v4 = vmul.f32 %v7586_v0, %v7586_v0  ;;  %1615 = vmatpush.bf16.msra.mxu2 %v5681_v21 }
 0x131   : > { %1014 = vadd.xlane.f32.xlu0 %v7563_v49  ;;  %1089 = vadd.xlane.f32.xlu1 %v1064_v50  ;;  %v5933_v50 = vld [vmem:[%s7483_s27 + $0x34] sm:$0xf0] }
 0x132   : > { %1073 = vadd.xlane.f32.xlu2 %v1056_v51  ;;  %v1005_v54 = vpop.xlane.xlu0 %1004  ;;  %v1007_v55 = vpop.xlane.xlu1 %1006  ;;  %v5932_v51 = vld [vmem:[%s7483_s27 + $0x34] sm:$0xf] }
 0x133   : > { %v1033_v56 = vmul.f32 %v7544_v32, %v1005_v54  ;;  %v1034_v59 = vmul.f32 %v7544_v32, %v1007_v55  ;;  %v1009_v1 = vpop.xlane.xlu2 %1008  ;;  %v7651_v54 = vor.u32 %v5933_v50, %v5644_v48  ;;  %v5646_v55 = vld [vmem:[%s7483_s27 + $0x38] sm:$0xf0] }
 0x134   : > { %v1035_v3 = vmul.f32 %v7544_v32, %v1009_v1 }
 0x135   : > { %v7575_v58 = vsub.f32 %v976_v22, %v1033_v56  ;;  %v7583_v63 = vsub.f32 %v977_v23, %v1034_v59  ;;  %v5668_v22 = vld [vmem:[%s7483_s27 + $0x60] sm:$0xf]  ;;  %v5939_v23 = vld [vmem:[%s7483_s27 + $0x64] sm:$0xf0]  ;;  %v5649_v56 = vor.u32 %v5932_v51, %v5646_v55 }
 0x136   : > { %v7596_v6 = vsub.f32 %v978_v24, %v1035_v3  ;;  %v5938_v24 = vld [vmem:[%s7483_s27 + $0x64] sm:$0xf]  ;;  %v7627_v26 = vor.u32 %v5939_v23, %v5668_v22  ;;  %v5931_v59 = vld [vmem:[%s7483_s27 + $0x24] sm:$0xf0] }
 0x137   : > { %v1065_v62 = vmul.f32 %v7575_v58, %v7575_v58  ;;  %v1066_v2 = vmul.f32 %v7583_v63, %v7583_v63  ;;  %v5673_v28 = vor.u32 %v5938_v24, %v5670_v27  ;;  %v5620_v24 = vld [vmem:[%s7483_s27] sm:$0xf]  ;;  %v5927_v27 = vld [vmem:[%s7483_s27 + $0x4] sm:$0xf0] }
 0x138   : > { %v1067_v8 = vmul.f32 %v7596_v6, %v7596_v6  ;;  %5992 = vmatpush.bf16.msra.mxu1 %v7627_v26  ;;  %v7679_v29 = vor.u32 %v5927_v27, %v5620_v24 }
 0x139   : > { %1075 = vadd.xlane.f32.xlu1 %v1057_v57  ;;  %1091 = vadd.xlane.f32.xlu0 %v1065_v62  ;;  %v5636_v57 = vld [vmem:[%s7483_s27 + $0x20] sm:$0xf]  ;;  %v5920_v62 = vld [vmem:[%s7476_s25 + $0x10] sm:$0xff] }
 0x13a   : > { %1012 = vadd.xlane.f32.xlu2 %v7579_v61  ;;  %v1011_v7 = vpop.xlane.xlu0 %1010  ;;  %1616 = vmatpush.bf16.msra.mxu2 %v5673_v28  ;;  %v7659_v1 = vor.u32 %v5931_v59, %v5636_v57  ;;  %v5926_v28 = vld [vmem:[%s7483_s27 + $0x4] sm:$0xf] }
 0x13b   : > { %v1036_v10 = vmul.f32 %v7544_v32, %v1011_v7  ;;  %v5929_v7 = vld [vmem:[%s7483_s27 + $0x14] sm:$0xf0]  ;;  %v5625_v31 = vor.u32 %v5926_v28, %v5622_v30 }
 0x13c   : > { %5993 = vmatpush.bf16.msra.mxu1 %v7635_v34 }
 0x13d   : > { %v7608_v12 = vsub.f32 %v7541_v25, %v1036_v10  ;;  %v5924_v25 = vld [vmem:[%s7476_s25 + $0x30] sm:$0xff] }
 0x13e   : > { %1422 = vmatpush.bf16.msra.mxu0 %v5924_v25  ;;  %5984 = vmatpush.bf16.msra.mxu3 %v5924_v25  ;;  %v5918_v25 = vld [vmem:[%s7476_s25] sm:$0xff]  ;;  %s7092_s25 = smov 32  }
 0x13f   : > { %v1068_v14 = vmul.f32 %v7608_v12, %v7608_v12  ;;  %1617 = vmatpush.bf16.msra.mxu2 %v5665_v36 }
 0x140   : > { %5994 = vmatpush.bf16.msra.mxu1 %v7643_v43 }
 0x141   : > { %1093 = vadd.xlane.f32.xlu1 %v1066_v2  ;;  %994 = vadd.xlane.f32.xlu0 %v7593_v5  ;;  %v5638_v2 = vld [vmem:[%s7483_s27 + $0x28] sm:$0xf0] }
 0x142   : > { %1077 = vadd.xlane.f32.xlu2 %v1058_v4  ;;  %1423 = vmatpush.bf16.msra.mxu0 %v5923_v33  ;;  %v5641_v3 = vor.u32 %v5930_v60, %v5638_v2  ;;  %v5628_v4 = vld [vmem:[%s7483_s27 + $0x10] sm:$0xf] }
 0x143   : > { %5985 = vmatpush.bf16.msra.mxu3 %v5923_v33  ;;  %1618 = vmatpush.bf16.msra.mxu2 %v5657_v45  ;;  %v7667_v16 = vor.u32 %v5929_v7, %v5628_v4 }
 0x144   : > { %5995 = vmatpush.bf16.msra.mxu1 %v7651_v54 }
 0x146   : > { %1424 = vmatpush.bf16.msra.mxu0 %v5922_v42 }
 0x147   : > { %5986 = vmatpush.bf16.msra.mxu3 %v5922_v42  ;;  %1619 = vmatpush.bf16.msra.mxu2 %v5649_v56 }
 0x148   : > { %5996 = vmatpush.bf16.msra.mxu1 %v7659_v1 }
 0x149   : > { %1095 = vadd.xlane.f32.xlu1 %v1067_v8  ;;  %996 = vadd.xlane.f32.xlu0 %v7600_v9  ;;  %v5928_v8 = vld [vmem:[%s7483_s27 + $0x14] sm:$0xf] }
 0x14a   : > { %992 = vadd.xlane.f32.xlu2 %v7603_v11  ;;  %1425 = vmatpush.bf16.msra.mxu0 %v5921_v52  ;;  %v5633_v21 = vor.u32 %v5928_v8, %v5630_v17 }
 0x14b   : > { %5987 = vmatpush.bf16.msra.mxu3 %v5921_v52  ;;  %1620 = vmatpush.bf16.msra.mxu2 %v5641_v3 }
 0x14c   : > { %5997 = vmatpush.bf16.msra.mxu1 %v7667_v16 }
 0x14e   : > { %1426 = vmatpush.bf16.msra.mxu0 %v5920_v62 }
 0x14f   : > { %5988 = vmatpush.bf16.msra.mxu3 %v5920_v62  ;;  %1621 = vmatpush.bf16.msra.mxu2 %v5633_v21 }
 0x150   : > { %5998 = vmatpush.bf16.msra.mxu1 %v7679_v29 }
 0x151   : > { %998 = vadd.xlane.f32.xlu1 %v7610_v13 }
 0x152   : > { %1097 = vadd.xlane.f32.xlu2 %v1068_v14  ;;  %1427 = vmatpush.bf16.msra.mxu0 %v5919_v15 }
 0x153   : > { %5989 = vmatpush.bf16.msra.mxu3 %v5919_v15  ;;  %1622 = vmatpush.bf16.msra.mxu2 %v5625_v31 }
 0x156   : > { %1428 = vmatpush.bf16.msra.mxu0 %v5918_v25 }
 0x157   : > { %5990 = vmatpush.bf16.msra.mxu3 %v5918_v25 }
 0x15a   : > { %1566 = vmatpush.bf16.msrb.mxu0 %v7619_v19 }
 0x15e   : > { %1567 = vmatpush.bf16.msrb.mxu0 %v7627_v26 }
 0x162   : > { %1568 = vmatpush.bf16.msrb.mxu0 %v7635_v34 }
 0x166   : > { %1569 = vmatpush.bf16.msrb.mxu0 %v7643_v43 }
 0x16a   : > { %1570 = vmatpush.bf16.msrb.mxu0 %v7651_v54 }
 0x16e   : > { %1571 = vmatpush.bf16.msrb.mxu0 %v7659_v1 }
 0x172   : > { %1572 = vmatpush.bf16.msrb.mxu0 %v7667_v16 }
 0x176   : > { %1573 = vmatpush.bf16.msrb.mxu0 %v7679_v29 }
 0x19c   : > { %v1072_v10 = vpop.xlane.xlu1 %1071  ;;  %v1088_v14 = vpop.xlane.xlu0 %1087 }
 0x19d   : > { %v1103_v18 = vmul.f32 %v1072_v10, %v7544_v32  ;;  %v1111_v20 = vmul.f32 %v1088_v14, %v7544_v32 }
 0x19f   : > { %v1119_v22 = vadd.f32 1e-05, %v1103_v18  ;;  %v7673_v23 = vadd.f32 1e-05, %v1111_v20 }
 0x1a1   : > { %6177 = vrsqrt.f32 %v1119_v22  ;;  %vm1141_vm2 = vweird.f32 %v1119_v22  ;;  %vm1221_vm3 = vweird.f32 %v7673_v23 }
 0x1a2   : > { %6179 = vrsqrt.f32 %v7673_v23 }
 0x1a4   : > { %v1090_v33 = vpop.xlane.xlu1 %1089  ;;  %v1015_v35 = vpop.xlane.xlu0 %1014 }
 0x1a5   : > { %v1112_v36 = vmul.f32 %v1090_v33, %v7544_v32  ;;  %v1074_v39 = vpop.xlane.xlu2 %1073  ;;  %v1038_v40 = vmul.f32 %v7544_v32, %v1015_v35 }
 0x1a6   : > { %v1104_v41 = vmul.f32 %v1074_v39, %v7544_v32 }
 0x1a7   : > { %v6178_v42 = vpop.eup %6177  ;;  %v7688_v44 = vadd.f32 1e-05, %v1112_v36  ;;  %v7691_v45 = vsub.f32 %v7563_v49, %v1038_v40 }
 0x1a8   : > { %v7694_v19 = vpop.eup %6179  ;;  %v1136_v48 = vmul.f32 %v6178_v42, %v1119_v22  ;;  %v7696_v50 = vadd.f32 1e-05, %v1104_v41  ;;  %vm1142_vm1 = vweird.f32 %v6178_v42 }
 0x1a9   : > { %v1216_v51 = vmul.f32 %v7694_v19, %v7673_v23  ;;  %6181 = vrsqrt.f32 %v7688_v44  ;;  %v1070_v55 = vmul.f32 %v7691_v45, %v7691_v45  ;;  %vm7727_vm4 = vmor %vm1141_vm2, %vm1142_vm1  ;;  %vm1222_vm5 = vweird.f32 %v7694_v19 }
 0x1aa   : > { %v1137_v52 = vmul.f32 %v6178_v42, %v1136_v48  ;;  %6183 = vrsqrt.f32 %v7696_v50  ;;  %vm1231_vm6 = vweird.f32 %v7688_v44  ;;  %vm7744_vm7 = vmor %vm1221_vm3, %vm1222_vm5  ;;  %vm1151_vm10 = vweird.f32 %v7696_v50 }
 0x1ab   : > { %v1217_v49 = vmul.f32 %v7694_v19, %v1216_v51  ;;  %1101 = vadd.xlane.f32.xlu0 %v1070_v55 }
 0x1ac   : > { %v1138_v26 = vmul.f32 0.5, %v1137_v52  ;;  %v1076_v56 = vpop.xlane.xlu1 %1075  ;;  %v1092_v57 = vpop.xlane.xlu0 %1091 }
 0x1ad   : > { %v1218_v59 = vmul.f32 0.5, %v1217_v49  ;;  %v1105_v60 = vmul.f32 %v1076_v56, %v7544_v32  ;;  %v1013_v62 = vpop.xlane.xlu2 %1012  ;;  %v1113_v2 = vmul.f32 %v1092_v57, %v7544_v32 }
 0x1ae   : > { %v1139_v3 = vsub.f32 1.5, %v1138_v26  ;;  %v1037_v4 = vmul.f32 %v7544_v32, %v1013_v62 }
 0x1af   : > { %v7709_v7 = vpop.eup %6181  ;;  %v1219_v8 = vsub.f32 1.5, %v1218_v59  ;;  %v7711_v10 = vadd.f32 1e-05, %v1105_v60  ;;  %v7713_v34 = vadd.f32 1e-05, %v1113_v2 }
 0x1b0   : > { %v7716_v14 = vpop.eup %6183  ;;  %v1140_v15 = vmul.f32 %v6178_v42, %v1139_v3  ;;  %v1226_v17 = vmul.f32 %v7709_v7, %v7688_v44  ;;  %v7721_v18 = vsub.f32 %v7579_v61, %v1037_v4  ;;  %vm1232_vm8 = vweird.f32 %v7709_v7  ;;  %v7800_v60 = vld [vmem:[%s10211_s10] ss:$0 sm:$0xff] }
 0x1b1   : > { %v1146_v20 = vmul.f32 %v7716_v14, %v7696_v50  ;;  %6185 = vrsqrt.f32 %v7711_v10  ;;  %v1220_v43 = vmul.f32 %v7694_v19, %v1219_v8  ;;  %vm1152_vm9 = vweird.f32 %v7716_v14  ;;  %vm7781_vm11 = vmor %vm1231_vm6, %vm1232_vm8 }
 0x1b2   : > { %v1227_v24 = vmul.f32 %v7709_v7, %v1226_v17  ;;  %6187 = vrsqrt.f32 %v7713_v34  ;;  %v1144_v61 = vsel %vm7727_vm4, %v6178_v42, %v1140_v15  ;;  %v1069_v25 = vmul.f32 %v7721_v18, %v7721_v18  ;;  %v7758_v42 = vld [vmem:[%s736_s23] ss:$0 sm:$0xff]  ;;  %vm1153_vm12 = vmor %vm1151_vm10, %vm1152_vm9  ;;  %s7091_s23 = smov 96  }
 0x1b3   : > { %v1147_v22 = vmul.f32 %v7716_v14, %v1146_v20  ;;  %v1224_v39 = vsel %vm7744_vm7, %v7694_v19, %v1220_v43  ;;  %v1295_v41 = vmul.f32 %v1144_v61, %v7550_v38  ;;  %vm1161_vm14 = vweird.f32 %v7711_v10 }
 0x1b4   : > { %v1228_v27 = vmul.f32 0.5, %v1227_v24  ;;  %v1094_v28 = vpop.xlane.xlu1 %1093  ;;  %v995_v30 = vpop.xlane.xlu0 %994  ;;  %1099 = vadd.xlane.f32.xlu2 %v1069_v25  ;;  %v1303_v50 = vmul.f32 %v1224_v39, %v7548_v37  ;;  %vm1241_vm15 = vweird.f32 %v7713_v34 }
 0x1b5   : > { %v1148_v33 = vmul.f32 0.5, %v1147_v22  ;;  %v1114_v35 = vmul.f32 %v1094_v28, %v7544_v32  ;;  %v1078_v36 = vpop.xlane.xlu2 %1077  ;;  %v1028_v54 = vmul.f32 %v7544_v32, %v995_v30  ;;  %v1314_v59 = vmul.f32 %v7758_v42, %v1295_v41 }
 0x1b6   : > { %v1229_v40 = vsub.f32 1.5, %v1228_v27  ;;  %v1106_v23 = vmul.f32 %v1078_v36, %v7544_v32  ;;  %v1322_v43 = vmul.f32 %v7758_v42, %v1303_v50 }
 0x1b7   : > { %v7760_v48 = vpop.eup %6185  ;;  %v1149_v51 = vsub.f32 1.5, %v1148_v33  ;;  %v7763_v52 = vadd.f32 1e-05, %v1114_v35  ;;  %v7766_v55 = vsub.f32 %v7593_v5, %v1028_v54  ;;  %v1333_v61 = vadd.f32 %v7800_v60, %v1314_v59 }
 0x1b8   : > { %v7769_v19 = vpop.eup %6187  ;;  %v1230_v38 = vmul.f32 %v7709_v7, %v1229_v40  ;;  %v1156_v49 = vmul.f32 %v7760_v48, %v7711_v10  ;;  %v7775_v26 = vadd.f32 1e-05, %v1106_v23  ;;  %vm1162_vm13 = vweird.f32 %v7760_v48 }
 0x1b9   : > { %v1150_v1 = vmul.f32 %v7716_v14, %v1149_v51  ;;  %v1236_v56 = vmul.f32 %v7769_v19, %v7713_v34  ;;  %6189 = vrsqrt.f32 %v7763_v52  ;;  %v1060_v2 = vmul.f32 %v7766_v55, %v7766_v55  ;;  %vm7840_vm1 = vmor %vm1161_vm14, %vm1162_vm13 }
 0x1ba   : > { %v1234_v57 = vsel %vm7781_vm11, %v7709_v7, %v1230_v38  ;;  %v1157_v44 = vmul.f32 %v7760_v48, %v1156_v49  ;;  %6191 = vrsqrt.f32 %v7775_v26  ;;  %vm1242_vm0 = vweird.f32 %v7769_v19 }
 0x1bb   : > { %v1154_v62 = vsel %vm1153_vm12, %v7716_v14, %v1150_v1  ;;  %v1237_v37 = vmul.f32 %v7769_v19, %v1236_v56  ;;  %v1304_v15 = vmul.f32 %v1234_v57, %v7558_v46  ;;  %v1341_v23 = vadd.f32 %v7800_v60, %v1322_v43  ;;  %vm7861_vm3 = vmor %vm1241_vm15, %vm1242_vm0 }
 0x1bc   : > { %v1158_v3 = vmul.f32 0.5, %v1157_v44  ;;  %v1096_v4 = vpop.xlane.xlu1 %1095  ;;  %v997_v7 = vpop.xlane.xlu0 %996  ;;  %v1296_v8 = vmul.f32 %v1154_v62, %v7560_v47  ;;  %1081 = vadd.xlane.f32.xlu2 %v1060_v2  ;;  %vm1251_vm2 = vweird.f32 %v7763_v52  ;;  %vm1171_vm7 = vweird.f32 %v7775_v26 }
 0x1bd   : > { %v1238_v17 = vmul.f32 0.5, %v1237_v37  ;;  %v1115_v20 = vmul.f32 %v1096_v4, %v7544_v32  ;;  %v993_v21 = vpop.xlane.xlu2 %992  ;;  %v1029_v14 = vmul.f32 %v7544_v32, %v997_v7  ;;  %v1323_v27 = vmul.f32 %v7758_v42, %v1304_v15 }
 0x1be   : > { %v1159_v24 = vsub.f32 1.5, %v1158_v3  ;;  %v1315_v16 = vmul.f32 %v7758_v42, %v1296_v8  ;;  %v1027_v25 = vmul.f32 %v7544_v32, %v993_v21 }
 0x1bf   : > { %v7815_v22 = vpop.eup %6189  ;;  %v1239_v47 = vsub.f32 1.5, %v1238_v17  ;;  %v7817_v46 = vadd.f32 1e-05, %v1115_v20  ;;  %v7827_v35 = vsub.f32 %v7600_v9, %v1029_v14  ;;  %v1342_v41 = vadd.f32 %v7800_v60, %v1323_v27 }
 0x1c0   : > { %v6192_v28 = vpop.eup %6191  ;;  %v1160_v30 = vmul.f32 %v7760_v48, %v1159_v24  ;;  %v1246_v31 = vmul.f32 %v7815_v22, %v7763_v52  ;;  %v1334_v33 = vadd.f32 %v7800_v60, %v1315_v16  ;;  %v7845_v40 = vsub.f32 %v7603_v11, %v1027_v25 }
 0x1c1   : > { %v1166_v36 = vmul.f32 %v6192_v28, %v7775_v26  ;;  %6193 = vrsqrt.f32 %v7817_v46  ;;  %v1240_v29 = vmul.f32 %v7769_v19, %v1239_v47  ;;  %v1061_v49 = vmul.f32 %v7827_v35, %v7827_v35 }
 0x1c2   : > { %v1247_v54 = vmul.f32 %v7815_v22, %v1246_v31  ;;  %v7836_v39 = vpack.c.bf16 %v1334_v33, %v1333_v61  ;;  %v1164_v51 = vsel %vm7840_vm1, %v7760_v48, %v1160_v30  ;;  %v1059_v1 = vmul.f32 %v7845_v40, %v7845_v40 }
 0x1c3   : > { %v1167_v10 = vmul.f32 %v6192_v28, %v1166_v36  ;;  %v7867_v56 = vpack.c.bf16 %v1342_v41, %v1341_v23  ;;  %v1244_v44 = vsel %vm7861_vm3, %v7769_v19, %v1240_v29  ;;  %vm1252_vm4 = vweird.f32 %v7815_v22  ;;  %1083 = vadd.xlane.f32.xlu0 %v1061_v49 }
 0x1c4   : > { %v1248_v38 = vmul.f32 0.5, %v1247_v54  ;;  %1429 = vmatmul.bf16.vlgmr.msra.gmra.mxu0 %v7836_v39  ;;  %1623 = vmatmul.bf16.vlgmr.msra.gmra.mxu2 %v7836_v39  ;;  %v999_v11 = vpop.xlane.xlu1 %998  ;;  %vm1172_vm5 = vweird.f32 %v6192_v28  ;;  %v1297_v7 = vmul.f32 %v1164_v51, %v7570_v53  ;;  %vm1253_vm6 = vmor %vm1251_vm2, %vm1252_vm4  ;;  %v1305_v15 = vmul.f32 %v1244_v44, %v7575_v58 }
 0x1c5   : > { %v1168_v48 = vmul.f32 0.5, %v1167_v10  ;;  %v1030_v50 = vmul.f32 %v7544_v32, %v999_v11  ;;  %v1098_v57 = vpop.xlane.xlu2 %1097  ;;  %1079 = vadd.xlane.f32.xlu1 %v1059_v1  ;;  %1594 = vmatmul.bf16.vlgmr.msra.gmra.mxu1 %v7867_v56  ;;  %vm1173_vm8 = vmor %vm1171_vm7, %vm1172_vm5  ;;  %vm1261_vm9 = vweird.f32 %v7817_v46 }
 0x1c6   : > { %v1249_v59 = vsub.f32 1.5, %v1248_v38  ;;  %v1116_v34 = vmul.f32 %v1098_v57, %v7544_v32  ;;  %v1316_v43 = vmul.f32 %v7758_v42, %v1297_v7  ;;  %v1324_v26 = vmul.f32 %v7758_v42, %v1305_v15 }
 0x1c7   : > { %v6194_v62 = vpop.eup %6193  ;;  %v1169_v37 = vsub.f32 1.5, %v1168_v48  ;;  %v7877_v2 = vsub.f32 %v7610_v13, %v1030_v50 }
 0x1c8   : > { %v1250_v3 = vmul.f32 %v7815_v22, %v1249_v59  ;;  %v1256_v4 = vmul.f32 %v6194_v62, %v7817_v46  ;;  %v1132_v19 = vadd.f32 1e-05, %v1116_v34  ;;  %v1335_v47 = vadd.f32 %v7800_v60, %v1316_v43 }
 0x1c9   : > { %v1170_v8 = vmul.f32 %v6192_v28, %v1169_v37  ;;  %v1062_v21 = vmul.f32 %v7877_v2, %v7877_v2  ;;  %vm1262_vm10 = vweird.f32 %v6194_v62 }
 0x1ca   : > { %v1254_v17 = vsel %vm1253_vm6, %v7815_v22, %v1250_v3  ;;  %v1257_v13 = vmul.f32 %v6194_v62, %v1256_v4  ;;  %6195 = vrsqrt.f32 %v1132_v19  ;;  %vm1263_vm11 = vmor %vm1261_vm9, %vm1262_vm10  ;;  %vm1271_vm12 = vweird.f32 %v1132_v19 }
 0x1cb   : > { %v1174_v20 = vsel %vm1173_vm8, %v6192_v28, %v1170_v8  ;;  %v1306_v14 = vmul.f32 %v1254_v17, %v7583_v63 }
 0x1cc   : > { %v1258_v53 = vmul.f32 0.5, %v1257_v13  ;;  %v1298_v52 = vmul.f32 %v1174_v20, %v7586_v0  ;;  %v1343_v0 = vadd.f32 %v7800_v60, %v1324_v26 }
 0x1cd   : > { %v1325_v58 = vmul.f32 %v7758_v42, %v1306_v14  ;;  %1085 = vadd.xlane.f32.xlu1 %v1062_v21 }
 0x1ce   : > { %v1259_v24 = vsub.f32 1.5, %v1258_v53  ;;  %v1317_v16 = vmul.f32 %v7758_v42, %v1298_v52 }
 0x1cf   : > { %v1344_v61 = vadd.f32 %v7800_v60, %v1325_v58 }
 0x1d0   : > { %v6196_v22 = vpop.eup %6195  ;;  %v1336_v63 = vadd.f32 %v7800_v60, %v1317_v16  ;;  %v1260_v27 = vmul.f32 %v6194_v62, %v1259_v24 }
 0x1d1   : > { %v1266_v25 = vmul.f32 %v6196_v22, %v1132_v19  ;;  %v7900_v31 = vpack.c.bf16 %v1344_v61, %v1343_v0  ;;  %vm1272_vm13 = vweird.f32 %v6196_v22 }
 0x1d2   : > { %v1350_v28 = vpack.c.bf16 %v1336_v63, %v1335_v47  ;;  %v1264_v36 = vsel %vm1263_vm11, %v6194_v62, %v1260_v27  ;;  %vm1273_vm14 = vmor %vm1271_vm12, %vm1272_vm13 }
 0x1d3   : > { %v1267_v30 = vmul.f32 %v6196_v22, %v1266_v25  ;;  %v1307_v9 = vmul.f32 %v1264_v36, %v7596_v6 }
 0x1d4   : > { %1434 = vmatmul.bf16.gmra.mxu0 %v1350_v28  ;;  %1628 = vmatmul.bf16.gmra.mxu2 %v1350_v28 }
 0x1d5   : > { %v1268_v33 = vmul.f32 0.5, %v1267_v30  ;;  %1599 = vmatmul.bf16.gmra.mxu1 %v7900_v31  ;;  %v1326_v23 = vmul.f32 %v7758_v42, %v1307_v9 }
 0x1d7   : > { %v1269_v29 = vsub.f32 1.5, %v1268_v33  ;;  %v1345_v38 = vadd.f32 %v7800_v60, %v1326_v23 }
 0x1d9   : > { %v1270_v54 = vmul.f32 %v6196_v22, %v1269_v29 }
 0x1db   : > { %v1274_v46 = vsel %vm1273_vm14, %v6196_v22, %v1270_v54 }
 0x1dc   : > { %v1308_v10 = vmul.f32 %v1274_v46, %v7608_v12 }
 0x1de   : > { %v1327_v41 = vmul.f32 %v7758_v42, %v1308_v10 }
 0x1e0   : > { %v1346_v51 = vadd.f32 %v7800_v60, %v1327_v41 }
 0x1e2   : > { %v7909_v49 = vpack.c.bf16 %v1346_v51, %v1345_v38 }
 0x1e4   : > { %1574 = vmatmul.bf16.vlgmr.msrb.gmra.mxu0 %v7836_v39 }
 0x1e5   : > { %1604 = vmatmul.bf16.gmra.mxu1 %v7909_v49 }
 0x1f4   : > { %1579 = vmatmul.bf16.gmra.mxu0 %v1350_v28 }
 0x21e   : > { %v1102_v11 = vpop.xlane.xlu0 %1101 }
 0x21f   : > { %v1118_v6 = vmul.f32 %v1102_v11, %v7544_v32 }
 0x221   : > { %v1134_v5 = vadd.f32 1e-05, %v1118_v6 }
 0x223   : > { %6197 = vrsqrt.f32 %v1134_v5  ;;  %vm1291_vm15 = vweird.f32 %v1134_v5 }
 0x227   : > { %v1100_v12 = vpop.xlane.xlu2 %1099 }
 0x228   : > { %v1117_v48 = vmul.f32 %v1100_v12, %v7544_v32 }
 0x229   : > { %v6198_v1 = vpop.eup %6197 }
 0x22a   : > { %v1286_v50 = vmul.f32 %v6198_v1, %v1134_v5  ;;  %v1133_v57 = vadd.f32 1e-05, %v1117_v48  ;;  %vm1292_vm0 = vweird.f32 %v6198_v1 }
 0x22b   : > { %vm1293_vm1 = vmor %vm1291_vm15, %vm1292_vm0 }
 0x22c   : > { %v1287_v44 = vmul.f32 %v6198_v1, %v1286_v50  ;;  %6199 = vrsqrt.f32 %v1133_v57  ;;  %vm1281_vm3 = vweird.f32 %v1133_v57 }
 0x22e   : > { %v1288_v59 = vmul.f32 0.5, %v1287_v44 }
 0x22f   : > { %v1082_v34 = vpop.xlane.xlu2 %1081 }
 0x230   : > { %v1289_v62 = vsub.f32 1.5, %v1288_v59  ;;  %v1108_v39 = vmul.f32 %v1082_v34, %v7544_v32 }
 0x232   : > { %v6200_v37 = vpop.eup %6199  ;;  %v1124_v3 = vadd.f32 1e-05, %v1108_v39  ;;  %v1290_v19 = vmul.f32 %v6198_v1, %v1289_v62 }
 0x233   : > { %v1276_v4 = vmul.f32 %v6200_v37, %v1133_v57  ;;  %vm1282_vm2 = vweird.f32 %v6200_v37 }
 0x234   : > { %6201 = vrsqrt.f32 %v1124_v3  ;;  %v1294_v15 = vsel %vm1293_vm1, %v6198_v1, %v1290_v19  ;;  %vm1283_vm4 = vmor %vm1281_vm3, %vm1282_vm2  ;;  %vm1191_vm5 = vweird.f32 %v1124_v3  ;;  %vm1792_vm1 = vcmask 261120  }
 0x235   : > { %v1277_v7 = vmul.f32 %v6200_v37, %v1276_v4  ;;  %v1310_v58 = vmul.f32 %v1294_v15, %v7691_v45 }
 0x236   : > { %v1084_v17 = vpop.xlane.xlu0 %1083 }
 0x237   : > { %v1278_v8 = vmul.f32 0.5, %v1277_v7  ;;  %v1109_v21 = vmul.f32 %v1084_v17, %v7544_v32  ;;  %v1329_v63 = vmul.f32 %v7758_v42, %v1310_v58 }
 0x238   : > { %v1080_v20 = vpop.xlane.xlu1 %1079 }
 0x239   : > { %v1279_v13 = vsub.f32 1.5, %v1278_v8  ;;  %v1107_v53 = vmul.f32 %v1080_v20, %v7544_v32  ;;  %v7918_v26 = vadd.f32 1e-05, %v1109_v21  ;;  %v1348_v29 = vadd.f32 %v7800_v60, %v1329_v63 }
 0x23a   : > { %v6202_v14 = vpop.eup %6201 }
 0x23b   : > { %v1280_v52 = vmul.f32 %v6200_v37, %v1279_v13  ;;  %v1186_v43 = vmul.f32 %v6202_v14, %v1124_v3  ;;  %v1123_v24 = vadd.f32 1e-05, %v1107_v53  ;;  %6203 = vrsqrt.f32 %v7918_v26 }
 0x23c   : > { %vm1192_vm6 = vweird.f32 %v6202_v14  ;;  %vm1201_vm11 = vweird.f32 %v7918_v26 }
 0x23d   : > { %v1284_v16 = vsel %vm1283_vm4, %v6200_v37, %v1280_v52  ;;  %v1187_v61 = vmul.f32 %v6202_v14, %v1186_v43  ;;  %6205 = vrsqrt.f32 %v1123_v24  ;;  %vm1193_vm7 = vmor %vm1191_vm5, %vm1192_vm6  ;;  %vm1181_vm9 = vweird.f32 %v1123_v24 }
 0x23e   : > { %v1309_v22 = vmul.f32 %v1284_v16, %v7721_v18 }
 0x23f   : > { %v1188_v47 = vmul.f32 0.5, %v1187_v61 }
 0x240   : > { %v1328_v0 = vmul.f32 %v7758_v42, %v1309_v22  ;;  %v1086_v28 = vpop.xlane.xlu1 %1085 }
 0x241   : > { %v1430_v25 = vpop.f32.mrf.mxu0  ;;  %v1189_v27 = vsub.f32 1.5, %v1188_v47  ;;  %v1110_v30 = vmul.f32 %v1086_v28, %v7544_v32  ;;  %v7927_v33 = vpop.eup %6203 }
 0x242   : > { %v1347_v45 = vadd.f32 %v7800_v60, %v1328_v0  ;;  %v1595_v36 = vpop.f32.mrf.mxu1  ;;  %v1196_v10 = vmul.f32 %v7927_v33, %v7918_v26  ;;  %v1664_v51 = vpack.c.bf16 %v1430_v25, %v1430_v25  ;;  %vm1202_vm12 = vweird.f32 %v7927_v33 }
 0x243   : > { %v6206_v54 = vpop.eup %6205  ;;  %v1126_v18 = vadd.f32 1e-05, %v1110_v30  ;;  %v1190_v9 = vmul.f32 %v6202_v14, %v1189_v27  ;;  %v1688_v48 = vpack.c.bf16 %v1595_v36, %v1595_v36  ;;  %vm7955_vm15 = vmor %vm1201_vm11, %vm1202_vm12 }
 0x244   : > { %v1176_v46 = vmul.f32 %v6206_v54, %v1123_v24  ;;  %v7932_v23 = vpack.c.bf16 %v1348_v29, %v1347_v45  ;;  %v1197_v5 = vmul.f32 %v7927_v33, %v1196_v10  ;;  %vm1182_vm8 = vweird.f32 %v6206_v54 }
 0x245   : > { %6207 = vrsqrt.f32 %v1126_v18  ;;  %v1194_v11 = vsel %vm1193_vm7, %v6202_v14, %v1190_v9  ;;  %v1728_v50 = vunpack.c.l.b16 %v1664_v51  ;;  %vm1183_vm10 = vmor %vm1181_vm9, %vm1182_vm8  ;;  %v1776_v19 = vunpack.c.l.b16 %v1688_v48 }
 0x246   : > { %v1177_v41 = vmul.f32 %v6206_v54, %v1176_v46  ;;  %1609 = vmatmul.bf16.gmra.mxu1 %v7932_v23  ;;  %v1300_v62 = vmul.f32 %v1194_v11, %v7766_v55  ;;  %v1198_v37 = vmul.f32 0.5, %v1197_v5  ;;  %vm1211_vm13 = vweird.f32 %v1126_v18 }
 0x248   : > { %v1178_v6 = vmul.f32 0.5, %v1177_v41  ;;  %v1319_v20 = vmul.f32 %v7758_v42, %v1300_v62  ;;  %v1199_v21 = vsub.f32 1.5, %v1198_v37 }
 0x249   : > { %v1432_v38 = vpop.f32.mrf.mxu0 }
 0x24a   : > { %v1665_v12 = vpack.c.bf16 %v1432_v38, %v1432_v38  ;;  %v1179_v1 = vsub.f32 1.5, %v1178_v6  ;;  %v1597_v44 = vpop.f32.mrf.mxu1  ;;  %v1200_v24 = vmul.f32 %v7927_v33, %v1199_v21 }
 0x24b   : > { %v6208_v59 = vpop.eup %6207  ;;  %v1689_v34 = vpack.c.bf16 %v1597_v44, %v1597_v44 }
 0x24c   : > { %v1729_v57 = vunpack.c.l.b16 %v1665_v12  ;;  %v1180_v39 = vmul.f32 %v6206_v54, %v1179_v1  ;;  %v1206_v3 = vmul.f32 %v6208_v59, %v1126_v18  ;;  %vm1212_vm14 = vweird.f32 %v6208_v59 }
 0x24d   : > { %v1777_v7 = vunpack.c.l.b16 %v1689_v34  ;;  %vm1213_vm0 = vmor %vm1211_vm13, %vm1212_vm14  ;;  %v1204_v25 = vsel %vm7955_vm15, %v7927_v33, %v1200_v24 }
 0x24e   : > { %v7937_v4 = vpack.c.b16 %v1729_v57, %v1728_v50  ;;  %v1184_v8 = vsel %vm1183_vm10, %v6206_v54, %v1180_v39  ;;  %v1207_v15 = vmul.f32 %v6208_v59, %v1206_v3  ;;  %v1301_v54 = vmul.f32 %v1204_v25, %v7827_v35 }
 0x24f   : > { %v7943_v17 = vpack.c.b16 %v1777_v7, %v1776_v19  ;;  %v1299_v13 = vmul.f32 %v1184_v8, %v7845_v40  ;;  %v1338_v40 = vadd.f32 %v7800_v60, %v1319_v20 }
 0x250   : > { %2719 = vrot.lane.b32.xlu2 %v7937_v4, %s7090_s16  ;;  %2167 = vrot.lane.b32.xlu0 %v7937_v4, %s7091_s23  ;;  %v1208_v14 = vmul.f32 0.5, %v1207_v15 }
 0x251   : > { %v1435_v55 = vpop.f32.mrf.mxu0  ;;  %2191 = vrot.lane.b32.xlu1 %v7943_v17, %s7091_s23  ;;  %v1318_v53 = vmul.f32 %v7758_v42, %v1299_v13 }
 0x252   : > { %v1209_v52 = vsub.f32 1.5, %v1208_v14  ;;  %v1600_v43 = vpop.f32.mrf.mxu1  ;;  %v1666_v47 = vpack.c.bf16 %v1435_v55, %v1435_v55 }
 0x253   : > { %v1337_v58 = vadd.f32 %v7800_v60, %v1318_v53  ;;  %v1690_v27 = vpack.c.bf16 %v1600_v43, %v1600_v43 }
 0x254   : > { %v1210_v26 = vmul.f32 %v6208_v59, %v1209_v52  ;;  %v1730_v30 = vunpack.c.l.b16 %v1666_v47 }
 0x255   : > { %v1351_v61 = vpack.c.bf16 %v1338_v40, %v1337_v58  ;;  %v1778_v9 = vunpack.c.l.b16 %v1690_v27  ;;  %v1830_v27 = vsel %vm1792_vm1, %v7943_v17, 0 }
 0x256   : > { %v1214_v22 = vsel %vm1213_vm0, %v6208_v59, %v1210_v26 }
 0x257   : > { %1439 = vmatmul.bf16.vlgmr.msra.gmra.mxu3 %v1351_v61  ;;  %1584 = vmatmul.bf16.gmra.mxu0 %v1351_v61  ;;  %v1302_v28 = vmul.f32 %v1214_v22, %v7877_v2  ;;  %v1320_v2 = vmul.f32 %v7758_v42, %v1301_v54 }
 0x258   : > { %3202 = vrot.lane.b32.xlu2 %v7937_v4, %s7092_s25  ;;  %3226 = vrot.lane.b32.xlu0 %v7943_v17, %s7092_s25 }
 0x259   : > { %v1437_v63 = vpop.f32.mrf.mxu0  ;;  %1633 = vmatmul.bf16.gmra.mxu2 %v1351_v61  ;;  %2743 = vrot.lane.b32.xlu1 %v7943_v17, %s7090_s16  ;;  %v1321_v33 = vmul.f32 %v7758_v42, %v1302_v28  ;;  %v1339_v38 = vadd.f32 %v7800_v60, %v1320_v2 }
 0x25a   : > { %v1667_v0 = vpack.c.bf16 %v1437_v63, %v1437_v63  ;;  %v1602_v36 = vpop.f32.mrf.mxu1 }
 0x25b   : > { %v1691_v29 = vpack.c.bf16 %v1602_v36, %v1602_v36  ;;  %v1340_v35 = vadd.f32 %v7800_v60, %v1321_v33 }
 0x25c   : > { %v1731_v45 = vunpack.c.l.b16 %v1667_v0 }
 0x25d   : > { %v1779_v46 = vunpack.c.l.b16 %v1691_v29  ;;  %v1352_v11 = vpack.c.bf16 %v1340_v35, %v1339_v38 }
 0x25e   : > { %v7970_v18 = vpack.c.b16 %v1731_v45, %v1730_v30 }
 0x25f   : > { %v7975_v10 = vpack.c.b16 %v1779_v46, %v1778_v9 }
 0x260   : > { %2169 = vrot.lane.b32.xlu0 %v7970_v18, %s7091_s23 }
 0x261   : > { %v7977_v41 = vpop.f32.mrf.mxu0  ;;  %2193 = vrot.lane.b32.xlu2 %v7975_v10, %s7091_s23  ;;  %v1833_v16 = vsel %vm1792_vm1, %v7975_v10, 0 }
 0x262   : > { %v1605_v51 = vpop.f32.mrf.mxu1 }
 0x263   : > { %v1692_v48 = vpack.c.bf16 %v1605_v51, %v1605_v51 }
 0x265   : > { %v1780_v1 = vunpack.c.l.b16 %v1692_v48  ;;  %v1680_v48 = vpack.c.bf16 %v7977_v41, %v7977_v41 }
 0x267   : > { %1444 = vmatmul.bf16.gmra.mxu3 %v1352_v11  ;;  %1589 = vmatmul.bf16.gmra.mxu0 %v1352_v11 }
 0x268   : > { %2745 = vrot.lane.b32.xlu0 %v7975_v10, %s7090_s16 }
 0x269   : > { %v7986_v6 = vpop.f32.mrf.mxu0  ;;  %1638 = vmatmul.bf16.gmra.mxu2 %v1352_v11  ;;  %3228 = vrot.lane.b32.xlu2 %v7975_v10, %s7092_s25 }
 0x26a   : > { %v1607_v42 = vpop.f32.mrf.mxu1 }
 0x26b   : > { %v1693_v5 = vpack.c.bf16 %v1607_v42, %v1607_v42  ;;  %v1681_v42 = vpack.c.bf16 %v7986_v6, %v7986_v6  ;;  %v1768_v6 = vunpack.c.l.b16 %v1680_v48 }
 0x26d   : > { %v1781_v60 = vunpack.c.l.b16 %v1693_v5 }
 0x26f   : > { %v7992_v50 = vpack.c.b16 %v1781_v60, %v1780_v1  ;;  %v1769_v1 = vunpack.c.l.b16 %v1681_v42 }
 0x271   : > { %v1580_v12 = vpop.f32.mrf.mxu0  ;;  %2721 = vrot.lane.b32.xlu2 %v7970_v18, %s7090_s16  ;;  %v1836_v53 = vsel %vm1792_vm1, %v7992_v50, 0 }
 0x272   : > { %v1682_v57 = vpack.c.bf16 %v1580_v12, %v1580_v12 }
 0x274   : > { %v1770_v62 = vunpack.c.l.b16 %v1682_v57 }
 0x277   : > { %1449 = vmatmul.bf16.gmra.mxu3 %v7867_v56 }
 0x279   : > { %v1582_v44 = vpop.f32.mrf.mxu0  ;;  %1643 = vmatmul.bf16.gmra.mxu2 %v7867_v56  ;;  %3230 = vrot.lane.b32.xlu2 %v7992_v50, %s7092_s25  ;;  %v8008_v56 = vpop.f32.mrf.mxu2 }
 0x27a   : > { %v1683_v59 = vpack.c.bf16 %v1582_v44, %v1582_v44 }
 0x27c   : > { %v1771_v34 = vunpack.c.l.b16 %v1683_v59  ;;  %v1784_v59 = vpack.c.b16 %v1769_v1, %v1768_v6 }
 0x27e   : > { %v7998_v39 = vpack.c.b16 %v1771_v34, %v1770_v62 }
 0x280   : > { %v1821_v62 = vsel %vm1792_vm1, %v7998_v39, 0 }
 0x281   : > { %2185 = vrot.lane.b32.xlu2 %v7998_v39, %s7091_s23  ;;  %v8010_v37 = vpop.f32.mrf.mxu2 }
 0x287   : > { %1454 = vmatmul.bf16.gmra.mxu3 %v7900_v31 }
 0x289   : > { %1648 = vmatmul.bf16.gmra.mxu2 %v7900_v31  ;;  %v8012_v19 = vpop.f32.mrf.mxu2 }
 0x297   : > { %1459 = vmatmul.bf16.gmra.mxu3 %v7909_v49 }
 0x299   : > { %1653 = vmatmul.bf16.gmra.mxu2 %v7909_v49  ;;  %v8016_v49 = vpop.f32.mrf.mxu2 }
 0x2a7   : > { %1464 = vmatmul.bf16.gmra.mxu3 %v7932_v23 }
 0x2a9   : > { %1658 = vmatmul.bf16.gmra.mxu2 %v7932_v23 }
 0x2c3   : > { %v1610_v3 = vpop.f32.mrf.mxu1 }
 0x2c4   : > { %v1694_v7 = vpack.c.bf16 %v1610_v3, %v1610_v3 }
 0x2c6   : > { %v1782_v55 = vunpack.c.l.b16 %v1694_v7 }
 0x2cb   : > { %v1612_v8 = vpop.f32.mrf.mxu1 }
 0x2cc   : > { %v1695_v15 = vpack.c.bf16 %v1612_v8, %v1612_v8 }
 0x2ce   : > { %v1783_v31 = vunpack.c.l.b16 %v1695_v15 }
 0x2d0   : > { %v8014_v13 = vpack.c.b16 %v1783_v31, %v1782_v55  ;;  %v1818_v31 = vsel %vm1792_vm1, %v1784_v59, 0 }
 0x2d2   : > { %2749 = vrot.lane.b32.xlu2 %v8014_v13, %s7090_s16  ;;  %v1839_v23 = vsel %vm1792_vm1, %v8014_v13, 0 }
 0x2d3   : > { %1841 = vmatpush.bf16.xpose.msrb.mxu3 %v1839_v23 }
 0x2d4   : > { %v1585_v20 = vpop.f32.mrf.mxu0 }
 0x2d5   : > { %v1684_v54 = vpack.c.bf16 %v1585_v20, %v1585_v20 }
 0x2d7   : > { %v1772_v51 = vunpack.c.l.b16 %v1684_v54 }
 0x2da   : > { %v1440_v21 = vpop.f32.mrf.mxu3 }
 0x2db   : > { %1842 = vmatpush.bf16.xpose.msrb.mxu3 %v1836_v53  ;;  %v1668_v43 = vpack.c.bf16 %v1440_v21, %v1440_v21 }
 0x2dc   : > { %v8022_v14 = vpop.f32.mrf.mxu2  ;;  %v1587_v52 = vpop.f32.mrf.mxu0 }
 0x2dd   : > { %v1732_v61 = vunpack.c.l.b16 %v1668_v43  ;;  %v1685_v45 = vpack.c.bf16 %v1587_v52, %v1587_v52 }
 0x2df   : > { %v1773_v10 = vunpack.c.l.b16 %v1685_v45 }
 0x2e1   : > { %v1786_v5 = vpack.c.b16 %v1773_v10, %v1772_v51 }
 0x2e2   : > { %v1442_v58 = vpop.f32.mrf.mxu3 }
 0x2e3   : > { %v1669_v40 = vpack.c.bf16 %v1442_v58, %v1442_v58  ;;  %1843 = vmatpush.bf16.xpose.msrb.mxu3 %v1833_v16  ;;  %v1824_v44 = vsel %vm1792_vm1, %v1786_v5, 0 }
 0x2e4   : > { %v8026_v24 = vpop.f32.mrf.mxu2  ;;  %v1590_v26 = vpop.f32.mrf.mxu0 }
 0x2e5   : > { %v1733_v22 = vunpack.c.l.b16 %v1669_v40  ;;  %v1686_v25 = vpack.c.bf16 %v1590_v26, %v1590_v26 }
 0x2e7   : > { %v8030_v47 = vpack.c.b16 %v1733_v22, %v1732_v61  ;;  %v1774_v36 = vunpack.c.l.b16 %v1686_v25 }
 0x2e9   : > { %2171 = vrot.lane.b32.xlu1 %v8030_v47, %s7091_s23 }
 0x2ea   : > { %v1445_v63 = vpop.f32.mrf.mxu3 }
 0x2eb   : > { %1844 = vmatpush.bf16.xpose.msrb.mxu3 %v1830_v27  ;;  %v1670_v9 = vpack.c.bf16 %v1445_v63, %v1445_v63 }
 0x2ec   : > { %v8034_v0 = vpop.f32.mrf.mxu2  ;;  %v1592_v28 = vpop.f32.mrf.mxu0 }
 0x2ed   : > { %v1687_v30 = vpack.c.bf16 %v1592_v28, %v1592_v28  ;;  %v1734_v38 = vunpack.c.l.b16 %v1670_v9 }
 0x2ef   : > { %v1775_v29 = vunpack.c.l.b16 %v1687_v30 }
 0x2f1   : > { %v8038_v46 = vpack.c.b16 %v1775_v29, %v1774_v36  ;;  %3204 = vrot.lane.b32.xlu1 %v7970_v18, %s7092_s25 }
 0x2f2   : > { %v1447_v33 = vpop.f32.mrf.mxu3 }
 0x2f3   : > { %v1671_v2 = vpack.c.bf16 %v1447_v33, %v1447_v33  ;;  %2741 = vrot.lane.b32.xlu2 %v8038_v46, %s7090_s16  ;;  %v1827_v17 = vsel %vm1792_vm1, %v8038_v46, 0 }
 0x2f4   : > { %v8042_v35 = vpop.f32.mrf.mxu2  ;;  %1845 = vmatpush.bf16.xpose.msrb.mxu3 %v1827_v17 }
 0x2f5   : > { %v1735_v11 = vunpack.c.l.b16 %v1671_v2 }
 0x2f7   : > { %v8050_v12 = vpack.c.b16 %v1735_v11, %v1734_v38 }
 0x2f9   : > { %2195 = vrot.lane.b32.xlu1 %v7992_v50, %s7091_s23  ;;  %2173 = vrot.lane.b32.xlu0 %v8050_v12, %s7091_s23 }
 0x2fa   : > { %v1450_v60 = vpop.f32.mrf.mxu3 }
 0x2fb   : > { %v1672_v7 = vpack.c.bf16 %v1450_v60, %v1450_v60 }
 0x2fc   : > { %v8058_v57 = vpop.f32.mrf.mxu2  ;;  %1846 = vmatpush.bf16.xpose.msrb.mxu3 %v1824_v44 }
 0x301   : > { %2183 = vrot.lane.b32.xlu1 %v1784_v59, %s7091_s23  ;;  %2747 = vrot.lane.b32.xlu0 %v7992_v50, %s7090_s16  ;;  %v1736_v50 = vunpack.c.l.b16 %v1672_v7 }
 0x302   : > { %v1452_v41 = vpop.f32.mrf.mxu3 }
 0x303   : > { %v1673_v3 = vpack.c.bf16 %v1452_v41, %v1452_v41 }
 0x304   : > { %v8064_v34 = vpop.f32.mrf.mxu2  ;;  %1847 = vmatpush.bf16.xpose.msrb.mxu3 %v1821_v62  ;;  %v1703_v62 = vpack.c.bf16 %v8042_v35, %v8042_v35 }
 0x305   : > { %v1737_v15 = vunpack.c.l.b16 %v1673_v3  ;;  %v1705_v1 = vpack.c.bf16 %v8064_v34, %v8064_v34  ;;  %v1702_v34 = vpack.c.bf16 %v8034_v0, %v8034_v0  ;;  %v1699_v0 = vpack.c.bf16 %v8016_v49, %v8016_v49 }
 0x307   : > { %v8071_v23 = vpack.c.b16 %v1737_v15, %v1736_v50  ;;  %v2083_v3 = vunpack.c.l.b16 %v1705_v1  ;;  %v2081_v15 = vunpack.c.l.b16 %v1703_v62 }
 0x309   : > { %2735 = vrot.lane.b32.xlu1 %v1784_v59, %s7090_s16  ;;  %3218 = vrot.lane.b32.xlu0 %v1784_v59, %s7092_s25  ;;  %v1704_v59 = vpack.c.bf16 %v8058_v57, %v8058_v57  ;;  %v1701_v57 = vpack.c.bf16 %v8026_v24, %v8026_v24  ;;  %v1698_v24 = vpack.c.bf16 %v8012_v19, %v8012_v19 }
 0x30a   : > { %v1455_v8 = vpop.f32.mrf.mxu3 }
 0x30b   : > { %v1674_v52 = vpack.c.bf16 %v1455_v8, %v1455_v8  ;;  %v2082_v8 = vunpack.c.l.b16 %v1704_v59  ;;  %v2079_v50 = vunpack.c.l.b16 %v1701_v57 }
 0x30c   : > { %v1649_v55 = vpop.f32.mrf.mxu2  ;;  %1848 = vmatpush.bf16.xpose.msrb.mxu3 %v1818_v31  ;;  %v2080_v31 = vunpack.c.l.b16 %v1702_v34 }
 0x30d   : > { %v1738_v16 = vunpack.c.l.b16 %v1674_v52  ;;  %v1706_v48 = vpack.c.bf16 %v1649_v55, %v1649_v55  ;;  %v8129_v35 = vpack.c.b16 %v2083_v3, %v2082_v8  ;;  %v8131_v55 = vpop.permute.xlu0 %2167  ;;  %v2077_v52 = vunpack.c.l.b16 %v1699_v0 }
 0x30f   : > { %v2084_v41 = vunpack.c.l.b16 %v1706_v48 }
 0x311   : > { %3232 = vrot.lane.b32.xlu1 %v8014_v13, %s7092_s25  ;;  %2175 = vrot.lane.b32.xlu0 %v8071_v23, %s7091_s23 }
 0x312   : > { %v1457_v20 = vpop.f32.mrf.mxu3 }
 0x313   : > { %5682 = vmatmul.msk.bf16.vlgmr.msrb.gmra.mxu3 %vm1792_vm1, %v7937_v4  ;;  %v1675_v53 = vpack.c.bf16 %v1457_v20, %v1457_v20  ;;  %v8138_v20 = vpack.c.b16 %v2081_v15, %v2080_v31 }
 0x314   : > { %v1651_v21 = vpop.f32.mrf.mxu2 }
 0x315   : > { %v1739_v58 = vunpack.c.l.b16 %v1675_v53  ;;  %v1707_v11 = vpack.c.bf16 %v1651_v21, %v1651_v21  ;;  %v1697_v53 = vpack.c.bf16 %v8010_v37, %v8010_v37  ;;  %v8150_v49 = vpop.permute.xlu0 %3226 }
 0x317   : > { %v8083_v26 = vpack.c.b16 %v1739_v58, %v1738_v16  ;;  %v2085_v44 = vunpack.c.l.b16 %v1707_v11  ;;  %v2076_v58 = vunpack.c.l.b16 %v1698_v24 }
 0x319   : > { %3220 = vrot.lane.b32.xlu1 %v7998_v39, %s7092_s25  ;;  %2197 = vrot.lane.b32.xlu0 %v8014_v13, %s7091_s23  ;;  %v8118_v7 = vpack.c.b16 %v2085_v44, %v2084_v41  ;;  %v8152_v16 = vpack.c.b16 %v2077_v52, %v2076_v58 }
 0x31a   : > { %v1460_v43 = vpop.f32.mrf.mxu3 }
 0x31b   : > { %v1676_v25 = vpack.c.bf16 %v1460_v43, %v1460_v43  ;;  %v1696_v43 = vpack.c.bf16 %v8008_v56, %v8008_v56 }
 0x31c   : > { %v1654_v40 = vpop.f32.mrf.mxu2 }
 0x31d   : > { %v1740_v54 = vunpack.c.l.b16 %v1676_v25  ;;  %v1708_v10 = vpack.c.bf16 %v1654_v40, %v1654_v40  ;;  %v2075_v40 = vunpack.c.l.b16 %v1697_v53  ;;  %v2074_v19 = vunpack.c.l.b16 %v1696_v43  ;;  %v8160_v56 = vpop.permute.xlu0 %2169 }
 0x31f   : > { %v2086_v60 = vunpack.c.l.b16 %v1708_v10  ;;  %v8157_v37 = vpack.c.b16 %v2075_v40, %v2074_v19 }
 0x321   : > { %2737 = vrot.lane.b32.xlu0 %v7998_v39, %s7090_s16  ;;  %2177 = vrot.lane.b32.xlu1 %v8083_v26, %s7091_s23 }
 0x322   : > { %v1462_v4 = vpop.f32.mrf.mxu3 }
 0x323   : > { %5683 = vmatmul.msk.bf16.gmra.mxu3 %vm1792_vm1, %v7970_v18  ;;  %v1677_v63 = vpack.c.bf16 %v1462_v4, %v1462_v4  ;;  %v2192_v4 = vpop.permute.xlu1 %2191 }
 0x324   : > { %v1656_v61 = vpop.f32.mrf.mxu2  ;;  %v2236_v62 = vsel %vm1792_vm1, %v2192_v4, 0 }
 0x325   : > { %v1741_v30 = vunpack.c.l.b16 %v1677_v63  ;;  %v1709_v18 = vpack.c.bf16 %v1656_v61, %v1656_v61 }
 0x327   : > { %v8098_v51 = vpack.c.b16 %v1741_v30, %v1740_v54  ;;  %v2087_v42 = vunpack.c.l.b16 %v1709_v18 }
 0x329   : > { %2739 = vrot.lane.b32.xlu0 %v1786_v5, %s7090_s16  ;;  %2187 = vrot.lane.b32.xlu1 %v1786_v5, %s7091_s23  ;;  %v8111_v6 = vpack.c.b16 %v2087_v42, %v2086_v60 }
 0x32a   : > { %v1465_v13 = vpop.f32.mrf.mxu3 }
 0x32b   : > { %v1678_v27 = vpack.c.bf16 %v1465_v13, %v1465_v13  ;;  %v8162_v61 = vpop.permute.xlu1 %2743  ;;  %v8164_v13 = vpop.permute.xlu0 %2745 }
 0x32c   : > { %v1659_v22 = vpop.f32.mrf.mxu2 }
 0x32d   : > { %v1710_v39 = vpack.c.bf16 %v1659_v22, %v1659_v22  ;;  %v1742_v9 = vunpack.c.l.b16 %v1678_v27 }
 0x32f   : > { %v2088_v2 = vunpack.c.l.b16 %v1710_v39 }
 0x331   : > { %3222 = vrot.lane.b32.xlu0 %v1786_v5, %s7092_s25  ;;  %3224 = vrot.lane.b32.xlu1 %v8038_v46, %s7092_s25 }
 0x332   : > { %v1467_v28 = vpop.f32.mrf.mxu3 }
 0x333   : > { %v1679_v45 = vpack.c.bf16 %v1467_v28, %v1467_v28  ;;  %5684 = vmatmul.msk.bf16.gmra.mxu3 %vm1792_vm1, %v8030_v47 }
 0x334   : > { %v1661_v36 = vpop.f32.mrf.mxu2 }
 0x335   : > { %v1711_v29 = vpack.c.bf16 %v1661_v36, %v1661_v36  ;;  %v1743_v33 = vunpack.c.l.b16 %v1679_v45  ;;  %v8184_v45 = vpop.permute.xlu2 %2719 }
 0x337   : > { %v2089_v17 = vunpack.c.l.b16 %v1711_v29  ;;  %v8100_v38 = vpack.c.b16 %v1743_v33, %v1742_v9 }
 0x339   : > { %v8102_v5 = vpack.c.b16 %v2089_v17, %v2088_v2  ;;  %2179 = vrot.lane.b32.xlu0 %v8098_v51, %s7091_s23  ;;  %2181 = vrot.lane.b32.xlu1 %v8100_v38, %s7091_s23 }
 0x33b   : > { %2106 = vmatpush.bf16.msra.mxu0 %v8102_v5 }
 0x33d   : > { %v8187_v54 = vpop.permute.xlu2 %3202 }
 0x33f   : > { %2107 = vmatpush.bf16.msra.mxu0 %v8111_v6 }
 0x341   : > { %2189 = vrot.lane.b32.xlu0 %v8038_v46, %s7091_s23  ;;  %v1700_v46 = vpack.c.bf16 %v8022_v14, %v8022_v14 }
 0x343   : > { %2108 = vmatpush.bf16.msra.mxu0 %v8118_v7  ;;  %5685 = vmatmul.msk.bf16.gmra.mxu3 %vm1792_vm1, %v8050_v12  ;;  %v2078_v21 = vunpack.c.l.b16 %v1700_v46 }
 0x345   : > { %v8145_v14 = vpack.c.b16 %v2079_v50, %v2078_v21  ;;  %v2194_v11 = vpop.permute.xlu2 %2193 }
 0x346   : > { %v2239_v60 = vsel %vm1792_vm1, %v2194_v11, 0 }
 0x347   : > { %2109 = vmatpush.bf16.msra.mxu0 %v8129_v35 }
 0x34b   : > { %2110 = vmatpush.bf16.msra.mxu0 %v8138_v20 }
 0x34d   : > { %v8205_v59 = vpop.permute.xlu2 %3228 }
 0x34f   : > { %2111 = vmatpush.bf16.msra.mxu0 %v8145_v14 }
 0x353   : > { %2112 = vmatpush.bf16.msra.mxu0 %v8152_v16  ;;  %5686 = vmatmul.msk.bf16.gmra.mxu3 %vm1792_vm1, %v8071_v23 }
 0x355   : > { %v8217_v15 = vpop.permute.xlu2 %2721 }
 0x357   : > { %2113 = vmatpush.bf16.msra.mxu0 %v8157_v37 }
 0x35b   : > { %v8168_v22 = vpop.permute.xlu1 %2171 }
 0x35d   : > { %v8225_v53 = vpop.permute.xlu2 %3230 }
 0x363   : > { %5687 = vmatmul.msk.bf16.gmra.mxu3 %vm1792_vm1, %v8083_v26  ;;  %v8172_v25 = vpop.permute.xlu1 %3204 }
 0x365   : > { %v2186_v4 = vpop.permute.xlu2 %2185 }
 0x36b   : > { %v8170_v63 = vpop.permute.xlu0 %2173  ;;  %v2196_v28 = vpop.permute.xlu1 %2195 }
 0x36c   : > { %v2242_v10 = vsel %vm1792_vm1, %v2196_v28, 0  ;;  %v2227_v28 = vsel %vm1792_vm1, %v2186_v4, 0 }
 0x373   : > { %5688 = vmatmul.msk.bf16.gmra.mxu3 %vm1792_vm1, %v8098_v51  ;;  %v8176_v27 = vpop.permute.xlu0 %2747  ;;  %v2184_v36 = vpop.permute.xlu1 %2183 }
 0x37b   : > { %v8178_v39 = vpop.permute.xlu0 %3218  ;;  %v8189_v9 = vpop.permute.xlu1 %2735 }
 0x383   : > { %5689 = vmatmul.msk.bf16.gmra.mxu3 %vm1792_vm1, %v8100_v38  ;;  %v8182_v30 = vpop.permute.xlu0 %2175  ;;  %v8197_v42 = vpop.permute.xlu1 %3232 }
 0x38b   : > { %v2198_v18 = vpop.permute.xlu0 %2197  ;;  %v8210_v3 = vpop.permute.xlu1 %3220 }
 0x38c   : > { %v2245_v29 = vsel %vm1792_vm1, %v2198_v18, 0 }
 0x38d   : > { %2247 = vmatpush.bf16.xpose.msrb.mxu1 %v2245_v29 }
 0x393   : > { %v8191_v33 = vpop.permute.xlu0 %2737  ;;  %v8219_v31 = vpop.permute.xlu1 %2177 }
 0x395   : > { %2248 = vmatpush.bf16.xpose.msrb.mxu1 %v2242_v10  ;;  %v2750_v10 = vpop.permute.xlu2 %2749 }
 0x396   : > { %v1850_v2 = vpop.f32.mrf.mxu3  ;;  %v2797_v11 = vsel %vm1792_vm1, %v2750_v10, 0 }
 0x397   : > { %v8194_v17 = vmul.f32 0.17677669, %v1850_v2  ;;  %v2224_v2 = vsel %vm1792_vm1, %v2184_v36, 0  ;;  %v2791_v36 = vsel %vm1792_vm1, %v8164_v13, 0 }
 0x399   : > { %1906 = vmax.xlane.f32.xlu2 %v8194_v17 }
 0x39b   : > { %v8199_v48 = vpop.permute.xlu0 %2739  ;;  %v2188_v43 = vpop.permute.xlu1 %2187 }
 0x39c   : > { %v2230_v58 = vsel %vm1792_vm1, %v2188_v43, 0 }
 0x39d   : > { %2249 = vmatpush.bf16.xpose.msrb.mxu1 %v2239_v60  ;;  %v2742_v43 = vpop.permute.xlu2 %2741 }
 0x39e   : > { %v1852_v1 = vpop.f32.mrf.mxu3  ;;  %v2785_v13 = vsel %vm1792_vm1, %v2742_v43, 0 }
 0x39f   : > { %v8202_v44 = vmul.f32 0.17677669, %v1852_v1 }
 0x3a1   : > { %1908 = vmax.xlane.f32.xlu0 %v8202_v44 }
 0x3a3   : > { %v8207_v41 = vpop.permute.xlu0 %3222 }
 0x3a5   : > { %2250 = vmatpush.bf16.xpose.msrb.mxu1 %v2236_v62  ;;  %v2794_v62 = vsel %vm1792_vm1, %v8176_v27, 0 }
 0x3a6   : > { %v1855_v34 = vpop.f32.mrf.mxu3 }
 0x3a7   : > { %v8212_v8 = vmul.f32 0.17677669, %v1855_v34 }
 0x3a9   : > { %1910 = vmax.xlane.f32.xlu1 %v8212_v8 }
 0x3ab   : > { %v8215_v57 = vpop.permute.xlu0 %2179 }
 0x3ae   : > { %v1857_v46 = vpop.f32.mrf.mxu3 }
 0x3af   : > { %v8221_v0 = vmul.f32 0.17677669, %v1857_v46 }
 0x3b1   : > { %1912 = vmax.xlane.f32.xlu2 %v8221_v0 }
 0x3b3   : > { %v2190_v50 = vpop.permute.xlu0 %2189 }
 0x3b4   : > { %v2233_v24 = vsel %vm1792_vm1, %v2190_v50, 0 }
 0x3b5   : > { %2251 = vmatpush.bf16.xpose.msrb.mxu1 %v2233_v24 }
 0x3b6   : > { %v1860_v21 = vpop.f32.mrf.mxu3 }
 0x3b7   : > { %v8227_v52 = vmul.f32 0.17677669, %v1860_v21 }
 0x3b9   : > { %1914 = vmax.xlane.f32.xlu0 %v8227_v52 }
 0x3bd   : > { %2252 = vmatpush.bf16.xpose.msrb.mxu1 %v2230_v58 }
 0x3be   : > { %v1862_v40 = vpop.f32.mrf.mxu3 }
 0x3bf   : > { %v8231_v19 = vmul.f32 0.17677669, %v1862_v40 }
 0x3c1   : > { %1916 = vmax.xlane.f32.xlu1 %v8231_v19 }
 0x3c5   : > { %2253 = vmatpush.bf16.xpose.msrb.mxu1 %v2227_v28  ;;  %v2779_v28 = vsel %vm1792_vm1, %v8191_v33, 0 }
 0x3c6   : > { %v1865_v18 = vpop.f32.mrf.mxu3 }
 0x3c7   : > { %v8235_v29 = vmul.f32 0.17677669, %v1865_v18 }
 0x3c9   : > { %1918 = vmax.xlane.f32.xlu2 %v8235_v29 }
 0x3cd   : > { %2254 = vmatpush.bf16.xpose.msrb.mxu1 %v2224_v2 }
 0x3ce   : > { %v1867_v60 = vpop.f32.mrf.mxu3 }
 0x3cf   : > { %v8240_v1 = vmul.f32 0.17677669, %v1867_v60 }
 0x3d1   : > { %1920 = vmax.xlane.f32.xlu0 %v8240_v1 }
 0x3d4   : > { %5690 = vmatmul.msk.bf16.vlgmr.msrb.gmra.mxu1 %vm1792_vm1, %v8131_v55  ;;  %v2788_v55 = vsel %vm1792_vm1, %v8162_v61, 0 }
 0x3d5   : > { %2799 = vmatpush.bf16.xpose.msra.mxu1 %v2797_v11  ;;  %v8285_v11 = vpop.permute.xlu1 %3224 }
 0x3d6   : > { %v1870_v34 = vpop.f32.mrf.mxu3 }
 0x3d7   : > { %v8247_v46 = vmul.f32 0.17677669, %v1870_v34 }
 0x3d9   : > { %1922 = vmax.xlane.f32.xlu0 %v8247_v46 }
 0x3dd   : > { %2800 = vmatpush.bf16.xpose.msra.mxu1 %v2794_v62 }
 0x3de   : > { %v1872_v50 = vpop.f32.mrf.mxu3 }
 0x3df   : > { %v8252_v24 = vmul.f32 0.17677669, %v1872_v50 }
 0x3e1   : > { %1924 = vmax.xlane.f32.xlu1 %v8252_v24 }
 0x3e4   : > { %5691 = vmatmul.msk.bf16.gmra.mxu1 %vm1792_vm1, %v8160_v56  ;;  %v2782_v56 = vsel %vm1792_vm1, %v8199_v48, 0 }
 0x3e5   : > { %2801 = vmatpush.bf16.xpose.msra.mxu1 %v2791_v36 }
 0x3e6   : > { %v1875_v27 = vpop.f32.mrf.mxu3 }
 0x3e7   : > { %v8259_v21 = vmul.f32 0.17677669, %v1875_v27 }
 0x3e9   : > { %1926 = vmax.xlane.f32.xlu1 %v8259_v21 }
 0x3ed   : > { %2802 = vmatpush.bf16.xpose.msra.mxu1 %v2788_v55 }
 0x3ee   : > { %v1877_v58 = vpop.f32.mrf.mxu3 }
 0x3ef   : > { %v8263_v40 = vmul.f32 0.17677669, %v1877_v58 }
 0x3f1   : > { %1928 = vmax.xlane.f32.xlu2 %v8263_v40 }
 0x3f4   : > { %5692 = vmatmul.msk.bf16.gmra.mxu1 %vm1792_vm1, %v8168_v22  ;;  %v2776_v22 = vsel %vm1792_vm1, %v8189_v9, 0 }
 0x3f5   : > { %2803 = vmatpush.bf16.xpose.msra.mxu1 %v2785_v13 }
 0x3f6   : > { %v1880_v61 = vpop.f32.mrf.mxu3 }
 0x3f7   : > { %v8270_v4 = vmul.f32 0.17677669, %v1880_v61 }
 0x3f9   : > { %1930 = vmax.xlane.f32.xlu2 %v8270_v4 }
 0x3fd   : > { %2804 = vmatpush.bf16.xpose.msra.mxu1 %v2782_v56 }
 0x3fe   : > { %v1882_v18 = vpop.f32.mrf.mxu3 }
 0x3ff   : > { %v8275_v10 = vmul.f32 0.17677669, %v1882_v18 }
 0x401   : > { %1932 = vmax.xlane.f32.xlu0 %v8275_v10 }
 0x404   : > { %5693 = vmatmul.msk.bf16.gmra.mxu1 %vm1792_vm1, %v8170_v63  ;;  %v2182_v63 = vpop.permute.xlu1 %2181 }
 0x405   : > { %2805 = vmatpush.bf16.xpose.msra.mxu1 %v2779_v28 }
 0x406   : > { %v1885_v48 = vpop.f32.mrf.mxu3 }
 0x407   : > { %v8282_v2 = vmul.f32 0.17677669, %v1885_v48 }
 0x409   : > { %1934 = vmax.xlane.f32.xlu2 %v8282_v2 }
 0x40c   : > { %v1907_v33 = vpop.xlane.xlu2 %1906 }
 0x40d   : > { %2806 = vmatpush.bf16.xpose.msra.mxu1 %v2776_v22  ;;  %v1938_v60 = vsub.f32 %v8194_v17, %v1907_v33 }
 0x40e   : > { %v1887_v62 = vpop.f32.mrf.mxu3 }
 0x40f   : > { %v1954_v34 = vmul.f32 1.442695, %v1938_v60  ;;  %v8288_v36 = vmul.f32 0.17677669, %v1887_v62 }
 0x411   : > { %6209 = vpow2.f32 %v1954_v34  ;;  %1936 = vmax.xlane.f32.xlu2 %v8288_v36 }
 0x414   : > { %5694 = vmatmul.msk.bf16.gmra.mxu1 %vm1792_vm1, %v8182_v30  ;;  %v1909_v9 = vpop.xlane.xlu0 %1908 }
 0x415   : > { %v1939_v50 = vsub.f32 %v8202_v44, %v1909_v9 }
 0x417   : > { %v8294_v55 = vpop.eup %6209  ;;  %v1956_v27 = vmul.f32 1.442695, %v1939_v50 }
 0x418   : > { %1986 = vadd.xlane.f32.xlu1 %v8294_v55 }
 0x419   : > { %6211 = vpow2.f32 %v1956_v27 }
 0x41c   : > { %v1911_v17 = vpop.xlane.xlu1 %1910 }
 0x41d   : > { %v1940_v43 = vsub.f32 %v8212_v8, %v1911_v17 }
 0x41f   : > { %v8298_v13 = vpop.eup %6211  ;;  %v1958_v58 = vmul.f32 1.442695, %v1940_v43 }
 0x420   : > { %1988 = vadd.xlane.f32.xlu2 %v8298_v13 }
 0x421   : > { %6213 = vpow2.f32 %v1958_v58 }
 0x424   : > { %v1913_v56 = vpop.xlane.xlu2 %1912  ;;  %5695 = vmatmul.msk.bf16.gmra.mxu1 %vm1792_vm1, %v8219_v31 }
 0x425   : > { %v1941_v30 = vsub.f32 %v8221_v0, %v1913_v56 }
 0x427   : > { %v8304_v44 = vpop.eup %6213  ;;  %v1960_v61 = vmul.f32 1.442695, %v1941_v30 }
 0x428   : > { %1990 = vadd.xlane.f32.xlu2 %v8304_v44 }
 0x429   : > { %6215 = vpow2.f32 %v1960_v61 }
 0x42c   : > { %v1915_v28 = vpop.xlane.xlu0 %1914 }
 0x42d   : > { %v1942_v8 = vsub.f32 %v8227_v52, %v1915_v28 }
 0x42f   : > { %v8308_v18 = vpop.eup %6215  ;;  %v1962_v22 = vmul.f32 1.442695, %v1942_v8 }
 0x430   : > { %1992 = vadd.xlane.f32.xlu0 %v8308_v18 }
 0x431   : > { %6217 = vpow2.f32 %v1962_v22 }
 0x434   : > { %5696 = vmatmul.msk.bf16.gmra.mxu1 %vm1792_vm1, %v8215_v57  ;;  %v1917_v48 = vpop.xlane.xlu1 %1916 }
 0x437   : > { %v8313_v31 = vpop.eup %6217 }
 0x438   : > { %1994 = vadd.xlane.f32.xlu0 %v8313_v31 }
 0x43c   : > { %v1919_v60 = vpop.xlane.xlu2 %1918 }
 0x440   : > { %3206 = vrot.lane.b32.xlu2 %v8030_v47, %s7092_s25 }
 0x444   : > { %5697 = vmatmul.msk.bf16.gmra.mxu1 %vm1792_vm1, %v2182_v63  ;;  %v1921_v50 = vpop.xlane.xlu0 %1920 }
 0x445   : > { %v1945_v43 = vsub.f32 %v8240_v1, %v1921_v50 }
 0x448   : > { %2725 = vrot.lane.b32.xlu2 %v8050_v12, %s7090_s16 }
 0x44c   : > { %2723 = vrot.lane.b32.xlu0 %v8030_v47, %s7090_s16  ;;  %v1943_v47 = vsub.f32 %v8231_v19, %v1917_v48 }
 0x44e   : > { %v1964_v34 = vmul.f32 1.442695, %v1943_v47 }
 0x450   : > { %3208 = vrot.lane.b32.xlu2 %v8050_v12, %s7092_s25  ;;  %6219 = vpow2.f32 %v1964_v34 }
 0x451   : > { %v2256_v0 = vpop.f32.mrf.mxu1 }
 0x452   : > { %v8325_v57 = vmul.f32 0.17677669, %v2256_v0  ;;  %v5943_v0 = vld [vmem:[%s7485_s13 + $0x8] sm:$0xff] }
 0x453   : > { %2676 = vmatpush.bf16.msrb.mxu0 %v5943_v0 }
 0x454   : > { %5730 = vmatmul.msk.bf16.vlgmr.msra.gmra.mxu1 %vm1792_vm1, %v8184_v45  ;;  %2312 = vmax.xlane.f32.xlu1 %v8325_v57  ;;  %v1925_v62 = vpop.xlane.xlu1 %1924  ;;  %v1944_v45 = vsub.f32 %v8235_v29, %v1919_v60  ;;  %v1968_v29 = vmul.f32 1.442695, %v1945_v43 }
 0x455   : > { %v1947_v27 = vsub.f32 %v8252_v24, %v1925_v62  ;;  %v1923_v24 = vpop.xlane.xlu0 %1922 }
 0x456   : > { %v1966_v17 = vmul.f32 1.442695, %v1944_v45  ;;  %v8339_v58 = vpop.eup %6219  ;;  %v1946_v22 = vsub.f32 %v8247_v46, %v1923_v24 }
 0x457   : > { %v1972_v19 = vmul.f32 1.442695, %v1947_v27 }
 0x458   : > { %6221 = vpow2.f32 %v1966_v17  ;;  %v1970_v60 = vmul.f32 1.442695, %v1946_v22 }
 0x459   : > { %v2258_v52 = vpop.f32.mrf.mxu1  ;;  %6223 = vpow2.f32 %v1972_v19 }
 0x45a   : > { %v8342_v30 = vmul.f32 0.17677669, %v2258_v52  ;;  %6225 = vpow2.f32 %v1968_v29 }
 0x45e   : > { %v8352_v52 = vpop.eup %6221 }
 0x45f   : > { %v8355_v48 = vpop.eup %6223 }
 0x461   : > { %v2261_v33 = vpop.f32.mrf.mxu1 }
 0x462   : > { %v8346_v1 = vmul.f32 0.17677669, %v2261_v33  ;;  %v5942_v33 = vld [vmem:[%s7485_s13] sm:$0xff] }
 0x463   : > { %2677 = vmatpush.bf16.msrb.mxu0 %v5942_v33  ;;  %v3274_v33 = vsel %vm1792_vm1, %v8205_v59, 0  ;;  %v3268_v59 = vsel %vm1792_vm1, %v8285_v11, 0 }
 0x464   : > { %5731 = vmatmul.msk.bf16.gmra.mxu1 %vm1792_vm1, %v8217_v15  ;;  %v1929_v63 = vpop.xlane.xlu2 %1928  ;;  %v1927_v15 = vpop.xlane.xlu1 %1926 }
 0x465   : > { %v1948_v61 = vsub.f32 %v8259_v21, %v1927_v15  ;;  %v1949_v46 = vsub.f32 %v8263_v40, %v1929_v63 }
 0x467   : > { %v1974_v8 = vmul.f32 1.442695, %v1948_v61 }
 0x469   : > { %v2263_v12 = vpop.f32.mrf.mxu1  ;;  %6227 = vpow2.f32 %v1974_v8 }
 0x46a   : > { %v8333_v9 = vmul.f32 0.17677669, %v2263_v12  ;;  %v1976_v12 = vmul.f32 1.442695, %v1949_v46 }
 0x46c   : > { %2318 = vmax.xlane.f32.xlu1 %v8333_v9  ;;  %v1931_v56 = vpop.xlane.xlu2 %1930 }
 0x46d   : > { %v1950_v28 = vsub.f32 %v8270_v4, %v1931_v56  ;;  %v8359_v4 = vpop.eup %6225 }
 0x46f   : > { %v1978_v21 = vmul.f32 1.442695, %v1950_v28  ;;  %v8365_v62 = vpop.eup %6227  ;;  %v3280_v28 = vsel %vm1792_vm1, %v8197_v42, 0 }
 0x471   : > { %6229 = vpow2.f32 %v1978_v21  ;;  %v2266_v63 = vpop.f32.mrf.mxu1 }
 0x472   : > { %6231 = vpow2.f32 %v1970_v60  ;;  %v8379_v43 = vmul.f32 0.17677669, %v2266_v63 }
 0x473   : > { %6233 = vpow2.f32 %v1976_v12 }
 0x474   : > { %1996 = vadd.xlane.f32.xlu1 %v8339_v58  ;;  %v1933_v56 = vpop.xlane.xlu0 %1932 }
 0x476   : > { %2314 = vmax.xlane.f32.xlu0 %v8342_v30 }
 0x477   : > { %v8368_v34 = vpop.eup %6229 }
 0x478   : > { %v8371_v45 = vpop.eup %6231 }
 0x479   : > { %2316 = vmax.xlane.f32.xlu2 %v8346_v1  ;;  %v8376_v17 = vpop.eup %6233 }
 0x47c   : > { %1998 = vadd.xlane.f32.xlu1 %v8352_v52  ;;  %v8361_v47 = vpop.xlane.xlu2 %1934 }
 0x47e   : > { %2004 = vadd.xlane.f32.xlu0 %v8355_v48 }
 0x481   : > { %2000 = vadd.xlane.f32.xlu2 %v8359_v4 }
 0x484   : > { %2006 = vadd.xlane.f32.xlu1 %v8365_v62  ;;  %v8374_v50 = vpop.xlane.xlu2 %1936 }
 0x486   : > { %2010 = vadd.xlane.f32.xlu0 %v8368_v34 }
 0x489   : > { %2002 = vadd.xlane.f32.xlu2 %v8371_v45 }
 0x48b   : > { %v1987_v27 = vpop.xlane.xlu1 %1986 }
 0x48c   : > { %6235 = vrcp.f32 %v1987_v27 }
 0x491   : > { %2008 = vadd.xlane.f32.xlu2 %v8376_v17 }
 0x492   : > { %v6236_v15 = vpop.eup %6235 }
 0x493   : > { %v1989_v40 = vpop.xlane.xlu2 %1988  ;;  %v2034_v61 = vmul.f32 %v6236_v15, %v8294_v55  ;;  %v3277_v55 = vsel %vm1792_vm1, %v8225_v53, 0  ;;  %v2268_v53 = vpop.f32.mrf.mxu1  ;;  %v1951_v15 = vsub.f32 %v8275_v10, %v1933_v56  ;;  %v3259_v56 = vsel %vm1792_vm1, %v8178_v39, 0 }
 0x494   : > { %6237 = vrcp.f32 %v1989_v40  ;;  %v8411_v12 = vmul.f32 0.17677669, %v2268_v53 }
 0x495   : > { %v1980_v11 = vmul.f32 1.442695, %v1951_v15 }
 0x499   : > { %2320 = vmax.xlane.f32.xlu2 %v8379_v43 }
 0x49a   : > { %v6238_v19 = vpop.eup %6237  ;;  %2727 = vrot.lane.b32.xlu0 %v8071_v23, %s7090_s16 }
 0x49b   : > { %v2035_v29 = vmul.f32 %v6238_v19, %v8298_v13  ;;  %v1991_v8 = vpop.xlane.xlu2 %1990 }
 0x49c   : > { %6239 = vrcp.f32 %v1991_v8 }
 0x49d   : > { %3210 = vrot.lane.b32.xlu1 %v8071_v23, %s7092_s25  ;;  %v2050_v24 = vpack.c.bf16 %v2035_v29, %v2034_v61  ;;  %v3262_v61 = vsel %vm1792_vm1, %v8210_v3, 0  ;;  %v1952_v29 = vsub.f32 %v8282_v2, %v8361_v47 }
 0x49f   : > { %2114 = vmatmul.bf16.vlgmr.msra.gmra.mxu0 %v2050_v24  ;;  %v1982_v24 = vmul.f32 1.442695, %v1952_v29 }
 0x4a0   : > { %3282 = vmatpush.bf16.xpose.msra.mxu0 %v3280_v28 }
 0x4a2   : > { %v6240_v13 = vpop.eup %6239 }
 0x4a3   : > { %v1993_v22 = vpop.xlane.xlu0 %1992  ;;  %v2036_v23 = vmul.f32 %v6240_v13, %v8304_v44  ;;  %v3271_v44 = vsel %vm1792_vm1, %v8150_v49, 0  ;;  %v8413_v27 = vpop.permute.xlu2 %3206  ;;  %v3265_v49 = vsel %vm1792_vm1, %v8207_v41, 0  ;;  %v1953_v41 = vsub.f32 %v8288_v36, %v8374_v50 }
 0x4a4   : > { %6241 = vrcp.f32 %v1993_v22 }
 0x4a5   : > { %2729 = vrot.lane.b32.xlu1 %v8083_v26, %s7090_s16  ;;  %6243 = vpow2.f32 %v1980_v11  ;;  %v1984_v28 = vmul.f32 1.442695, %v1953_v41 }
 0x4a6   : > { %6245 = vpow2.f32 %v1982_v24 }
 0x4a7   : > { %6247 = vpow2.f32 %v1984_v28 }
 0x4a8   : > { %3283 = vmatpush.bf16.xpose.msra.mxu0 %v3277_v55 }
 0x4aa   : > { %v6242_v0 = vpop.eup %6241 }
 0x4ab   : > { %v2037_v21 = vmul.f32 %v6242_v0, %v8308_v18  ;;  %v1995_v60 = vpop.xlane.xlu0 %1994  ;;  %v8406_v18 = vpop.f32.mrf.mxu1 }
 0x4ac   : > { %v2726_v19 = vpop.permute.xlu2 %2725  ;;  %v8433_v8 = vpop.eup %6243  ;;  %6249 = vrcp.f32 %v1995_v60 }
 0x4ad   : > { %2476 = vrot.lane.b32.xlu1 %v8111_v6, %s7091_s23  ;;  %v2051_v42 = vpack.c.bf16 %v2037_v21, %v2036_v23  ;;  %v8436_v3 = vpop.eup %6245 }
 0x4ae   : > { %v8443_v36 = vpop.eup %6247 }
 0x4af   : > { %2119 = vmatmul.bf16.gmra.mxu0 %v2051_v42 }
 0x4b0   : > { %3284 = vmatpush.bf16.xpose.msra.mxu0 %v3274_v33 }
 0x4b1   : > { %2478 = vrot.lane.b32.xlu2 %v8102_v5, %s7091_s23 }
 0x4b2   : > { %v6250_v50 = vpop.eup %6249 }
 0x4b3   : > { %v2273_v40 = vpop.f32.mrf.mxu1  ;;  %v2038_v13 = vmul.f32 %v6250_v50, %v8313_v31 }
 0x4b4   : > { %v8418_v63 = vmul.f32 0.17677669, %v2273_v40  ;;  %v8446_v39 = vpop.permute.xlu2 %3208 }
 0x4b5   : > { %2474 = vrot.lane.b32.xlu1 %v8118_v7, %s7091_s23 }
 0x4b8   : > { %3285 = vmatpush.bf16.xpose.msra.mxu0 %v3271_v44 }
 0x4bb   : > { %v2276_v15 = vpop.f32.mrf.mxu1 }
 0x4be   : > { %v2724_v46 = vpop.permute.xlu0 %2723 }
 0x4bf   : > { %5732 = vmatmul.msk.bf16.gmra.mxu1 %vm1792_vm1, %v2724_v46 }
 0x4c0   : > { %3286 = vmatpush.bf16.xpose.msra.mxu0 %v3268_v59 }
 0x4c3   : > { %v8466_v41 = vpop.f32.mrf.mxu1 }
 0x4c4   : > { %2322 = vmax.xlane.f32.xlu0 %v8411_v12 }
 0x4c7   : > { %v8429_v10 = vpop.xlane.xlu1 %2312 }
 0x4c8   : > { %3287 = vmatpush.bf16.xpose.msra.mxu0 %v3265_v49 }
 0x4cc   : > { %2326 = vmax.xlane.f32.xlu0 %v8418_v63 }
 0x4cf   : > { %5733 = vmatmul.msk.bf16.gmra.mxu1 %vm1792_vm1, %v2726_v19 }
 0x4d0   : > { %3288 = vmatpush.bf16.xpose.msra.mxu0 %v3262_v61 }
 0x4d8   : > { %3289 = vmatpush.bf16.xpose.msra.mxu0 %v3259_v56 }
 0x4da   : > { %2012 = vadd.xlane.f32.xlu2 %v8433_v8 }
 0x4df   : > { %2014 = vadd.xlane.f32.xlu1 %v8436_v3  ;;  %v8439_v2 = vpop.xlane.xlu1 %2318 }
 0x4e0   : > { %2731 = vrot.lane.b32.xlu0 %v8098_v51, %s7090_s16 }
 0x4e2   : > { %2016 = vadd.xlane.f32.xlu2 %v8443_v36 }
 0x4e7   : > { %v1997_v47 = vpop.xlane.xlu1 %1996 }
 0x4e8   : > { %6251 = vrcp.f32 %v1997_v47  ;;  %v8473_v47 = vmul.f32 0.17677669, %v2276_v15 }
 0x4e9   : > { %v2315_v23 = vpop.xlane.xlu0 %2314 }
 0x4ea   : > { %v2345_v44 = vsub.f32 %v8342_v30, %v2315_v23 }
 0x4ec   : > { %v8448_v22 = vpop.xlane.xlu2 %2316  ;;  %v2362_v59 = vmul.f32 1.442695, %v2345_v44 }
 0x4ee   : > { %v6252_v55 = vpop.eup %6251 }
 0x4ef   : > { %v2039_v0 = vmul.f32 %v6252_v55, %v8339_v58  ;;  %v1999_v42 = vpop.xlane.xlu1 %1998 }
 0x4f1   : > { %v2052_v21 = vpack.c.bf16 %v2039_v0, %v2038_v13  ;;  %v2005_v53 = vpop.xlane.xlu0 %2004  ;;  %v2281_v13 = vpop.f32.mrf.mxu1 }
 0x4f3   : > { %2124 = vmatmul.bf16.gmra.mxu0 %v2052_v21 }
 0x4f4   : > { %v2001_v33 = vpop.xlane.xlu2 %2000 }
 0x4f5   : > { %6253 = vrcp.f32 %v2001_v33 }
 0x4f6   : > { %6255 = vrcp.f32 %v1999_v42 }
 0x4f7   : > { %6257 = vpow2.f32 %v2362_v59  ;;  %v2007_v11 = vpop.xlane.xlu1 %2006 }
 0x4f8   : > { %2472 = vrot.lane.b32.xlu1 %v8129_v35, %s7091_s23 }
 0x4f9   : > { %v2011_v19 = vpop.xlane.xlu0 %2010  ;;  %v8484_v44 = vpop.f32.mrf.mxu1 }
 0x4fa   : > { %3212 = vrot.lane.b32.xlu2 %v8083_v26, %s7092_s25 }
 0x4fb   : > { %v6254_v60 = vpop.eup %6253 }
 0x4fc   : > { %v6256_v31 = vpop.eup %6255  ;;  %v2003_v46 = vpop.xlane.xlu2 %2002  ;;  %v2041_v58 = vmul.f32 %v6254_v60, %v8359_v4  ;;  %v8482_v60 = vmul.f32 0.17677669, %v8406_v18 }
 0x4fd   : > { %v2040_v40 = vmul.f32 %v6256_v31, %v8352_v52  ;;  %6259 = vrcp.f32 %v2003_v46  ;;  %v8461_v30 = vpop.eup %6257 }
 0x4fe   : > { %6261 = vrcp.f32 %v2005_v53 }
 0x4ff   : > { %v2053_v49 = vpack.c.bf16 %v2041_v58, %v2040_v40 }
 0x500   : > { %2470 = vrot.lane.b32.xlu1 %v8138_v20, %s7091_s23 }
 0x503   : > { %2129 = vmatmul.bf16.gmra.mxu0 %v2053_v49  ;;  %v6260_v61 = vpop.eup %6259  ;;  %v8506_v49 = vmul.f32 0.17677669, %v2281_v13 }
 0x504   : > { %v2009_v26 = vpop.xlane.xlu2 %2008  ;;  %v6262_v4 = vpop.eup %6261  ;;  %v2042_v24 = vmul.f32 %v6260_v61, %v8371_v45  ;;  %v2344_v45 = vsub.f32 %v8325_v57, %v8429_v10 }
 0x505   : > { %v2043_v56 = vmul.f32 %v6262_v4, %v8355_v48  ;;  %6263 = vrcp.f32 %v2009_v26 }
 0x506   : > { %6265 = vrcp.f32 %v2007_v11  ;;  %v2360_v42 = vmul.f32 1.442695, %v2344_v45 }
 0x507   : > { %v2054_v50 = vpack.c.bf16 %v2043_v56, %v2042_v24 }
 0x508   : > { %6267 = vpow2.f32 %v2360_v42  ;;  %v8521_v42 = vmul.f32 0.17677669, %v8466_v41 }
 0x509   : > { %6269 = vrcp.f32 %v2011_v19 }
 0x50a   : > { %2394 = vadd.xlane.f32.xlu0 %v8461_v30 }
 0x50b   : > { %v6264_v23 = vpop.eup %6263 }
 0x50c   : > { %v8464_v29 = vpop.xlane.xlu2 %2320  ;;  %v2728_v52 = vpop.permute.xlu0 %2727  ;;  %v2045_v48 = vmul.f32 %v6264_v23, %v8376_v17 }
 0x50d   : > { %5734 = vmatmul.msk.bf16.gmra.mxu1 %vm1792_vm1, %v2728_v52  ;;  %v6266_v21 = vpop.eup %6265 }
 0x50e   : > { %v2044_v53 = vmul.f32 %v6266_v21, %v8365_v62  ;;  %v8489_v17 = vpop.eup %6267  ;;  %v2286_v62 = vpop.f32.mrf.mxu1 }
 0x50f   : > { %v8470_v28 = vpop.permute.xlu1 %3210  ;;  %v6270_v15 = vpop.eup %6269 }
 0x510   : > { %v2055_v31 = vpack.c.bf16 %v2045_v48, %v2044_v53  ;;  %v2046_v61 = vmul.f32 %v6270_v15, %v8368_v34  ;;  %v8531_v53 = vmul.f32 0.17677669, %v8484_v44 }
 0x512   : > { %2328 = vmax.xlane.f32.xlu0 %v8473_v47 }
 0x513   : > { %2134 = vmatmul.bf16.gmra.mxu0 %v2054_v50 }
 0x514   : > { %v2479_v55 = vpop.permute.xlu2 %2478 }
 0x515   : > { %2488 = vmatpush.bf16.msrb.mxu2 %v2479_v55 }
 0x516   : > { %v2288_v10 = vpop.f32.mrf.mxu1 }
 0x517   : > { %v2730_v0 = vpop.permute.xlu1 %2729 }
 0x51c   : > { %v2115_v24 = vpop.f32.mrf.mxu0 }
 0x51d   : > { %5735 = vmatmul.msk.bf16.gmra.mxu1 %vm1792_vm1, %v2730_v0 }
 0x51e   : > { %v2291_v18 = vpop.f32.mrf.mxu1 }
 0x51f   : > { %v2477_v33 = vpop.permute.xlu1 %2476 }
 0x520   : > { %2489 = vmatpush.bf16.msrb.mxu2 %v2477_v33  ;;  %v8523_v33 = vmul.f32 0.17677669, %v2288_v10 }
 0x523   : > { %2324 = vmax.xlane.f32.xlu2 %v8482_v60  ;;  %2139 = vmatmul.bf16.gmra.mxu0 %v2055_v31  ;;  %v8533_v31 = vmul.f32 0.17677669, %v2291_v18 }
 0x524   : > { %v2117_v34 = vpop.f32.mrf.mxu0 }
 0x526   : > { %3216 = vrot.lane.b32.xlu0 %v8100_v38, %s7092_s25  ;;  %v2293_v58 = vpop.f32.mrf.mxu1 }
 0x527   : > { %v2475_v57 = vpop.permute.xlu1 %2474  ;;  %v8515_v50 = vmul.f32 0.17677669, %v2293_v58 }
 0x528   : > { %2490 = vmatpush.bf16.msrb.mxu2 %v2475_v57  ;;  %v8539_v57 = vmul.f32 0.17677669, %v2286_v62 }
 0x52a   : > { %2392 = vadd.xlane.f32.xlu1 %v8489_v17 }
 0x52c   : > { %v2120_v21 = vpop.f32.mrf.mxu0 }
 0x52e   : > { %v2808_v11 = vpop.f32.mrf.mxu1 }
 0x52f   : > { %v8512_v4 = vmul.f32 0.17677669, %v2808_v11 }
 0x536   : > { %v2810_v10 = vpop.f32.mrf.mxu1 }
 0x537   : > { %v8494_v46 = vpop.xlane.xlu0 %2322  ;;  %v8545_v18 = vmul.f32 0.17677669, %v2810_v10 }
 0x53b   : > { %2468 = vrot.lane.b32.xlu2 %v8145_v14, %s7091_s23 }
 0x53e   : > { %v2813_v11 = vpop.f32.mrf.mxu1 }
 0x53f   : > { %v8500_v59 = vpop.xlane.xlu0 %2326 }
 0x543   : > { %2466 = vrot.lane.b32.xlu1 %v8152_v16, %s7091_s23  ;;  %3214 = vrot.lane.b32.xlu2 %v8098_v51, %s7092_s25 }
 0x54b   : > { %2733 = vrot.lane.b32.xlu1 %v8100_v38, %s7090_s16  ;;  %2464 = vrot.lane.b32.xlu2 %v8157_v37, %s7091_s23 }
 0x54d   : > { %v2013_v40 = vpop.xlane.xlu2 %2012 }
 0x54e   : > { %6271 = vrcp.f32 %v2013_v40 }
 0x550   : > { %2332 = vmax.xlane.f32.xlu0 %v8506_v49 }
 0x552   : > { %v2732_v26 = vpop.permute.xlu0 %2731  ;;  %v2015_v56 = vpop.xlane.xlu1 %2014 }
 0x553   : > { %5736 = vmatmul.msk.bf16.gmra.mxu1 %vm1792_vm1, %v2732_v26 }
 0x554   : > { %v6272_v51 = vpop.eup %6271 }
 0x555   : > { %v2047_v38 = vmul.f32 %v6272_v51, %v8433_v8  ;;  %v2017_v52 = vpop.xlane.xlu2 %2016 }
 0x556   : > { %6273 = vrcp.f32 %v2017_v52  ;;  %v8559_v52 = vpop.f32.mrf.mxu1 }
 0x557   : > { %v2056_v19 = vpack.c.bf16 %v2047_v38, %v2046_v61  ;;  %6275 = vrcp.f32 %v2015_v56  ;;  %v2346_v38 = vsub.f32 %v8346_v1, %v8448_v22 }
 0x558   : > { %2864 = vmax.xlane.f32.xlu0 %v8512_v4 }
 0x559   : > { %2144 = vmatmul.bf16.gmra.mxu0 %v2056_v19  ;;  %v2364_v19 = vmul.f32 1.442695, %v2346_v38 }
 0x55b   : > { %6277 = vpow2.f32 %v2364_v19  ;;  %v2349_v19 = vsub.f32 %v8411_v12, %v8494_v46 }
 0x55c   : > { %v6274_v55 = vpop.eup %6273 }
 0x55d   : > { %v6276_v13 = vpop.eup %6275  ;;  %v2049_v8 = vmul.f32 %v6274_v55, %v8443_v36  ;;  %v2155_v36 = vpack.c.bf16 %v2117_v34, %v2115_v24  ;;  %v8548_v40 = vpop.permute.xlu2 %3212 }
 0x55e   : > { %v2048_v0 = vmul.f32 %v6276_v13, %v8436_v3  ;;  %v2122_v3 = vpop.f32.mrf.mxu0 }
 0x55f   : > { %v2156_v44 = vpack.c.bf16 %v2122_v3, %v2120_v21 }
 0x560   : > { %2342 = vmax.xlane.f32.xlu0 %v8515_v50  ;;  %v2057_v23 = vpack.c.bf16 %v2049_v8, %v2048_v0 }
 0x561   : > { %v8568_v1 = vpop.eup %6277 }
 0x569   : > { %2149 = vmatmul.bf16.gmra.mxu0 %v2057_v23  ;;  %v8577_v23 = vmul.f32 0.17677669, %v2813_v11 }
 0x56a   : > { %v2473_v45 = vpop.permute.xlu1 %2472 }
 0x56b   : > { %2491 = vmatpush.bf16.msrb.mxu2 %v2473_v45 }
 0x570   : > { %v2125_v41 = vpop.f32.mrf.mxu0 }
 0x572   : > { %v2471_v48 = vpop.permute.xlu1 %2470 }
 0x573   : > { %2492 = vmatpush.bf16.msrb.mxu2 %v2471_v48 }
 0x574   : > { %2330 = vmax.xlane.f32.xlu2 %v8521_v42  ;;  %3026 = vrot.lane.b32.xlu0 %v8118_v7, %s7090_s16 }
 0x575   : > { %2338 = vmax.xlane.f32.xlu1 %v8523_v33 }
 0x578   : > { %v2127_v58 = vpop.f32.mrf.mxu0 }
 0x579   : > { %5722 = vmatmul.msk.bf16.vlgmr.msrb.gmra.mxu0 %vm1792_vm1, %v2155_v36  ;;  %v2157_v26 = vpack.c.bf16 %v2127_v58, %v2125_v41 }
 0x57c   : > { %2334 = vmax.xlane.f32.xlu2 %v8531_v53  ;;  %3016 = vrot.lane.b32.xlu0 %v8157_v37, %s7090_s16 }
 0x57d   : > { %2340 = vmax.xlane.f32.xlu1 %v8533_v31  ;;  %v2395_v22 = vpop.xlane.xlu0 %2394 }
 0x580   : > { %v2130_v15 = vpop.f32.mrf.mxu0 }
 0x584   : > { %2336 = vmax.xlane.f32.xlu2 %v8539_v57  ;;  %3507 = vrot.lane.b32.xlu0 %v8129_v35, %s7092_s25 }
 0x588   : > { %v2132_v51 = vpop.f32.mrf.mxu0 }
 0x589   : > { %5723 = vmatmul.msk.bf16.gmra.mxu0 %vm1792_vm1, %v2156_v44  ;;  %v2158_v56 = vpack.c.bf16 %v2132_v51, %v2130_v15  ;;  %v2347_v51 = vsub.f32 %v8333_v9, %v8439_v2  ;;  %v2351_v2 = vsub.f32 %v8418_v63, %v8500_v59 }
 0x58b   : > { %v2374_v12 = vmul.f32 1.442695, %v2351_v2 }
 0x58c   : > { %2866 = vmax.xlane.f32.xlu2 %v8545_v18 }
 0x590   : > { %v2135_v24 = vpop.f32.mrf.mxu0 }
 0x596   : > { %3028 = vrot.lane.b32.xlu1 %v8111_v6, %s7090_s16  ;;  %v8552_v62 = vpop.xlane.xlu2 %2324 }
 0x598   : > { %v2137_v34 = vpop.f32.mrf.mxu0 }
 0x599   : > { %5724 = vmatmul.msk.bf16.gmra.mxu0 %vm1792_vm1, %v2157_v26  ;;  %v2159_v48 = vpack.c.bf16 %v2137_v34, %v2135_v24  ;;  %v8609_v24 = vpop.xlane.xlu0 %2328 }
 0x59d   : > { %v2393_v55 = vpop.xlane.xlu1 %2392 }
 0x59e   : > { %3024 = vrot.lane.b32.xlu1 %v8129_v35, %s7090_s16  ;;  %v2469_v61 = vpop.permute.xlu2 %2468  ;;  %v2818_v35 = vpop.f32.mrf.mxu1  ;;  %6279 = vrcp.f32 %v2393_v55 }
 0x59f   : > { %2493 = vmatpush.bf16.msrb.mxu2 %v2469_v61  ;;  %6281 = vrcp.f32 %v2395_v22  ;;  %v8587_v44 = vmul.f32 0.17677669, %v2818_v35 }
 0x5a0   : > { %v2140_v10 = vpop.f32.mrf.mxu0 }
 0x5a1   : > { %v8619_v34 = vpop.permute.xlu0 %3216 }
 0x5a4   : > { %3030 = vrot.lane.b32.xlu2 %v8102_v5, %s7090_s16  ;;  %v6280_v8 = vpop.eup %6279 }
 0x5a5   : > { %v6282_v21 = vpop.eup %6281  ;;  %v2440_v3 = vmul.f32 %v6280_v8, %v8489_v17 }
 0x5a6   : > { %3022 = vrot.lane.b32.xlu1 %v8138_v20, %s7090_s16  ;;  %v8573_v13 = vpop.permute.xlu2 %3214  ;;  %v2820_v0 = vpop.f32.mrf.mxu1  ;;  %v2441_v41 = vmul.f32 %v6282_v21, %v8461_v30  ;;  %v2348_v21 = vsub.f32 %v8379_v43, %v8464_v29 }
 0x5a7   : > { %v8593_v30 = vmul.f32 0.17677669, %v2820_v0 }
 0x5a8   : > { %v2142_v17 = vpop.f32.mrf.mxu0 }
 0x5a9   : > { %5725 = vmatmul.msk.bf16.gmra.mxu0 %vm1792_vm1, %v2158_v56  ;;  %v2160_v15 = vpack.c.bf16 %v2142_v17, %v2140_v10  ;;  %v2370_v56 = vmul.f32 1.442695, %v2349_v19  ;;  %v2352_v19 = vsub.f32 %v8473_v47, %v8609_v24 }
 0x5ab   : > { %v2376_v2 = vmul.f32 1.442695, %v2352_v19  ;;  %v5945_v19 = vld [vmem:[%s7485_s13 + $0x18] sm:$0xff] }
 0x5ac   : > { %3020 = vrot.lane.b32.xlu2 %v8145_v14, %s7090_s16  ;;  %2591 = vmatpush.bf16.msra.mxu3 %v5945_v19 }
 0x5ae   : > { %3018 = vrot.lane.b32.xlu1 %v8152_v16, %s7090_s16  ;;  %2396 = vadd.xlane.f32.xlu0 %v8568_v1  ;;  %v2465_v36 = vpop.permute.xlu2 %2464  ;;  %v2823_v58 = vpop.f32.mrf.mxu1 }
 0x5b4   : > { %3513 = vrot.lane.b32.xlu2 %v8102_v5, %s7092_s25  ;;  %v2456_v5 = vpack.c.bf16 %v2441_v41, %v2440_v3 }
 0x5b5   : > { %v2467_v45 = vpop.permute.xlu1 %2466 }
 0x5b6   : > { %3505 = vrot.lane.b32.xlu1 %v8138_v20, %s7092_s25  ;;  %2494 = vmatpush.bf16.msrb.mxu2 %v2467_v45  ;;  %v2825_v26 = vpop.f32.mrf.mxu1 }
 0x5b7   : > { %2868 = vmax.xlane.f32.xlu0 %v8577_v23 }
 0x5b9   : > { %5726 = vmatmul.msk.bf16.gmra.mxu0 %vm1792_vm1, %v2159_v48 }
 0x5ba   : > { %2495 = vmatpush.bf16.msrb.mxu2 %v2465_v36 }
 0x5bc   : > { %3511 = vrot.lane.b32.xlu2 %v8111_v6, %s7092_s25  ;;  %v8599_v6 = vmul.f32 0.17677669, %v2823_v58  ;;  %v8634_v58 = vmul.f32 0.17677669, %v8559_v52 }
 0x5bd   : > { %v2734_v20 = vpop.permute.xlu1 %2733  ;;  %2496 = vmatmul.bf16.vlgmr.msrb.gmra.mxu2 %v2456_v5  ;;  %v2368_v5 = vmul.f32 1.442695, %v2348_v21 }
 0x5be   : > { %5737 = vmatmul.msk.bf16.gmra.mxu1 %vm1792_vm1, %v2734_v20  ;;  %v2828_v11 = vpop.f32.mrf.mxu1 }
 0x5bf   : > { %2872 = vmax.xlane.f32.xlu0 %v8587_v44  ;;  %v8604_v61 = vmul.f32 0.17677669, %v2828_v11 }
 0x5c3   : > { %v2333_v45 = vpop.xlane.xlu0 %2332 }
 0x5c4   : > { %3509 = vrot.lane.b32.xlu2 %v8118_v7, %s7092_s25  ;;  %v2366_v7 = vmul.f32 1.442695, %v2347_v51 }
 0x5c6   : > { %6283 = vpow2.f32 %v2366_v7 }
 0x5c7   : > { %2874 = vmax.xlane.f32.xlu0 %v8593_v30  ;;  %6285 = vpow2.f32 %v2370_v56 }
 0x5c8   : > { %6287 = vpow2.f32 %v2374_v12 }
 0x5c9   : > { %5727 = vmatmul.msk.bf16.gmra.mxu0 %vm1792_vm1, %v2160_v15 }
 0x5cb   : > { %v8636_v43 = vpop.xlane.xlu0 %2864 }
 0x5cc   : > { %3503 = vrot.lane.b32.xlu2 %v8145_v14, %s7092_s25  ;;  %v2830_v14 = vpop.f32.mrf.mxu1  ;;  %v8613_v22 = vpop.eup %6283 }
 0x5cd   : > { %v8611_v35 = vmul.f32 0.17677669, %v2830_v14  ;;  %v8622_v8 = vpop.eup %6285 }
 0x5ce   : > { %v8627_v3 = vpop.eup %6287 }
 0x5cf   : > { %2876 = vmax.xlane.f32.xlu0 %v8599_v6 }
 0x5d6   : > { %v2145_v38 = vpop.f32.mrf.mxu0 }
 0x5d7   : > { %2880 = vmax.xlane.f32.xlu0 %v8604_v61 }
 0x5de   : > { %v2147_v55 = vpop.f32.mrf.mxu0 }
 0x5df   : > { %v2161_v9 = vpack.c.bf16 %v2147_v55, %v2145_v38  ;;  %2882 = vmax.xlane.f32.xlu0 %v8611_v35  ;;  %v2354_v38 = vsub.f32 %v8506_v49, %v2333_v45 }
 0x5e0   : > { %2398 = vadd.xlane.f32.xlu1 %v8613_v22 }
 0x5e1   : > { %5728 = vmatmul.msk.bf16.gmra.mxu0 %vm1792_vm1, %v2161_v9  ;;  %v2380_v14 = vmul.f32 1.442695, %v2354_v38 }
 0x5e6   : > { %v2150_v46 = vpop.f32.mrf.mxu0 }
 0x5e7   : > { %v2331_v0 = vpop.xlane.xlu2 %2330 }
 0x5e8   : > { %2402 = vadd.xlane.f32.xlu1 %v8622_v8  ;;  %v2339_v63 = vpop.xlane.xlu1 %2338  ;;  %v2353_v10 = vsub.f32 %v8521_v42, %v2331_v0  ;;  %v2350_v42 = vsub.f32 %v8482_v60, %v8552_v62  ;;  %v2343_v62 = vpop.xlane.xlu0 %2342 }
 0x5e9   : > { %v2357_v29 = vsub.f32 %v8523_v33, %v2339_v63 }
 0x5ea   : > { %v2378_v17 = vmul.f32 1.442695, %v2353_v10  ;;  %v2372_v33 = vmul.f32 1.442695, %v2350_v42 }
 0x5eb   : > { %v2386_v51 = vmul.f32 1.442695, %v2357_v29 }
 0x5ee   : > { %v2152_v48 = vpop.f32.mrf.mxu0 }
 0x5ef   : > { %v2162_v59 = vpack.c.bf16 %v2152_v48, %v2150_v46  ;;  %v2335_v36 = vpop.xlane.xlu2 %2334 }
 0x5f0   : > { %v2355_v41 = vsub.f32 %v8531_v53, %v2335_v36  ;;  %2406 = vadd.xlane.f32.xlu1 %v8627_v3  ;;  %v8640_v53 = vmul.f32 0.17677669, %v2825_v26  ;;  %v2341_v52 = vpop.xlane.xlu1 %2340  ;;  %v3027_v12 = vpop.permute.xlu0 %3026 }
 0x5f1   : > { %5729 = vmatmul.msk.bf16.gmra.mxu0 %vm1792_vm1, %v2162_v59  ;;  %v2358_v60 = vsub.f32 %v8533_v31, %v2341_v52 }
 0x5f2   : > { %v2382_v20 = vmul.f32 1.442695, %v2355_v41 }
 0x5f3   : > { %v2388_v9 = vmul.f32 1.442695, %v2358_v60 }
 0x5f4   : > { %6289 = vpow2.f32 %v2382_v20 }
 0x5f5   : > { %2870 = vmax.xlane.f32.xlu2 %v8634_v58  ;;  %6291 = vpow2.f32 %v2368_v5 }
 0x5f6   : > { %v8644_v15 = vpop.f32.mrf.mxu0  ;;  %6293 = vpow2.f32 %v2378_v17 }
 0x5f7   : > { %v2337_v11 = vpop.xlane.xlu2 %2336  ;;  %6295 = vpow2.f32 %v2386_v51 }
 0x5f8   : > { %2878 = vmax.xlane.f32.xlu1 %v8640_v53  ;;  %6297 = vpow2.f32 %v2372_v33  ;;  %v2356_v46 = vsub.f32 %v8539_v57, %v2337_v11  ;;  %v2359_v57 = vsub.f32 %v8515_v50, %v2343_v62  ;;  %v3017_v41 = vpop.permute.xlu0 %3016  ;;  %v2896_v50 = vsub.f32 %v8512_v4, %v8636_v43 }
 0x5f9   : > { %6299 = vpow2.f32 %v2380_v14 }
 0x5fa   : > { %v8647_v7 = vpop.eup %6289  ;;  %6301 = vpow2.f32 %v2388_v9  ;;  %v2390_v29 = vmul.f32 1.442695, %v2359_v57  ;;  %v2912_v52 = vmul.f32 1.442695, %v2896_v50 }
 0x5fb   : > { %2414 = vadd.xlane.f32.xlu0 %v8647_v7  ;;  %v8651_v26 = vpop.eup %6291  ;;  %6303 = vpow2.f32 %v2376_v2 }
 0x5fc   : > { %v8659_v55 = vpop.eup %6293 }
 0x5fd   : > { %2400 = vadd.xlane.f32.xlu2 %v8651_v26  ;;  %v8664_v31 = vpop.eup %6295 }
 0x5fe   : > { %v8657_v56 = vpop.f32.mrf.mxu0  ;;  %v8667_v47 = vpop.eup %6297 }
 0x5ff   : > { %v2867_v49 = vpop.xlane.xlu2 %2866  ;;  %v8674_v45 = vpop.eup %6299 }
 0x600   : > { %2410 = vadd.xlane.f32.xlu1 %v8659_v55  ;;  %v2897_v24 = vsub.f32 %v8545_v18, %v2867_v49  ;;  %v8677_v63 = vpop.eup %6301  ;;  %v2384_v18 = vmul.f32 1.442695, %v2356_v46  ;;  %v3508_v51 = vpop.permute.xlu0 %3507  ;;  %v5944_v49 = vld [vmem:[%s7485_s13 + $0x10] sm:$0xff] }
 0x601   : > { %5754 = vmatmul.msk.bf16.vlgmr.msra.gmra.mxu0 %vm1792_vm1, %v8187_v54  ;;  %v8680_v59 = vpop.eup %6303  ;;  %2592 = vmatpush.bf16.msra.mxu3 %v5944_v49 }
 0x602   : > { %v2914_v21 = vmul.f32 1.442695, %v2897_v24 }
 0x603   : > { %2418 = vadd.xlane.f32.xlu0 %v8664_v31 }
 0x604   : > { %6305 = vpow2.f32 %v2914_v21 }
 0x605   : > { %2404 = vadd.xlane.f32.xlu2 %v8667_v47  ;;  %6307 = vpow2.f32 %v2384_v18 }
 0x606   : > { %v8672_v0 = vpop.f32.mrf.mxu0  ;;  %6309 = vpow2.f32 %v2390_v29 }
 0x607   : > { %v3031_v54 = vpop.permute.xlu2 %3030  ;;  %6311 = vpow2.f32 %v2912_v52 }
 0x608   : > { %v3029_v48 = vpop.permute.xlu1 %3028  ;;  %3040 = vmatpush.bf16.msrb.mxu1 %v3031_v54  ;;  %5999 = vmatpush.bf16.msra.mxu2 %v3031_v54 }
 0x609   : > { %2412 = vadd.xlane.f32.xlu1 %v8674_v45 }
 0x60a   : > { %v8688_v20 = vpop.eup %6305 }
 0x60b   : > { %2420 = vadd.xlane.f32.xlu0 %v8677_v63  ;;  %v8691_v17 = vpop.eup %6307 }
 0x60c   : > { %3041 = vmatpush.bf16.msrb.mxu1 %v3029_v48  ;;  %6000 = vmatpush.bf16.msra.mxu2 %v3029_v48  ;;  %v8698_v33 = vpop.eup %6309 }
 0x60d   : > { %2408 = vadd.xlane.f32.xlu2 %v8680_v59  ;;  %v8705_v62 = vpop.eup %6311 }
 0x60e   : > { %v8684_v36 = vpop.f32.mrf.mxu0 }
 0x60f   : > { %v3021_v10 = vpop.permute.xlu2 %3020 }
 0x610   : > { %v3025_v5 = vpop.permute.xlu1 %3024  ;;  %3042 = vmatpush.bf16.msrb.mxu1 %v3027_v12  ;;  %6001 = vmatpush.bf16.msra.mxu2 %v3027_v12 }
 0x611   : > { %5755 = vmatmul.msk.bf16.gmra.mxu0 %vm1792_vm1, %v8172_v25 }
 0x613   : > { %2946 = vadd.xlane.f32.xlu0 %v8688_v20 }
 0x614   : > { %3043 = vmatpush.bf16.msrb.mxu1 %v3025_v5  ;;  %6002 = vmatpush.bf16.msra.mxu2 %v3025_v5 }
 0x615   : > { %2416 = vadd.xlane.f32.xlu2 %v8691_v17 }
 0x616   : > { %v8696_v42 = vpop.f32.mrf.mxu0 }
 0x617   : > { %v3514_v25 = vpop.permute.xlu2 %3513 }
 0x618   : > { %v3023_v11 = vpop.permute.xlu1 %3022 }
 0x619   : > { %3044 = vmatpush.bf16.msrb.mxu1 %v3023_v11  ;;  %6003 = vmatpush.bf16.msra.mxu2 %v3023_v11 }
 0x61d   : > { %2422 = vadd.xlane.f32.xlu2 %v8698_v33  ;;  %3045 = vmatpush.bf16.msrb.mxu1 %v3021_v10 }
 0x61e   : > { %6004 = vmatpush.bf16.msra.mxu2 %v3021_v10  ;;  %v8701_v38 = vpop.f32.mrf.mxu0 }
 0x61f   : > { %v3512_v60 = vpop.permute.xlu2 %3511 }
 0x620   : > { %v3019_v4 = vpop.permute.xlu1 %3018 }
 0x621   : > { %3046 = vmatpush.bf16.msrb.mxu1 %v3019_v4  ;;  %5756 = vmatmul.msk.bf16.gmra.mxu0 %vm1792_vm1, %v8413_v27  ;;  %v2397_v43 = vpop.xlane.xlu0 %2396 }
 0x622   : > { %6005 = vmatpush.bf16.msra.mxu2 %v3019_v4 }
 0x625   : > { %2944 = vadd.xlane.f32.xlu2 %v8705_v62  ;;  %3047 = vmatpush.bf16.msrb.mxu1 %v3017_v41 }
 0x626   : > { %6006 = vmatpush.bf16.msra.mxu2 %v3017_v41  ;;  %v8709_v14 = vpop.f32.mrf.mxu0 }
 0x627   : > { %v3510_v27 = vpop.permute.xlu2 %3509 }
 0x628   : > { %v3506_v54 = vpop.permute.xlu1 %3505 }
 0x629   : > { %3523 = vmatpush.bf16.msra.mxu1 %v3514_v25 }
 0x62a   : > { %v2869_v9 = vpop.xlane.xlu0 %2868 }
 0x62b   : > { %v2898_v2 = vsub.f32 %v8577_v23, %v2869_v9 }
 0x62d   : > { %3524 = vmatpush.bf16.msra.mxu1 %v3512_v60  ;;  %v2916_v24 = vmul.f32 1.442695, %v2898_v2 }
 0x62e   : > { %v8713_v12 = vpop.f32.mrf.mxu0 }
 0x62f   : > { %6313 = vpow2.f32 %v2916_v24  ;;  %v3504_v23 = vpop.permute.xlu2 %3503 }
 0x630   : > { %6315 = vrcp.f32 %v2397_v43 }
 0x631   : > { %3525 = vmatpush.bf16.msra.mxu1 %v3510_v27  ;;  %5757 = vmatmul.msk.bf16.gmra.mxu0 %vm1792_vm1, %v8446_v39 }
 0x632   : > { %v8726_v57 = vpop.xlane.xlu0 %2872 }
 0x635   : > { %3526 = vmatpush.bf16.msra.mxu1 %v3508_v51  ;;  %v8717_v46 = vpop.eup %6313 }
 0x636   : > { %2948 = vadd.xlane.f32.xlu1 %v8717_v46  ;;  %v8720_v21 = vpop.f32.mrf.mxu0 }
 0x639   : > { %3527 = vmatpush.bf16.msra.mxu1 %v3506_v54 }
 0x63a   : > { %v8731_v5 = vpop.xlane.xlu0 %2874 }
 0x63d   : > { %3528 = vmatpush.bf16.msra.mxu1 %v3504_v23 }
 0x63e   : > { %v8724_v18 = vpop.f32.mrf.mxu0 }
 0x640   : > { %v2497_v48 = vpop.f32.mrf.mxu2 }
 0x641   : > { %5758 = vmatmul.msk.bf16.gmra.mxu0 %vm1792_vm1, %v8470_v28  ;;  %v6316_v28 = vpop.eup %6315 }
 0x642   : > { %v8737_v51 = vpop.xlane.xlu0 %2876  ;;  %v2442_v25 = vmul.f32 %v6316_v28, %v8568_v1 }
 0x646   : > { %v8729_v10 = vpop.f32.mrf.mxu0 }
 0x648   : > { %v2499_v39 = vpop.f32.mrf.mxu2 }
 0x649   : > { %v2537_v41 = vpack.c.bf16 %v2499_v39, %v2497_v48 }
 0x64b   : > { %5706 = vmatmul.msk.bf16.vlgmr.msra.gmra.mxu3 %vm1792_vm1, %v2537_v41 }
 0x64e   : > { %v8735_v50 = vpop.f32.mrf.mxu0 }
 0x651   : > { %5759 = vmatmul.msk.bf16.gmra.mxu0 %vm1792_vm1, %v8548_v40  ;;  %v8745_v40 = vpop.xlane.xlu0 %2880 }
 0x653   : > { %v2399_v29 = vpop.xlane.xlu1 %2398 }
 0x654   : > { %6317 = vrcp.f32 %v2399_v29 }
 0x659   : > { %v8750_v1 = vpop.xlane.xlu0 %2882 }
 0x65a   : > { %v6318_v11 = vpop.eup %6317 }
 0x65b   : > { %v2443_v52 = vmul.f32 %v6318_v11, %v8613_v22  ;;  %v2403_v2 = vpop.xlane.xlu1 %2402 }
 0x65d   : > { %v2457_v4 = vpack.c.bf16 %v2443_v52, %v2442_v25 }
 0x65e   : > { %v8741_v60 = vpop.f32.mrf.mxu0 }
 0x65f   : > { %2501 = vmatmul.bf16.gmra.mxu2 %v2457_v4 }
 0x661   : > { %5760 = vmatmul.msk.bf16.gmra.mxu0 %vm1792_vm1, %v8573_v13 }
 0x663   : > { %v2407_v48 = vpop.xlane.xlu1 %2406 }
 0x666   : > { %v8747_v43 = vpop.f32.mrf.mxu0 }
 0x668   : > { %v2871_v19 = vpop.xlane.xlu2 %2870 }
 0x669   : > { %v2899_v49 = vsub.f32 %v8634_v58, %v2871_v19 }
 0x66b   : > { %v2918_v9 = vmul.f32 1.442695, %v2899_v49  ;;  %v8766_v4 = vpop.xlane.xlu1 %2878 }
 0x66d   : > { %6319 = vpow2.f32 %v2918_v9 }
 0x66e   : > { %v8752_v22 = vpop.f32.mrf.mxu0  ;;  %6321 = vrcp.f32 %v2403_v2  ;;  %v2415_v54 = vpop.xlane.xlu0 %2414 }
 0x670   : > { %v2401_v27 = vpop.xlane.xlu2 %2400 }
 0x671   : > { %6323 = vrcp.f32 %v2401_v27  ;;  %5761 = vmatmul.msk.bf16.gmra.mxu0 %vm1792_vm1, %v8619_v34 }
 0x673   : > { %v8756_v13 = vpop.eup %6319 }
 0x674   : > { %2950 = vadd.xlane.f32.xlu1 %v8756_v13  ;;  %v6322_v24 = vpop.eup %6321 }
 0x675   : > { %v2445_v29 = vmul.f32 %v6322_v24, %v8622_v8 }
 0x676   : > { %v8759_v58 = vpop.f32.mrf.mxu0  ;;  %v2419_v25 = vpop.xlane.xlu0 %2418 }
 0x677   : > { %10218 = vst [vmem:[#allocation39_spill] sm:$0xff] %v8759_v58  ;;  %v6324_v23 = vpop.eup %6323 }
 0x678   : > { %v2405_v39 = vpop.xlane.xlu2 %2404  ;;  %v2444_v41 = vmul.f32 %v6324_v23, %v8651_v26 }
 0x679   : > { %6325 = vrcp.f32 %v2405_v39 }
 0x67a   : > { %v2458_v28 = vpack.c.bf16 %v2445_v29, %v2444_v41  ;;  %6327 = vrcp.f32 %v2407_v48  ;;  %v2411_v48 = vpop.xlane.xlu1 %2410 }
 0x67c   : > { %2506 = vmatmul.bf16.gmra.mxu2 %v2458_v28 }
 0x67e   : > { %v3291_v11 = vpop.f32.mrf.mxu0  ;;  %v2421_v24 = vpop.xlane.xlu0 %2420 }
 0x67f   : > { %v8763_v34 = vmul.f32 0.17677669, %v3291_v11  ;;  %v6326_v19 = vpop.eup %6325 }
 0x680   : > { %v2409_v52 = vpop.xlane.xlu2 %2408  ;;  %v6328_v49 = vpop.eup %6327  ;;  %v2446_v26 = vmul.f32 %v6326_v19, %v8667_v47 }
 0x681   : > { %3347 = vmax.xlane.f32.xlu1 %v8763_v34  ;;  %v2447_v27 = vmul.f32 %v6328_v49, %v8627_v3  ;;  %6329 = vrcp.f32 %v2409_v52 }
 0x682   : > { %6331 = vrcp.f32 %v2411_v48  ;;  %v2413_v52 = vpop.xlane.xlu1 %2412 }
 0x683   : > { %v2459_v23 = vpack.c.bf16 %v2447_v27, %v2446_v26 }
 0x686   : > { %v3293_v9 = vpop.f32.mrf.mxu0  ;;  %v2947_v28 = vpop.xlane.xlu0 %2946 }
 0x687   : > { %v8769_v2 = vmul.f32 0.17677669, %v3293_v9  ;;  %v6330_v47 = vpop.eup %6329  ;;  %6333 = vrcp.f32 %v2947_v28 }
 0x688   : > { %v2417_v8 = vpop.xlane.xlu2 %2416  ;;  %v6332_v11 = vpop.eup %6331  ;;  %v2448_v3 = vmul.f32 %v6330_v47, %v8680_v59 }
 0x689   : > { %3349 = vmax.xlane.f32.xlu0 %v8769_v2  ;;  %v2449_v26 = vmul.f32 %v6332_v11, %v8659_v55 }
 0x68b   : > { %v2460_v27 = vpack.c.bf16 %v2449_v26, %v2448_v3 }
 0x68c   : > { %2511 = vmatmul.bf16.gmra.mxu2 %v2459_v23 }
 0x68d   : > { %v6334_v23 = vpop.eup %6333 }
 0x68e   : > { %v3296_v39 = vpop.f32.mrf.mxu0  ;;  %v2993_v59 = vmul.f32 %v6334_v23, %v8688_v20 }
 0x68f   : > { %v8773_v41 = vmul.f32 0.17677669, %v3296_v39 }
 0x690   : > { %v2423_v29 = vpop.xlane.xlu2 %2422 }
 0x691   : > { %3351 = vmax.xlane.f32.xlu1 %v8773_v41 }
 0x696   : > { %v3298_v19 = vpop.f32.mrf.mxu0 }
 0x697   : > { %v8777_v49 = vmul.f32 0.17677669, %v3298_v19 }
 0x698   : > { %v2945_v9 = vpop.xlane.xlu2 %2944 }
 0x699   : > { %6335 = vrcp.f32 %v2945_v9  ;;  %3353 = vmax.xlane.f32.xlu2 %v8777_v49 }
 0x69a   : > { %6337 = vrcp.f32 %v2413_v52 }
 0x69b   : > { %6339 = vrcp.f32 %v2415_v54 }
 0x69c   : > { %2516 = vmatmul.bf16.gmra.mxu2 %v2460_v27  ;;  %6341 = vrcp.f32 %v2417_v8 }
 0x69d   : > { %6343 = vrcp.f32 %v2419_v25 }
 0x69e   : > { %v3301_v48 = vpop.f32.mrf.mxu0  ;;  %6345 = vrcp.f32 %v2423_v29 }
 0x69f   : > { %v6336_v39 = vpop.eup %6335  ;;  %v8781_v58 = vmul.f32 0.17677669, %v3301_v48  ;;  %v8798_v48 = vpop.f32.mrf.mxu1  ;;  %6347 = vrcp.f32 %v2421_v24  ;;  %v2901_v24 = vsub.f32 %v8593_v30, %v8731_v5 }
 0x6a0   : > { %v2992_v47 = vmul.f32 %v6336_v39, %v8705_v62  ;;  %v6338_v28 = vpop.eup %6337 }
 0x6a1   : > { %3355 = vmax.xlane.f32.xlu1 %v8781_v58  ;;  %v6340_v11 = vpop.eup %6339  ;;  %v2450_v3 = vmul.f32 %v6338_v28, %v8674_v45 }
 0x6a2   : > { %v3008_v55 = vpack.c.bf16 %v2993_v59, %v2992_v47  ;;  %v2451_v26 = vmul.f32 %v6340_v11, %v8647_v7  ;;  %v6342_v52 = vpop.eup %6341 }
 0x6a3   : > { %v6344_v45 = vpop.eup %6343  ;;  %v2452_v23 = vmul.f32 %v6342_v52, %v8691_v17 }
 0x6a4   : > { %3048 = vmatmul.bf16.vlgmr.msrb.gmra.mxu1 %v3008_v55  ;;  %v2461_v54 = vpack.c.bf16 %v2451_v26, %v2450_v3  ;;  %v2453_v7 = vmul.f32 %v6344_v45, %v8664_v31  ;;  %v6346_v59 = vpop.eup %6345 }
 0x6a5   : > { %v6348_v55 = vpop.eup %6347  ;;  %v2455_v31 = vmul.f32 %v6346_v59, %v8698_v33 }
 0x6a6   : > { %v3303_v19 = vpop.f32.mrf.mxu0  ;;  %v2462_v39 = vpack.c.bf16 %v2453_v7, %v2452_v23  ;;  %v2454_v29 = vmul.f32 %v6348_v55, %v8677_v63  ;;  %v2903_v23 = vsub.f32 %v8640_v53, %v8766_v4 }
 0x6a7   : > { %v8787_v9 = vmul.f32 0.17677669, %v3303_v19  ;;  %v2835_v47 = vpop.f32.mrf.mxu1 }
 0x6a8   : > { %v8806_v28 = vmul.f32 0.17677669, %v2835_v47  ;;  %v2463_v19 = vpack.c.bf16 %v2455_v31, %v2454_v29  ;;  %v2926_v59 = vmul.f32 1.442695, %v2903_v23 }
 0x6a9   : > { %3357 = vmax.xlane.f32.xlu0 %v8787_v9 }
 0x6ac   : > { %2521 = vmatmul.bf16.gmra.mxu2 %v2461_v54  ;;  %v2949_v54 = vpop.xlane.xlu1 %2948 }
 0x6ae   : > { %v3306_v20 = vpop.f32.mrf.mxu0 }
 0x6af   : > { %v8791_v62 = vmul.f32 0.17677669, %v3306_v20 }
 0x6b1   : > { %3501 = vrot.lane.b32.xlu2 %v8152_v16, %s7092_s25  ;;  %3359 = vmax.xlane.f32.xlu1 %v8791_v62  ;;  %v2900_v16 = vsub.f32 %v8587_v44, %v8726_v57  ;;  %v2922_v44 = vmul.f32 1.442695, %v2901_v24 }
 0x6b3   : > { %v2920_v17 = vmul.f32 1.442695, %v2900_v16 }
 0x6b5   : > { %6349 = vpow2.f32 %v2920_v17 }
 0x6b6   : > { %v3308_v27 = vpop.f32.mrf.mxu0  ;;  %6351 = vpow2.f32 %v2922_v44 }
 0x6b7   : > { %v8817_v26 = vmul.f32 0.17677669, %v3308_v27  ;;  %6353 = vrcp.f32 %v2949_v54 }
 0x6bb   : > { %v8812_v57 = vpop.eup %6349 }
 0x6bc   : > { %2526 = vmatmul.bf16.gmra.mxu2 %v2462_v39  ;;  %v8815_v3 = vpop.eup %6351 }
 0x6bd   : > { %v6354_v39 = vpop.eup %6353 }
 0x6be   : > { %v3311_v25 = vpop.f32.mrf.mxu0  ;;  %v2994_v47 = vmul.f32 %v6354_v39, %v8717_v46 }
 0x6bf   : > { %v8800_v8 = vmul.f32 0.17677669, %v3311_v25  ;;  %v2838_v25 = vpop.f32.mrf.mxu1 }
 0x6c0   : > { %v8835_v17 = vmul.f32 0.17677669, %v2838_v25 }
 0x6c1   : > { %3363 = vmax.xlane.f32.xlu1 %v8800_v8 }
 0x6c6   : > { %v3313_v11 = vpop.f32.mrf.mxu0 }
 0x6c7   : > { %v8823_v5 = vmul.f32 0.17677669, %v3313_v11  ;;  %v8857_v25 = vpop.f32.mrf.mxu1 }
 0x6c9   : > { %2886 = vmax.xlane.f32.xlu1 %v8806_v28 }
 0x6cc   : > { %2531 = vmatmul.bf16.gmra.mxu2 %v2463_v19 }
 0x6ce   : > { %v3316_v33 = vpop.f32.mrf.mxu0 }
 0x6cf   : > { %v8827_v45 = vmul.f32 0.17677669, %v3316_v33 }
 0x6d1   : > { %2952 = vadd.xlane.f32.xlu1 %v8812_v57 }
 0x6d6   : > { %v3318_v63 = vpop.f32.mrf.mxu0 }
 0x6d7   : > { %v8821_v30 = vmul.f32 0.17677669, %v3318_v63 }
 0x6d9   : > { %2954 = vadd.xlane.f32.xlu1 %v8815_v3 }
 0x6da   : > { %3361 = vmax.xlane.f32.xlu2 %v8817_v26 }
 0x6e1   : > { %3369 = vmax.xlane.f32.xlu1 %v8821_v30 }
 0x6e2   : > { %3365 = vmax.xlane.f32.xlu2 %v8823_v5  ;;  %v2502_v20 = vpop.f32.mrf.mxu2 }
 0x6e7   : > { %v2951_v52 = vpop.xlane.xlu1 %2950 }
 0x6e8   : > { %6355 = vrcp.f32 %v2951_v52 }
 0x6e9   : > { %6357 = vpow2.f32 %v2926_v59 }
 0x6ea   : > { %3367 = vmax.xlane.f32.xlu2 %v8827_v45  ;;  %v2504_v27 = vpop.f32.mrf.mxu2 }
 0x6eb   : > { %v2538_v7 = vpack.c.bf16 %v2504_v27, %v2502_v20 }
 0x6ed   : > { %5707 = vmatmul.msk.bf16.gmra.mxu3 %vm1792_vm1, %v2538_v7 }
 0x6ee   : > { %v6356_v16 = vpop.eup %6355 }
 0x6ef   : > { %v2995_v55 = vmul.f32 %v6356_v16, %v8756_v13  ;;  %v8839_v29 = vpop.eup %6357 }
 0x6f1   : > { %v3009_v31 = vpack.c.bf16 %v2995_v55, %v2994_v47 }
 0x6f2   : > { %2888 = vmax.xlane.f32.xlu2 %v8835_v17 }
 0x6f3   : > { %3053 = vmatmul.bf16.gmra.mxu1 %v3009_v31 }
 0x6f4   : > { %v3348_v11 = vpop.xlane.xlu1 %3347 }
 0x6f5   : > { %v3379_v53 = vsub.f32 %v8763_v34, %v3348_v11 }
 0x6f7   : > { %v3395_v4 = vmul.f32 1.442695, %v3379_v53 }
 0x6f9   : > { %6359 = vpow2.f32 %v3395_v4 }
 0x6fa   : > { %2958 = vadd.xlane.f32.xlu2 %v8839_v29 }
 0x6fc   : > { %v3350_v24 = vpop.xlane.xlu0 %3349 }
 0x6fd   : > { %v3380_v46 = vsub.f32 %v8769_v2, %v3350_v24 }
 0x6ff   : > { %v8843_v13 = vpop.eup %6359  ;;  %v3397_v19 = vmul.f32 1.442695, %v3380_v46  ;;  %v2507_v44 = vpop.f32.mrf.mxu2 }
 0x700   : > { %3427 = vadd.xlane.f32.xlu0 %v8843_v13 }
 0x701   : > { %6361 = vpow2.f32 %v3397_v19 }
 0x704   : > { %v3352_v33 = vpop.xlane.xlu1 %3351 }
 0x705   : > { %v3381_v63 = vsub.f32 %v8773_v41, %v3352_v33  ;;  %v2902_v41 = vsub.f32 %v8599_v6, %v8737_v51  ;;  %v2843_v51 = vpop.f32.mrf.mxu1 }
 0x707   : > { %v8847_v34 = vpop.eup %6361  ;;  %v3399_v54 = vmul.f32 1.442695, %v3381_v63  ;;  %v2509_v20 = vpop.f32.mrf.mxu2  ;;  %v2924_v16 = vmul.f32 1.442695, %v2902_v41  ;;  %v2905_v41 = vsub.f32 %v8611_v35, %v8750_v1  ;;  %v8898_v35 = vmul.f32 0.17677669, %v8798_v48 }
 0x708   : > { %v2539_v52 = vpack.c.bf16 %v2509_v20, %v2507_v44  ;;  %3429 = vadd.xlane.f32.xlu1 %v8847_v34 }
 0x709   : > { %6363 = vpow2.f32 %v3399_v54 }
 0x70a   : > { %5708 = vmatmul.msk.bf16.gmra.mxu3 %vm1792_vm1, %v2539_v52 }
 0x70c   : > { %v3354_v2 = vpop.xlane.xlu2 %3353 }
 0x70d   : > { %v3382_v27 = vsub.f32 %v8777_v49, %v3354_v2  ;;  %v2845_v44 = vpop.f32.mrf.mxu1 }
 0x70e   : > { %v8874_v54 = vmul.f32 0.17677669, %v2845_v44  ;;  %v5947_v44 = vld [vmem:[%s7485_s13 + $0x28] sm:$0xff] }
 0x70f   : > { %v8852_v23 = vpop.eup %6363  ;;  %v3401_v7 = vmul.f32 1.442695, %v3382_v27  ;;  %v2512_v39 = vpop.f32.mrf.mxu2  ;;  %3143 = vmatpush.bf16.msrb.mxu3 %v5947_v44 }
 0x710   : > { %3431 = vadd.xlane.f32.xlu1 %v8852_v23 }
 0x711   : > { %6365 = vpow2.f32 %v3401_v7 }
 0x712   : > { %6367 = vpow2.f32 %v2924_v16 }
 0x714   : > { %v3502_v59 = vpop.permute.xlu2 %3501  ;;  %3499 = vrot.lane.b32.xlu0 %v8157_v37, %s7092_s25  ;;  %v3356_v47 = vpop.xlane.xlu1 %3355 }
 0x715   : > { %v3383_v49 = vsub.f32 %v8781_v58, %v3356_v47  ;;  %3529 = vmatpush.bf16.msra.mxu1 %v3502_v59  ;;  %v3321_v58 = vpop.f32.mrf.mxu0  ;;  %v2930_v47 = vmul.f32 1.442695, %v2905_v41 }
 0x717   : > { %v8862_v55 = vpop.eup %6365  ;;  %v3403_v31 = vmul.f32 1.442695, %v3383_v49  ;;  %v2514_v11 = vpop.f32.mrf.mxu2  ;;  %v8889_v49 = vmul.f32 0.17677669, %v2843_v51 }
 0x718   : > { %v2540_v6 = vpack.c.bf16 %v2514_v11, %v2512_v39  ;;  %3433 = vadd.xlane.f32.xlu1 %v8862_v55  ;;  %v8867_v37 = vpop.eup %6367 }
 0x719   : > { %6369 = vpow2.f32 %v3403_v31 }
 0x71a   : > { %5709 = vmatmul.msk.bf16.gmra.mxu3 %vm1792_vm1, %v2540_v6 }
 0x71c   : > { %v3358_v53 = vpop.xlane.xlu0 %3357 }
 0x71d   : > { %v3384_v4 = vsub.f32 %v8787_v9, %v3358_v53  ;;  %v3323_v27 = vpop.f32.mrf.mxu0 }
 0x71e   : > { %v8881_v7 = vmul.f32 0.17677669, %v3323_v27 }
 0x71f   : > { %v8869_v24 = vpop.eup %6369  ;;  %v3405_v46 = vmul.f32 1.442695, %v3384_v4  ;;  %v2517_v19 = vpop.f32.mrf.mxu2 }
 0x720   : > { %3435 = vadd.xlane.f32.xlu2 %v8869_v24  ;;  %2956 = vadd.xlane.f32.xlu1 %v8867_v37 }
 0x721   : > { %6371 = vpow2.f32 %v3405_v46 }
 0x724   : > { %v3360_v33 = vpop.xlane.xlu1 %3359 }
 0x725   : > { %v3385_v63 = vsub.f32 %v8791_v62, %v3360_v33  ;;  %v3326_v16 = vpop.f32.mrf.mxu0 }
 0x726   : > { %v8891_v31 = vmul.f32 0.17677669, %v3326_v16 }
 0x727   : > { %v8876_v20 = vpop.eup %6371  ;;  %v3407_v9 = vmul.f32 1.442695, %v3385_v63  ;;  %v2519_v52 = vpop.f32.mrf.mxu2 }
 0x728   : > { %v2541_v2 = vpack.c.bf16 %v2519_v52, %v2517_v19  ;;  %2894 = vmax.xlane.f32.xlu2 %v8874_v54  ;;  %3437 = vadd.xlane.f32.xlu1 %v8876_v20  ;;  %v5946_v52 = vld [vmem:[%s7485_s13 + $0x20] sm:$0xff] }
 0x729   : > { %6373 = vpow2.f32 %v3407_v9  ;;  %3144 = vmatpush.bf16.msrb.mxu3 %v5946_v52 }
 0x72a   : > { %5710 = vmatmul.msk.bf16.gmra.mxu3 %vm1792_vm1, %v2541_v2  ;;  %6375 = vpow2.f32 %v2930_v47 }
 0x72d   : > { %v3328_v52 = vpop.f32.mrf.mxu0 }
 0x72f   : > { %v8883_v39 = vpop.eup %6373  ;;  %v2522_v62 = vpop.f32.mrf.mxu2 }
 0x730   : > { %3439 = vadd.xlane.f32.xlu2 %v8883_v39  ;;  %3373 = vmax.xlane.f32.xlu1 %v8881_v7  ;;  %v8901_v4 = vpop.eup %6375 }
 0x734   : > { %v3364_v59 = vpop.xlane.xlu1 %3363 }
 0x735   : > { %v3387_v53 = vsub.f32 %v8800_v8, %v3364_v59  ;;  %v8907_v8 = vmul.f32 0.17677669, %v8857_v25 }
 0x737   : > { %v2524_v11 = vpop.f32.mrf.mxu2  ;;  %v3411_v51 = vmul.f32 1.442695, %v3387_v53 }
 0x738   : > { %v2542_v6 = vpack.c.bf16 %v2524_v11, %v2522_v62  ;;  %3375 = vmax.xlane.f32.xlu2 %v8891_v31  ;;  %2892 = vmax.xlane.f32.xlu1 %v8889_v49  ;;  %v2904_v11 = vsub.f32 %v8604_v61, %v8745_v40  ;;  %v3049_v61 = vpop.f32.mrf.mxu1 }
 0x739   : > { %6377 = vpow2.f32 %v3411_v51 }
 0x73a   : > { %5711 = vmatmul.msk.bf16.gmra.mxu3 %vm1792_vm1, %v2542_v6 }
 0x73c   : > { %v2887_v1 = vpop.xlane.xlu1 %2886 }
 0x73d   : > { %v2907_v19 = vsub.f32 %v8806_v28, %v2887_v1  ;;  %v8915_v28 = vmul.f32 0.17677669, %v3321_v58  ;;  %v2928_v1 = vmul.f32 1.442695, %v2904_v11 }
 0x73e   : > { %2884 = vmax.xlane.f32.xlu0 %v8898_v35 }
 0x73f   : > { %v2527_v46 = vpop.f32.mrf.mxu2  ;;  %v2934_v48 = vmul.f32 1.442695, %v2907_v19  ;;  %v8910_v63 = vpop.eup %6377 }
 0x740   : > { %2962 = vadd.xlane.f32.xlu1 %v8901_v4 }
 0x741   : > { %6379 = vpow2.f32 %v2934_v48 }
 0x744   : > { %v2953_v33 = vpop.xlane.xlu1 %2952 }
 0x745   : > { %6381 = vrcp.f32 %v2953_v33 }
 0x746   : > { %2890 = vmax.xlane.f32.xlu0 %v8907_v8 }
 0x747   : > { %v2529_v9 = vpop.f32.mrf.mxu2  ;;  %v8919_v41 = vpop.eup %6379 }
 0x748   : > { %v2543_v2 = vpack.c.bf16 %v2529_v9, %v2527_v46  ;;  %3443 = vadd.xlane.f32.xlu1 %v8910_v63 }
 0x74a   : > { %5712 = vmatmul.msk.bf16.gmra.mxu3 %vm1792_vm1, %v2543_v2  ;;  %v3051_v2 = vpop.f32.mrf.mxu1 }
 0x74b   : > { %v6382_v47 = vpop.eup %6381 }
 0x74c   : > { %v2955_v25 = vpop.xlane.xlu1 %2954  ;;  %v2996_v6 = vmul.f32 %v6382_v47, %v8812_v57 }
 0x74d   : > { %6383 = vrcp.f32 %v2955_v25  ;;  %v3362_v27 = vpop.xlane.xlu2 %3361 }
 0x74e   : > { %v3386_v62 = vsub.f32 %v8817_v26, %v3362_v27  ;;  %3371 = vmax.xlane.f32.xlu0 %v8915_v28 }
 0x74f   : > { %v2532_v16 = vpop.f32.mrf.mxu2 }
 0x750   : > { %v3409_v59 = vmul.f32 1.442695, %v3386_v62  ;;  %2966 = vadd.xlane.f32.xlu1 %v8919_v41  ;;  %v8939_v62 = vmul.f32 0.17677669, %v3328_v52 }
 0x752   : > { %6385 = vpow2.f32 %v3409_v59 }
 0x753   : > { %v6384_v58 = vpop.eup %6383  ;;  %6387 = vpow2.f32 %v2928_v1 }
 0x754   : > { %v2997_v53 = vmul.f32 %v6384_v58, %v8815_v3  ;;  %v8949_v58 = vpop.xlane.xlu1 %3369 }
 0x755   : > { %v3366_v26 = vpop.xlane.xlu2 %3365 }
 0x756   : > { %v3010_v51 = vpack.c.bf16 %v2997_v53, %v2996_v6  ;;  %v3388_v46 = vsub.f32 %v8823_v5, %v3366_v26 }
 0x757   : > { %v2534_v19 = vpop.f32.mrf.mxu2 }
 0x758   : > { %v8927_v44 = vpop.eup %6385  ;;  %v3413_v33 = vmul.f32 1.442695, %v3388_v46  ;;  %v2544_v48 = vpack.c.bf16 %v2534_v19, %v2532_v16  ;;  %3058 = vmatmul.bf16.vlgmr.msra.gmra.mxu2 %v3010_v51 }
 0x759   : > { %3441 = vadd.xlane.f32.xlu0 %v8927_v44  ;;  %v8932_v3 = vpop.eup %6387 }
 0x75a   : > { %6389 = vpow2.f32 %v3413_v33  ;;  %5713 = vmatmul.msk.bf16.gmra.mxu3 %vm1792_vm1, %v2544_v48 }
 0x75d   : > { %v3368_v40 = vpop.xlane.xlu2 %3367 }
 0x75e   : > { %v3389_v57 = vsub.f32 %v8827_v45, %v3368_v40  ;;  %v3089_v45 = vpack.c.bf16 %v3051_v2, %v3049_v61 }
 0x760   : > { %v8934_v9 = vpop.eup %6389  ;;  %v3415_v5 = vmul.f32 1.442695, %v3389_v57 }
 0x761   : > { %3445 = vadd.xlane.f32.xlu2 %v8934_v9  ;;  %2960 = vadd.xlane.f32.xlu0 %v8932_v3 }
 0x762   : > { %6391 = vpow2.f32 %v3415_v5 }
 0x765   : > { %v2889_v25 = vpop.xlane.xlu2 %2888 }
 0x766   : > { %v2908_v27 = vsub.f32 %v8835_v17, %v2889_v25 }
 0x768   : > { %v8941_v16 = vpop.eup %6391  ;;  %v2936_v59 = vmul.f32 1.442695, %v2908_v27 }
 0x769   : > { %3447 = vadd.xlane.f32.xlu2 %v8941_v16  ;;  %3377 = vmax.xlane.f32.xlu0 %v8939_v62 }
 0x76a   : > { %6393 = vpow2.f32 %v2936_v59  ;;  %5746 = vmatmul.msk.bf16.vlgmr.msrb.gmra.mxu3 %vm1792_vm1, %v3089_v45 }
 0x76d   : > { %v2959_v40 = vpop.xlane.xlu2 %2958 }
 0x770   : > { %v8946_v47 = vpop.eup %6393  ;;  %v3054_v11 = vpop.f32.mrf.mxu1 }
 0x771   : > { %2968 = vadd.xlane.f32.xlu1 %v8946_v47 }
 0x773   : > { %v3428_v53 = vpop.xlane.xlu0 %3427 }
 0x778   : > { %v3056_v17 = vpop.f32.mrf.mxu1 }
 0x779   : > { %v3090_v6 = vpack.c.bf16 %v3056_v17, %v3054_v11 }
 0x77b   : > { %5747 = vmatmul.msk.bf16.gmra.mxu3 %vm1792_vm1, %v3090_v6  ;;  %v3430_v1 = vpop.xlane.xlu1 %3429 }
 0x77c   : > { %6395 = vrcp.f32 %v3430_v1 }
 0x77d   : > { %6397 = vrcp.f32 %v3428_v53 }
 0x782   : > { %v6396_v26 = vpop.eup %6395 }
 0x783   : > { %v6398_v51 = vpop.eup %6397  ;;  %v3432_v46 = vpop.xlane.xlu1 %3431  ;;  %v3476_v19 = vmul.f32 %v6396_v26, %v8847_v34 }
 0x784   : > { %v3475_v33 = vmul.f32 %v6398_v51, %v8843_v13 }
 0x786   : > { %v3500_v48 = vpop.permute.xlu0 %3499  ;;  %v3491_v61 = vpack.c.bf16 %v3476_v19, %v3475_v33 }
 0x787   : > { %3530 = vmatpush.bf16.msra.mxu1 %v3500_v48 }
 0x78a   : > { %3531 = vmatmul.bf16.vlgmr.msra.gmra.mxu1 %v3491_v61 }
 0x78b   : > { %v3434_v57 = vpop.xlane.xlu1 %3433 }
 0x78c   : > { %6399 = vrcp.f32 %v3434_v57 }
 0x78d   : > { %6401 = vrcp.f32 %v3432_v46 }
 0x78e   : > { %6403 = vrcp.f32 %v2959_v40 }
 0x792   : > { %v6400_v5 = vpop.eup %6399 }
 0x793   : > { %v6402_v52 = vpop.eup %6401  ;;  %v3436_v2 = vpop.xlane.xlu2 %3435  ;;  %v3478_v27 = vmul.f32 %v6400_v5, %v8862_v55 }
 0x794   : > { %v2957_v25 = vpop.xlane.xlu1 %2956  ;;  %v3477_v34 = vmul.f32 %v6402_v52, %v8852_v23  ;;  %v6404_v13 = vpop.eup %6403 }
 0x795   : > { %6405 = vrcp.f32 %v2957_v25  ;;  %v2999_v53 = vmul.f32 %v6404_v13, %v8839_v29 }
 0x796   : > { %v3492_v45 = vpack.c.bf16 %v3478_v27, %v3477_v34 }
 0x79a   : > { %3536 = vmatmul.bf16.gmra.mxu1 %v3492_v45 }
 0x79b   : > { %v6406_v59 = vpop.eup %6405  ;;  %v2895_v11 = vpop.xlane.xlu2 %2894 }
 0x79c   : > { %v3438_v17 = vpop.xlane.xlu1 %3437  ;;  %v2998_v6 = vmul.f32 %v6406_v59, %v8867_v37 }
 0x79d   : > { %6407 = vrcp.f32 %v3438_v17 }
 0x79e   : > { %6409 = vrcp.f32 %v3436_v2  ;;  %v3011_v1 = vpack.c.bf16 %v2999_v53, %v2998_v6 }
 0x7a0   : > { %3063 = vmatmul.bf16.gmra.mxu2 %v3011_v1 }
 0x7a3   : > { %v6408_v26 = vpop.eup %6407  ;;  %v3440_v55 = vpop.xlane.xlu2 %3439 }
 0x7a4   : > { %v6410_v51 = vpop.eup %6409  ;;  %v3374_v46 = vpop.xlane.xlu1 %3373  ;;  %v3480_v19 = vmul.f32 %v6408_v26, %v8876_v20  ;;  %v3390_v20 = vsub.f32 %v8821_v30, %v8949_v58 }
 0x7a5   : > { %v3392_v23 = vsub.f32 %v8881_v7, %v3374_v46  ;;  %v3479_v48 = vmul.f32 %v6410_v51, %v8869_v24 }
 0x7a6   : > { %v3417_v2 = vmul.f32 1.442695, %v3390_v20 }
 0x7a7   : > { %v3421_v33 = vmul.f32 1.442695, %v3392_v23  ;;  %v3493_v61 = vpack.c.bf16 %v3480_v19, %v3479_v48 }
 0x7a9   : > { %6411 = vpow2.f32 %v3421_v33 }
 0x7aa   : > { %3541 = vmatmul.bf16.gmra.mxu1 %v3493_v61 }
 0x7ab   : > { %v3376_v37 = vpop.xlane.xlu2 %3375 }
 0x7ac   : > { %v3393_v29 = vsub.f32 %v8891_v31, %v3376_v37  ;;  %v2893_v25 = vpop.xlane.xlu1 %2892 }
 0x7ae   : > { %v3423_v57 = vmul.f32 1.442695, %v3393_v29 }
 0x7af   : > { %v8962_v40 = vpop.eup %6411 }
 0x7b0   : > { %3453 = vadd.xlane.f32.xlu1 %v8962_v40  ;;  %6413 = vpow2.f32 %v3423_v57 }
 0x7b1   : > { %v2885_v5 = vpop.xlane.xlu0 %2884 }
 0x7b2   : > { %v2906_v7 = vsub.f32 %v8898_v35, %v2885_v5  ;;  %v2910_v35 = vsub.f32 %v8889_v49, %v2893_v25 }
 0x7b4   : > { %v2932_v52 = vmul.f32 1.442695, %v2906_v7  ;;  %v2940_v30 = vmul.f32 1.442695, %v2910_v35  ;;  %v2963_v26 = vpop.xlane.xlu1 %2962 }
 0x7b6   : > { %v8968_v24 = vpop.eup %6413  ;;  %6415 = vpow2.f32 %v2932_v52 }
 0x7b7   : > { %6417 = vpow2.f32 %v3417_v2 }
 0x7b8   : > { %3455 = vadd.xlane.f32.xlu1 %v8968_v24 }
 0x7b9   : > { %v2891_v31 = vpop.xlane.xlu0 %2890 }
 0x7ba   : > { %v2909_v27 = vsub.f32 %v8907_v8, %v2891_v31  ;;  %v2911_v8 = vsub.f32 %v8874_v54, %v2895_v11 }
 0x7bc   : > { %v8972_v34 = vpop.eup %6415  ;;  %v2938_v45 = vmul.f32 1.442695, %v2909_v27  ;;  %v2942_v49 = vmul.f32 1.442695, %v2911_v8  ;;  %v3444_v48 = vpop.xlane.xlu1 %3443 }
 0x7bd   : > { %2964 = vadd.xlane.f32.xlu0 %v8972_v34  ;;  %v8977_v59 = vpop.eup %6417 }
 0x7be   : > { %6419 = vpow2.f32 %v2938_v45 }
 0x7bf   : > { %6421 = vpow2.f32 %v2940_v30 }
 0x7c1   : > { %v3372_v58 = vpop.xlane.xlu0 %3371 }
 0x7c2   : > { %v3391_v13 = vsub.f32 %v8915_v28, %v3372_v58 }
 0x7c4   : > { %v8979_v17 = vpop.eup %6419  ;;  %v3419_v6 = vmul.f32 1.442695, %v3391_v13  ;;  %v2967_v58 = vpop.xlane.xlu1 %2966 }
 0x7c5   : > { %3449 = vadd.xlane.f32.xlu0 %v8977_v59  ;;  %2970 = vadd.xlane.f32.xlu2 %v8979_v17  ;;  %v8984_v53 = vpop.eup %6421 }
 0x7c6   : > { %6423 = vpow2.f32 %v3419_v6 }
 0x7c7   : > { %6425 = vrcp.f32 %v3440_v55 }
 0x7cc   : > { %v8986_v1 = vpop.eup %6423  ;;  %v3442_v28 = vpop.xlane.xlu0 %3441 }
 0x7cd   : > { %6427 = vrcp.f32 %v3442_v28  ;;  %2972 = vadd.xlane.f32.xlu2 %v8984_v53  ;;  %3451 = vadd.xlane.f32.xlu0 %v8986_v1  ;;  %v6426_v51 = vpop.eup %6425 }
 0x7ce   : > { %6429 = vpow2.f32 %v2942_v49  ;;  %v3481_v11 = vmul.f32 %v6426_v51, %v8883_v39 }
 0x7cf   : > { %6431 = vrcp.f32 %v2963_v26 }
 0x7d3   : > { %v6428_v46 = vpop.eup %6427 }
 0x7d4   : > { %v8990_v23 = vpop.eup %6429  ;;  %v2961_v54 = vpop.xlane.xlu0 %2960  ;;  %v3482_v55 = vmul.f32 %v6428_v46, %v8927_v44 }
 0x7d5   : > { %2974 = vadd.xlane.f32.xlu0 %v8990_v23  ;;  %v3446_v19 = vpop.xlane.xlu2 %3445  ;;  %6433 = vrcp.f32 %v2961_v54  ;;  %v6432_v61 = vpop.eup %6431 }
 0x7d6   : > { %v3494_v33 = vpack.c.bf16 %v3482_v55, %v3481_v11  ;;  %6435 = vrcp.f32 %v3446_v19  ;;  %v3001_v39 = vmul.f32 %v6432_v61, %v8901_v4  ;;  %v5949_v4 = vld [vmem:[%s7485_s13 + $0x38] sm:$0xff]  ;;  %v5948_v55 = vld [vmem:[%s7485_s13 + $0x30] sm:$0xff] }
 0x7d7   : > { %6437 = vrcp.f32 %v3444_v48  ;;  %3626 = vmatpush.bf16.msrb.mxu2 %v5949_v4 }
 0x7d8   : > { %3546 = vmatmul.bf16.gmra.mxu1 %v3494_v33 }
 0x7db   : > { %v3059_v37 = vpop.f32.mrf.mxu2  ;;  %v6434_v29 = vpop.eup %6433  ;;  %3627 = vmatpush.bf16.msrb.mxu2 %v5948_v55 }
 0x7dc   : > { %v3378_v57 = vpop.xlane.xlu0 %3377  ;;  %v3000_v7 = vmul.f32 %v6434_v29, %v8932_v3  ;;  %v6436_v44 = vpop.eup %6435 }
 0x7dd   : > { %v3394_v5 = vsub.f32 %v8939_v62, %v3378_v57  ;;  %v6438_v2 = vpop.eup %6437  ;;  %v3484_v31 = vmul.f32 %v6436_v44, %v8934_v9 }
 0x7de   : > { %v3012_v20 = vpack.c.bf16 %v3001_v39, %v3000_v7  ;;  %v3483_v45 = vmul.f32 %v6438_v2, %v8910_v63  ;;  %v3448_v63 = vpop.xlane.xlu2 %3447 }
 0x7df   : > { %v3425_v52 = vmul.f32 1.442695, %v3394_v5  ;;  %v9012_v5 = vpop.f32.mrf.mxu3 }
 0x7e0   : > { %3068 = vmatmul.bf16.gmra.mxu2 %v3012_v20  ;;  %v3495_v62 = vpack.c.bf16 %v3484_v31, %v3483_v45 }
 0x7e1   : > { %6439 = vpow2.f32 %v3425_v52 }
 0x7e2   : > { %6441 = vrcp.f32 %v2967_v58 }
 0x7e3   : > { %v3061_v25 = vpop.f32.mrf.mxu2 }
 0x7e4   : > { %v3091_v27 = vpack.c.bf16 %v3061_v25, %v3059_v37  ;;  %v2969_v54 = vpop.xlane.xlu1 %2968 }
 0x7e6   : > { %5748 = vmatmul.msk.bf16.gmra.mxu3 %vm1792_vm1, %v3091_v27 }
 0x7e7   : > { %v9001_v35 = vpop.eup %6439  ;;  %v9016_v31 = vpop.f32.mrf.mxu3 }
 0x7e8   : > { %3551 = vmatmul.bf16.gmra.mxu1 %v3495_v62  ;;  %3457 = vadd.xlane.f32.xlu2 %v9001_v35  ;;  %v6442_v6 = vpop.eup %6441 }
 0x7e9   : > { %v3003_v26 = vmul.f32 %v6442_v6, %v8919_v41 }
 0x823   : > { %v3064_v3 = vpop.f32.mrf.mxu2  ;;  %v3454_v41 = vpop.xlane.xlu1 %3453 }
 0x82b   : > { %v3066_v30 = vpop.f32.mrf.mxu2  ;;  %v3456_v62 = vpop.xlane.xlu1 %3455 }
 0x82c   : > { %v3092_v13 = vpack.c.bf16 %v3066_v30, %v3064_v3  ;;  %v9021_v3 = vpop.f32.mrf.mxu3 }
 0x82e   : > { %5749 = vmatmul.msk.bf16.gmra.mxu3 %vm1792_vm1, %v3092_v13 }
 0x830   : > { %v2965_v9 = vpop.xlane.xlu0 %2964 }
 0x831   : > { %6443 = vrcp.f32 %v2965_v9 }
 0x832   : > { %6445 = vrcp.f32 %v3448_v63 }
 0x837   : > { %v6444_v8 = vpop.eup %6443 }
 0x838   : > { %v3450_v49 = vpop.xlane.xlu0 %3449  ;;  %v3002_v28 = vmul.f32 %v6444_v8, %v8972_v34  ;;  %v2971_v51 = vpop.xlane.xlu2 %2970 }
 0x839   : > { %6447 = vrcp.f32 %v3450_v49  ;;  %v6446_v11 = vpop.eup %6445 }
 0x83a   : > { %v3013_v46 = vpack.c.bf16 %v3003_v26, %v3002_v28  ;;  %6449 = vrcp.f32 %v2971_v51  ;;  %v3485_v48 = vmul.f32 %v6446_v11, %v8941_v16 }
 0x83b   : > { %6451 = vrcp.f32 %v2969_v54 }
 0x83c   : > { %3073 = vmatmul.bf16.gmra.mxu2 %v3013_v46 }
 0x83f   : > { %v6448_v19 = vpop.eup %6447 }
 0x840   : > { %v3452_v33 = vpop.xlane.xlu0 %3451  ;;  %v3486_v61 = vmul.f32 %v6448_v19, %v8977_v59  ;;  %v6450_v37 = vpop.eup %6449 }
 0x841   : > { %v6452_v29 = vpop.eup %6451  ;;  %6453 = vrcp.f32 %v3452_v33  ;;  %v3005_v57 = vmul.f32 %v6450_v37, %v8979_v17  ;;  %v2973_v20 = vpop.xlane.xlu2 %2972 }
 0x842   : > { %v3496_v34 = vpack.c.bf16 %v3486_v61, %v3485_v48  ;;  %6455 = vrcp.f32 %v3454_v41  ;;  %v3004_v7 = vmul.f32 %v6452_v29, %v8946_v47  ;;  %v3532_v59 = vpop.f32.mrf.mxu1 }
 0x844   : > { %3556 = vmatmul.bf16.gmra.mxu1 %v3496_v34  ;;  %v3014_v44 = vpack.c.bf16 %v3005_v57, %v3004_v7 }
 0x847   : > { %v6454_v52 = vpop.eup %6453 }
 0x848   : > { %v2975_v39 = vpop.xlane.xlu0 %2974  ;;  %v6456_v16 = vpop.eup %6455  ;;  %v3487_v2 = vmul.f32 %v6454_v52, %v8986_v1 }
 0x849   : > { %6457 = vrcp.f32 %v2975_v39  ;;  %v3488_v17 = vmul.f32 %v6456_v16, %v8962_v40  ;;  %v9023_v40 = vpop.f32.mrf.mxu3 }
 0x84a   : > { %6459 = vrcp.f32 %v2973_v20  ;;  %v3534_v30 = vpop.f32.mrf.mxu1 }
 0x84b   : > { %v3497_v27 = vpack.c.bf16 %v3488_v17, %v3487_v2  ;;  %6461 = vrcp.f32 %v3456_v62 }
 0x84c   : > { %3078 = vmatmul.bf16.gmra.mxu2 %v3014_v44 }
 0x84f   : > { %v6458_v25 = vpop.eup %6457 }
 0x850   : > { %v6460_v45 = vpop.eup %6459  ;;  %v3007_v47 = vmul.f32 %v6458_v25, %v8990_v23 }
 0x851   : > { %v3006_v4 = vmul.f32 %v6460_v45, %v8984_v53  ;;  %v6462_v1 = vpop.eup %6461  ;;  %v3572_v53 = vpack.c.bf16 %v3534_v30, %v3532_v59  ;;  %v9027_v28 = vpop.f32.mrf.mxu3 }
 0x852   : > { %v3537_v63 = vpop.f32.mrf.mxu1  ;;  %v3489_v6 = vmul.f32 %v6462_v1, %v8968_v24 }
 0x853   : > { %v3015_v58 = vpack.c.bf16 %v3007_v47, %v3006_v4 }
 0x854   : > { %3561 = vmatmul.bf16.gmra.mxu1 %v3497_v27 }
 0x859   : > { %v9031_v54 = vpop.f32.mrf.mxu3 }
 0x85a   : > { %v3539_v51 = vpop.f32.mrf.mxu1 }
 0x85b   : > { %v3458_v13 = vpop.xlane.xlu2 %3457  ;;  %v3573_v55 = vpack.c.bf16 %v3539_v51, %v3537_v63 }
 0x85c   : > { %6463 = vrcp.f32 %v3458_v13  ;;  %3083 = vmatmul.bf16.gmra.mxu2 %v3015_v58 }
 0x861   : > { %v9034_v24 = vpop.f32.mrf.mxu3 }
 0x862   : > { %v6464_v9 = vpop.eup %6463  ;;  %v3542_v11 = vpop.f32.mrf.mxu1 }
 0x863   : > { %v3490_v23 = vmul.f32 %v6464_v9, %v9001_v35  ;;  %v3069_v8 = vpop.f32.mrf.mxu2 }
 0x865   : > { %v3498_v49 = vpack.c.bf16 %v3490_v23, %v3489_v6 }
 0x867   : > { %3566 = vmatmul.bf16.gmra.mxu1 %v3498_v49  ;;  %v2680_v49 = vadd.f32 %v8644_v15, %v9012_v5  ;;  %v6561_v15 = vld [vmem:[#allocation2 + $0x30] sm:$0xff] }
 0x869   : > { %v9036_v19 = vpop.f32.mrf.mxu3 }
 0x86a   : > { %v3544_v35 = vpop.f32.mrf.mxu1 }
 0x86b   : > { %v3071_v26 = vpop.f32.mrf.mxu2  ;;  %v3574_v48 = vpack.c.bf16 %v3544_v35, %v3542_v11  ;;  %v9069_v11 = vld [vmem:[%s925_s7] ss:$0 sm:$0xff] }
 0x86c   : > { %5770 = vmatmul.msk.bf16.vlgmr.msrb.gmra.mxu2 %vm1792_vm1, %v3572_v53  ;;  %v3093_v46 = vpack.c.bf16 %v3071_v26, %v3069_v8 }
 0x86e   : > { %5750 = vmatmul.msk.bf16.gmra.mxu3 %vm1792_vm1, %v3093_v46 }
 0x871   : > { %v9039_v61 = vpop.f32.mrf.mxu3 }
 0x872   : > { %v3547_v33 = vpop.f32.mrf.mxu1 }
 0x879   : > { %v9042_v29 = vpop.f32.mrf.mxu3 }
 0x87a   : > { %v3549_v37 = vpop.f32.mrf.mxu1 }
 0x87b   : > { %v3575_v34 = vpack.c.bf16 %v3549_v37, %v3547_v33 }
 0x87c   : > { %5771 = vmatmul.msk.bf16.gmra.mxu2 %vm1792_vm1, %v3573_v55 }
 0x881   : > { %v9044_v57 = vpop.f32.mrf.mxu3 }
 0x882   : > { %v3552_v41 = vpop.f32.mrf.mxu1 }
 0x889   : > { %v9047_v44 = vpop.f32.mrf.mxu3 }
 0x88a   : > { %v3554_v7 = vpop.f32.mrf.mxu1 }
 0x88b   : > { %v3576_v39 = vpack.c.bf16 %v3554_v7, %v3552_v41 }
 0x88c   : > { %5772 = vmatmul.msk.bf16.gmra.mxu2 %vm1792_vm1, %v3574_v48  ;;  %v2682_v48 = vadd.f32 %v8657_v56, %v9016_v31 }
 0x891   : > { %v9049_v52 = vpop.f32.mrf.mxu3 }
 0x899   : > { %v9051_v59 = vpop.f32.mrf.mxu3 }
 0x89c   : > { %5773 = vmatmul.msk.bf16.gmra.mxu2 %vm1792_vm1, %v3575_v34 }
 0x8a1   : > { %v9055_v45 = vpop.f32.mrf.mxu3 }
 0x8a9   : > { %v9057_v58 = vpop.f32.mrf.mxu3 }
 0x8ac   : > { %5774 = vmatmul.msk.bf16.gmra.mxu2 %vm1792_vm1, %v3576_v39 }
 0x8b1   : > { %v3146_v63 = vpop.f32.mrf.mxu3 }
 0x8b2   : > { %v3186_v46 = vadd.f32 %v3146_v63, %v2680_v49  ;;  %v6564_v63 = vld [vmem:[#allocation2 + $0x18] sm:$0xff] }
 0x8b9   : > { %v3148_v26 = vpop.f32.mrf.mxu3 }
 0x8ba   : > { %v3187_v37 = vadd.f32 %v3148_v26, %v2682_v48  ;;  %v6565_v26 = vld [vmem:[#allocation2 + $0x50] sm:$0xff]  ;;  %v6566_v48 = vld [vmem:[#allocation2 + $0x68] sm:$0xff] }
 0x8bf   : > { %v3074_v20 = vpop.f32.mrf.mxu2 }
 0x8c1   : > { %v3557_v16 = vpop.f32.mrf.mxu1  ;;  %v3151_v34 = vpop.f32.mrf.mxu3 }
 0x8c7   : > { %v3076_v2 = vpop.f32.mrf.mxu2 }
 0x8c8   : > { %v3094_v17 = vpack.c.bf16 %v3076_v2, %v3074_v20  ;;  %v2685_v20 = vadd.f32 %v8672_v0, %v9021_v3 }
 0x8c9   : > { %v3559_v25 = vpop.f32.mrf.mxu1 }
 0x8ca   : > { %5751 = vmatmul.msk.bf16.gmra.mxu3 %vm1792_vm1, %v3094_v17  ;;  %v3577_v27 = vpack.c.bf16 %v3559_v25, %v3557_v16  ;;  %v6562_v16 = vld [vmem:[#allocation2] sm:$0xff]  ;;  %v3188_v17 = vadd.f32 %v3151_v34, %v2685_v20  ;;  %v3153_v25 = vpop.f32.mrf.mxu3 }
 0x8cc   : > { %5775 = vmatmul.msk.bf16.gmra.mxu2 %vm1792_vm1, %v3577_v27 }
 0x8cf   : > { %v3079_v47 = vpop.f32.mrf.mxu2 }
 0x8d1   : > { %v3562_v62 = vpop.f32.mrf.mxu1 }
 0x8d7   : > { %v3081_v4 = vpop.f32.mrf.mxu2 }
 0x8d8   : > { %v3095_v30 = vpack.c.bf16 %v3081_v4, %v3079_v47  ;;  %v2687_v47 = vadd.f32 %v8684_v36, %v9023_v40 }
 0x8d9   : > { %v3564_v13 = vpop.f32.mrf.mxu1 }
 0x8da   : > { %5752 = vmatmul.msk.bf16.gmra.mxu3 %vm1792_vm1, %v3095_v30  ;;  %v3578_v1 = vpack.c.bf16 %v3564_v13, %v3562_v62  ;;  %v6563_v62 = vld [vmem:[#allocation2 + $0x58] sm:$0xff]  ;;  %v3189_v30 = vadd.f32 %v3153_v25, %v2687_v47  ;;  %v3156_v13 = vpop.f32.mrf.mxu3 }
 0x8dc   : > { %5776 = vmatmul.msk.bf16.gmra.mxu2 %vm1792_vm1, %v3578_v1 }
 0x8df   : > { %v3084_v9 = vpop.f32.mrf.mxu2 }
 0x8e2   : > { %v3158_v49 = vpop.f32.mrf.mxu3 }
 0x8e4   : > { %v3567_v6 = vpop.f32.mrf.mxu1 }
 0x8e7   : > { %v3086_v23 = vpop.f32.mrf.mxu2 }
 0x8e8   : > { %v3096_v8 = vpack.c.bf16 %v3086_v23, %v3084_v9  ;;  %v2690_v9 = vadd.f32 %v8696_v42, %v9027_v28 }
 0x8ea   : > { %5753 = vmatmul.msk.bf16.gmra.mxu3 %vm1792_vm1, %v3096_v8  ;;  %v3190_v23 = vadd.f32 %v3156_v13, %v2690_v9 }
 0x8ec   : > { %v3569_v53 = vpop.f32.mrf.mxu1 }
 0x8ed   : > { %v3579_v51 = vpack.c.bf16 %v3569_v53, %v3567_v6  ;;  %v2692_v53 = vadd.f32 %v8701_v38, %v9031_v54 }
 0x8ef   : > { %v3629_v55 = vpop.f32.mrf.mxu2  ;;  %5777 = vmatmul.msk.bf16.gmra.mxu2 %vm1792_vm1, %v3579_v51 }
 0x8f0   : > { %v3669_v35 = vadd.f32 %v3629_v55, %v3186_v46  ;;  %v3191_v46 = vadd.f32 %v3158_v49, %v2692_v53 }
 0x8f2   : > { %v3689_v33 = vadd.f32 %v9069_v11, %v3669_v35  ;;  %v3161_v35 = vpop.f32.mrf.mxu3 }
 0x8f4   : > { %v9075_v5 = vadd.f32 %v6561_v15, %v3689_v33  ;;  %v2695_v33 = vadd.f32 %v8709_v14, %v9034_v24  ;;  %v2697_v14 = vadd.f32 %v8713_v12, %v9036_v19 }
 0x8f6   : > { %3723 = vadd.xlane.f32.xlu0 %v9075_v5 }
 0x8f7   : > { %v3631_v41 = vpop.f32.mrf.mxu2 }
 0x8f8   : > { %v3670_v7 = vadd.f32 %v3631_v41, %v3187_v37  ;;  %v3192_v37 = vadd.f32 %v3161_v35, %v2695_v33  ;;  %v6567_v41 = vld [vmem:[#allocation2 + $0x8] sm:$0xff]  ;;  %v2705_v33 = vadd.f32 %v8729_v10, %v9044_v57  ;;  %v2707_v57 = vadd.f32 %v8735_v50, %v9047_v44 }
 0x8f9   : > { %v2710_v50 = vadd.f32 %v8741_v60, %v9049_v52  ;;  %v2712_v52 = vadd.f32 %v8747_v43, %v9051_v59  ;;  %v2715_v59 = vadd.f32 %v8752_v22, %v9055_v45  ;;  %v5836_v22 = vld [vmem:[%s7492_s4 + $0x70] sm:$0xf]  ;;  %v5965_v45 = vld [vmem:[%s7492_s4 + $0x74] sm:$0xf0] }
 0x8fa   : > { %v3690_v39 = vadd.f32 %v9069_v11, %v3670_v7 }
 0x8fc   : > { %v9081_v2 = vadd.f32 %v6562_v16, %v3690_v39  ;;  %v3163_v39 = vpop.f32.mrf.mxu3 }
 0x8fe   : > { %3725 = vadd.xlane.f32.xlu1 %v9081_v2 }
 0x8ff   : > { %v3634_v56 = vpop.f32.mrf.mxu2 }
 0x900   : > { %v3671_v31 = vadd.f32 %v3634_v56, %v3188_v17 }
 0x902   : > { %v3691_v27 = vadd.f32 %v9069_v11, %v3671_v31  ;;  %v3193_v31 = vadd.f32 %v3163_v39, %v2697_v14  ;;  %v6570_v39 = vld [vmem:[#allocation2 + $0x20] sm:$0xff] }
 0x904   : > { %v9087_v4 = vadd.f32 %v6563_v62, %v3691_v27  ;;  %v3166_v16 = vpop.f32.mrf.mxu3 }
 0x906   : > { %3727 = vadd.xlane.f32.xlu2 %v9087_v4 }
 0x907   : > { %v3636_v0 = vpop.f32.mrf.mxu2 }
 0x908   : > { %v3672_v3 = vadd.f32 %v3636_v0, %v3189_v30  ;;  %v2700_v0 = vadd.f32 %v8720_v21, %v9039_v61 }
 0x90a   : > { %v3692_v1 = vadd.f32 %v9069_v11, %v3672_v3  ;;  %v3194_v19 = vadd.f32 %v3166_v16, %v2700_v0 }
 0x90c   : > { %v9093_v6 = vadd.f32 %v6564_v63, %v3692_v1  ;;  %v3168_v62 = vpop.f32.mrf.mxu3 }
 0x90e   : > { %3729 = vadd.xlane.f32.xlu0 %v9093_v6 }
 0x90f   : > { %v3639_v36 = vpop.f32.mrf.mxu2 }
 0x910   : > { %v3673_v40 = vadd.f32 %v3639_v36, %v3190_v23  ;;  %v6568_v23 = vld [vmem:[#allocation2 + $0x48] sm:$0xff] }
 0x912   : > { %v3693_v8 = vadd.f32 %v9069_v11, %v3673_v40  ;;  %v2702_v40 = vadd.f32 %v8724_v18, %v9042_v29 }
 0x914   : > { %v9099_v51 = vadd.f32 %v6565_v26, %v3693_v8  ;;  %v3195_v53 = vadd.f32 %v3168_v62, %v2702_v40  ;;  %v6571_v62 = vld [vmem:[#allocation2 + $0x10] sm:$0xff] }
 0x916   : > { %3731 = vadd.xlane.f32.xlu1 %v9099_v51 }
 0x917   : > { %v3641_v42 = vpop.f32.mrf.mxu2 }
 0x918   : > { %v3674_v28 = vadd.f32 %v3641_v42, %v3191_v46 }
 0x91a   : > { %v3694_v55 = vadd.f32 %v9069_v11, %v3674_v28 }
 0x91c   : > { %v9105_v15 = vadd.f32 %v6566_v48, %v3694_v55  ;;  %v6569_v55 = vld [vmem:[#allocation2 + $0x40] sm:$0xff] }
 0x91e   : > { %3733 = vadd.xlane.f32.xlu2 %v9105_v15 }
 0x91f   : > { %v3644_v38 = vpop.f32.mrf.mxu2 }
 0x920   : > { %v3675_v54 = vadd.f32 %v3644_v38, %v3192_v37 }
 0x922   : > { %v3695_v34 = vadd.f32 %v9069_v11, %v3675_v54 }
 0x924   : > { %v9109_v7 = vadd.f32 %v6567_v41, %v3695_v34 }
 0x926   : > { %3735 = vadd.xlane.f32.xlu2 %v9109_v7 }
 0x927   : > { %v3646_v20 = vpop.f32.mrf.mxu2 }
 0x928   : > { %v3676_v27 = vadd.f32 %v3646_v20, %v3193_v31 }
 0x92a   : > { %v3696_v3 = vadd.f32 %v9069_v11, %v3676_v27 }
 0x92c   : > { %v9129_v36 = vadd.f32 %v6568_v23, %v3696_v3  ;;  %v6572_v23 = vld [vmem:[#allocation2 + $0x38] sm:$0xff] }
 0x92f   : > { %v3649_v56 = vpop.f32.mrf.mxu2 }
 0x930   : > { %v3677_v9 = vadd.f32 %v3649_v56, %v3194_v19 }
 0x932   : > { %v3697_v8 = vadd.f32 %v9069_v11, %v3677_v9 }
 0x934   : > { %v9141_v35 = vadd.f32 %v6569_v55, %v3697_v8  ;;  %v6573_v55 = vld [vmem:[#allocation2 + $0x60] sm:$0xff] }
 0x937   : > { %v3651_v1 = vpop.f32.mrf.mxu2 }
 0x938   : > { %v3678_v42 = vadd.f32 %v3651_v1, %v3195_v53 }
 0x93a   : > { %v3698_v29 = vadd.f32 %v9069_v11, %v3678_v42 }
 0x93c   : > { %v9153_v20 = vadd.f32 %v6570_v39, %v3698_v29  ;;  %v6575_v39 = vld [vmem:[#allocation2 + $0x78] sm:$0xff] }
 0x94d   : > { %v3171_v21 = vpop.f32.mrf.mxu3 }
 0x94e   : > { %v3196_v48 = vadd.f32 %v3171_v21, %v2705_v33 }
 0x94f   : > { %v3654_v46 = vpop.f32.mrf.mxu2 }
 0x950   : > { %v3679_v34 = vadd.f32 %v3654_v46, %v3196_v48 }
 0x955   : > { %v3173_v38 = vpop.f32.mrf.mxu3 }
 0x956   : > { %v3197_v14 = vadd.f32 %v3173_v38, %v2707_v57  ;;  %v6574_v38 = vld [vmem:[#allocation2 + $0x70] sm:$0xff]  ;;  %v5964_v57 = vld [vmem:[%s7492_s4 + $0x74] sm:$0xf] }
 0x957   : > { %v3656_v10 = vpop.f32.mrf.mxu2 }
 0x958   : > { %v3680_v27 = vadd.f32 %v3656_v10, %v3197_v14 }
 0x95a   : > { %v3700_v3 = vadd.f32 %v9069_v11, %v3680_v27  ;;  %v5962_v27 = vld [vmem:[%s7492_s4 + $0x64] sm:$0xf] }
 0x95c   : > { %v9177_v21 = vadd.f32 %v6572_v23, %v3700_v3  ;;  %v5960_v3 = vld [vmem:[%s7492_s4 + $0x54] sm:$0xf]  ;;  %v5959_v23 = vld [vmem:[%s7492_s4 + $0x44] sm:$0xf0] }
 0x95d   : > { %v3176_v31 = vpop.f32.mrf.mxu3 }
 0x95f   : > { %v3659_v44 = vpop.f32.mrf.mxu2 }
 0x965   : > { %v3178_v60 = vpop.f32.mrf.mxu3 }
 0x966   : > { %v3199_v8 = vadd.f32 %v3178_v60, %v2712_v52  ;;  %v5958_v60 = vld [vmem:[%s7492_s4 + $0x44] sm:$0xf] }
 0x967   : > { %v3661_v53 = vpop.f32.mrf.mxu2 }
 0x968   : > { %v3682_v42 = vadd.f32 %v3661_v53, %v3199_v8  ;;  %v5804_v8 = vld [vmem:[%s7492_s4 + $0x30] sm:$0xf]  ;;  %v5956_v53 = vld [vmem:[%s7492_s4 + $0x34] sm:$0xf] }
 0x969   : > { %v3724_v17 = vpop.xlane.xlu0 %3723 }
 0x96a   : > { %v3755_v24 = vmul.f32 %v3724_v17, %v7544_v32  ;;  %v3699_v17 = vadd.f32 %v9069_v11, %v3679_v34 }
 0x96c   : > { %v9116_v25 = vsub.f32 %v9075_v5, %v3755_v24 }
 0x96d   : > { %v3181_v43 = vpop.f32.mrf.mxu3 }
 0x96e   : > { %v3787_v47 = vmul.f32 %v9116_v25, %v9116_v25  ;;  %v3200_v48 = vadd.f32 %v3181_v43, %v2715_v59  ;;  %v5796_v43 = vld [vmem:[%s7492_s4 + $0x20] sm:$0xf]  ;;  %v5955_v59 = vld [vmem:[%s7492_s4 + $0x24] sm:$0xf0] }
 0x970   : > { %3803 = vadd.xlane.f32.xlu0 %v3787_v47 }
 0x971   : > { %v3726_v30 = vpop.xlane.xlu1 %3725 }
 0x972   : > { %v3756_v12 = vmul.f32 %v3726_v30, %v7544_v32  ;;  %v9165_v30 = vadd.f32 %v6571_v62, %v3699_v17  ;;  %v3664_v29 = vpop.f32.mrf.mxu2  ;;  %v5838_v17 = vld [vmem:[%s7492_s4 + $0x78] sm:$0xf0]  ;;  %v5830_v62 = vld [vmem:[%s7492_s4 + $0x68] sm:$0xf0] }
 0x973   : > { %v5841_v14 = vor.u32 %v5964_v57, %v5838_v17  ;;  %v5790_v57 = vld [vmem:[%s7492_s4 + $0x18] sm:$0xf0] }
 0x974   : > { %v9125_v13 = vsub.f32 %v9081_v2, %v3756_v12  ;;  %v3198_v12 = vadd.f32 %v3176_v31, %v2710_v50  ;;  %v5963_v31 = vld [vmem:[%s7492_s4 + $0x64] sm:$0xf0]  ;;  %v5833_v50 = vor.u32 %v5962_v27, %v5830_v62  ;;  %v5782_v62 = vld [vmem:[%s7492_s4 + $0x8] sm:$0xf0] }
 0x975   : > { %4240 = vmatpush.bf16.msrb.mxu0 %v5841_v14 }
 0x976   : > { %v3788_v63 = vmul.f32 %v9125_v13, %v9125_v13  ;;  %v3681_v9 = vadd.f32 %v3659_v44, %v3198_v12  ;;  %v5820_v44 = vld [vmem:[%s7492_s4 + $0x50] sm:$0xf] }
 0x978   : > { %3805 = vadd.xlane.f32.xlu1 %v3788_v63  ;;  %3737 = vadd.xlane.f32.xlu0 %v9129_v36  ;;  %v3701_v40 = vadd.f32 %v9069_v11, %v3681_v9 }
 0x979   : > { %v3728_v61 = vpop.xlane.xlu2 %3727  ;;  %4241 = vmatpush.bf16.msrb.mxu0 %v5833_v50 }
 0x97a   : > { %v3757_v49 = vmul.f32 %v3728_v61, %v7544_v32  ;;  %v9189_v33 = vadd.f32 %v6573_v55, %v3701_v40 }
 0x97c   : > { %v9137_v26 = vsub.f32 %v9087_v4, %v3757_v49 }
 0x97e   : > { %v3789_v28 = vmul.f32 %v9137_v26, %v9137_v26 }
 0x980   : > { %3807 = vadd.xlane.f32.xlu1 %v3789_v28  ;;  %3739 = vadd.xlane.f32.xlu0 %v9141_v35 }
 0x981   : > { %v3730_v18 = vpop.xlane.xlu0 %3729 }
 0x982   : > { %v3758_v37 = vmul.f32 %v3730_v18, %v7544_v32  ;;  %v3702_v18 = vadd.f32 %v9069_v11, %v3682_v42 }
 0x984   : > { %v9149_v54 = vsub.f32 %v9093_v6, %v3758_v37  ;;  %v3683_v37 = vadd.f32 %v3664_v29, %v3200_v48  ;;  %v9195_v34 = vadd.f32 %v6574_v38, %v3702_v18  ;;  %v5954_v18 = vld [vmem:[%s7492_s4 + $0x24] sm:$0xf]  ;;  %v5797_v29 = vor.u32 %v5955_v59, %v5796_v43  ;;  %v5798_v48 = vld [vmem:[%s7492_s4 + $0x28] sm:$0xf0]  ;;  %v5788_v38 = vld [vmem:[%s7492_s4 + $0x10] sm:$0xf]  ;;  %v3666_v43 = vpop.f32.mrf.mxu2 }
 0x986   : > { %v3790_v41 = vmul.f32 %v9149_v54, %v9149_v54 }
 0x988   : > { %3809 = vadd.xlane.f32.xlu2 %v3790_v41  ;;  %3741 = vadd.xlane.f32.xlu1 %v9153_v20  ;;  %v3703_v41 = vadd.f32 %v9069_v11, %v3683_v37  ;;  %v5801_v37 = vor.u32 %v5954_v18, %v5798_v48 }
 0x989   : > { %v3732_v16 = vpop.xlane.xlu1 %3731 }
 0x98a   : > { %v3759_v24 = vmul.f32 %v3732_v16, %v7544_v32  ;;  %v9199_v10 = vadd.f32 %v6575_v39, %v3703_v41  ;;  %v5837_v16 = vor.u32 %v5965_v45, %v5836_v22  ;;  %v5953_v41 = vld [vmem:[%s7492_s4 + $0x14] sm:$0xf0]  ;;  %v5952_v39 = vld [vmem:[%s7492_s4 + $0x14] sm:$0xf] }
 0x98b   : > { %v5789_v45 = vor.u32 %v5953_v41, %v5788_v38  ;;  %v5793_v17 = vor.u32 %v5952_v39, %v5790_v57 }
 0x98c   : > { %v9161_v56 = vsub.f32 %v9099_v51, %v3759_v24  ;;  %4191 = vmatpush.bf16.msra.mxu3 %v5837_v16  ;;  %v5828_v24 = vld [vmem:[%s7492_s4 + $0x60] sm:$0xf] }
 0x98e   : > { %v3791_v47 = vmul.f32 %v9161_v56, %v9161_v56 }
 0x990   : > { %3811 = vadd.xlane.f32.xlu2 %v3791_v47  ;;  %3743 = vadd.xlane.f32.xlu1 %v9165_v30  ;;  %v5829_v47 = vor.u32 %v5963_v31, %v5828_v24  ;;  %v5780_v24 = vld [vmem:[%s7492_s4] sm:$0xf]  ;;  %v5951_v31 = vld [vmem:[%s7492_s4 + $0x4] sm:$0xf0] }
 0x991   : > { %v3734_v0 = vpop.xlane.xlu2 %3733  ;;  %v5781_v27 = vor.u32 %v5951_v31, %v5780_v24 }
 0x992   : > { %v3760_v19 = vmul.f32 %v3734_v0, %v7544_v32  ;;  %4192 = vmatpush.bf16.msra.mxu3 %v5829_v47  ;;  %v5961_v0 = vld [vmem:[%s7492_s4 + $0x54] sm:$0xf0]  ;;  %v5950_v47 = vld [vmem:[%s7492_s4 + $0x4] sm:$0xf] }
 0x993   : > { %v5821_v12 = vor.u32 %v5961_v0, %v5820_v44  ;;  %v5785_v50 = vor.u32 %v5950_v47, %v5782_v62 }
 0x994   : > { %v9173_v1 = vsub.f32 %v9105_v15, %v3760_v19  ;;  %v5822_v19 = vld [vmem:[%s7492_s4 + $0x58] sm:$0xf0] }
 0x995   : > { %v5825_v9 = vor.u32 %v5960_v3, %v5822_v19 }
 0x996   : > { %v3792_v63 = vmul.f32 %v9173_v1, %v9173_v1  ;;  %4193 = vmatpush.bf16.msra.mxu3 %v5821_v12 }
 0x997   : > { %4242 = vmatpush.bf16.msrb.mxu0 %v5825_v9 }
 0x998   : > { %3813 = vadd.xlane.f32.xlu0 %v3792_v63  ;;  %3745 = vadd.xlane.f32.xlu2 %v9177_v21  ;;  %v5812_v63 = vld [vmem:[%s7492_s4 + $0x40] sm:$0xf] }
 0x999   : > { %v3736_v61 = vpop.xlane.xlu2 %3735  ;;  %v5813_v52 = vor.u32 %v5959_v23, %v5812_v63 }
 0x99a   : > { %v3761_v49 = vmul.f32 %v3736_v61, %v7544_v32  ;;  %v5814_v61 = vld [vmem:[%s7492_s4 + $0x48] sm:$0xf0] }
 0x99b   : > { %v5817_v40 = vor.u32 %v5958_v60, %v5814_v61  ;;  %4194 = vmatpush.bf16.msra.mxu3 %v5813_v52  ;;  %v3183_v61 = vpop.f32.mrf.mxu3 }
 0x99c   : > { %v9185_v46 = vsub.f32 %v9109_v7, %v3761_v49  ;;  %v5957_v49 = vld [vmem:[%s7492_s4 + $0x34] sm:$0xf0] }
 0x99d   : > { %4243 = vmatpush.bf16.msrb.mxu0 %v5817_v40  ;;  %v5805_v42 = vor.u32 %v5957_v49, %v5804_v8 }
 0x99e   : > { %v3793_v28 = vmul.f32 %v9185_v46, %v9185_v46 }
 0x99f   : > { %4195 = vmatpush.bf16.msra.mxu3 %v5805_v42 }
 0x9a0   : > { %3815 = vadd.xlane.f32.xlu0 %v3793_v28  ;;  %3747 = vadd.xlane.f32.xlu2 %v9189_v33  ;;  %v5806_v28 = vld [vmem:[%s7492_s4 + $0x38] sm:$0xf0] }
 0x9a1   : > { %v5809_v55 = vor.u32 %v5956_v53, %v5806_v28  ;;  %v10220_v53 = vld [vmem:[#allocation39_spill] sm:$0xff] }
 0x9a2   : > { %v2717_v42 = vadd.f32 %v10220_v53, %v9057_v58 }
 0x9a3   : > { %4244 = vmatpush.bf16.msrb.mxu0 %v5809_v55  ;;  %4196 = vmatpush.bf16.msra.mxu3 %v5797_v29 }
 0x9a4   : > { %v3201_v29 = vadd.f32 %v3183_v61, %v2717_v42 }
 0x9a6   : > { %v3684_v39 = vadd.f32 %v3666_v43, %v3201_v29 }
 0x9a7   : > { %4245 = vmatpush.bf16.msrb.mxu0 %v5801_v37  ;;  %4197 = vmatpush.bf16.msra.mxu3 %v5789_v45 }
 0x9a8   : > { %3749 = vadd.xlane.f32.xlu0 %v9195_v34  ;;  %v3704_v24 = vadd.f32 %v9069_v11, %v3684_v39 }
 0x9ab   : > { %4246 = vmatpush.bf16.msrb.mxu0 %v5793_v17  ;;  %4198 = vmatpush.bf16.msra.mxu3 %v5781_v27 }
 0x9af   : > { %4247 = vmatpush.bf16.msrb.mxu0 %v5785_v50 }
 0x9b0   : > { %3751 = vadd.xlane.f32.xlu0 %v9199_v10 }
 0x9e3   : > { %v3804_v22 = vpop.xlane.xlu0 %3803 }
 0x9e4   : > { %v3835_v16 = vmul.f32 %v3804_v22, %v7544_v32 }
 0x9e6   : > { %v3851_v14 = vadd.f32 1e-05, %v3835_v16 }
 0x9e8   : > { %6465 = vrsqrt.f32 %v3851_v14  ;;  %vm3873_vm3 = vweird.f32 %v3851_v14 }
 0x9eb   : > { %v3806_v44 = vpop.xlane.xlu1 %3805  ;;  %v3738_v0 = vpop.xlane.xlu0 %3737 }
 0x9ec   : > { %v3836_v3 = vmul.f32 %v3806_v44, %v7544_v32  ;;  %v3762_v12 = vmul.f32 %v3738_v0, %v7544_v32 }
 0x9ee   : > { %v6466_v19 = vpop.eup %6465  ;;  %v3852_v9 = vadd.f32 1e-05, %v3836_v3  ;;  %v9238_v63 = vsub.f32 %v9129_v36, %v3762_v12 }
 0x9ef   : > { %v3868_v23 = vmul.f32 %v6466_v19, %v3851_v14  ;;  %vm3874_vm2 = vweird.f32 %v6466_v19  ;;  %v9259_v14 = vld [vmem:[%s928_s1] ss:$0 sm:$0xff]  ;;  %s10222_s1 = scalar_lea.vmem [#allocation14], %s7467_s30  ;;  %s10229_s30 = sld [smem:[#allocation30_spill]] }
 0x9f0   : > { %6467 = vrsqrt.f32 %v3852_v9  ;;  %v3794_v60 = vmul.f32 %v9238_v63, %v9238_v63  ;;  %vm3875_vm4 = vmor %vm3873_vm3, %vm3874_vm2  ;;  %vm3883_vm6 = vweird.f32 %v3852_v9  ;;  %v9271_v61 = vld [vmem:[%s10222_s1] ss:$0 sm:$0xff] }
 0x9f1   : > { %v3869_v52 = vmul.f32 %v6466_v19, %v3868_v23 }
 0x9f2   : > { %3817 = vadd.xlane.f32.xlu1 %v3794_v60 }
 0x9f3   : > { %v3870_v40 = vmul.f32 0.5, %v3869_v52  ;;  %v3808_v8 = vpop.xlane.xlu1 %3807  ;;  %v3740_v49 = vpop.xlane.xlu0 %3739 }
 0x9f4   : > { %v3837_v28 = vmul.f32 %v3808_v8, %v7544_v32  ;;  %v3763_v55 = vmul.f32 %v3740_v49, %v7544_v32 }
 0x9f5   : > { %v3871_v59 = vsub.f32 1.5, %v3870_v40  ;;  %p5906_p8 = scmp.ne.s32.totalorder %s10229_s30, 1 }
 0x9f6   : > { %v6468_v18 = vpop.eup %6467  ;;  %v3853_v48 = vadd.f32 1e-05, %v3837_v28  ;;  %v9247_v37 = vsub.f32 %v9141_v35, %v3763_v55  ;;  %s10231_s15 = sld [smem:[#allocation54_spill]] (!%p5906_p8) }
 0x9f7   : > { %v3872_v38 = vmul.f32 %v6466_v19, %v3871_v59  ;;  %v3878_v41 = vmul.f32 %v6468_v18, %v3852_v9  ;;  %vm3884_vm5 = vweird.f32 %v6468_v18 }
 0x9f8   : > { %6469 = vrsqrt.f32 %v3853_v48  ;;  %v3795_v58 = vmul.f32 %v9247_v37, %v9247_v37  ;;  %vm3885_vm7 = vmor %vm3883_vm6, %vm3884_vm5  ;;  %vm3893_vm9 = vweird.f32 %v3853_v48 }
 0x9f9   : > { %v3879_v22 = vmul.f32 %v6468_v18, %v3878_v41  ;;  %v3876_v45 = vsel %vm3875_vm4, %v6466_v19, %v3872_v38  ;;  %v6576_v19 = vld [vmem:[#allocation2 + $0x28] sm:$0xff] }
 0x9fa   : > { %3819 = vadd.xlane.f32.xlu1 %v3795_v58  ;;  %v4027_v50 = vmul.f32 %v3876_v45, %v9116_v25  ;;  %v9267_v23 = vadd.f32 %v6576_v19, %v3704_v24 }
 0x9fb   : > { %v3880_v57 = vmul.f32 0.5, %v3879_v22  ;;  %v3810_v16 = vpop.xlane.xlu2 %3809  ;;  %v3742_v17 = vpop.xlane.xlu1 %3741 }
 0x9fc   : > { %v3838_v31 = vmul.f32 %v3810_v16, %v7544_v32  ;;  %v3764_v27 = vmul.f32 %v3742_v17, %v7544_v32  ;;  %v4046_v25 = vmul.f32 %v9259_v14, %v4027_v50 }
 0x9fd   : > { %v3881_v47 = vsub.f32 1.5, %v3880_v57 }
 0x9fe   : > { %v6470_v62 = vpop.eup %6469  ;;  %v3854_v44 = vadd.f32 1e-05, %v3838_v31  ;;  %v9263_v0 = vsub.f32 %v9153_v20, %v3764_v27  ;;  %v4065_v59 = vadd.f32 %v9271_v61, %v4046_v25 }
 0x9ff   : > { %v3882_v11 = vmul.f32 %v6468_v18, %v3881_v47  ;;  %v3888_v3 = vmul.f32 %v6470_v62, %v3853_v48  ;;  %vm3894_vm8 = vweird.f32 %v6470_v62 }
 0xa00   : > { %6471 = vrsqrt.f32 %v3854_v44  ;;  %v3796_v12 = vmul.f32 %v9263_v0, %v9263_v0  ;;  %vm3895_vm10 = vmor %vm3893_vm9, %vm3894_vm8  ;;  %vm3903_vm12 = vweird.f32 %v3854_v44 }
 0xa01   : > { %v3886_v60 = vsel %vm3885_vm7, %v6468_v18, %v3882_v11  ;;  %v3889_v52 = vmul.f32 %v6470_v62, %v3888_v3 }
 0xa02   : > { %v4028_v40 = vmul.f32 %v3886_v60, %v9125_v13  ;;  %3821 = vadd.xlane.f32.xlu2 %v3796_v12  ;;  %3753 = vadd.xlane.f32.xlu1 %v9267_v23 }
 0xa03   : > { %v3890_v9 = vmul.f32 0.5, %v3889_v52  ;;  %v3812_v8 = vpop.xlane.xlu2 %3811  ;;  %v3744_v49 = vpop.xlane.xlu1 %3743 }
 0xa04   : > { %v4047_v53 = vmul.f32 %v9259_v14, %v4028_v40  ;;  %v3839_v42 = vmul.f32 %v3812_v8, %v7544_v32  ;;  %v3765_v28 = vmul.f32 %v3744_v49, %v7544_v32 }
 0xa05   : > { %v3891_v55 = vsub.f32 1.5, %v3890_v9 }
 0xa06   : > { %v6472_v43 = vpop.eup %6471  ;;  %v4066_v18 = vadd.f32 %v9271_v61, %v4047_v53  ;;  %v3855_v29 = vadd.f32 1e-05, %v3839_v42  ;;  %v9282_v13 = vsub.f32 %v9165_v30, %v3765_v28 }
 0xa07   : > { %v3892_v38 = vmul.f32 %v6470_v62, %v3891_v55  ;;  %v3898_v41 = vmul.f32 %v6472_v43, %v3854_v44  ;;  %vm3904_vm11 = vweird.f32 %v6472_v43 }
 0xa08   : > { %6473 = vrsqrt.f32 %v3855_v29  ;;  %v4081_v39 = vpack.c.bf16 %v4066_v18, %v4065_v59  ;;  %v3797_v58 = vmul.f32 %v9282_v13, %v9282_v13  ;;  %vm3905_vm13 = vmor %vm3903_vm12, %vm3904_vm11  ;;  %vm3913_vm15 = vweird.f32 %v3855_v29 }
 0xa09   : > { %v3899_v22 = vmul.f32 %v6472_v43, %v3898_v41  ;;  %v3896_v45 = vsel %vm3895_vm10, %v6470_v62, %v3892_v38 }
 0xa0a   : > { %4248 = vmatmul.bf16.vlgmr.msrb.gmra.mxu0 %v4081_v39  ;;  %3823 = vadd.xlane.f32.xlu2 %v3797_v58  ;;  %v4029_v50 = vmul.f32 %v3896_v45, %v9137_v26 }
 0xa0b   : > { %v3900_v57 = vmul.f32 0.5, %v3899_v22  ;;  %4199 = vmatmul.bf16.vlgmr.msra.gmra.mxu3 %v4081_v39  ;;  %v3814_v16 = vpop.xlane.xlu0 %3813  ;;  %v3746_v17 = vpop.xlane.xlu2 %3745 }
 0xa0c   : > { %v3840_v24 = vmul.f32 %v3814_v16, %v7544_v32  ;;  %v3766_v31 = vmul.f32 %v3746_v17, %v7544_v32  ;;  %v4048_v25 = vmul.f32 %v9259_v14, %v4029_v50 }
 0xa0d   : > { %v3901_v27 = vsub.f32 1.5, %v3900_v57 }
 0xa0e   : > { %v6474_v47 = vpop.eup %6473  ;;  %v3856_v11 = vadd.f32 1e-05, %v3840_v24  ;;  %v9290_v48 = vsub.f32 %v9177_v21, %v3766_v31  ;;  %v4067_v28 = vadd.f32 %v9271_v61, %v4048_v25 }
 0xa0f   : > { %v3902_v3 = vmul.f32 %v6472_v43, %v3901_v27  ;;  %v3908_v62 = vmul.f32 %v6474_v47, %v3855_v29  ;;  %vm3914_vm14 = vweird.f32 %v6474_v47 }
 0xa10   : > { %6475 = vrsqrt.f32 %v3856_v11  ;;  %v3798_v12 = vmul.f32 %v9290_v48, %v9290_v48  ;;  %vm3915_vm0 = vmor %vm3913_vm15, %vm3914_vm14  ;;  %vm3923_vm2 = vweird.f32 %v3856_v11 }
 0xa11   : > { %v3906_v19 = vsel %vm3905_vm13, %v6472_v43, %v3902_v3  ;;  %v3909_v60 = vmul.f32 %v6474_v47, %v3908_v62 }
 0xa12   : > { %v4030_v52 = vmul.f32 %v3906_v19, %v9149_v54  ;;  %3825 = vadd.xlane.f32.xlu0 %v3798_v12 }
 0xa13   : > { %v3910_v26 = vmul.f32 0.5, %v3909_v60  ;;  %v3816_v40 = vpop.xlane.xlu0 %3815  ;;  %v3748_v9 = vpop.xlane.xlu2 %3747 }
 0xa14   : > { %v3767_v8 = vmul.f32 %v3748_v9, %v7544_v32  ;;  %v4049_v44 = vmul.f32 %v9259_v14, %v4030_v52  ;;  %v3841_v19 = vmul.f32 %v3816_v40, %v7544_v32 }
 0xa15   : > { %v3911_v49 = vsub.f32 1.5, %v3910_v26 }
 0xa16   : > { %v6476_v53 = vpop.eup %6475  ;;  %v9299_v42 = vsub.f32 %v9189_v33, %v3767_v8  ;;  %v4068_v55 = vadd.f32 %v9271_v61, %v4049_v44  ;;  %v3857_v60 = vadd.f32 1e-05, %v3841_v19 }
 0xa17   : > { %v3912_v54 = vmul.f32 %v6474_v47, %v3911_v49  ;;  %v3918_v43 = vmul.f32 %v6476_v53, %v3856_v11  ;;  %vm3924_vm1 = vweird.f32 %v6476_v53 }
 0xa18   : > { %v4082_v59 = vpack.c.bf16 %v4068_v55, %v4067_v28  ;;  %v3799_v18 = vmul.f32 %v9299_v42, %v9299_v42  ;;  %vm3925_vm3 = vmor %vm3923_vm2, %vm3924_vm1  ;;  %6477 = vrsqrt.f32 %v3857_v60  ;;  %vm3933_vm5 = vweird.f32 %v3857_v60 }
 0xa19   : > { %v3919_v38 = vmul.f32 %v6476_v53, %v3918_v43  ;;  %v3916_v41 = vsel %vm3915_vm0, %v6474_v47, %v3912_v54  ;;  %v5980_v54 = vld [vmem:[%s7501_s0 + $0x70] sm:$0xff] }
 0xa1a   : > { %4253 = vmatmul.bf16.gmra.mxu0 %v4082_v59  ;;  %3827 = vadd.xlane.f32.xlu1 %v3799_v18  ;;  %v4031_v57 = vmul.f32 %v3916_v41, %v9161_v56  ;;  %v5973_v18 = vld [vmem:[%s7501_s0 + $0x38] sm:$0xff] }
 0xa1b   : > { %v3920_v39 = vmul.f32 0.5, %v3919_v38  ;;  %4204 = vmatmul.bf16.gmra.mxu3 %v4082_v59  ;;  %v3750_v58 = vpop.xlane.xlu0 %3749  ;;  %4725 = vmatpush.bf16.msrb.mxu1 %v5973_v18  ;;  %v5976_v18 = vld [vmem:[%s7501_s0 + $0x50] sm:$0xff] }
 0xa1c   : > { %v3768_v22 = vmul.f32 %v3750_v58, %v7544_v32  ;;  %v4050_v27 = vmul.f32 %v9259_v14, %v4031_v57 }
 0xa1d   : > { %v3921_v45 = vsub.f32 1.5, %v3920_v39  ;;  %v5979_v39 = vld [vmem:[%s7501_s0 + $0x68] sm:$0xff] }
 0xa1e   : > { %v9308_v16 = vsub.f32 %v9195_v34, %v3768_v22  ;;  %v4069_v11 = vadd.f32 %v9271_v61, %v4050_v27  ;;  %v6478_v52 = vpop.eup %6477  ;;  %v5972_v22 = vld [vmem:[%s7501_s0 + $0x30] sm:$0xff] }
 0xa1f   : > { %v3922_v17 = vmul.f32 %v6476_v53, %v3921_v45  ;;  %v3928_v25 = vmul.f32 %v6478_v52, %v3857_v60  ;;  %vm3934_vm4 = vweird.f32 %v6478_v52  ;;  %4726 = vmatpush.bf16.msrb.mxu1 %v5972_v22 }
 0xa20   : > { %v3800_v29 = vmul.f32 %v9308_v16, %v9308_v16  ;;  %vm3935_vm6 = vmor %vm3933_vm5, %vm3934_vm4 }
 0xa21   : > { %v3926_v24 = vsel %vm3925_vm3, %v6476_v53, %v3922_v17  ;;  %v3929_v26 = vmul.f32 %v6478_v52, %v3928_v25  ;;  %v5981_v53 = vld [vmem:[%s7501_s0 + $0x78] sm:$0xff] }
 0xa22   : > { %v4032_v31 = vmul.f32 %v3926_v24, %v9173_v1  ;;  %3829 = vadd.xlane.f32.xlu2 %v3800_v29  ;;  %4774 = vmatpush.bf16.msra.mxu2 %v5981_v53 }
 0xa23   : > { %v3752_v47 = vpop.xlane.xlu0 %3751  ;;  %v3930_v49 = vmul.f32 0.5, %v3929_v26 }
 0xa24   : > { %v3769_v50 = vmul.f32 %v3752_v47, %v7544_v32  ;;  %v4051_v56 = vmul.f32 %v9259_v14, %v4032_v31 }
 0xa25   : > { %v3931_v28 = vsub.f32 1.5, %v3930_v49 }
 0xa26   : > { %v9317_v3 = vsub.f32 %v9199_v10, %v3769_v50  ;;  %v4070_v62 = vadd.f32 %v9271_v61, %v4051_v56  ;;  %4775 = vmatpush.bf16.msra.mxu2 %v5980_v54 }
 0xa27   : > { %v3932_v38 = vmul.f32 %v6478_v52, %v3931_v28  ;;  %v5970_v28 = vld [vmem:[%s7501_s0 + $0x20] sm:$0xff] }
 0xa28   : > { %v4083_v12 = vpack.c.bf16 %v4070_v62, %v4069_v11  ;;  %v3801_v1 = vmul.f32 %v9317_v3, %v9317_v3  ;;  %v5978_v62 = vld [vmem:[%s7501_s0 + $0x60] sm:$0xff] }
 0xa29   : > { %v3936_v45 = vsel %vm3935_vm6, %v6478_v52, %v3932_v38 }
 0xa2a   : > { %4258 = vmatmul.bf16.gmra.mxu0 %v4083_v12  ;;  %3831 = vadd.xlane.f32.xlu0 %v3801_v1  ;;  %v4033_v50 = vmul.f32 %v3936_v45, %v9185_v46  ;;  %v5971_v46 = vld [vmem:[%s7501_s0 + $0x28] sm:$0xff] }
 0xa2b   : > { %4209 = vmatmul.bf16.gmra.mxu3 %v4083_v12  ;;  %4776 = vmatpush.bf16.msra.mxu2 %v5979_v39 }
 0xa2c   : > { %v4052_v26 = vmul.f32 %v9259_v14, %v4033_v50  ;;  %4727 = vmatpush.bf16.msrb.mxu1 %v5971_v46  ;;  %v5968_v50 = vld [vmem:[%s7501_s0 + $0x10] sm:$0xff] }
 0xa2f   : > { %4777 = vmatpush.bf16.msra.mxu2 %v5978_v62 }
 0xa30   : > { %4728 = vmatpush.bf16.msrb.mxu1 %v5970_v28 }
 0xa65   : > { %v3818_v9 = vpop.xlane.xlu1 %3817 }
 0xa66   : > { %v3842_v8 = vmul.f32 %v3818_v9, %v7544_v32  ;;  %v5977_v9 = vld [vmem:[%s7501_s0 + $0x58] sm:$0xff] }
 0xa67   : > { %4778 = vmatpush.bf16.msra.mxu2 %v5977_v9  ;;  %v5967_v9 = vld [vmem:[%s7501_s0 + $0x8] sm:$0xff] }
 0xa68   : > { %v3858_v44 = vadd.f32 1e-05, %v3842_v8 }
 0xa6a   : > { %6479 = vrsqrt.f32 %v3858_v44  ;;  %vm3943_vm8 = vweird.f32 %v3858_v44 }
 0xa6b   : > { %4779 = vmatpush.bf16.msra.mxu2 %v5976_v18 }
 0xa6d   : > { %v3820_v55 = vpop.xlane.xlu1 %3819 }
 0xa6e   : > { %v3843_v40 = vmul.f32 %v3820_v55, %v7544_v32 }
 0xa70   : > { %v6480_v43 = vpop.eup %6479  ;;  %v9328_v59 = vadd.f32 1e-05, %v3843_v40 }
 0xa71   : > { %v3938_v41 = vmul.f32 %v6480_v43, %v3858_v44  ;;  %vm3944_vm7 = vweird.f32 %v6480_v43 }
 0xa72   : > { %6481 = vrsqrt.f32 %v9328_v59  ;;  %vm3945_vm9 = vmor %vm3943_vm8, %vm3944_vm7  ;;  %vm3953_vm11 = vweird.f32 %v9328_v59 }
 0xa73   : > { %v3939_v58 = vmul.f32 %v6480_v43, %v3938_v41  ;;  %v4105_v41 = vld [vmem:[%s7499_s6] sm:$0x3] }
 0xa75   : > { %v3940_v57 = vmul.f32 0.5, %v3939_v58  ;;  %v3822_v17 = vpop.xlane.xlu2 %3821  ;;  %v3754_v29 = vpop.xlane.xlu1 %3753  ;;  %v5969_v58 = vld [vmem:[%s7501_s0 + $0x18] sm:$0xff] }
 0xa76   : > { %v3844_v24 = vmul.f32 %v3822_v17, %v7544_v32  ;;  %v3770_v31 = vmul.f32 %v3754_v29, %v7544_v32  ;;  %v5975_v17 = vld [vmem:[%s7501_s0 + $0x48] sm:$0xff]  ;;  %4729 = vmatpush.bf16.msrb.mxu1 %v5969_v58 }
 0xa77   : > { %v3941_v27 = vsub.f32 1.5, %v3940_v57  ;;  %v9369_v57 = vperm.slane %v4105_v41, 1  ;;  %4780 = vmatpush.bf16.msra.mxu2 %v5975_v17 }
 0xa78   : > { %v9336_v47 = vpop.eup %6481  ;;  %v9339_v56 = vadd.f32 1e-05, %v3844_v24  ;;  %v9342_v11 = vsub.f32 %v9267_v23, %v3770_v31 }
 0xa79   : > { %v3942_v12 = vmul.f32 %v6480_v43, %v3941_v27  ;;  %v3948_v1 = vmul.f32 %v9336_v47, %v9328_v59  ;;  %vm3954_vm10 = vweird.f32 %v9336_v47 }
 0xa7a   : > { %6483 = vrsqrt.f32 %v9339_v56  ;;  %v3802_v19 = vmul.f32 %v9342_v11, %v9342_v11  ;;  %vm9373_vm12 = vmor %vm3953_vm11, %vm3954_vm10  ;;  %vm3963_vm14 = vweird.f32 %v9339_v56  ;;  %4730 = vmatpush.bf16.msrb.mxu1 %v5968_v50 }
 0xa7b   : > { %v3946_v60 = vsel %vm3945_vm9, %v6480_v43, %v3942_v12  ;;  %v3949_v52 = vmul.f32 %v9336_v47, %v3948_v1 }
 0xa7c   : > { %v4034_v25 = vmul.f32 %v3946_v60, %v9238_v63  ;;  %3833 = vadd.xlane.f32.xlu1 %v3802_v19  ;;  %v4071_v63 = vadd.f32 %v9271_v61, %v4052_v26  ;;  %v5974_v60 = vld [vmem:[%s7501_s0 + $0x40] sm:$0xff] }
 0xa7d   : > { %v3950_v8 = vmul.f32 0.5, %v3949_v52  ;;  %v3824_v44 = vpop.xlane.xlu2 %3823  ;;  %4781 = vmatpush.bf16.msra.mxu2 %v5974_v60 }
 0xa7e   : > { %v3845_v49 = vmul.f32 %v3824_v44, %v7544_v32  ;;  %v4053_v53 = vmul.f32 %v9259_v14, %v4034_v25  ;;  %4731 = vmatpush.bf16.msrb.mxu1 %v5967_v9 }
 0xa7f   : > { %v3951_v55 = vsub.f32 1.5, %v3950_v8 }
 0xa80   : > { %v6484_v40 = vpop.eup %6483  ;;  %v9358_v54 = vadd.f32 1e-05, %v3845_v49  ;;  %v4072_v43 = vadd.f32 %v9271_v61, %v4053_v53  ;;  %v9398_v49 = vperm.slane %v4105_v41, 0 }
 0xa81   : > { %v3958_v38 = vmul.f32 %v6484_v40, %v9339_v56  ;;  %v3952_v22 = vmul.f32 %v9336_v47, %v3951_v55  ;;  %vm3964_vm13 = vweird.f32 %v6484_v40 }
 0xa82   : > { %6485 = vrsqrt.f32 %v9358_v54  ;;  %v4084_v39 = vpack.c.bf16 %v4072_v43, %v4071_v63  ;;  %vm3965_vm15 = vmor %vm3963_vm14, %vm3964_vm13  ;;  %vm3973_vm1 = vweird.f32 %v9358_v54 }
 0xa83   : > { %v3959_v45 = vmul.f32 %v6484_v40, %v3958_v38  ;;  %v3956_v62 = vsel %vm9373_vm12, %v9336_v47, %v3952_v22  ;;  %v5966_v38 = vld [vmem:[%s7501_s0] sm:$0xff]  ;;  %s10230_s0 = sld [smem:[#allocation53_spill]] (!%p5906_p8) }
 0xa84   : > { %4214 = vmatmul.bf16.gmra.mxu3 %v4084_v39  ;;  %4263 = vmatmul.bf16.gmra.mxu0 %v4084_v39  ;;  %v4035_v47 = vmul.f32 %v3956_v62, %v9247_v37 }
 0xa85   : > { %v3960_v29 = vmul.f32 0.5, %v3959_v45  ;;  %v3826_v24 = vpop.xlane.xlu0 %3825  ;;  %4732 = vmatpush.bf16.msrb.mxu1 %v5966_v38 }
 0xa86   : > { %v3846_v27 = vmul.f32 %v3826_v24, %v7544_v32  ;;  %v4054_v18 = vmul.f32 %v9259_v14, %v4035_v47 }
 0xa87   : > { %v3961_v12 = vsub.f32 1.5, %v3960_v29  ;;  %v4249_v1 = vpop.f32.mrf.mxu0 }
 0xa88   : > { %v9382_v59 = vpop.eup %6485  ;;  %v9384_v19 = vadd.f32 1e-05, %v3846_v27  ;;  %v9387_v46 = vadd.f32 %v4249_v1, %v9369_v57  ;;  %v4073_v27 = vadd.f32 %v9271_v61, %v4054_v18 }
 0xa89   : > { %v3962_v52 = vmul.f32 %v6484_v40, %v3961_v12  ;;  %v3968_v25 = vmul.f32 %v9382_v59, %v9358_v54  ;;  %vm3974_vm0 = vweird.f32 %v9382_v59 }
 0xa8a   : > { %6487 = vrsqrt.f32 %v9384_v19  ;;  %v4322_v26 = vmul.f32 0.044715, %v9387_v46  ;;  %vm9431_vm2 = vmor %vm3973_vm1, %vm3974_vm0  ;;  %vm3983_vm3 = vweird.f32 %v9384_v19 }
 0xa8b   : > { %v3966_v8 = vsel %vm3965_vm15, %v6484_v40, %v3962_v52  ;;  %v3969_v44 = vmul.f32 %v9382_v59, %v3968_v25 }
 0xa8c   : > { %v4036_v56 = vmul.f32 %v3966_v8, %v9263_v0  ;;  %v4354_v53 = vmul.f32 %v4322_v26, %v9387_v46 }
 0xa8d   : > { %v3970_v28 = vmul.f32 0.5, %v3969_v44  ;;  %v3828_v55 = vpop.xlane.xlu1 %3827 }
 0xa8e   : > { %v4386_v37 = vmul.f32 %v4354_v53, %v9387_v46  ;;  %v4200_v63 = vpop.f32.mrf.mxu3  ;;  %v3847_v43 = vmul.f32 %v3828_v55, %v7544_v32  ;;  %v4055_v40 = vmul.f32 %v9259_v14, %v4036_v56 }
 0xa8f   : > { %v3971_v39 = vsub.f32 1.5, %v3970_v28  ;;  %v9408_v41 = vadd.f32 %v4200_v63, %v9398_v49  ;;  %v4251_v0 = vpop.f32.mrf.mxu0 }
 0xa90   : > { %v6488_v58 = vpop.eup %6487  ;;  %v4418_v22 = vadd.f32 %v4386_v37, %v9387_v46  ;;  %v9411_v45 = vadd.f32 1e-05, %v3847_v43  ;;  %v9414_v17 = vadd.f32 %v4251_v0, %v9369_v57  ;;  %v4074_v29 = vadd.f32 %v9271_v61, %v4055_v40 }
 0xa91   : > { %v3978_v24 = vmul.f32 %v6488_v58, %v9384_v19  ;;  %v4321_v31 = vmul.f32 0.044715, %v9408_v41  ;;  %v3972_v12 = vmul.f32 %v9382_v59, %v3971_v39  ;;  %vm3984_vm4 = vweird.f32 %v6488_v58 }
 0xa92   : > { %6489 = vrsqrt.f32 %v9411_v45  ;;  %v4324_v62 = vmul.f32 0.044715, %v9414_v17  ;;  %v4450_v1 = vmul.f32 0.7978846, %v4418_v22  ;;  %v4085_v52 = vpack.c.bf16 %v4074_v29, %v4073_v27  ;;  %vm3985_vm5 = vmor %vm3983_vm3, %vm3984_vm4 }
 0xa93   : > { %v3979_v50 = vmul.f32 %v6488_v58, %v3978_v24  ;;  %v4353_v60 = vmul.f32 %v4321_v31, %v9408_v41  ;;  %v3976_v37 = vsel %vm9431_vm2, %v9382_v59, %v3972_v12  ;;  %vm3993_vm7 = vweird.f32 %v9411_v45 }
 0xa94   : > { %v4356_v47 = vmul.f32 %v4324_v62, %v9414_v17  ;;  %4219 = vmatmul.bf16.gmra.mxu3 %v4085_v52  ;;  %4268 = vmatmul.bf16.gmra.mxu0 %v4085_v52  ;;  %6491 = vtanh.f32 %v4450_v1  ;;  %v4037_v59 = vmul.f32 %v3976_v37, %v9282_v13 }
 0xa95   : > { %v3980_v25 = vmul.f32 0.5, %v3979_v50  ;;  %v3830_v26 = vpop.xlane.xlu2 %3829  ;;  %v4385_v9 = vmul.f32 %v4353_v60, %v9408_v41 }
 0xa96   : > { %v3848_v8 = vmul.f32 %v3830_v26, %v7544_v32  ;;  %v4202_v44 = vpop.f32.mrf.mxu3  ;;  %v4388_v28 = vmul.f32 %v4356_v47, %v9414_v17  ;;  %v4290_v26 = vmul.f32 0.5, %v9387_v46 }
 0xa97   : > { %v3981_v53 = vsub.f32 1.5, %v3980_v25  ;;  %v4254_v54 = vpop.f32.mrf.mxu0  ;;  %v9445_v43 = vadd.f32 %v4202_v44, %v9398_v49  ;;  %v4417_v40 = vadd.f32 %v4385_v9, %v9408_v41 }
 0xa98   : > { %v9437_v55 = vpop.eup %6489  ;;  %v9442_v63 = vadd.f32 1e-05, %v3848_v8  ;;  %v4420_v38 = vadd.f32 %v4388_v28, %v9414_v17  ;;  %v9453_v39 = vadd.f32 %v4254_v54, %v9369_v57 }
 0xa99   : > { %v3982_v18 = vmul.f32 %v6488_v58, %v3981_v53  ;;  %v3988_v19 = vmul.f32 %v9437_v55, %v9411_v45  ;;  %v4323_v31 = vmul.f32 0.044715, %v9445_v43  ;;  %v4449_v27 = vmul.f32 0.7978846, %v4417_v40 }
 0xa9a   : > { %6493 = vrsqrt.f32 %v9442_v63  ;;  %v4452_v29 = vmul.f32 0.7978846, %v4420_v38  ;;  %v6492_v62 = vpop.eup %6491  ;;  %v4326_v1 = vmul.f32 0.044715, %v9453_v39  ;;  %vm3994_vm6 = vweird.f32 %v9437_v55 }
 0xa9b   : > { %v3986_v0 = vsel %vm3985_vm5, %v6488_v58, %v3982_v18  ;;  %v3989_v22 = vmul.f32 %v9437_v55, %v3988_v19  ;;  %v4355_v12 = vmul.f32 %v4323_v31, %v9445_v43  ;;  %v4514_v44 = vadd.f32 1.0, %v6492_v62  ;;  %vm9485_vm8 = vmor %vm3993_vm7, %vm3994_vm6 }
 0xa9c   : > { %v4038_v24 = vmul.f32 %v3986_v0, %v9290_v48  ;;  %6495 = vtanh.f32 %v4452_v29  ;;  %v4056_v48 = vmul.f32 %v9259_v14, %v4037_v59  ;;  %v4358_v37 = vmul.f32 %v4326_v1, %v9453_v39 }
 0xa9d   : > { %v3990_v50 = vmul.f32 0.5, %v3989_v22  ;;  %v4387_v9 = vmul.f32 %v4355_v12, %v9445_v43  ;;  %6497 = vtanh.f32 %v4449_v27  ;;  %v4292_v59 = vmul.f32 0.5, %v9414_v17 }
 0xa9e   : > { %v4205_v60 = vpop.f32.mrf.mxu3  ;;  %v4057_v52 = vmul.f32 %v9259_v14, %v4038_v24  ;;  %v4075_v38 = vadd.f32 %v9271_v61, %v4056_v48  ;;  %v4546_v27 = vmul.f32 %v4514_v44, %v4290_v26  ;;  %v4390_v12 = vmul.f32 %v4358_v37, %v9453_v39 }
 0xa9f   : > { %v3991_v13 = vsub.f32 1.5, %v3990_v50  ;;  %v9463_v58 = vadd.f32 %v4205_v60, %v9398_v49  ;;  %v4256_v25 = vpop.f32.mrf.mxu0  ;;  %v4419_v54 = vadd.f32 %v4387_v9, %v9445_v43  ;;  %v4289_v26 = vmul.f32 0.5, %v9408_v41 }
 0xaa0   : > { %v6494_v47 = vpop.eup %6493  ;;  %v9470_v8 = vadd.f32 %v4256_v25, %v9369_v57  ;;  %v4076_v53 = vadd.f32 %v9271_v61, %v4057_v52  ;;  %v4422_v44 = vadd.f32 %v4390_v12, %v9453_v39  ;;  %vm4003_vm10 = vweird.f32 %v9442_v63 }
 0xaa1   : > { %v3998_v56 = vmul.f32 %v6494_v47, %v9442_v63  ;;  %v3992_v28 = vmul.f32 %v9437_v55, %v3991_v13  ;;  %v4325_v19 = vmul.f32 0.044715, %v9463_v58  ;;  %v4451_v22 = vmul.f32 0.7978846, %v4419_v54 }
 0xaa2   : > { %v4328_v46 = vmul.f32 0.044715, %v9470_v8  ;;  %v6496_v18 = vpop.eup %6495  ;;  %vm4004_vm9 = vweird.f32 %v6494_v47  ;;  %v4086_v45 = vpack.c.bf16 %v4076_v53, %v4075_v38  ;;  %v4291_v54 = vmul.f32 0.5, %v9445_v43 }
 0xaa3   : > { %v3999_v40 = vmul.f32 %v6494_v47, %v3998_v56  ;;  %v4516_v0 = vadd.f32 1.0, %v6496_v18  ;;  %v3996_v50 = vsel %vm9485_vm8, %v9437_v55, %v3992_v28  ;;  %6499 = vtanh.f32 %v4451_v22  ;;  %v6498_v1 = vpop.eup %6497  ;;  %vm4005_vm11 = vmor %vm4003_vm10, %vm4004_vm9 }
 0xaa4   : > { %v4360_v29 = vmul.f32 %v4328_v46, %v9470_v8  ;;  %v4357_v52 = vmul.f32 %v4325_v19, %v9463_v58  ;;  %4224 = vmatmul.bf16.gmra.mxu3 %v4086_v45  ;;  %4273 = vmatmul.bf16.gmra.mxu0 %v4086_v45  ;;  %v4039_v56 = vmul.f32 %v3996_v50, %v9299_v42  ;;  %v4454_v46 = vmul.f32 0.7978846, %v4422_v44 }
 0xaa5   : > { %v4000_v31 = vmul.f32 0.5, %v3999_v40  ;;  %v4548_v62 = vmul.f32 %v4516_v0, %v4292_v59  ;;  %v4513_v18 = vadd.f32 1.0, %v6498_v1 }
 0xaa6   : > { %v4207_v17 = vpop.f32.mrf.mxu3  ;;  %v4392_v48 = vmul.f32 %v4360_v29, %v9470_v8  ;;  %v4389_v42 = vmul.f32 %v4357_v52, %v9463_v58  ;;  %6501 = vtanh.f32 %v4454_v46  ;;  %v4058_v22 = vmul.f32 %v9259_v14, %v4039_v56 }
 0xaa7   : > { %v4001_v60 = vsub.f32 1.5, %v4000_v31  ;;  %v9495_v13 = vadd.f32 %v4207_v17, %v9398_v49  ;;  %v4259_v25 = vpop.f32.mrf.mxu0  ;;  %v4578_v9 = vpack.c.bf16 %v4548_v62, %v4546_v27  ;;  %v4545_v50 = vmul.f32 %v4513_v18, %v4289_v26 }
 0xaa8   : > { %v9500_v55 = vadd.f32 %v4259_v25, %v9369_v57  ;;  %v4424_v41 = vadd.f32 %v4392_v48, %v9470_v8  ;;  %v4421_v24 = vadd.f32 %v4389_v42, %v9463_v58  ;;  %v4294_v18 = vmul.f32 0.5, %v9453_v39 }
 0xaa9   : > { %v4002_v53 = vmul.f32 %v6494_v47, %v4001_v60  ;;  %v4327_v28 = vmul.f32 0.044715, %v9495_v13  ;;  %4782 = vmatmul.bf16.vlgmr.msra.gmra.mxu2 %v4578_v9  ;;  %v6500_v38 = vpop.eup %6499  ;;  %v4077_v9 = vadd.f32 %v9271_v61, %v4058_v22 }
 0xaaa   : > { %v4330_v37 = vmul.f32 0.044715, %v9500_v55  ;;  %v4456_v0 = vmul.f32 0.7978846, %v4424_v41  ;;  %v4515_v43 = vadd.f32 1.0, %v6500_v38 }
 0xaab   : > { %v4006_v40 = vsel %vm4005_vm11, %v6494_v47, %v4002_v53  ;;  %v4359_v19 = vmul.f32 %v4327_v28, %v9495_v13  ;;  %v4453_v60 = vmul.f32 0.7978846, %v4421_v24 }
 0xaac   : > { %v4040_v63 = vmul.f32 %v4006_v40, %v9308_v16  ;;  %v4362_v59 = vmul.f32 %v4330_v37, %v9500_v55  ;;  %6503 = vtanh.f32 %v4456_v0  ;;  %v4547_v17 = vmul.f32 %v4515_v43, %v4291_v54  ;;  %v6502_v56 = vpop.eup %6501 }
 0xaad   : > { %v4391_v29 = vmul.f32 %v4359_v19, %v9495_v13  ;;  %6505 = vtanh.f32 %v4453_v60  ;;  %v4518_v54 = vadd.f32 1.0, %v6502_v56  ;;  %v4296_v40 = vmul.f32 0.5, %v9470_v8 }
 0xaae   : > { %v4210_v31 = vpop.f32.mrf.mxu3  ;;  %v4059_v47 = vmul.f32 %v9259_v14, %v4040_v63  ;;  %v4394_v45 = vmul.f32 %v4362_v59, %v9500_v55  ;;  %v4577_v48 = vpack.c.bf16 %v4547_v17, %v4545_v50 }
 0xaaf   : > { %v9520_v27 = vadd.f32 %v4210_v31, %v9398_v49  ;;  %v4261_v16 = vpop.f32.mrf.mxu0  ;;  %v4423_v62 = vadd.f32 %v4391_v29, %v9495_v13  ;;  %v4550_v0 = vmul.f32 %v4518_v54, %v4294_v18 }
 0xab0   : > { %v4262_v12 = vadd.f32 %v4261_v16, %v9369_v57  ;;  %v4078_v1 = vadd.f32 %v9271_v61, %v4059_v47  ;;  %v4426_v52 = vadd.f32 %v4394_v45, %v9500_v55  ;;  %4733 = vmatmul.bf16.vlgmr.msrb.gmra.mxu1 %v4577_v48  ;;  %v4295_v45 = vmul.f32 0.5, %v9495_v13 }
 0xab1   : > { %v4329_v25 = vmul.f32 0.044715, %v9520_v27  ;;  %v4455_v44 = vmul.f32 0.7978846, %v4423_v62  ;;  %v4293_v62 = vmul.f32 0.5, %v9463_v58  ;;  %v4298_v13 = vmul.f32 0.5, %v9500_v55 }
 0xab2   : > { %v4332_v53 = vmul.f32 0.044715, %v4262_v12  ;;  %v4087_v28 = vpack.c.bf16 %v4078_v1, %v4077_v9  ;;  %v6504_v37 = vpop.eup %6503  ;;  %v4458_v46 = vmul.f32 0.7978846, %v4426_v52 }
 0xab3   : > { %v4361_v26 = vmul.f32 %v4329_v25, %v9520_v27  ;;  %6507 = vtanh.f32 %v4455_v44  ;;  %v4520_v19 = vadd.f32 1.0, %v6504_v37  ;;  %v6506_v22 = vpop.eup %6505 }
 0xab4   : > { %v4364_v41 = vmul.f32 %v4332_v53, %v4262_v12  ;;  %4229 = vmatmul.bf16.gmra.mxu3 %v4087_v28  ;;  %4278 = vmatmul.bf16.gmra.mxu0 %v4087_v28  ;;  %6509 = vtanh.f32 %v4458_v46  ;;  %v4517_v8 = vadd.f32 1.0, %v6506_v22  ;;  %v4300_v28 = vmul.f32 0.5, %v4262_v12  ;;  %v3832_v22 = vpop.xlane.xlu0 %3831 }
 0xab5   : > { %v4393_v42 = vmul.f32 %v4361_v26, %v9520_v27  ;;  %v4552_v43 = vmul.f32 %v4520_v19, %v4296_v40  ;;  %v3849_v55 = vmul.f32 %v3832_v22, %v7544_v32 }
 0xab6   : > { %v4212_v38 = vpop.f32.mrf.mxu3  ;;  %v4396_v63 = vmul.f32 %v4364_v41, %v4262_v12  ;;  %v4549_v52 = vmul.f32 %v4517_v8, %v4293_v62 }
 0xab7   : > { %v4213_v59 = vadd.f32 %v4212_v38, %v9398_v49  ;;  %v4425_v24 = vadd.f32 %v4393_v42, %v9520_v27  ;;  %v4580_v47 = vpack.c.bf16 %v4552_v43, %v4550_v0  ;;  %v4297_v38 = vmul.f32 0.5, %v9520_v27 }
 0xab8   : > { %v4428_v29 = vadd.f32 %v4396_v63, %v4262_v12  ;;  %v3865_v12 = vadd.f32 1e-05, %v3849_v55 }
 0xab9   : > { %v6508_v31 = vpop.eup %6507  ;;  %v4331_v39 = vmul.f32 0.044715, %v4213_v59  ;;  %4787 = vmatmul.bf16.gmra.mxu2 %v4580_v47  ;;  %v4457_v60 = vmul.f32 0.7978846, %v4425_v24  ;;  %v4299_v19 = vmul.f32 0.5, %v4213_v59 }
 0xaba   : > { %v4519_v16 = vadd.f32 1.0, %v6508_v31  ;;  %v4460_v50 = vmul.f32 0.7978846, %v4428_v29  ;;  %v6510_v48 = vpop.eup %6509  ;;  %vm4013_vm13 = vweird.f32 %v3865_v12 }
 0xabb   : > { %v4363_v17 = vmul.f32 %v4331_v39, %v4213_v59  ;;  %v4522_v56 = vadd.f32 1.0, %v6510_v48 }
 0xabc   : > { %v4551_v1 = vmul.f32 %v4519_v16, %v4295_v45  ;;  %6511 = vtanh.f32 %v4460_v50 }
 0xabd   : > { %v4395_v25 = vmul.f32 %v4363_v17, %v4213_v59  ;;  %6513 = vtanh.f32 %v4457_v60  ;;  %v4554_v37 = vmul.f32 %v4522_v56, %v4298_v13 }
 0xabe   : > { %v4579_v9 = vpack.c.bf16 %v4551_v1, %v4549_v52 }
 0xabf   : > { %v4427_v44 = vadd.f32 %v4395_v25, %v4213_v59 }
 0xac0   : > { %4738 = vmatmul.bf16.gmra.mxu1 %v4579_v9 }
 0xac1   : > { %v4459_v53 = vmul.f32 0.7978846, %v4427_v44 }
 0xac2   : > { %v6512_v26 = vpop.eup %6511 }
 0xac3   : > { %v4524_v54 = vadd.f32 1.0, %v6512_v26  ;;  %6515 = vtanh.f32 %v4459_v53  ;;  %v6514_v41 = vpop.eup %6513 }
 0xac4   : > { %v4521_v40 = vadd.f32 1.0, %v6514_v41  ;;  %6517 = vrsqrt.f32 %v3865_v12 }
 0xac5   : > { %v4556_v58 = vmul.f32 %v4524_v54, %v4300_v28 }
 0xac6   : > { %v4553_v0 = vmul.f32 %v4521_v40, %v4297_v38 }
 0xac7   : > { %v4582_v46 = vpack.c.bf16 %v4556_v58, %v4554_v37 }
 0xac9   : > { %v6516_v18 = vpop.eup %6515  ;;  %4792 = vmatmul.bf16.gmra.mxu2 %v4582_v46 }
 0xaca   : > { %v4523_v42 = vadd.f32 1.0, %v6516_v18  ;;  %v6518_v29 = vpop.eup %6517 }
 0xacb   : > { %v4008_v24 = vmul.f32 %v6518_v29, %v3865_v12  ;;  %vm4014_vm12 = vweird.f32 %v6518_v29 }
 0xacc   : > { %v4555_v63 = vmul.f32 %v4523_v42, %v4299_v19  ;;  %vm4015_vm14 = vmor %vm4013_vm13, %vm4014_vm12 }
 0xacd   : > { %v4009_v31 = vmul.f32 %v6518_v29, %v4008_v24 }
 0xace   : > { %v4581_v43 = vpack.c.bf16 %v4555_v63, %v4553_v0 }
 0xacf   : > { %v4010_v59 = vmul.f32 0.5, %v4009_v31 }
 0xad0   : > { %4743 = vmatmul.bf16.gmra.mxu1 %v4581_v43 }
 0xad1   : > { %v4011_v45 = vsub.f32 1.5, %v4010_v59 }
 0xad3   : > { %v4012_v16 = vmul.f32 %v6518_v29, %v4011_v45 }
 0xad5   : > { %v4016_v62 = vsel %vm4015_vm14, %v6518_v29, %v4012_v16 }
 0xad6   : > { %v4041_v60 = vmul.f32 %v4016_v62, %v9317_v3 }
 0xad8   : > { %v4060_v53 = vmul.f32 %v9259_v14, %v4041_v60 }
 0xada   : > { %v4079_v41 = vadd.f32 %v9271_v61, %v4060_v53 }
 0xaef   : > { %v3834_v39 = vpop.xlane.xlu1 %3833 }
 0xaf0   : > { %v3850_v47 = vmul.f32 %v3834_v39, %v7544_v32 }
 0xaf2   : > { %v3866_v8 = vadd.f32 1e-05, %v3850_v47 }
 0xaf4   : > { %6519 = vrsqrt.f32 %v3866_v8  ;;  %vm4023_vm0 = vweird.f32 %v3866_v8 }
 0xafa   : > { %v6520_v27 = vpop.eup %6519 }
 0xafb   : > { %v4018_v50 = vmul.f32 %v6520_v27, %v3866_v8  ;;  %vm4024_vm15 = vweird.f32 %v6520_v27 }
 0xafc   : > { %vm4025_vm1 = vmor %vm4023_vm0, %vm4024_vm15 }
 0xafd   : > { %v4019_v17 = vmul.f32 %v6520_v27, %v4018_v50 }
 0xaff   : > { %v4020_v1 = vmul.f32 0.5, %v4019_v17 }
 0xb01   : > { %v4021_v52 = vsub.f32 1.5, %v4020_v1  ;;  %v4264_v25 = vpop.f32.mrf.mxu0 }
 0xb02   : > { %v4265_v48 = vadd.f32 %v4264_v25, %v9369_v57 }
 0xb03   : > { %v4022_v9 = vmul.f32 %v6520_v27, %v4021_v52 }
 0xb04   : > { %v4334_v44 = vmul.f32 0.044715, %v4265_v48 }
 0xb05   : > { %v4026_v56 = vsel %vm4025_vm1, %v6520_v27, %v4022_v9 }
 0xb06   : > { %v4042_v26 = vmul.f32 %v4026_v56, %v9342_v11  ;;  %v4366_v13 = vmul.f32 %v4334_v44, %v4265_v48 }
 0xb07   : > { %v4215_v28 = vpop.f32.mrf.mxu3 }
 0xb08   : > { %v9545_v54 = vadd.f32 %v4215_v28, %v9398_v49  ;;  %v4061_v3 = vmul.f32 %v9259_v14, %v4042_v26  ;;  %v4398_v37 = vmul.f32 %v4366_v13, %v4265_v48  ;;  %v4302_v26 = vmul.f32 0.5, %v4265_v48 }
 0xb09   : > { %v4266_v58 = vpop.f32.mrf.mxu0 }
 0xb0a   : > { %v4333_v46 = vmul.f32 0.044715, %v9545_v54  ;;  %v4267_v18 = vadd.f32 %v4266_v58, %v9369_v57  ;;  %v4080_v40 = vadd.f32 %v9271_v61, %v4061_v3  ;;  %v4430_v19 = vadd.f32 %v4398_v37, %v4265_v48 }
 0xb0c   : > { %v4365_v11 = vmul.f32 %v4333_v46, %v9545_v54  ;;  %v4336_v42 = vmul.f32 0.044715, %v4267_v18  ;;  %v4088_v38 = vpack.c.bf16 %v4080_v40, %v4079_v41  ;;  %v4462_v0 = vmul.f32 0.7978846, %v4430_v19 }
 0xb0d   : > { %v4304_v13 = vmul.f32 0.5, %v4267_v18 }
 0xb0e   : > { %v4368_v63 = vmul.f32 %v4336_v42, %v4267_v18  ;;  %4234 = vmatmul.bf16.gmra.mxu3 %v4088_v38  ;;  %4283 = vmatmul.bf16.gmra.mxu0 %v4088_v38  ;;  %v4397_v14 = vmul.f32 %v4365_v11, %v9545_v54  ;;  %6521 = vtanh.f32 %v4462_v0 }
 0xb0f   : > { %v4217_v43 = vpop.f32.mrf.mxu3 }
 0xb10   : > { %v4218_v22 = vadd.f32 %v4217_v43, %v9398_v49  ;;  %v4400_v55 = vmul.f32 %v4368_v63, %v4267_v18  ;;  %v4429_v12 = vadd.f32 %v4397_v14, %v9545_v54 }
 0xb11   : > { %v4269_v61 = vpop.f32.mrf.mxu0 }
 0xb12   : > { %v4335_v29 = vmul.f32 0.044715, %v4218_v22  ;;  %v4432_v24 = vadd.f32 %v4400_v55, %v4267_v18  ;;  %v9557_v39 = vadd.f32 %v4269_v61, %v9369_v57  ;;  %v4461_v59 = vmul.f32 0.7978846, %v4429_v12 }
 0xb13   : > { %v4301_v18 = vmul.f32 0.5, %v9545_v54  ;;  %v4303_v55 = vmul.f32 0.5, %v4218_v22 }
 0xb14   : > { %v4367_v31 = vmul.f32 %v4335_v29, %v4218_v22  ;;  %v4464_v47 = vmul.f32 0.7978846, %v4432_v24  ;;  %v4338_v8 = vmul.f32 0.044715, %v9557_v39  ;;  %v6522_v27 = vpop.eup %6521 }
 0xb15   : > { %v4526_v25 = vadd.f32 1.0, %v6522_v27 }
 0xb16   : > { %6523 = vtanh.f32 %v4464_v47  ;;  %v4399_v45 = vmul.f32 %v4367_v31, %v4218_v22  ;;  %v4370_v16 = vmul.f32 %v4338_v8, %v9557_v39 }
 0xb17   : > { %6525 = vtanh.f32 %v4461_v59  ;;  %v4220_v17 = vpop.f32.mrf.mxu3  ;;  %v4558_v41 = vmul.f32 %v4526_v25, %v4302_v26 }
 0xb18   : > { %v4431_v50 = vadd.f32 %v4399_v45, %v4218_v22  ;;  %v9562_v62 = vadd.f32 %v4220_v17, %v9398_v49  ;;  %v4402_v60 = vmul.f32 %v4370_v16, %v9557_v39 }
 0xb19   : > { %v4271_v52 = vpop.f32.mrf.mxu0 }
 0xb1a   : > { %v4463_v1 = vmul.f32 0.7978846, %v4431_v50  ;;  %v4337_v44 = vmul.f32 0.044715, %v9562_v62  ;;  %v4272_v56 = vadd.f32 %v4271_v52, %v9369_v57  ;;  %v4434_v53 = vadd.f32 %v4402_v60, %v9557_v39 }
 0xb1c   : > { %v6524_v9 = vpop.eup %6523  ;;  %6527 = vtanh.f32 %v4463_v1  ;;  %v4369_v37 = vmul.f32 %v4337_v44, %v9562_v62  ;;  %v4340_v58 = vmul.f32 0.044715, %v4272_v56  ;;  %v4466_v40 = vmul.f32 0.7978846, %v4434_v53 }
 0xb1d   : > { %v4528_v28 = vadd.f32 1.0, %v6524_v9  ;;  %v6526_v3 = vpop.eup %6525 }
 0xb1e   : > { %v4372_v19 = vmul.f32 %v4340_v58, %v4272_v56  ;;  %v4401_v11 = vmul.f32 %v4369_v37, %v9562_v62  ;;  %v4525_v63 = vadd.f32 1.0, %v6526_v3  ;;  %6529 = vtanh.f32 %v4466_v40 }
 0xb1f   : > { %v4560_v46 = vmul.f32 %v4528_v28, %v4304_v13  ;;  %v4222_v42 = vpop.f32.mrf.mxu3  ;;  %v9588_v28 = vld [vmem:[%s823_s14] ss:$0 sm:$0xff] }
 0xb20   : > { %v4223_v14 = vadd.f32 %v4222_v42, %v9398_v49  ;;  %v4404_v43 = vmul.f32 %v4372_v19, %v4272_v56  ;;  %v4433_v48 = vadd.f32 %v4401_v11, %v9562_v62  ;;  %v4557_v47 = vmul.f32 %v4525_v63, %v4301_v18 }
 0xb21   : > { %v4584_v38 = vpack.c.bf16 %v4560_v46, %v4558_v41  ;;  %v4274_v24 = vpop.f32.mrf.mxu0  ;;  %v4306_v41 = vmul.f32 0.5, %v9557_v39  ;;  %v4308_v11 = vmul.f32 0.5, %v4272_v56 }
 0xb22   : > { %v6528_v0 = vpop.eup %6527  ;;  %v4339_v29 = vmul.f32 0.044715, %v4223_v14  ;;  %v4436_v61 = vadd.f32 %v4404_v43, %v4272_v56  ;;  %v9574_v31 = vadd.f32 %v4274_v24, %v9369_v57  ;;  %v4465_v8 = vmul.f32 0.7978846, %v4433_v48 }
 0xb23   : > { %4797 = vmatmul.bf16.gmra.mxu2 %v4584_v38  ;;  %v4527_v12 = vadd.f32 1.0, %v6528_v0 }
 0xb24   : > { %v4371_v45 = vmul.f32 %v4339_v29, %v4223_v14  ;;  %v4468_v27 = vmul.f32 0.7978846, %v4436_v61  ;;  %v4342_v16 = vmul.f32 0.044715, %v9574_v31  ;;  %v6530_v22 = vpop.eup %6529 }
 0xb25   : > { %v4559_v59 = vmul.f32 %v4527_v12, %v4303_v55  ;;  %v4530_v44 = vadd.f32 1.0, %v6530_v22 }
 0xb26   : > { %6531 = vtanh.f32 %v4468_v27  ;;  %v4403_v54 = vmul.f32 %v4371_v45, %v4223_v14  ;;  %v4374_v17 = vmul.f32 %v4342_v16, %v9574_v31  ;;  %v4307_v45 = vmul.f32 0.5, %v4223_v14 }
 0xb27   : > { %v4583_v50 = vpack.c.bf16 %v4559_v59, %v4557_v47  ;;  %6533 = vtanh.f32 %v4465_v8  ;;  %v4225_v1 = vpop.f32.mrf.mxu3  ;;  %v4562_v63 = vmul.f32 %v4530_v44, %v4306_v41  ;;  %v4305_v8 = vmul.f32 0.5, %v9562_v62 }
 0xb28   : > { %v4435_v60 = vadd.f32 %v4403_v54, %v4223_v14  ;;  %v9579_v52 = vadd.f32 %v4225_v1, %v9398_v49  ;;  %v4406_v25 = vmul.f32 %v4374_v17, %v9574_v31 }
 0xb29   : > { %4748 = vmatmul.bf16.gmra.mxu1 %v4583_v50  ;;  %v4276_v9 = vpop.f32.mrf.mxu0 }
 0xb2a   : > { %v4467_v53 = vmul.f32 0.7978846, %v4435_v60  ;;  %v4341_v26 = vmul.f32 0.044715, %v9579_v52  ;;  %v9584_v13 = vadd.f32 %v4276_v9, %v9369_v57  ;;  %v4438_v37 = vadd.f32 %v4406_v25, %v9574_v31 }
 0xb2c   : > { %v4783_v3 = vpop.f32.mrf.mxu2  ;;  %v6532_v58 = vpop.eup %6531  ;;  %6535 = vtanh.f32 %v4467_v53  ;;  %v4373_v40 = vmul.f32 %v4341_v26, %v9579_v52  ;;  %v4344_v19 = vmul.f32 0.044715, %v9584_v13  ;;  %v4470_v0 = vmul.f32 0.7978846, %v4438_v37 }
 0xb2d   : > { %v6534_v46 = vpop.eup %6533  ;;  %v4532_v42 = vadd.f32 1.0, %v6532_v58  ;;  %v4734_v38 = vpop.f32.mrf.mxu1 }
 0xb2e   : > { %v4376_v43 = vmul.f32 %v4344_v19, %v9584_v13  ;;  %v4735_v48 = vadd.f32 %v9588_v28, %v4734_v38  ;;  %v4405_v55 = vmul.f32 %v4373_v40, %v9579_v52  ;;  %v4529_v39 = vadd.f32 1.0, %v6534_v46 }
 0xb2f   : > { %v4564_v18 = vmul.f32 %v4532_v42, %v4308_v11  ;;  %v4227_v12 = vpop.f32.mrf.mxu3  ;;  %6537 = vtanh.f32 %v4470_v0 }
 0xb30   : > { %v4784_v29 = vadd.f32 %v4783_v3, %v4735_v48  ;;  %v9598_v24 = vadd.f32 %v4227_v12, %v9398_v49  ;;  %v4408_v56 = vmul.f32 %v4376_v43, %v9584_v13  ;;  %v4437_v27 = vadd.f32 %v4405_v55, %v9579_v52 }
 0xb31   : > { %v4586_v61 = vpack.c.bf16 %v4564_v18, %v4562_v63  ;;  %v4279_v59 = vpop.f32.mrf.mxu0  ;;  %v4561_v1 = vmul.f32 %v4529_v39, %v4305_v8 }
 0xb32   : > { %v6536_v47 = vpop.eup %6535  ;;  %v9604_v16 = vadd.f32 %v4784_v29, %v9075_v5  ;;  %v4343_v50 = vmul.f32 0.044715, %v9598_v24  ;;  %v9608_v54 = vadd.f32 %v4279_v59, %v9369_v57  ;;  %v4440_v60 = vadd.f32 %v4408_v56, %v9584_v13 }
 0xb33   : > { %4802 = vmatmul.bf16.gmra.mxu2 %v4586_v61  ;;  %v4531_v17 = vadd.f32 1.0, %v6536_v47  ;;  %v4469_v5 = vmul.f32 0.7978846, %v4437_v27  ;;  %v4310_v56 = vmul.f32 0.5, %v9574_v31 }
 0xb34   : > { %v4785_v22 = vpop.f32.mrf.mxu2  ;;  %4839 = vst [vmem:[#allocation2 + $0x30] sm:$0xff] %v9604_v16  ;;  %v4375_v62 = vmul.f32 %v4343_v50, %v9598_v24  ;;  %v4346_v14 = vmul.f32 0.044715, %v9608_v54  ;;  %v4472_v44 = vmul.f32 0.7978846, %v4440_v60 }
 0xb35   : > { %v4563_v25 = vmul.f32 %v4531_v17, %v4307_v45  ;;  %v4736_v9 = vpop.f32.mrf.mxu1  ;;  %v6538_v37 = vpop.eup %6537  ;;  %v4312_v45 = vmul.f32 0.5, %v9584_v13 }
 0xb36   : > { %v4378_v53 = vmul.f32 %v4346_v14, %v9608_v54  ;;  %v4737_v26 = vadd.f32 %v9588_v28, %v4736_v9  ;;  %6539 = vtanh.f32 %v4472_v44  ;;  %v4407_v41 = vmul.f32 %v4375_v62, %v9598_v24 }
 0xb37   : > { %v4585_v3 = vpack.c.bf16 %v4563_v25, %v4561_v1  ;;  %v4230_v58 = vpop.f32.mrf.mxu3  ;;  %6541 = vtanh.f32 %v4469_v5  ;;  %v4534_v18 = vadd.f32 1.0, %v6538_v37 }
 0xb38   : > { %v4786_v46 = vadd.f32 %v4785_v22, %v4737_v26  ;;  %v9618_v40 = vadd.f32 %v4230_v58, %v9398_v49  ;;  %v4410_v19 = vmul.f32 %v4378_v53, %v9608_v54  ;;  %v4439_v42 = vadd.f32 %v4407_v41, %v9598_v24 }
 0xb39   : > { %4753 = vmatmul.bf16.gmra.mxu1 %v4585_v3  ;;  %v4281_v11 = vpop.f32.mrf.mxu0  ;;  %v4566_v22 = vmul.f32 %v4534_v18, %v4310_v56  ;;  %v4309_v3 = vmul.f32 0.5, %v9579_v52  ;;  %v4311_v58 = vmul.f32 0.5, %v9598_v24 }
 0xb3a   : > { %v9623_v38 = vadd.f32 %v4786_v46, %v9081_v2  ;;  %v4345_v63 = vmul.f32 0.044715, %v9618_v40  ;;  %v4282_v0 = vadd.f32 %v4281_v11, %v9369_v57  ;;  %v4442_v43 = vadd.f32 %v4410_v19, %v9608_v54 }
 0xb3b   : > { %v4471_v55 = vmul.f32 0.7978846, %v4439_v42 }
 0xb3c   : > { %v4788_v48 = vpop.f32.mrf.mxu2  ;;  %4840 = vst [vmem:[#allocation2] sm:$0xff] %v9623_v38  ;;  %v4377_v12 = vmul.f32 %v4345_v63, %v9618_v40  ;;  %v4348_v39 = vmul.f32 0.044715, %v4282_v0  ;;  %v6540_v29 = vpop.eup %6539  ;;  %v4474_v2 = vmul.f32 0.7978846, %v4442_v43 }
 0xb3d   : > { %v4739_v61 = vpop.f32.mrf.mxu1  ;;  %6543 = vtanh.f32 %v4471_v55  ;;  %v6542_v47 = vpop.eup %6541  ;;  %v4536_v27 = vadd.f32 1.0, %v6540_v29 }
 0xb3e   : > { %v4380_v59 = vmul.f32 %v4348_v39, %v4282_v0  ;;  %v4740_v8 = vadd.f32 %v9588_v28, %v4739_v61  ;;  %v4409_v17 = vmul.f32 %v4377_v12, %v9618_v40  ;;  %v4533_v25 = vadd.f32 1.0, %v6542_v47 }
 0xb3f   : > { %v4232_v50 = vpop.f32.mrf.mxu3  ;;  %v4568_v62 = vmul.f32 %v4536_v27, %v4312_v45  ;;  %6545 = vtanh.f32 %v4474_v2  ;;  %v4314_v2 = vmul.f32 0.5, %v9608_v54  ;;  %v4316_v47 = vmul.f32 0.5, %v4282_v0 }
 0xb40   : > { %v4789_v1 = vadd.f32 %v4788_v48, %v4740_v8  ;;  %v4233_v60 = vadd.f32 %v4232_v50, %v9398_v49  ;;  %v4412_v14 = vmul.f32 %v4380_v59, %v4282_v0  ;;  %v4441_v31 = vadd.f32 %v4409_v17, %v9618_v40 }
 0xb41   : > { %v4588_v44 = vpack.c.bf16 %v4568_v62, %v4566_v22  ;;  %v4565_v42 = vmul.f32 %v4533_v25, %v4309_v3  ;;  %v4313_v54 = vmul.f32 0.5, %v9618_v40 }
 0xb42   : > { %v9637_v5 = vadd.f32 %v4789_v1, %v9087_v4  ;;  %v4347_v9 = vmul.f32 0.044715, %v4233_v60  ;;  %v4444_v13 = vadd.f32 %v4412_v14, %v4282_v0  ;;  %v4473_v11 = vmul.f32 0.7978846, %v4441_v31 }
 0xb43   : > { %v6544_v53 = vpop.eup %6543  ;;  %4807 = vmatmul.bf16.gmra.mxu2 %v4588_v44  ;;  %v4315_v0 = vmul.f32 0.5, %v4233_v60 }
 0xb44   : > { %v4790_v26 = vpop.f32.mrf.mxu2  ;;  %4841 = vst [vmem:[#allocation2 + $0x58] sm:$0xff] %v9637_v5  ;;  %v4379_v37 = vmul.f32 %v4347_v9, %v4233_v60  ;;  %v4535_v41 = vadd.f32 1.0, %v6544_v53  ;;  %v4476_v46 = vmul.f32 0.7978846, %v4444_v13 }
 0xb45   : > { %v4741_v19 = vpop.f32.mrf.mxu1  ;;  %v6546_v43 = vpop.eup %6545 }
 0xb46   : > { %v4742_v4 = vadd.f32 %v9588_v28, %v4741_v19  ;;  %v4567_v63 = vmul.f32 %v4535_v41, %v4311_v58  ;;  %6547 = vtanh.f32 %v4476_v46  ;;  %v4411_v48 = vmul.f32 %v4379_v37, %v4233_v60 }
 0xb47   : > { %6549 = vtanh.f32 %v4473_v11  ;;  %v4538_v24 = vadd.f32 1.0, %v6546_v43 }
 0xb48   : > { %v4791_v18 = vadd.f32 %v4790_v26, %v4742_v4  ;;  %v4587_v55 = vpack.c.bf16 %v4567_v63, %v4565_v42  ;;  %v4443_v52 = vadd.f32 %v4411_v48, %v4233_v60 }
 0xb49   : > { %v4570_v27 = vmul.f32 %v4538_v24, %v4314_v2 }
 0xb4a   : > { %v9644_v12 = vadd.f32 %v4791_v18, %v9093_v6  ;;  %4758 = vmatmul.bf16.gmra.mxu1 %v4587_v55  ;;  %v4475_v39 = vmul.f32 0.7978846, %v4443_v52 }
 0xb4c   : > { %v6548_v29 = vpop.eup %6547  ;;  %4842 = vst [vmem:[#allocation2 + $0x18] sm:$0xff] %v9644_v12  ;;  %v4793_v56 = vpop.f32.mrf.mxu2  ;;  %6551 = vtanh.f32 %v4475_v39 }
 0xb4d   : > { %v4744_v61 = vpop.f32.mrf.mxu1  ;;  %v4540_v59 = vadd.f32 1.0, %v6548_v29  ;;  %v6550_v45 = vpop.eup %6549 }
 0xb4e   : > { %v4745_v8 = vadd.f32 %v9588_v28, %v4744_v61  ;;  %v4537_v1 = vadd.f32 1.0, %v6550_v45 }
 0xb4f   : > { %v4572_v50 = vmul.f32 %v4540_v59, %v4316_v47 }
 0xb50   : > { %v4794_v6 = vadd.f32 %v4793_v56, %v4745_v8  ;;  %v4569_v9 = vmul.f32 %v4537_v1, %v4313_v54 }
 0xb51   : > { %v4590_v22 = vpack.c.bf16 %v4572_v50, %v4570_v27 }
 0xb52   : > { %v9650_v17 = vadd.f32 %v4794_v6, %v9099_v51  ;;  %v6552_v62 = vpop.eup %6551 }
 0xb53   : > { %4812 = vmatmul.bf16.gmra.mxu2 %v4590_v22  ;;  %v4539_v14 = vadd.f32 1.0, %v6552_v62 }
 0xb54   : > { %4843 = vst [vmem:[#allocation2 + $0x50] sm:$0xff] %v9650_v17  ;;  %v4795_v13 = vpop.f32.mrf.mxu2 }
 0xb55   : > { %v4746_v25 = vpop.f32.mrf.mxu1  ;;  %v4571_v44 = vmul.f32 %v4539_v14, %v4315_v0 }
 0xb56   : > { %v4747_v31 = vadd.f32 %v9588_v28, %v4746_v25 }
 0xb57   : > { %v4589_v26 = vpack.c.bf16 %v4571_v44, %v4569_v9 }
 0xb58   : > { %v4796_v53 = vadd.f32 %v4795_v13, %v4747_v31 }
 0xb5a   : > { %v9656_v51 = vadd.f32 %v4796_v53, %v9105_v15  ;;  %4763 = vmatmul.bf16.gmra.mxu1 %v4589_v26 }
 0xb5c   : > { %4844 = vst [vmem:[#allocation2 + $0x68] sm:$0xff] %v9656_v51 }
 0xb8b   : > { %v4284_v3 = vpop.f32.mrf.mxu0 }
 0xb8c   : > { %v4285_v37 = vadd.f32 %v4284_v3, %v9369_v57 }
 0xb8e   : > { %v4350_v40 = vmul.f32 0.044715, %v4285_v37  ;;  %v4318_v1 = vmul.f32 0.5, %v4285_v37 }
 0xb90   : > { %v4382_v60 = vmul.f32 %v4350_v40, %v4285_v37 }
 0xb91   : > { %v4235_v58 = vpop.f32.mrf.mxu3 }
 0xb92   : > { %v4236_v41 = vadd.f32 %v4235_v58, %v9398_v49  ;;  %v4414_v46 = vmul.f32 %v4382_v60, %v4285_v37 }
 0xb93   : > { %v4286_v19 = vpop.f32.mrf.mxu0 }
 0xb94   : > { %v4349_v11 = vmul.f32 0.044715, %v4236_v41  ;;  %v4287_v4 = vadd.f32 %v4286_v19, %v9369_v57  ;;  %v4446_v42 = vadd.f32 %v4414_v46, %v4285_v37  ;;  %v4317_v26 = vmul.f32 0.5, %v4236_v41 }
 0xb96   : > { %v4381_v63 = vmul.f32 %v4349_v11, %v4236_v41  ;;  %v4352_v15 = vmul.f32 0.044715, %v4287_v4  ;;  %v4478_v48 = vmul.f32 0.7978846, %v4446_v42  ;;  %v4320_v62 = vmul.f32 0.5, %v4287_v4 }
 0xb98   : > { %v4384_v43 = vmul.f32 %v4352_v15, %v4287_v4  ;;  %v4413_v18 = vmul.f32 %v4381_v63, %v4236_v41  ;;  %6553 = vtanh.f32 %v4478_v48 }
 0xb99   : > { %v4237_v55 = vpop.f32.mrf.mxu3 }
 0xb9a   : > { %v4238_v52 = vadd.f32 %v4237_v55, %v9398_v49  ;;  %v4416_v24 = vmul.f32 %v4384_v43, %v4287_v4  ;;  %v4445_v39 = vadd.f32 %v4413_v18, %v4236_v41 }
 0xb9c   : > { %v4351_v29 = vmul.f32 0.044715, %v4238_v52  ;;  %v4448_v61 = vadd.f32 %v4416_v24, %v4287_v4  ;;  %v4477_v47 = vmul.f32 0.7978846, %v4445_v39  ;;  %v4319_v3 = vmul.f32 0.5, %v4238_v52 }
 0xb9e   : > { %v4383_v56 = vmul.f32 %v4351_v29, %v4238_v52  ;;  %v4480_v2 = vmul.f32 0.7978846, %v4448_v61  ;;  %v6554_v57 = vpop.eup %6553 }
 0xb9f   : > { %v4542_v27 = vadd.f32 1.0, %v6554_v57 }
 0xba0   : > { %6555 = vtanh.f32 %v4480_v2  ;;  %v4415_v59 = vmul.f32 %v4383_v56, %v4238_v52 }
 0xba1   : > { %6557 = vtanh.f32 %v4477_v47  ;;  %v4574_v25 = vmul.f32 %v4542_v27, %v4318_v1 }
 0xba2   : > { %v4447_v8 = vadd.f32 %v4415_v59, %v4238_v52 }
 0xba4   : > { %v4479_v45 = vmul.f32 0.7978846, %v4447_v8 }
 0xba6   : > { %v6556_v50 = vpop.eup %6555  ;;  %v4749_v6 = vpop.f32.mrf.mxu1  ;;  %6559 = vtanh.f32 %v4479_v45 }
 0xba7   : > { %v4798_v22 = vpop.f32.mrf.mxu2  ;;  %v4750_v49 = vadd.f32 %v9588_v28, %v4749_v6  ;;  %v4544_v54 = vadd.f32 1.0, %v6556_v50  ;;  %v6558_v0 = vpop.eup %6557 }
 0xba8   : > { %v4541_v13 = vadd.f32 1.0, %v6558_v0 }
 0xba9   : > { %v4799_v14 = vadd.f32 %v4798_v22, %v4750_v49  ;;  %v4576_v31 = vmul.f32 %v4544_v54, %v4320_v62 }
 0xbaa   : > { %v4573_v46 = vmul.f32 %v4541_v13, %v4317_v26 }
 0xbab   : > { %v9665_v9 = vadd.f32 %v4799_v14, %v9109_v7  ;;  %v4592_v44 = vpack.c.bf16 %v4576_v31, %v4574_v25 }
 0xbac   : > { %v6560_v53 = vpop.eup %6559 }
 0xbad   : > { %4845 = vst [vmem:[#allocation2 + $0x8] sm:$0xff] %v9665_v9  ;;  %4817 = vmatmul.bf16.gmra.mxu2 %v4592_v44  ;;  %v4543_v40 = vadd.f32 1.0, %v6560_v53 }
 0xbae   : > { %v4751_v60 = vpop.f32.mrf.mxu1 }
 0xbaf   : > { %v4800_v37 = vpop.f32.mrf.mxu2  ;;  %v4752_v58 = vadd.f32 %v9588_v28, %v4751_v60  ;;  %v4575_v19 = vmul.f32 %v4543_v40, %v4319_v3 }
 0xbb1   : > { %v4801_v11 = vadd.f32 %v4800_v37, %v4752_v58  ;;  %v4591_v4 = vpack.c.bf16 %v4575_v19, %v4573_v46 }
 0xbb3   : > { %v9670_v7 = vadd.f32 %v4801_v11, %v9129_v36  ;;  %4768 = vmatmul.bf16.gmra.mxu1 %v4591_v4 }
 0xbb5   : > { %4846 = vst [vmem:[#allocation2 + $0x48] sm:$0xff] %v9670_v7 }
 0xbb6   : > { %v4754_v42 = vpop.f32.mrf.mxu1 }
 0xbb7   : > { %v4803_v63 = vpop.f32.mrf.mxu2  ;;  %v4755_v41 = vadd.f32 %v9588_v28, %v4754_v42 }
 0xbb9   : > { %v4804_v15 = vadd.f32 %v4803_v63, %v4755_v41 }
 0xbbb   : > { %v9675_v43 = vadd.f32 %v4804_v15, %v9141_v35 }
 0xbbd   : > { %4847 = vst [vmem:[#allocation2 + $0x40] sm:$0xff] %v9675_v43 }
 0xbbe   : > { %v4756_v48 = vpop.f32.mrf.mxu1 }
 0xbbf   : > { %v4805_v18 = vpop.f32.mrf.mxu2  ;;  %v4757_v55 = vadd.f32 %v9588_v28, %v4756_v48 }
 0xbc1   : > { %v4806_v52 = vadd.f32 %v4805_v18, %v4757_v55 }
 0xbc3   : > { %v9680_v36 = vadd.f32 %v4806_v52, %v9153_v20 }
 0xbc5   : > { %4848 = vst [vmem:[#allocation2 + $0x20] sm:$0xff] %v9680_v36 }
 0xbc7   : > { %v4759_v24 = vpop.f32.mrf.mxu1  ;;  %v4808_v39 = vpop.f32.mrf.mxu2 }
 0xbc8   : > { %v4760_v29 = vadd.f32 %v9588_v28, %v4759_v24 }
 0xbca   : > { %v4809_v61 = vadd.f32 %v4808_v39, %v4760_v29 }
 0xbcc   : > { %v9685_v35 = vadd.f32 %v4809_v61, %v9165_v30 }
 0xbce   : > { %4849 = vst [vmem:[#allocation2 + $0x10] sm:$0xff] %v9685_v35 }
 0xbcf   : > { %v4761_v56 = vpop.f32.mrf.mxu1  ;;  %v4810_v2 = vpop.f32.mrf.mxu2 }
 0xbd0   : > { %v4762_v47 = vadd.f32 %v9588_v28, %v4761_v56 }
 0xbd2   : > { %v4811_v59 = vadd.f32 %v4810_v2, %v4762_v47 }
 0xbd4   : > { %v9690_v20 = vadd.f32 %v4811_v59, %v9177_v21 }
 0xbd6   : > { %4850 = vst [vmem:[#allocation2 + $0x38] sm:$0xff] %v9690_v20 }
 0xbd7   : > { %v4764_v57 = vpop.f32.mrf.mxu1  ;;  %v4813_v8 = vpop.f32.mrf.mxu2 }
 0xbd8   : > { %v4765_v45 = vadd.f32 %v9588_v28, %v4764_v57 }
 0xbda   : > { %v4814_v27 = vadd.f32 %v4813_v8, %v4765_v45 }
 0xbdc   : > { %v9695_v30 = vadd.f32 %v4814_v27, %v9189_v33 }
 0xbde   : > { %4851 = vst [vmem:[#allocation2 + $0x60] sm:$0xff] %v9695_v30 }
 0xbdf   : > { %v4766_v50 = vpop.f32.mrf.mxu1  ;;  %v4815_v22 = vpop.f32.mrf.mxu2 }
 0xbe0   : > { %v4767_v6 = vadd.f32 %v9588_v28, %v4766_v50 }
 0xbe2   : > { %v4816_v49 = vadd.f32 %v4815_v22, %v4767_v6 }
 0xbe4   : > { %v9700_v21 = vadd.f32 %v4816_v49, %v9195_v34 }
 0xbe6   : > { %4852 = vst [vmem:[#allocation2 + $0x70] sm:$0xff] %v9700_v21 }
 0xc30   : > { %v4769_v1 = vpop.f32.mrf.mxu1  ;;  %v4818_v62 = vpop.f32.mrf.mxu2 }
 0xc31   : > { %v4770_v54 = vadd.f32 %v9588_v28, %v4769_v1 }
 0xc33   : > { %v4819_v0 = vadd.f32 %v4818_v62, %v4770_v54 }
 0xc35   : > { %v9705_v33 = vadd.f32 %v4819_v0, %v9199_v10 }
 0xc37   : > { %4853 = vst [vmem:[#allocation2 + $0x78] sm:$0xff] %v9705_v33 }
 0xc38   : > { %v4771_v14 = vpop.f32.mrf.mxu1  ;;  %v4820_v31 = vpop.f32.mrf.mxu2 }
 0xc39   : > { %v4772_v25 = vadd.f32 %v9588_v28, %v4771_v14 }
 0xc3b   : > { %v4821_v44 = vadd.f32 %v4820_v31, %v4772_v25  ;;  %4858 = sbr.rel (%p5906_p8) target bundleno = 3452 (0xd7c), region = 132 }
 0xc3d   : > { %v9710_v34 = vadd.f32 %v4821_v44, %v9267_v23 }
 0xc3f   : > { %4854 = vst [vmem:[#allocation2 + $0x28] sm:$0xff] %v9710_v34 }
 0xc40   : > { %4869 = vadd.xlane.f32.xlu2 %v9650_v17  ;;  %4865 = vadd.xlane.f32.xlu1 %v9637_v5 }
 0xc41   : > { %4861 = vadd.xlane.f32.xlu0 %v9604_v16 }
 0xc48   : > { %4871 = vadd.xlane.f32.xlu2 %v9656_v51  ;;  %4867 = vadd.xlane.f32.xlu1 %v9644_v12 }
 0xc49   : > { %4863 = vadd.xlane.f32.xlu0 %v9623_v38 }
 0xc50   : > { %4877 = vadd.xlane.f32.xlu2 %v9675_v43  ;;  %4875 = vadd.xlane.f32.xlu1 %v9670_v7 }
 0xc51   : > { %4873 = vadd.xlane.f32.xlu0 %v9665_v9 }
 0xc58   : > { %4883 = vadd.xlane.f32.xlu2 %v9690_v20  ;;  %4881 = vadd.xlane.f32.xlu1 %v9685_v35 }
 0xc59   : > { %4879 = vadd.xlane.f32.xlu0 %v9680_v36 }
 0xc60   : > { %4889 = vadd.xlane.f32.xlu2 %v9705_v33  ;;  %4887 = vadd.xlane.f32.xlu1 %v9700_v21 }
 0xc61   : > { %4885 = vadd.xlane.f32.xlu0 %v9695_v30 }
 0xc69   : > { %4891 = vadd.xlane.f32.xlu0 %v9710_v34 }
 0xcb3   : > { %v4870_v10 = vpop.xlane.xlu2 %4869  ;;  %v4866_v23 = vpop.xlane.xlu1 %4865 }
 0xcb4   : > { %v4895_v28 = vmul.f32 %v4866_v23, %v7544_v32  ;;  %v4862_v13 = vpop.xlane.xlu0 %4861  ;;  %v4897_v15 = vmul.f32 %v4870_v10, %v7544_v32 }
 0xcb5   : > { %v4893_v53 = vmul.f32 %v4862_v13, %v7544_v32 }
 0xcb6   : > { %v9733_v26 = vsub.f32 %v9637_v5, %v4895_v28  ;;  %v9763_v55 = vsub.f32 %v9650_v17, %v4897_v15 }
 0xcb7   : > { %v9736_v3 = vsub.f32 %v9604_v16, %v4893_v53 }
 0xcb8   : > { %v4927_v40 = vmul.f32 %v9733_v26, %v9733_v26  ;;  %v4929_v56 = vmul.f32 %v9763_v55, %v9763_v55 }
 0xcb9   : > { %v4925_v60 = vmul.f32 %v9736_v3, %v9736_v3 }
 0xcba   : > { %4945 = vadd.xlane.f32.xlu0 %v4927_v40 }
 0xcbb   : > { %4941 = vadd.xlane.f32.xlu1 %v4925_v60  ;;  %v4872_v37 = vpop.xlane.xlu2 %4871  ;;  %v4868_v58 = vpop.xlane.xlu1 %4867 }
 0xcbc   : > { %v4898_v46 = vmul.f32 %v4872_v37, %v7544_v32  ;;  %v4896_v19 = vmul.f32 %v4868_v58, %v7544_v32  ;;  %v4864_v11 = vpop.xlane.xlu0 %4863 }
 0xcbd   : > { %v4894_v5 = vmul.f32 %v4864_v11, %v7544_v32 }
 0xcbe   : > { %v9746_v16 = vsub.f32 %v9656_v51, %v4898_v46  ;;  %v9749_v4 = vsub.f32 %v9644_v12, %v4896_v19 }
 0xcbf   : > { %v9752_v42 = vsub.f32 %v9623_v38, %v4894_v5 }
 0xcc0   : > { %v4930_v63 = vmul.f32 %v9746_v16, %v9746_v16  ;;  %v4928_v41 = vmul.f32 %v9749_v4, %v9749_v4 }
 0xcc1   : > { %v4926_v48 = vmul.f32 %v9752_v42, %v9752_v42 }
 0xcc2   : > { %4951 = vadd.xlane.f32.xlu0 %v4930_v63 }
 0xcc3   : > { %4947 = vadd.xlane.f32.xlu1 %v4928_v41  ;;  %4943 = vadd.xlane.f32.xlu2 %v4926_v48  ;;  %v4878_v51 = vpop.xlane.xlu2 %4877  ;;  %v4876_v12 = vpop.xlane.xlu1 %4875 }
 0xcc4   : > { %v4901_v18 = vmul.f32 %v4878_v51, %v7544_v32  ;;  %v4874_v38 = vpop.xlane.xlu0 %4873  ;;  %v4900_v29 = vmul.f32 %v4876_v12, %v7544_v32 }
 0xcc5   : > { %v4899_v52 = vmul.f32 %v4874_v38, %v7544_v32 }
 0xcc6   : > { %v9767_v24 = vsub.f32 %v9675_v43, %v4901_v18  ;;  %v9780_v43 = vsub.f32 %v9670_v7, %v4900_v29 }
 0xcc7   : > { %v9770_v39 = vsub.f32 %v9665_v9, %v4899_v52 }
 0xcc8   : > { %v4933_v61 = vmul.f32 %v9767_v24, %v9767_v24  ;;  %v4932_v27 = vmul.f32 %v9780_v43, %v9780_v43 }
 0xcc9   : > { %v4931_v17 = vmul.f32 %v9770_v39, %v9770_v39 }
 0xcca   : > { %4957 = vadd.xlane.f32.xlu0 %v4933_v61 }
 0xccb   : > { %4949 = vadd.xlane.f32.xlu2 %v4929_v56  ;;  %4953 = vadd.xlane.f32.xlu1 %v4931_v17  ;;  %v4884_v2 = vpop.xlane.xlu2 %4883  ;;  %v4882_v9 = vpop.xlane.xlu1 %4881 }
 0xccc   : > { %v4904_v47 = vmul.f32 %v4884_v2, %v7544_v32  ;;  %v4880_v59 = vpop.xlane.xlu0 %4879  ;;  %v4903_v50 = vmul.f32 %v4882_v9, %v7544_v32 }
 0xccd   : > { %v4902_v57 = vmul.f32 %v4880_v59, %v7544_v32 }
 0xcce   : > { %v9785_v8 = vsub.f32 %v9690_v20, %v4904_v47  ;;  %v9798_v20 = vsub.f32 %v9685_v35, %v4903_v50 }
 0xccf   : > { %v9788_v45 = vsub.f32 %v9680_v36, %v4902_v57 }
 0xcd0   : > { %v4936_v7 = vmul.f32 %v9785_v8, %v9785_v8  ;;  %v4935_v14 = vmul.f32 %v9798_v20, %v9798_v20 }
 0xcd1   : > { %v4934_v6 = vmul.f32 %v9788_v45, %v9788_v45 }
 0xcd2   : > { %4963 = vadd.xlane.f32.xlu0 %v4936_v7 }
 0xcd3   : > { %4955 = vadd.xlane.f32.xlu2 %v4932_v27  ;;  %4959 = vadd.xlane.f32.xlu1 %v4934_v6  ;;  %v4890_v22 = vpop.xlane.xlu2 %4889  ;;  %v4888_v1 = vpop.xlane.xlu1 %4887 }
 0xcd4   : > { %v4907_v36 = vmul.f32 %v4890_v22, %v7544_v32  ;;  %v4886_v49 = vpop.xlane.xlu0 %4885  ;;  %v4906_v25 = vmul.f32 %v4888_v1, %v7544_v32 }
 0xcd5   : > { %v4905_v62 = vmul.f32 %v4886_v49, %v7544_v32 }
 0xcd6   : > { %v9803_v54 = vsub.f32 %v9705_v33, %v4907_v36  ;;  %v9816_v33 = vsub.f32 %v9700_v21, %v4906_v25 }
 0xcd7   : > { %v9806_v0 = vsub.f32 %v9695_v30, %v4905_v62  ;;  %v9856_v62 = vld [vmem:[%s10230_s0] ss:$0 sm:$0xff] }
 0xcd8   : > { %v4939_v35 = vmul.f32 %v9803_v54, %v9803_v54  ;;  %v4938_v23 = vmul.f32 %v9816_v33, %v9816_v33 }
 0xcd9   : > { %v4937_v31 = vmul.f32 %v9806_v0, %v9806_v0 }
 0xcda   : > { %4969 = vadd.xlane.f32.xlu0 %v4939_v35 }
 0xcdb   : > { %4961 = vadd.xlane.f32.xlu2 %v4935_v14  ;;  %4965 = vadd.xlane.f32.xlu1 %v4937_v31 }
 0xcdc   : > { %v4892_v44 = vpop.xlane.xlu0 %4891 }
 0xcdd   : > { %v4908_v30 = vmul.f32 %v4892_v44, %v7544_v32 }
 0xcdf   : > { %v9820_v10 = vsub.f32 %v9710_v34, %v4908_v30 }
 0xce1   : > { %v4940_v28 = vmul.f32 %v9820_v10, %v9820_v10 }
 0xce3   : > { %4967 = vadd.xlane.f32.xlu2 %v4938_v23  ;;  %4971 = vadd.xlane.f32.xlu1 %v4940_v28  ;;  %v9871_v28 = vld [vmem:[%s10231_s15] ss:$0 sm:$0xff] }
 0xd2d   : > { %v4946_v13 = vpop.xlane.xlu0 %4945 }
 0xd2e   : > { %v4942_v53 = vpop.xlane.xlu1 %4941  ;;  %v4975_v40 = vmul.f32 %v4946_v13, %v7544_v32 }
 0xd2f   : > { %v4973_v21 = vmul.f32 %v4942_v53, %v7544_v32 }
 0xd30   : > { %v4991_v60 = vadd.f32 1e-05, %v4975_v40 }
 0xd31   : > { %v4989_v37 = vadd.f32 1e-05, %v4973_v21 }
 0xd32   : > { %6579 = vrsqrt.f32 %v4991_v60  ;;  %vm5031_vm4 = vweird.f32 %v4991_v60 }
 0xd33   : > { %6581 = vrsqrt.f32 %v4989_v37  ;;  %vm5011_vm5 = vweird.f32 %v4989_v37 }
 0xd35   : > { %v4952_v34 = vpop.xlane.xlu0 %4951 }
 0xd36   : > { %v4948_v58 = vpop.xlane.xlu1 %4947  ;;  %v4944_v46 = vpop.xlane.xlu2 %4943  ;;  %v4978_v19 = vmul.f32 %v4952_v34, %v7544_v32 }
 0xd37   : > { %v4976_v11 = vmul.f32 %v4948_v58, %v7544_v32  ;;  %v4974_v5 = vmul.f32 %v4944_v46, %v7544_v32 }
 0xd38   : > { %v6580_v63 = vpop.eup %6579  ;;  %v9831_v41 = vadd.f32 1e-05, %v4978_v19 }
 0xd39   : > { %v6582_v15 = vpop.eup %6581  ;;  %v5026_v48 = vmul.f32 %v6580_v63, %v4991_v60  ;;  %v9833_v51 = vadd.f32 1e-05, %v4976_v11  ;;  %v9835_v12 = vadd.f32 1e-05, %v4974_v5  ;;  %vm5032_vm2 = vweird.f32 %v6580_v63 }
 0xd3a   : > { %v5006_v18 = vmul.f32 %v6582_v15, %v4989_v37  ;;  %6583 = vrsqrt.f32 %v9831_v41  ;;  %vm5012_vm3 = vweird.f32 %v6582_v15  ;;  %vm5033_vm6 = vmor %vm5031_vm4, %vm5032_vm2  ;;  %vm5061_vm8 = vweird.f32 %v9831_v41 }
 0xd3b   : > { %v5027_v38 = vmul.f32 %v6580_v63, %v5026_v48  ;;  %6585 = vrsqrt.f32 %v9833_v51  ;;  %vm5013_vm7 = vmor %vm5011_vm5, %vm5012_vm3  ;;  %vm5041_vm12 = vweird.f32 %v9833_v51  ;;  %vm5021_vm13 = vweird.f32 %v9835_v12 }
 0xd3c   : > { %v5007_v52 = vmul.f32 %v6582_v15, %v5006_v18  ;;  %6587 = vrsqrt.f32 %v9835_v12 }
 0xd3d   : > { %v5028_v29 = vmul.f32 0.5, %v5027_v38  ;;  %v4958_v61 = vpop.xlane.xlu0 %4957 }
 0xd3e   : > { %v5008_v56 = vmul.f32 0.5, %v5007_v52  ;;  %v4950_v17 = vpop.xlane.xlu2 %4949  ;;  %v4954_v2 = vpop.xlane.xlu1 %4953  ;;  %v4981_v57 = vmul.f32 %v4958_v61, %v7544_v32 }
 0xd3f   : > { %v5029_v9 = vsub.f32 1.5, %v5028_v29  ;;  %v4977_v47 = vmul.f32 %v4950_v17, %v7544_v32  ;;  %v4979_v59 = vmul.f32 %v4954_v2, %v7544_v32 }
 0xd40   : > { %v9843_v27 = vpop.eup %6583  ;;  %v5009_v50 = vsub.f32 1.5, %v5008_v56  ;;  %v9866_v30 = vadd.f32 1e-05, %v4981_v57 }
 0xd41   : > { %v9845_v7 = vpop.eup %6585  ;;  %v5030_v6 = vmul.f32 %v6580_v63, %v5029_v9  ;;  %v5056_v22 = vmul.f32 %v9843_v27, %v9831_v41  ;;  %v9849_v36 = vadd.f32 1e-05, %v4977_v47  ;;  %v9861_v25 = vadd.f32 1e-05, %v4979_v59 }
 0xd42   : > { %v9851_v49 = vpop.eup %6587  ;;  %v5010_v1 = vmul.f32 %v6582_v15, %v5009_v50  ;;  %v5036_v14 = vmul.f32 %v9845_v7, %v9833_v51  ;;  %vm5062_vm9 = vweird.f32 %v9843_v27  ;;  %vm5042_vm10 = vweird.f32 %v9845_v7 }
 0xd43   : > { %v5034_v35 = vsel %vm5033_vm6, %v6580_v63, %v5030_v6  ;;  %v5016_v31 = vmul.f32 %v9851_v49, %v9835_v12  ;;  %v5057_v44 = vmul.f32 %v9843_v27, %v5056_v22  ;;  %6589 = vrsqrt.f32 %v9849_v36  ;;  %vm5063_vm14 = vmor %vm5061_vm8, %vm5062_vm9 }
 0xd44   : > { %v5014_v23 = vsel %vm5013_vm7, %v6582_v15, %v5010_v1  ;;  %v5167_v13 = vmul.f32 %v5034_v35, %v9733_v26  ;;  %v5037_v53 = vmul.f32 %v9845_v7, %v5036_v14  ;;  %6591 = vrsqrt.f32 %v9861_v25  ;;  %vm5043_vm15 = vmor %vm5041_vm12, %vm5042_vm10 }
 0xd45   : > { %v5165_v40 = vmul.f32 %v5014_v23, %v9736_v3  ;;  %v5017_v21 = vmul.f32 %v9851_v49, %v5016_v31  ;;  %v5058_v60 = vmul.f32 0.5, %v5057_v44  ;;  %6593 = vrsqrt.f32 %v9866_v30  ;;  %v4964_v38 = vpop.xlane.xlu0 %4963 }
 0xd46   : > { %v5186_v37 = vmul.f32 %v9856_v62, %v5167_v13  ;;  %v5038_v34 = vmul.f32 0.5, %v5037_v53  ;;  %v4956_v58 = vpop.xlane.xlu2 %4955  ;;  %v4960_v63 = vpop.xlane.xlu1 %4959  ;;  %vm5022_vm11 = vweird.f32 %v9851_v49  ;;  %vm5051_vm0 = vweird.f32 %v9849_v36 }
 0xd47   : > { %v5184_v26 = vmul.f32 %v9856_v62, %v5165_v40  ;;  %v5018_v46 = vmul.f32 0.5, %v5017_v21  ;;  %v5059_v19 = vsub.f32 1.5, %v5058_v60  ;;  %v4980_v5 = vmul.f32 %v4956_v58, %v7544_v32  ;;  %vm5023_vm1 = vmor %vm5021_vm13, %vm5022_vm11 }
 0xd48   : > { %v5205_v3 = vadd.f32 %v9871_v28, %v5186_v37  ;;  %v5039_v11 = vsub.f32 1.5, %v5038_v34  ;;  %v4982_v12 = vmul.f32 %v4960_v63, %v7544_v32  ;;  %v4984_v47 = vmul.f32 %v4964_v38, %v7544_v32 }
 0xd49   : > { %v5203_v15 = vadd.f32 %v9871_v28, %v5184_v26  ;;  %v5019_v48 = vsub.f32 1.5, %v5018_v46  ;;  %v5060_v18 = vmul.f32 %v9843_v27, %v5059_v19  ;;  %v9890_v52 = vpop.eup %6589  ;;  %v9900_v61 = vadd.f32 1e-05, %v4980_v5 }
 0xd4a   : > { %5221 = vst [vmem:[%s7522_s17 + $0x10] sm:$0xff] %v5205_v3  ;;  %v5040_v29 = vmul.f32 %v9845_v7, %v5039_v11  ;;  %v5046_v51 = vmul.f32 %v9890_v52, %v9849_v36  ;;  %v9911_v2 = vpop.eup %6591  ;;  %vm5071_vm2 = vweird.f32 %v9861_v25  ;;  %vm5052_vm3 = vweird.f32 %v9890_v52 }
 0xd4b   : > { %5219 = vst [vmem:[%s7522_s17] sm:$0xff] %v5203_v15  ;;  %v5020_v56 = vmul.f32 %v9851_v49, %v5019_v48  ;;  %v5064_v17 = vsel %vm5063_vm14, %v9843_v27, %v5060_v18  ;;  %6595 = vrsqrt.f32 %v9900_v61  ;;  %v6594_v59 = vpop.eup %6593  ;;  %v5066_v6 = vmul.f32 %v9911_v2, %v9861_v25  ;;  %vm5053_vm6 = vmor %vm5051_vm0, %vm5052_vm3 }
 0xd4c   : > { %v5044_v41 = vsel %vm5043_vm15, %v9845_v7, %v5040_v29  ;;  %v5170_v9 = vmul.f32 %v5064_v17, %v9746_v16  ;;  %v5047_v50 = vmul.f32 %v9890_v52, %v5046_v51  ;;  %v5086_v16 = vmul.f32 %v6594_v59, %v9866_v30 }
 0xd4d   : > { %v5168_v57 = vmul.f32 %v5044_v41, %v9749_v4  ;;  %v5024_v27 = vsel %vm5023_vm1, %v9851_v49, %v5020_v56  ;;  %v5067_v49 = vmul.f32 %v9911_v2, %v5066_v6  ;;  %v9933_v44 = vadd.f32 1e-05, %v4982_v12  ;;  %v4970_v11 = vpop.xlane.xlu0 %4969 }
 0xd4e   : > { %v5166_v7 = vmul.f32 %v5024_v27, %v9752_v42  ;;  %v5189_v22 = vmul.f32 %v9856_v62, %v5170_v9  ;;  %v4962_v1 = vpop.xlane.xlu2 %4961  ;;  %v5048_v4 = vmul.f32 0.5, %v5047_v50  ;;  %v5087_v31 = vmul.f32 %v6594_v59, %v5086_v16  ;;  %v4966_v34 = vpop.xlane.xlu1 %4965 }
 0xd4f   : > { %v5187_v14 = vmul.f32 %v9856_v62, %v5168_v57  ;;  %v5068_v53 = vmul.f32 0.5, %v5067_v49  ;;  %v9936_v40 = vadd.f32 1e-05, %v4984_v47  ;;  %vm5091_vm4 = vweird.f32 %v9866_v30 }
 0xd50   : > { %v5185_v35 = vmul.f32 %v9856_v62, %v5166_v7  ;;  %v5208_v42 = vadd.f32 %v9871_v28, %v5189_v22  ;;  %v5049_v13 = vsub.f32 1.5, %v5048_v4  ;;  %v5088_v37 = vmul.f32 0.5, %v5087_v31 }
 0xd51   : > { %v5206_v23 = vadd.f32 %v9871_v28, %v5187_v14  ;;  %v9938_v21 = vpop.eup %6595  ;;  %6597 = vrsqrt.f32 %v9933_v44  ;;  %v5069_v26 = vsub.f32 1.5, %v5068_v53  ;;  %vm5072_vm5 = vweird.f32 %v9911_v2 }
 0xd52   : > { %v5204_v60 = vadd.f32 %v9871_v28, %v5185_v35  ;;  %5224 = vst [vmem:[%s7522_s17 + $0x28] sm:$0xff] %v5208_v42  ;;  %v5050_v58 = vmul.f32 %v9890_v52, %v5049_v13  ;;  %v5076_v46 = vmul.f32 %v9938_v21, %v9900_v61  ;;  %v5089_v19 = vsub.f32 1.5, %v5088_v37  ;;  %vm5073_vm8 = vmor %vm5071_vm2, %vm5072_vm5 }
 0xd53   : > { %5222 = vst [vmem:[%s7522_s17 + $0x18] sm:$0xff] %v5206_v23  ;;  %vm5092_vm7 = vweird.f32 %v6594_v59  ;;  %6599 = vrsqrt.f32 %v9936_v40  ;;  %v4983_v3 = vmul.f32 %v4962_v1, %v7544_v32  ;;  %v5070_v63 = vmul.f32 %v9911_v2, %v5069_v26 }
 0xd54   : > { %5220 = vst [vmem:[%s7522_s17 + $0x8] sm:$0xff] %v5204_v60  ;;  %v5054_v5 = vsel %vm5053_vm6, %v9890_v52, %v5050_v58  ;;  %v5077_v15 = vmul.f32 %v9938_v21, %v5076_v46  ;;  %v4985_v48 = vmul.f32 %v4966_v34, %v7544_v32  ;;  %v5090_v36 = vmul.f32 %v6594_v59, %v5089_v19  ;;  %vm5093_vm10 = vmor %vm5091_vm4, %vm5092_vm7 }
 0xd55   : > { %v5169_v18 = vmul.f32 %v5054_v5, %v9763_v55  ;;  %vm5081_vm9 = vweird.f32 %v9900_v61  ;;  %v9964_v38 = vadd.f32 1e-05, %v4983_v3  ;;  %v5074_v29 = vsel %vm5073_vm8, %v9911_v2, %v5070_v63 }
 0xd56   : > { %v5078_v52 = vmul.f32 0.5, %v5077_v15  ;;  %v9969_v56 = vadd.f32 1e-05, %v4985_v48  ;;  %v4987_v17 = vmul.f32 %v4970_v11, %v7544_v32  ;;  %v4968_v51 = vpop.xlane.xlu2 %4967  ;;  %v5171_v12 = vmul.f32 %v5074_v29, %v9770_v39  ;;  %v4972_v49 = vpop.xlane.xlu1 %4971 }
 0xd57   : > { %v6598_v55 = vpop.eup %6597  ;;  %v5188_v25 = vmul.f32 %v9856_v62, %v5169_v18  ;;  %v5094_v41 = vsel %vm5093_vm10, %v6594_v59, %v5090_v36  ;;  %6601 = vrsqrt.f32 %v9964_v38  ;;  %vm5082_vm11 = vweird.f32 %v9938_v21 }
 0xd58   : > { %v5173_v2 = vmul.f32 %v5094_v41, %v9767_v24  ;;  %v5079_v9 = vsub.f32 1.5, %v5078_v52  ;;  %v5096_v30 = vmul.f32 %v6598_v55, %v9933_v44  ;;  %v5190_v27 = vmul.f32 %v9856_v62, %v5171_v12  ;;  %vm5083_vm12 = vmor %vm5081_vm9, %vm5082_vm11 }
 0xd59   : > { %v6600_v47 = vpop.eup %6599  ;;  %v5207_v57 = vadd.f32 %v9871_v28, %v5188_v25  ;;  %6603 = vrsqrt.f32 %v9969_v56  ;;  %v4986_v39 = vmul.f32 %v4968_v51, %v7544_v32  ;;  %vm5101_vm13 = vweird.f32 %v9933_v44 }
 0xd5a   : > { %v5192_v59 = vmul.f32 %v9856_v62, %v5173_v2  ;;  %v5080_v50 = vmul.f32 %v9938_v21, %v5079_v9  ;;  %v5097_v24 = vmul.f32 %v6598_v55, %v5096_v30  ;;  %v5116_v6 = vmul.f32 %v6600_v47, %v9936_v40 }
 0xd5b   : > { %5223 = vst [vmem:[%s7522_s17 + $0x20] sm:$0xff] %v5207_v57  ;;  %v5209_v7 = vadd.f32 %v9871_v28, %v5190_v27  ;;  %v9990_v22 = vadd.f32 1e-05, %v4987_v17  ;;  %vm5121_vm14 = vweird.f32 %v9936_v40  ;;  %v9998_v61 = vadd.f32 1e-05, %v4986_v39 }
 0xd5c   : > { %v5211_v16 = vadd.f32 %v9871_v28, %v5192_v59  ;;  %v5084_v1 = vsel %vm5083_vm12, %v9938_v21, %v5080_v50  ;;  %v5098_v14 = vmul.f32 0.5, %v5097_v24  ;;  %v5117_v4 = vmul.f32 %v6600_v47, %v5116_v6 }
 0xd5d   : > { %v6602_v35 = vpop.eup %6601  ;;  %5225 = vst [vmem:[%s7522_s17 + $0x30] sm:$0xff] %v5209_v7  ;;  %v5172_v42 = vmul.f32 %v5084_v1, %v9780_v43  ;;  %6605 = vrsqrt.f32 %v9990_v22  ;;  %vm5102_vm15 = vweird.f32 %v6598_v55  ;;  %vm5122_vm0 = vweird.f32 %v6600_v47 }
 0xd5e   : > { %5227 = vst [vmem:[%s7522_s17 + $0x40] sm:$0xff] %v5211_v16  ;;  %v5099_v31 = vsub.f32 1.5, %v5098_v14  ;;  %v5118_v23 = vmul.f32 0.5, %v5117_v4  ;;  %v5106_v13 = vmul.f32 %v6602_v35, %v9964_v38  ;;  %6607 = vrsqrt.f32 %v9998_v61  ;;  %vm5103_vm1 = vmor %vm5101_vm13, %vm5102_vm15 }
 0xd5f   : > { %v6604_v53 = vpop.eup %6603  ;;  %v5191_v21 = vmul.f32 %v9856_v62, %v5172_v42  ;;  %v4988_v43 = vmul.f32 %v4972_v49, %v7544_v32  ;;  %vm5123_vm2 = vmor %vm5121_vm14, %vm5122_vm0  ;;  %vm5112_vm3 = vweird.f32 %v6602_v35  ;;  %vm5111_vm4 = vweird.f32 %v9964_v38 }
 0xd60   : > { %v5100_v60 = vmul.f32 %v6598_v55, %v5099_v31  ;;  %v5119_v37 = vsub.f32 1.5, %v5118_v23  ;;  %v5107_v34 = vmul.f32 %v6602_v35, %v5106_v13  ;;  %v5126_v58 = vmul.f32 %v6604_v53, %v9969_v56  ;;  %vm5113_vm6 = vmor %vm5111_vm4, %vm5112_vm3 }
 0xd61   : > { %v5210_v26 = vadd.f32 %v9871_v28, %v5191_v21  ;;  %v10009_v46 = vadd.f32 1e-05, %v4988_v43  ;;  %vm5132_vm5 = vweird.f32 %v6604_v53  ;;  %vm5131_vm7 = vweird.f32 %v9969_v56 }
 0xd62   : > { %v5104_v19 = vsel %vm5103_vm1, %v6598_v55, %v5100_v60  ;;  %v5120_v3 = vmul.f32 %v6600_v47, %v5119_v37  ;;  %v5108_v11 = vmul.f32 0.5, %v5107_v34  ;;  %v5127_v5 = vmul.f32 %v6604_v53, %v5126_v58  ;;  %vm5133_vm8 = vmor %vm5131_vm7, %vm5132_vm5 }
 0xd63   : > { %v6606_v63 = vpop.eup %6605  ;;  %5226 = vst [vmem:[%s7522_s17 + $0x38] sm:$0xff] %v5210_v26  ;;  %v5174_v32 = vmul.f32 %v5104_v19, %v9788_v45  ;;  %6609 = vrsqrt.f32 %v10009_v46  ;;  %vm5151_vm9 = vweird.f32 %v9990_v22  ;;  %vm5141_vm13 = vweird.f32 %v9998_v61 }
 0xd64   : > { %v5124_v15 = vsel %vm5123_vm2, %v6600_v47, %v5120_v3  ;;  %v5109_v44 = vsub.f32 1.5, %v5108_v11  ;;  %v5128_v48 = vmul.f32 0.5, %v5127_v5  ;;  %v5146_v18 = vmul.f32 %v6606_v63, %v9990_v22  ;;  %v6608_v36 = vpop.eup %6607 }
 0xd65   : > { %v5193_v29 = vmul.f32 %v9856_v62, %v5174_v32  ;;  %v5176_v52 = vmul.f32 %v5124_v15, %v9785_v8  ;;  %v5136_v51 = vmul.f32 %v6608_v36, %v9998_v61  ;;  %vm5152_vm10 = vweird.f32 %v6606_v63 }
 0xd66   : > { %v5110_v45 = vmul.f32 %v6602_v35, %v5109_v44  ;;  %v5129_v40 = vsub.f32 1.5, %v5128_v48  ;;  %v5147_v17 = vmul.f32 %v6606_v63, %v5146_v18  ;;  %vm5142_vm11 = vweird.f32 %v6608_v36  ;;  %vm5153_vm12 = vmor %vm5151_vm9, %vm5152_vm10 }
 0xd67   : > { %v5212_v55 = vadd.f32 %v9871_v28, %v5193_v29  ;;  %v5195_v25 = vmul.f32 %v9856_v62, %v5176_v52  ;;  %v5137_v2 = vmul.f32 %v6608_v36, %v5136_v51  ;;  %vm5143_vm14 = vmor %vm5141_vm13, %vm5142_vm11  ;;  %vm5161_vm0 = vweird.f32 %v10009_v46 }
 0xd68   : > { %v5114_v12 = vsel %vm5113_vm6, %v6602_v35, %v5110_v45  ;;  %v5130_v8 = vmul.f32 %v6604_v53, %v5129_v40  ;;  %v5148_v41 = vmul.f32 0.5, %v5147_v17 }
 0xd69   : > { %v6610_v38 = vpop.eup %6609  ;;  %5228 = vst [vmem:[%s7522_s17 + $0x48] sm:$0xff] %v5212_v55  ;;  %v5214_v9 = vadd.f32 %v9871_v28, %v5195_v25  ;;  %v5175_v30 = vmul.f32 %v5114_v12, %v9798_v20  ;;  %v5138_v27 = vmul.f32 0.5, %v5137_v2 }
 0xd6a   : > { %v5134_v47 = vsel %vm5133_vm8, %v6604_v53, %v5130_v8  ;;  %v5149_v57 = vsub.f32 1.5, %v5148_v41  ;;  %v5156_v56 = vmul.f32 %v6610_v38, %v10009_v46  ;;  %vm5162_vm15 = vweird.f32 %v6610_v38 }
 0xd6b   : > { %5230 = vst [vmem:[%s7522_s17 + $0x58] sm:$0xff] %v5214_v9  ;;  %v5194_v39 = vmul.f32 %v9856_v62, %v5175_v30  ;;  %v5177_v59 = vmul.f32 %v5134_v47, %v9806_v0  ;;  %v5139_v24 = vsub.f32 1.5, %v5138_v27  ;;  %vm5163_vm1 = vmor %vm5161_vm0, %vm5162_vm15 }
 0xd6c   : > { %v5150_v50 = vmul.f32 %v6606_v63, %v5149_v57  ;;  %v5157_v20 = vmul.f32 %v6610_v38, %v5156_v56 }
 0xd6d   : > { %v5213_v6 = vadd.f32 %v9871_v28, %v5194_v39  ;;  %v5196_v7 = vmul.f32 %v9856_v62, %v5177_v59  ;;  %v5140_v1 = vmul.f32 %v6608_v36, %v5139_v24 }
 0xd6e   : > { %v5154_v16 = vsel %vm5153_vm12, %v6606_v63, %v5150_v50  ;;  %v5158_v14 = vmul.f32 0.5, %v5157_v20 }
 0xd6f   : > { %5229 = vst [vmem:[%s7522_s17 + $0x50] sm:$0xff] %v5213_v6  ;;  %v5215_v0 = vadd.f32 %v9871_v28, %v5196_v7  ;;  %v5179_v4 = vmul.f32 %v5154_v16, %v9803_v54  ;;  %v5144_v49 = vsel %vm5143_vm14, %v6608_v36, %v5140_v1 }
 0xd70   : > { %v5159_v35 = vsub.f32 1.5, %v5158_v14  ;;  %v5178_v42 = vmul.f32 %v5144_v49, %v9816_v33 }
 0xd71   : > { %5231 = vst [vmem:[%s7522_s17 + $0x60] sm:$0xff] %v5215_v0  ;;  %v5198_v22 = vmul.f32 %v9856_v62, %v5179_v4 }
 0xd72   : > { %v5160_v31 = vmul.f32 %v6610_v38, %v5159_v35  ;;  %v5197_v23 = vmul.f32 %v9856_v62, %v5178_v42 }
 0xd73   : > { %v5217_v61 = vadd.f32 %v9871_v28, %v5198_v22 }
 0xd74   : > { %v5164_v54 = vsel %vm5163_vm1, %v6610_v38, %v5160_v31  ;;  %v5216_v13 = vadd.f32 %v9871_v28, %v5197_v23 }
 0xd75   : > { %5233 = vst [vmem:[%s7522_s17 + $0x70] sm:$0xff] %v5217_v61  ;;  %v5180_v53 = vmul.f32 %v5164_v54, %v9820_v10 }
 0xd76   : > { %5232 = vst [vmem:[%s7522_s17 + $0x68] sm:$0xff] %v5216_v13 }
 0xd77   : > { %v5199_v21 = vmul.f32 %v9856_v62, %v5180_v53 }
 0xd79   : > { %v5218_v43 = vadd.f32 %v9871_v28, %v5199_v21 }
 0xd7b   : > { %5234 = vst [vmem:[%s7522_s17 + $0x78] sm:$0xff] %v5218_v43 }
 0xd7c PF: > { %s10232_s7 = sld [smem:[#allocation31_spill]]  ;;  %s5248_s25 = sshll.u32 %s7522_s17, 4  ;;  %s5249_s25 = int_to_ptr.vmem [resolvable:$true] %s5248_s25 }
 0xd7d   : > { %s10234_s16 = sld [smem:[#allocation55_spill]]  ;;  %s5236_s13 = scalar_lea.sflag [#allocation5], %s7453_s5 }
 0xd82   : > { %s5982_s3 = sshll.u32 %s10232_s7, 7 }
 0xd83   : > { %s5247_s23 = scalar_lea.hbm %s10234_s16, %s5982_s3  ;;  %s6961_s1 = scalar_lea.hbm %s10234_s16, 256 }
 0xd84   : > { %s5250_s27 = sshll.u32 %s5247_s23, 4  ;;  %s5251_s27 = int_to_ptr.hbm [resolvable:$true] %s5250_s27 }
 0xd85   : > { %s6955_s2 = sshra.s32 %s5251_s27, 4  ;;  %s6956_s2 = int_to_ptr.hbm [resolvable:$true] %s6955_s2 }
 0xd86   : > { %s6957_s4 = scalar_lea.hbm %s6956_s2, 128  ;;  %p6962_p6 = scmp.lt.s32.totalorder %s6956_s2, %s10234_s16 }
 0xd87   : > { %p6958_p11 = scmp.ne.s32.totalorder %s6956_s2, %s6957_s4  ;;  %p6963_p0 = scmp.lt.s32.totalorder %s6961_s1, %s6957_s4 }
 0xd89   : > { %p6959_p12 = pnand %p6958_p11, %p7371_p13  ;;  %p6964_p7 = por %p6963_p0, %p6962_p6 }
 0xd8b   : > { %p6960_p4 = pneg %p6959_p12 }
 0xd8d   : > { %p6965_p9 = pnand %p6964_p7, %p6960_p4 }
 0xd8f   : > { %6968 = shalt.err (!%p6965_p9)
}
 0xd90   : > { %s7093_s5 = smov 128   ;;  %s7094_s17 = smov 8  }
 0xd91   : > { %6029 = dma.vmem_to_hbm [thread:$0]  (%p7371_p13), %s5249_s25, 2048, %s5251_s27, %s5236_s13, %s7093_s5, %s7093_s5, %s7094_s17  }
 0xd92 PF: > { %p6070_p10 = scmp.ge.s32.totalorder %s7083_s28, 2  ;;  %s5265_s6 = sand.u32 1, %s7055_s21  }
 0xd93   : > { %s5266_s0 = scalar_lea.sflag [#allocation5], %s5265_s6 }
 0xd94   : > { %p6066_p1 = pnand %p6070_p10, %p7387_p2 }
 0xd96   : > { %p6067_p3 = pneg %p6066_p1 }
 0xd98   : > { %7038 = dma.done.wait (%p6067_p3), %s5266_s0, 2048  }
 0xd99   : > { %7040 = vsyncadd (%p6067_p3), %s5266_s0, 4294965248  ;;  %s46_s28 = sadd.s32 1, %s7083_s28   ;;  %s10235_s9 = sld [smem:[#allocation37_spill]] }
 0xd9a   : > { %p43_p5 = scmp.ge.s32.totalorder %s46_s28, 6   ;;  %s10236_s15 = sld [smem:[#allocation29_spill]] }
 0xd9b   : > { %s10237_s23 = sld [smem:[#allocation38_spill]]  ;;  %s10241_s18 = smov %s7047_s19 }
 0xd9c   : > { %s10238_s25 = sld [smem:[#allocation32_spill]]  ;;  %s10242_s19 = smov %s7051_s20 }
 0xd9d   : > { %s10239_s7 = sld [smem:[#allocation34_spill]]  ;;  %s10244_s21 = smov %s7059_s22 }
 0xd9e   : > { %s10240_s27 = sld [smem:[#allocation35_spill]]  ;;  %s10246_s24 = smov %s7075_s26 }
 0xd9f   : > { %s10243_s20 = smov %s10235_s9  ;;  %45 = sbr.rel (!%p43_p5) target bundleno = 36 (0x24), region = 259 }
 0xda0   : > { %s10245_s22 = smov %s10236_s15 }
 0xda3   : > { %s10247_s26 = smov %s10239_s7 }
 0xda4   :  { %5272 = vsyncpa [#allocation4], 1 }
 0xda5   :  { %5274 = vsyncpa [#allocation4 + $0x1], 1 }
 0xda6   :  { %5275 = vsyncpa [#allocation7], 1 }
 0xda7   :  { %5277 = vsyncpa [#allocation7 + $0x1], 1 }
 0xda8   :  { %5278 = vsyncpa [#allocation10], 1 }
 0xda9   :  { %5280 = vsyncpa [#allocation10 + $0x1], 1 }
 0xdaa   :  { %5281 = vsyncpa [#allocation13], 1 }
 0xdab   :  { %5283 = vsyncpa [#allocation13 + $0x1], 1 }
 0xdac   :  { %5284 = vsyncpa [#allocation16], 1 }
 0xdad   :  { %5286 = vsyncpa [#allocation16 + $0x1], 1 }
 0xdae   :  { %5287 = vsyncpa [#allocation19], 1 }
 0xdaf   :  { %5289 = vsyncpa [#allocation19 + $0x1], 1 }
 0xdb0   :  { %5290 = vsyncpa [#allocation5], 1 }
 0xdb1   :  { %5292 = vsyncpa [#allocation5 + $0x1], 1 }

</bundles_post_ra>
